<compile_context>
chip_gen: v6e
topology: v6e:2x2x1
jax: 0.10.0
libtpu: 0.0.40
codegen_flags: <defaults>
</compile_context>

<pallas_src>
import functools

import jax
import jax.numpy as jnp
import numpy as np
from jax import lax
from jax.experimental import pallas as pl
from jax.experimental.pallas import tpu as pltpu


_VMEM_BLOCK_BUDGET = 34 * 1024 * 1024   # bytes accounted for resident kernel blocks
_VMEM_LIMIT_BYTES = 48 * 1024 * 1024    # explicit scoped-VMEM limit (< v7x 64 MiB phys)


def _round_up(v, m):
    return -(-v // m) * m


def _act(x, kind):
    if kind == "leaky":                  # nn.LeakyReLU(0.2)
        return jnp.where(x > 0, x, 0.2 * x)
    if kind == "relu":                   # nn.ReLU
        return jnp.maximum(x, 0.0)
    return x


# ---------------------------------------------------------------------------
# Fused conv-as-matmul Pallas kernel:
#   out[p] = post_act( BN( sum_k cols[p] @ w[p] + bias ) )
# cols/w carry a leading "phase" dim (1 for Conv2d, 4 for ConvTranspose2d).
# Grid = (P or 1, M tiles, K tiles); K is reduced with an f32 VMEM accumulator
# (only allocated when nk > 1).
# ---------------------------------------------------------------------------
def _conv_mm_kernel(*refs, nk, has_bias, has_bn, m_valid, post_act, bn_eps, use_acc):
    idx = 2
    x_ref, w_ref = refs[0], refs[1]
    b_ref = refs[idx] if has_bias else None
    idx += 1 if has_bias else 0
    g_ref = refs[idx] if has_bn else None
    be_ref = refs[idx + 1] if has_bn else None
    idx += 2 if has_bn else 0
    o_ref = refs[idx]
    acc_ref = refs[idx + 1] if use_acc else None

    k = pl.program_id(2)

    if use_acc:
        @pl.when(k == 0)
        def _init():
            acc_ref[...] = jnp.zeros_like(acc_ref)

    # bf16 x bf16 -> f32 accumulation on the MXU.
    part = jnp.einsum("pmk,pkn->pmn", x_ref[...], w_ref[...],
                      preferred_element_type=jnp.float32)
    if use_acc:
        acc_ref[...] += part

    def _epilogue():
        y = acc_ref[...] if use_acc else part              # (Pb, tm, Np) f32
        if has_bias:
            y = y + b_ref[...]
        if has_bn:
            pb, tm, _ = y.shape
            if m_valid < tm:
                # Padded rows must not pollute the batch statistics.
                rid = lax.broadcasted_iota(jnp.int32, y.shape, 1)
                msk = (rid < m_valid).astype(jnp.float32)
                cnt = float(pb * m_valid)
                mean = jnp.sum(jnp.sum(y * msk, axis=1, keepdims=True),
                               axis=0, keepdims=True) / cnt
                d = (y - mean) * msk
                var = jnp.sum(jnp.sum(d * d, axis=1, keepdims=True),
                              axis=0, keepdims=True) / cnt
            else:
                mean = jnp.mean(jnp.mean(y, axis=1, keepdims=True),
                                axis=0, keepdims=True)
                d = y - mean
                var = jnp.mean(jnp.mean(d * d, axis=1, keepdims=True),
                               axis=0, keepdims=True)
            y = (y - mean) * lax.rsqrt(var + bn_eps) * g_ref[...] + be_ref[...]
        if post_act == "tanh":                              # nn.Tanh (outermost)
            y = jnp.tanh(y)
        o_ref[...] = y.astype(o_ref.dtype)

    if use_acc:
        pl.when(k == nk - 1)(_epilogue)
    else:
        _epilogue()


def _resident_bytes(p_blk, tm, tk, npad, out_bytes, use_acc):
    cols = p_blk * tm * tk * 2 * 2            # bf16, double-buffered
    wts = p_blk * tk * npad * 2 * 2           # bf16, double-buffered
    out = p_blk * tm * npad * out_bytes * 2   # output block, double-buffered
    acc = p_blk * tm * npad * 4 if use_acc else 0
    return cols + wts + out + acc


def _choose_tiles(p_blk, M, K, npad, out_bytes, full_m, budget):
    """Pick (tm, tk) so every resident block fits `budget`.  Returns (tm, tk, fits)."""
    Mr = _round_up(M, 16)                     # bf16 packs 2 rows / sublane
    Kr = K if K <= 128 else _round_up(K, 128)
    if full_m:
        tm_cands = [Mr]
    else:
        tm_cands = sorted({min(Mr, t) for t in (512, 256, 128, 64, 32, 16)},
                          reverse=True)
    tk_cands = sorted({min(Kr, t) for t in (2048, 1024, 512, 256, 128)}, reverse=True)
    for tm in tm_cands:
        for tk in tk_cands:
            nk = _round_up(Kr, tk) // tk
            if _resident_bytes(p_blk, tm, tk, npad, out_bytes, nk > 1) <= budget:
                return tm, tk, True
    return tm_cands[-1], tk_cands[-1], False


def fused_conv_matmul(cols, w_mat, bias=None, gamma=None, beta=None, *,
                      post_act=None, bn_eps=1e-5, out_dtype=jnp.bfloat16):
    """cols: (P, M, K), w_mat: (P, K, N) -> (P, M, N) in `out_dtype`.

    Training-mode BatchNorm (stats over P and M) is fused into the matmul epilogue
    whenever a single whole-M tile fits the VMEM budget; otherwise the matmul runs
    M-tiled and BN is applied by the tiled two-pass kernels below.
    """
    P, M, K = cols.shape
    N = w_mat.shape[2]
    Np = _round_up(N, 128)                    # lane-dense output stores
    out_bytes = jnp.dtype(out_dtype).itemsize
    has_bias = bias is not None
    has_bn = gamma is not None

    fuse_bn = False
    if has_bn:
        tm, tk, fits = _choose_tiles(P, M, K, Np, out_bytes, True, _VMEM_BLOCK_BUDGET)
        fuse_bn = fits
    if not fuse_bn:
        tm, tk, _ = _choose_tiles(1, M, K, Np, out_bytes, False, _VMEM_BLOCK_BUDGET)

    Mp, Kp = _round_up(M, tm), _round_up(K, tk)
    nm, nk = Mp // tm, Kp // tk
    use_acc = nk > 1
    p_blk = P if fuse_bn else 1               # BN stats need every phase in-block
    np_grid = 1 if fuse_bn else P

    cols = cols.astype(jnp.bfloat16)
    w_mat = w_mat.astype(jnp.bfloat16)
    if Mp != M or Kp != K:
        cols = jnp.pad(cols, ((0, 0), (0, Mp - M), (0, Kp - K)))
    if Kp != K or Np != N:
        w_mat = jnp.pad(w_mat, ((0, 0), (0, Kp - K), (0, Np - N)))

    operands = [cols, w_mat]
    in_specs = [
        pl.BlockSpec((p_blk, tm, tk), lambda p, m, k: (p, m, k)),
        pl.BlockSpec((p_blk, tk, Np), lambda p, m, k: (p, k, 0)),
    ]
    if has_bias:
        operands.append(jnp.pad(bias, (0, Np - N)).reshape(1, 1, Np)
                        .astype(jnp.float32))
        in_specs.append(pl.BlockSpec((1, 1, Np), lambda p, m, k: (0, 0, 0)))
    if fuse_bn:
        operands.append(jnp.pad(gamma, (0, Np - N), constant_values=1.0)
                        .reshape(1, 1, Np).astype(jnp.float32))
        operands.append(jnp.pad(beta, (0, Np - N)).reshape(1, 1, Np)
                        .astype(jnp.float32))
        in_specs.append(pl.BlockSpec((1, 1, Np), lambda p, m, k: (0, 0, 0)))
        in_specs.append(pl.BlockSpec((1, 1, Np), lambda p, m, k: (0, 0, 0)))

    kernel = functools.partial(
        _conv_mm_kernel, nk=nk, has_bias=has_bias, has_bn=fuse_bn,
        m_valid=M, post_act=post_act, bn_eps=bn_eps, use_acc=use_acc)

    scratch = [pltpu.VMEM((p_blk, tm, Np), jnp.float32)] if use_acc else []

    out = pl.pallas_call(
        kernel,
        out_shape=jax.ShapeDtypeStruct((P, Mp, Np), out_dtype),
        grid=(np_grid, nm, nk),
        in_specs=in_specs,
        out_specs=pl.BlockSpec((p_blk, tm, Np), lambda p, m, k: (p, m, 0)),
        scratch_shapes=scratch,
        compiler_params=pltpu.CompilerParams(
            dimension_semantics=("parallel", "parallel", "arbitrary"),
            vmem_limit_bytes=_VMEM_LIMIT_BYTES),
    )(*operands)

    out = out[:, :M, :N]
    if has_bn and not fuse_bn:
        out = batch_norm_tiled(out.reshape(P * M, N), gamma, beta, bn_eps,
                               out_dtype).reshape(P, M, N)
    return out


# ---------------------------------------------------------------------------
# Tiled two-pass BatchNorm (used only when BN could not be fused into the conv
# epilogue; never hit at the demo config but VMEM-safe at any size).
# ---------------------------------------------------------------------------
def _bn_stats_kernel(x_ref, s_ref, ss_ref):
    @pl.when(pl.program_id(0) == 0)
    def _init():
        s_ref[...] = jnp.zeros_like(s_ref)
        ss_ref[...] = jnp.zeros_like(ss_ref)
    x = x_ref[...].astype(jnp.float32)
    s_ref[...] += jnp.sum(x, axis=0, keepdims=True)
    ss_ref[...] += jnp.sum(x * x, axis=0, keepdims=True)


def _bn_apply_kernel(x_ref, sc_ref, sh_ref, o_ref):
    o_ref[...] = (x_ref[...].astype(jnp.float32) * sc_ref[...]
                  + sh_ref[...]).astype(o_ref.dtype)


def batch_norm_tiled(x2d, gamma, beta, eps, out_dtype, tile_r=512):
    """Training-mode BatchNorm over the rows of x2d (R, C), tiled for VMEM safety."""
    R, C = x2d.shape
    Cp = _round_up(C, 128)
    tr = min(_round_up(R, 16), tile_r)
    Rp = _round_up(R, tr)
    x = x2d
    if Rp != R or Cp != C:
        x = jnp.pad(x2d, ((0, Rp - R), (0, Cp - C)))   # zero rows/cols: masked below
    nr = Rp // tr

    s, ss = pl.pallas_call(
        _bn_stats_kernel,
        out_shape=(jax.ShapeDtypeStruct((1, Cp), jnp.float32),
                   jax.ShapeDtypeStruct((1, Cp), jnp.float32)),
        grid=(nr,),
        in_specs=[pl.BlockSpec((tr, Cp), lambda r: (r, 0))],
        out_specs=(pl.BlockSpec((1, Cp), lambda r: (0, 0)),
                   pl.BlockSpec((1, Cp), lambda r: (0, 0))),
        compiler_params=pltpu.CompilerParams(
            dimension_semantics=("arbitrary",),
            vmem_limit_bytes=_VMEM_LIMIT_BYTES),
    )(x)

    mean = s / R
    var = jnp.maximum(ss / R - mean * mean, 0.0)
    gp = jnp.pad(gamma.astype(jnp.float32), (0, Cp - C),
                 constant_values=1.0).reshape(1, Cp)
    bp = jnp.pad(beta.astype(jnp.float32), (0, Cp - C)).reshape(1, Cp)
    scale = gp * lax.rsqrt(var + eps)
    shift = bp - mean * scale

    y = pl.pallas_call(
        _bn_apply_kernel,
        out_shape=jax.ShapeDtypeStruct((Rp, Cp), out_dtype),
        grid=(nr,),
        in_specs=[pl.BlockSpec((tr, Cp), lambda r: (r, 0)),
                  pl.BlockSpec((1, Cp), lambda r: (0, 0)),
                  pl.BlockSpec((1, Cp), lambda r: (0, 0))],
        out_specs=pl.BlockSpec((tr, Cp), lambda r: (r, 0)),
        compiler_params=pltpu.CompilerParams(
            dimension_semantics=("parallel",),
            vmem_limit_bytes=_VMEM_LIMIT_BYTES),
    )(x, scale, shift)
    return y[:R, :C]


# ---------------------------------------------------------------------------
# Conv / ConvTranspose wrappers (im2col glue in XLA, compute in Pallas)
# ---------------------------------------------------------------------------
def conv_down_pl(x, w, *, pre_act, gamma=None, beta=None, out_dtype=jnp.bfloat16):
    """Conv2d(k=4, s=2, p=1, bias=False), optionally fused with a following BN.
    x: (N,H,W,Cin), w: (Cout,Cin,4,4) PyTorch layout."""
    Cout = w.shape[0]
    xa = _act(x, pre_act).astype(jnp.bfloat16)          # act(0)=0, so pad-after-act ok
    xp = jnp.pad(xa, ((0, 0), (1, 1), (1, 1), (0, 0)))
    N, Hp, Wp, Cin = xp.shape
    Ho, Wo = (Hp - 4) // 2 + 1, (Wp - 4) // 2 + 1
    patches = [xp[:, kh:kh + 2 * Ho - 1:2, kw:kw + 2 * Wo - 1:2, :]
               for kh in range(4) for kw in range(4)]
    # TODO(synk): build these 16 shifted views inside the kernel (halo DMA of the raw
    # bf16 input) instead of materializing the 4x-expanded im2col matrix in HBM.
    cols = jnp.stack(patches, axis=3).reshape(1, N * Ho * Wo, 16 * Cin)
    wm = jnp.transpose(w, (2, 3, 1, 0)).reshape(1, 16 * Cin, Cout)
    y = fused_conv_matmul(cols, wm, gamma=gamma, beta=beta, out_dtype=out_dtype)
    return y[0].reshape(N, Ho, Wo, Cout)


def conv_up_pl(x, w, b=None, *, pre_act, post_act=None, gamma=None, beta=None,
               out_dtype=jnp.bfloat16):
    """ConvTranspose2d(k=4, s=2, p=1) via 4-phase output-parity decomposition,
    optionally fused with bias / BN / tanh.  x: (N,H,W,Cin), w: (Cin,Cout,4,4)."""
    N, H, W, Cin = x.shape
    Cout = w.shape[1]
    xa = _act(x, pre_act).astype(jnp.bfloat16)
    xp = jnp.pad(xa, ((0, 0), (1, 1), (1, 1), (0, 0)))
    wb = w.astype(jnp.bfloat16)
    # Output pixel (2m+pr, 2n+pc) only sees input rows {m-1+pr, m+pr} with kernel
    # taps kh=(3-pr)-2a (same along columns): a 2x2 effective kernel per output
    # parity -> no zero-dilated input and no 4x wasted MXU FLOPs.
    cols_p, w_p = [], []
    for pr in (0, 1):
        for pc in (0, 1):
            patches, taps = [], []
            for a in (0, 1):
                for c in (0, 1):
                    patches.append(xp[:, pr + a:pr + a + H, pc + c:pc + c + W, :])
                    taps.append(wb[:, :, (3 - pr) - 2 * a, (3 - pc) - 2 * c])
            cols_p.append(jnp.stack(patches, axis=3).reshape(N * H * W, 4 * Cin))
            w_p.append(jnp.stack(taps, axis=0).reshape(4 * Cin, Cout))
    cols = jnp.stack(cols_p, axis=0)          # (4, N*H*W, 4*Cin)
    wm = jnp.stack(w_p, axis=0)               # (4, 4*Cin, Cout)
    y = fused_conv_matmul(cols, wm, bias=b, gamma=gamma, beta=beta,
                          post_act=post_act, out_dtype=out_dtype)
    # TODO(synk): write the phase-interleaved (N,2H,2W,Cout) layout directly from the
    # kernel's out_spec to remove this XLA transpose (now bf16, half the old cost).
    y = y.reshape(2, 2, N, H, W, Cout).transpose(2, 3, 0, 4, 1, 5)
    return y.reshape(N, 2 * H, 2 * W, Cout)


# ---------------------------------------------------------------------------
# Pure-JAX reference (same math: bf16 operands / activations, f32 accumulation).
# ---------------------------------------------------------------------------
def bn_ref(x, g, b, eps=1e-5):
    m = x.mean((0, 1, 2), keepdims=True)
    v = jnp.square(x - m).mean((0, 1, 2), keepdims=True)
    return (x - m) * lax.rsqrt(v + eps) * g + b


def conv_down_ref(x, w, *, pre_act, gamma=None, beta=None, out_dtype=jnp.bfloat16):
    xa = _act(x, pre_act).astype(jnp.bfloat16)
    wb = jnp.transpose(w, (2, 3, 1, 0)).astype(jnp.bfloat16)
    y = lax.conv_general_dilated(
        xa, wb, (2, 2), ((1, 1), (1, 1)),
        dimension_numbers=("NHWC", "HWIO", "NHWC"),
        preferred_element_type=jnp.float32)
    if gamma is not None:
        y = bn_ref(y, gamma, beta)
    return y.astype(out_dtype)


def conv_up_ref(x, w, b=None, *, pre_act, post_act=None, gamma=None, beta=None,
                out_dtype=jnp.bfloat16):
    xa = _act(x, pre_act).astype(jnp.bfloat16)
    wf = jnp.transpose(jnp.flip(w, (2, 3)), (2, 3, 0, 1)).astype(jnp.bfloat16)
    y = lax.conv_general_dilated(
        xa, wf, (1, 1), ((2, 2), (2, 2)), lhs_dilation=(2, 2),
        dimension_numbers=("NHWC", "HWIO", "NHWC"),
        preferred_element_type=jnp.float32)
    if b is not None:
        y = y + b
    if gamma is not None:
        y = bn_ref(y, gamma, beta)
    if post_act == "tanh":
        y = jnp.tanh(y)
    return y.astype(out_dtype)


# ---------------------------------------------------------------------------
# UnetSkipConnectionBlock / UnetGenerator structure
# ---------------------------------------------------------------------------
def unet_forward(p_root, x, pallas):
    cd = conv_down_pl if pallas else conv_down_ref
    cu = conv_up_pl if pallas else conv_up_ref

    def block(pb, h_in):
        if pb["outermost"]:
            # down = [downconv] ; up = [uprelu, upconv, Tanh]
            h = cd(h_in, pb["down_w"], pre_act=None)
            h = block(pb["sub"], h)
            return cu(h, pb["up_w"], pb["up_b"], pre_act="relu", post_act="tanh",
                      out_dtype=jnp.float32)
        if pb["innermost"]:
            # down = [downrelu, downconv] ; up = [uprelu, upconv, upnorm]
            h = cd(h_in, pb["down_w"], pre_act="leaky")
            h = cu(h, pb["up_w"], pre_act="relu",
                   gamma=pb["up_gamma"], beta=pb["up_beta"])
            return jnp.concatenate([h_in.astype(h.dtype), h], axis=-1)
        # middle block: down = [downrelu, downconv, downnorm]
        #               up   = [uprelu, upconv, upnorm]
        h = cd(h_in, pb["down_w"], pre_act="leaky",
               gamma=pb["down_gamma"], beta=pb["down_beta"])
        h = block(pb["sub"], h)
        h = cu(h, pb["up_w"], pre_act="relu",
               gamma=pb["up_gamma"], beta=pb["up_beta"])
        # TODO(synk): nn.Dropout(0.5) branch not implemented (use_dropout=False default).
        return jnp.concatenate([h_in.astype(h.dtype), h], axis=-1)

    return block(p_root, x)


def _init_block(key, outer_nc, inner_nc, input_nc=None, sub=None,
                outermost=False, innermost=False):
    """Deterministic params matching the PyTorch layer shapes.
    norm_layer=BatchNorm2d => use_bias=False for all convs except the outermost upconv."""
    if input_nc is None:
        input_nc = outer_nc
    ks = jax.random.split(key, 8)
    p = {"outermost": outermost, "innermost": innermost, "sub": sub}
    # Conv2d(input_nc, inner_nc, 4, 2, 1, bias=False): weight (Cout, Cin, 4, 4)
    p["down_w"] = 0.05 * jax.random.normal(ks[0], (inner_nc, input_nc, 4, 4), jnp.float32)
    if not outermost and not innermost:
        p["down_gamma"] = 1.0 + 0.1 * jax.random.normal(ks[1], (inner_nc,), jnp.float32)
        p["down_beta"] = 0.1 * jax.random.normal(ks[2], (inner_nc,), jnp.float32)
    # ConvTranspose2d weight (Cin, Cout, 4, 4)
    up_in = inner_nc if innermost else inner_nc * 2
    p["up_w"] = 0.05 * jax.random.normal(ks[3], (up_in, outer_nc, 4, 4), jnp.float32)
    if outermost:
        p["up_b"] = 0.02 * jax.random.normal(ks[4], (outer_nc,), jnp.float32)  # bias=True
    else:
        p["up_gamma"] = 1.0 + 0.1 * jax.random.normal(ks[5], (outer_nc,), jnp.float32)
        p["up_beta"] = 0.1 * jax.random.normal(ks[6], (outer_nc,), jnp.float32)
    return p


def init_unet_params(key, input_nc, output_nc, num_downs, ngf):
    """Mirrors UnetGenerator.__init__ (built innermost -> outermost)."""
    keys = iter(jax.random.split(key, num_downs + 1))
    block = _init_block(next(keys), ngf * 8, ngf * 8, innermost=True)
    for _ in range(num_downs - 5):
        block = _init_block(next(keys), ngf * 8, ngf * 8, sub=block)
    block = _init_block(next(keys), ngf * 4, ngf * 8, sub=block)
    block = _init_block(next(keys), ngf * 2, ngf * 4, sub=block)
    block = _init_block(next(keys), ngf, ngf * 2, sub=block)
    block = _init_block(next(keys), output_nc, ngf, input_nc=input_nc,
                        sub=block, outermost=True)
    return block


def unet_generator_pallas(params, x_nchw):
    x = jnp.transpose(x_nchw, (0, 2, 3, 1))                 # NCHW -> NHWC
    y = unet_forward(params, x, pallas=True)
    return jnp.transpose(y, (0, 3, 1, 2))                   # NHWC -> NCHW


def unet_generator_ref(params, x_nchw):
    x = jnp.transpose(x_nchw, (0, 2, 3, 1))
    y = unet_forward(params, x, pallas=False)
    return jnp.transpose(y, (0, 3, 1, 2))


# ---------------------------------------------------------------------------
if __name__ == "__main__":
    input_nc, output_nc, num_downs, ngf = 3, 3, 5, 8
    key = jax.random.PRNGKey(0)
    kp, kx, kt = jax.random.split(key, 3)

    params = init_unet_params(kp, input_nc, output_nc, num_downs, ngf)
    # num_downs=5 downsamples 32x32 -> 1x1 at the bottleneck (matching the module docs).
    x = jax.random.normal(kx, (2, input_nc, 32, 32), jnp.float32)   # NCHW like PyTorch

    fwd = jax.jit(lambda inp: unet_generator_pallas(params, inp))
    out = jax.block_until_ready(fwd(x))
    assert out.shape == (2, output_nc, 32, 32), out.shape
    assert bool(jnp.all(jnp.isfinite(out)))

    # Reference uses identical math (bf16 operands/activations, f32 accumulation)
    # via lax.conv.  Tolerance is looser than before because intermediate activations
    # are now stored in bf16 (rare 1-ulp rounding disagreements between the two
    # accumulation orders propagate through the BatchNorm chain).
    ref = jax.block_until_ready(jax.jit(
        lambda inp: unet_generator_ref(params, inp))(x))
    np.testing.assert_allclose(np.asarray(out, np.float32),
                               np.asarray(ref, np.float32), atol=4e-2, rtol=4e-2)

    # Exercise the tiled two-pass BatchNorm fallback (used when a layer is too large
    # to fuse BN into the conv epilogue) against a plain-JAX reference.
    xb = jax.random.normal(kt, (70, 24), jnp.float32).astype(jnp.bfloat16)
    g = 1.0 + 0.1 * jax.random.normal(jax.random.PRNGKey(1), (24,), jnp.float32)
    bb = 0.1 * jax.random.normal(jax.random.PRNGKey(2), (24,), jnp.float32)
    y_t = jax.block_until_ready(jax.jit(
        lambda a: batch_norm_tiled(a, g, bb, 1e-5, jnp.float32, tile_r=32))(xb))
    xf = xb.astype(jnp.float32)
    m = xf.mean(0, keepdims=True)
    v = jnp.square(xf - m).mean(0, keepdims=True)
    y_r = (xf - m) * lax.rsqrt(v + 1e-5) * g + bb
    np.testing.assert_allclose(np.asarray(y_t), np.asarray(y_r), atol=5e-3, rtol=5e-3)

    print("KERNEL_OK")
</pallas_src>

<mosaic_0001>
module attributes {stable_mosaic.version = 11 : i64} {
  func.func @_conv_mm_kernel(%arg0: i32, %arg1: i32, %arg2: i32, %arg3: memref<1x512x48xbf16, #tpu.memory_space<vmem>>, %arg4: memref<1x48x128xbf16, #tpu.memory_space<vmem>>, %arg5: memref<1x512x128xbf16, #tpu.memory_space<vmem>>) attributes {dimension_semantics = [#tpu.dimension_semantics<parallel>, #tpu.dimension_semantics<parallel>, #tpu.dimension_semantics<arbitrary>], iteration_bounds = array<i64: 1, 1, 1>, scalar_prefetch = 0 : i64, scratch_operands = 0 : i64, tpu.core_type = #tpu.core_type<tc>, window_params = [{transform_indices = @transform_0, window_bounds = array<i64: 1, 512, 48>}, {transform_indices = @transform_1, window_bounds = array<i64: 1, 48, 128>}, {transform_indices = @transform_2, window_bounds = array<i64: 1, 512, 128>}]} {
    %c0 = arith.constant 0 : index
    %c0_0 = arith.constant 0 : index
    %c0_1 = arith.constant 0 : index
    %0 = vector.load %arg3[%c0, %c0_0, %c0_1] : memref<1x512x48xbf16, #tpu.memory_space<vmem>>, vector<1x512x48xbf16>
    %c0_2 = arith.constant 0 : index
    %c0_3 = arith.constant 0 : index
    %c0_4 = arith.constant 0 : index
    %1 = vector.load %arg4[%c0_2, %c0_3, %c0_4] : memref<1x48x128xbf16, #tpu.memory_space<vmem>>, vector<1x48x128xbf16>
    "tpu.trace_start"() <{level = 10 : i32, message = "pmk,pkn->pmn"}> : () -> ()
    %cst = arith.constant dense<0.000000e+00> : vector<1x512x128xf32>
    %2 = tpu.matmul %0, %1, %cst {dimension_numbers = #tpu.dot_dimension_numbers<[2], [1], [1], [2], [0, 0, 0, 1, 1, 2], [0], [0]>} : vector<1x512x48xbf16>, vector<1x48x128xbf16>, vector<1x512x128xf32> -> vector<1x512x128xf32>
    "tpu.trace_stop"() : () -> ()
    %3 = arith.truncf %2 : vector<1x512x128xf32> to vector<1x512x128xbf16>
    %c0_5 = arith.constant 0 : index
    %c0_6 = arith.constant 0 : index
    %c0_7 = arith.constant 0 : index
    %4 = vector.load %arg5[%c0_5, %c0_6, %c0_7] : memref<1x512x128xbf16, #tpu.memory_space<vmem>>, vector<1x512x128xbf16>
    tpu.vector_store %arg5[%c0_5, %c0_6, %c0_7], %3 {strides = array<i32>} : memref<1x512x128xbf16, #tpu.memory_space<vmem>>, vector<1x512x128xbf16>,
    return
  }
  func.func @transform_0(%arg0: i32, %arg1: i32, %arg2: i32) -> (i32, i32, i32) {
    %c0_i32 = arith.constant 0 : i32
    return %arg0, %arg1, %arg2 : i32, i32, i32
  }
  func.func @transform_1(%arg0: i32, %arg1: i32, %arg2: i32) -> (i32, i32, i32) {
    %c0_i32 = arith.constant 0 : i32
    %c0_i32_0 = arith.constant 0 : i32
    return %arg0, %arg2, %c0_i32 : i32, i32, i32
  }
  func.func @transform_2(%arg0: i32, %arg1: i32, %arg2: i32) -> (i32, i32, i32) {
    %c0_i32 = arith.constant 0 : i32
    %c0_i32_0 = arith.constant 0 : i32
    return %arg0, %arg1, %c0_i32 : i32, i32, i32
  }
}

module attributes {stable_mosaic.version = 11 : i64} {
  func.func @_conv_mm_kernel(%arg0: i32, %arg1: i32, %arg2: i32, %arg3: memref<1x128x128xbf16, #tpu.memory_space<vmem>>, %arg4: memref<1x128x128xbf16, #tpu.memory_space<vmem>>, %arg5: memref<1x1x128xf32, #tpu.memory_space<vmem>>, %arg6: memref<1x1x128xf32, #tpu.memory_space<vmem>>, %arg7: memref<1x128x128xbf16, #tpu.memory_space<vmem>>) attributes {dimension_semantics = [#tpu.dimension_semantics<parallel>, #tpu.dimension_semantics<parallel>, #tpu.dimension_semantics<arbitrary>], iteration_bounds = array<i64: 1, 1, 1>, scalar_prefetch = 0 : i64, scratch_operands = 0 : i64, tpu.core_type = #tpu.core_type<tc>, window_params = [{transform_indices = @transform_0, window_bounds = array<i64: 1, 128, 128>}, {transform_indices = @transform_1, window_bounds = array<i64: 1, 128, 128>}, {pipeline_mode = #tpu.pipeline_mode<synchronous>, transform_indices = @transform_2, window_bounds = array<i64: 1, 1, 128>}, {pipeline_mode = #tpu.pipeline_mode<synchronous>, transform_indices = @transform_3, window_bounds = array<i64: 1, 1, 128>}, {transform_indices = @transform_4, window_bounds = array<i64: 1, 128, 128>}]} {
    %c0 = arith.constant 0 : index
    %c0_0 = arith.constant 0 : index
    %c0_1 = arith.constant 0 : index
    %0 = vector.load %arg3[%c0, %c0_0, %c0_1] : memref<1x128x128xbf16, #tpu.memory_space<vmem>>, vector<1x128x128xbf16>
    %c0_2 = arith.constant 0 : index
    %c0_3 = arith.constant 0 : index
    %c0_4 = arith.constant 0 : index
    %1 = vector.load %arg4[%c0_2, %c0_3, %c0_4] : memref<1x128x128xbf16, #tpu.memory_space<vmem>>, vector<1x128x128xbf16>
    "tpu.trace_start"() <{level = 10 : i32, message = "pmk,pkn->pmn"}> : () -> ()
    %cst = arith.constant dense<0.000000e+00> : vector<1x128x128xf32>
    %2 = tpu.matmul %0, %1, %cst {dimension_numbers = #tpu.dot_dimension_numbers<[2], [1], [1], [2], [0, 0, 0, 1, 1, 2], [0], [0]>} : vector<1x128x128xbf16>, vector<1x128x128xbf16>, vector<1x128x128xf32> -> vector<1x128x128xf32>
    "tpu.trace_stop"() : () -> ()
    %cst_5 = arith.constant dense<0.000000e+00> : vector<1x128xf32>
    %3 = vector.multi_reduction <add>, %2, %cst_5 [1] : vector<1x128x128xf32> to vector<1x128xf32>
    %4 = vector.shape_cast %3 : vector<1x128xf32> to vector<1x1x128xf32>
    %cst_6 = arith.constant 1.280000e+02 : f32
    %5 = vector.broadcast %cst_6 : f32 to vector<1x1x128xf32>
    %6 = arith.divf %4, %5 : vector<1x1x128xf32>
    %cst_7 = arith.constant dense<0.000000e+00> : vector<1x128xf32>
    %7 = vector.multi_reduction <add>, %6, %cst_7 [0] : vector<1x1x128xf32> to vector<1x128xf32>
    %8 = vector.shape_cast %7 : vector<1x128xf32> to vector<1x1x128xf32>
    %cst_8 = arith.constant 1.000000e+00 : f32
    %9 = vector.broadcast %cst_8 : f32 to vector<1x1x128xf32>
    %10 = arith.divf %8, %9 : vector<1x1x128xf32>
    %11 = vector.broadcast %10 : vector<1x1x128xf32> to vector<1x128x128xf32>
    %12 = arith.subf %2, %11 : vector<1x128x128xf32>
    %13 = arith.mulf %12, %12 : vector<1x128x128xf32>
    %cst_9 = arith.constant dense<0.000000e+00> : vector<1x128xf32>
    %14 = vector.multi_reduction <add>, %13, %cst_9 [1] : vector<1x128x128xf32> to vector<1x128xf32>
    %15 = vector.shape_cast %14 : vector<1x128xf32> to vector<1x1x128xf32>
    %cst_10 = arith.constant 1.280000e+02 : f32
    %16 = vector.broadcast %cst_10 : f32 to vector<1x1x128xf32>
    %17 = arith.divf %15, %16 : vector<1x1x128xf32>
    %cst_11 = arith.constant dense<0.000000e+00> : vector<1x128xf32>
    %18 = vector.multi_reduction <add>, %17, %cst_11 [0] : vector<1x1x128xf32> to vector<1x128xf32>
    %19 = vector.shape_cast %18 : vector<1x128xf32> to vector<1x1x128xf32>
    %cst_12 = arith.constant 1.000000e+00 : f32
    %20 = vector.broadcast %cst_12 : f32 to vector<1x1x128xf32>
    %21 = arith.divf %19, %20 : vector<1x1x128xf32>
    %22 = vector.broadcast %10 : vector<1x1x128xf32> to vector<1x128x128xf32>
    %23 = arith.subf %2, %22 : vector<1x128x128xf32>
    %cst_13 = arith.constant 9.99999974E-6 : f32
    %24 = vector.broadcast %cst_13 : f32 to vector<1x1x128xf32>
    %25 = arith.addf %21, %24 : vector<1x1x128xf32>
    %26 = math.rsqrt %25 : vector<1x1x128xf32>
    %27 = vector.broadcast %26 : vector<1x1x128xf32> to vector<1x128x128xf32>
    %28 = arith.mulf %23, %27 : vector<1x128x128xf32>
    %c0_14 = arith.constant 0 : index
    %c0_15 = arith.constant 0 : index
    %c0_16 = arith.constant 0 : index
    %29 = vector.load %arg5[%c0_14, %c0_15, %c0_16] : memref<1x1x128xf32, #tpu.memory_space<vmem>>, vector<1x1x128xf32>
    %30 = vector.broadcast %29 : vector<1x1x128xf32> to vector<1x128x128xf32>
    %31 = arith.mulf %28, %30 : vector<1x128x128xf32>
    %c0_17 = arith.constant 0 : index
    %c0_18 = arith.constant 0 : index
    %c0_19 = arith.constant 0 : index
    %32 = vector.load %arg6[%c0_17, %c0_18, %c0_19] : memref<1x1x128xf32, #tpu.memory_space<vmem>>, vector<1x1x128xf32>
    %33 = vector.broadcast %32 : vector<1x1x128xf32> to vector<1x128x128xf32>
    %34 = arith.addf %31, %33 : vector<1x128x128xf32>
    %35 = arith.truncf %34 : vector<1x128x128xf32> to vector<1x128x128xbf16>
    %c0_20 = arith.constant 0 : index
    %c0_21 = arith.constant 0 : index
    %c0_22 = arith.constant 0 : index
    %36 = vector.load %arg7[%c0_20, %c0_21, %c0_22] : memref<1x128x128xbf16, #tpu.memory_space<vmem>>, vector<1x128x128xbf16>
    tpu.vector_store %arg7[%c0_20, %c0_21, %c0_22], %35 {strides = array<i32>} : memref<1x128x128xbf16, #tpu.memory_space<vmem>>, vector<1x128x128xbf16>,
    return
  }
  func.func @transform_0(%arg0: i32, %arg1: i32, %arg2: i32) -> (i32, i32, i32) {
    %c0_i32 = arith.constant 0 : i32
    return %arg0, %arg1, %arg2 : i32, i32, i32
  }
  func.func @transform_1(%arg0: i32, %arg1: i32, %arg2: i32) -> (i32, i32, i32) {
    %c0_i32 = arith.constant 0 : i32
    %c0_i32_0 = arith.constant 0 : i32
    return %arg0, %arg2, %c0_i32 : i32, i32, i32
  }
  func.func @transform_2(%arg0: i32, %arg1: i32, %arg2: i32) -> (i32, i32, i32) {
    %c0_i32 = arith.constant 0 : i32
    %c0_i32_0 = arith.constant 0 : i32
    %c0_i32_1 = arith.constant 0 : i32
    %c0_i32_2 = arith.constant 0 : i32
    return %c0_i32, %c0_i32_0, %c0_i32_1 : i32, i32, i32
  }
  func.func @transform_3(%arg0: i32, %arg1: i32, %arg2: i32) -> (i32, i32, i32) {
    %c0_i32 = arith.constant 0 : i32
    %c0_i32_0 = arith.constant 0 : i32
    %c0_i32_1 = arith.constant 0 : i32
    %c0_i32_2 = arith.constant 0 : i32
    return %c0_i32, %c0_i32_0, %c0_i32_1 : i32, i32, i32
  }
  func.func @transform_4(%arg0: i32, %arg1: i32, %arg2: i32) -> (i32, i32, i32) {
    %c0_i32 = arith.constant 0 : i32
    %c0_i32_0 = arith.constant 0 : i32
    return %arg0, %arg1, %c0_i32 : i32, i32, i32
  }
}

module attributes {stable_mosaic.version = 11 : i64} {
  func.func @_conv_mm_kernel(%arg0: i32, %arg1: i32, %arg2: i32, %arg3: memref<1x32x256xbf16, #tpu.memory_space<vmem>>, %arg4: memref<1x256x128xbf16, #tpu.memory_space<vmem>>, %arg5: memref<1x1x128xf32, #tpu.memory_space<vmem>>, %arg6: memref<1x1x128xf32, #tpu.memory_space<vmem>>, %arg7: memref<1x32x128xbf16, #tpu.memory_space<vmem>>) attributes {dimension_semantics = [#tpu.dimension_semantics<parallel>, #tpu.dimension_semantics<parallel>, #tpu.dimension_semantics<arbitrary>], iteration_bounds = array<i64: 1, 1, 1>, scalar_prefetch = 0 : i64, scratch_operands = 0 : i64, tpu.core_type = #tpu.core_type<tc>, window_params = [{transform_indices = @transform_0, window_bounds = array<i64: 1, 32, 256>}, {transform_indices = @transform_1, window_bounds = array<i64: 1, 256, 128>}, {pipeline_mode = #tpu.pipeline_mode<synchronous>, transform_indices = @transform_2, window_bounds = array<i64: 1, 1, 128>}, {pipeline_mode = #tpu.pipeline_mode<synchronous>, transform_indices = @transform_3, window_bounds = array<i64: 1, 1, 128>}, {transform_indices = @transform_4, window_bounds = array<i64: 1, 32, 128>}]} {
    %c0 = arith.constant 0 : index
    %c0_0 = arith.constant 0 : index
    %c0_1 = arith.constant 0 : index
    %0 = vector.load %arg3[%c0, %c0_0, %c0_1] : memref<1x32x256xbf16, #tpu.memory_space<vmem>>, vector<1x32x256xbf16>
    %c0_2 = arith.constant 0 : index
    %c0_3 = arith.constant 0 : index
    %c0_4 = arith.constant 0 : index
    %1 = vector.load %arg4[%c0_2, %c0_3, %c0_4] : memref<1x256x128xbf16, #tpu.memory_space<vmem>>, vector<1x256x128xbf16>
    "tpu.trace_start"() <{level = 10 : i32, message = "pmk,pkn->pmn"}> : () -> ()
    %cst = arith.constant dense<0.000000e+00> : vector<1x32x128xf32>
    %2 = tpu.matmul %0, %1, %cst {dimension_numbers = #tpu.dot_dimension_numbers<[2], [1], [1], [2], [0, 0, 0, 1, 1, 2], [0], [0]>} : vector<1x32x256xbf16>, vector<1x256x128xbf16>, vector<1x32x128xf32> -> vector<1x32x128xf32>
    "tpu.trace_stop"() : () -> ()
    %cst_5 = arith.constant dense<0.000000e+00> : vector<1x128xf32>
    %3 = vector.multi_reduction <add>, %2, %cst_5 [1] : vector<1x32x128xf32> to vector<1x128xf32>
    %4 = vector.shape_cast %3 : vector<1x128xf32> to vector<1x1x128xf32>
    %cst_6 = arith.constant 3.200000e+01 : f32
    %5 = vector.broadcast %cst_6 : f32 to vector<1x1x128xf32>
    %6 = arith.divf %4, %5 : vector<1x1x128xf32>
    %cst_7 = arith.constant dense<0.000000e+00> : vector<1x128xf32>
    %7 = vector.multi_reduction <add>, %6, %cst_7 [0] : vector<1x1x128xf32> to vector<1x128xf32>
    %8 = vector.shape_cast %7 : vector<1x128xf32> to vector<1x1x128xf32>
    %cst_8 = arith.constant 1.000000e+00 : f32
    %9 = vector.broadcast %cst_8 : f32 to vector<1x1x128xf32>
    %10 = arith.divf %8, %9 : vector<1x1x128xf32>
    %11 = vector.broadcast %10 : vector<1x1x128xf32> to vector<1x32x128xf32>
    %12 = arith.subf %2, %11 : vector<1x32x128xf32>
    %13 = arith.mulf %12, %12 : vector<1x32x128xf32>
    %cst_9 = arith.constant dense<0.000000e+00> : vector<1x128xf32>
    %14 = vector.multi_reduction <add>, %13, %cst_9 [1] : vector<1x32x128xf32> to vector<1x128xf32>
    %15 = vector.shape_cast %14 : vector<1x128xf32> to vector<1x1x128xf32>
    %cst_10 = arith.constant 3.200000e+01 : f32
    %16 = vector.broadcast %cst_10 : f32 to vector<1x1x128xf32>
    %17 = arith.divf %15, %16 : vector<1x1x128xf32>
    %cst_11 = arith.constant dense<0.000000e+00> : vector<1x128xf32>
    %18 = vector.multi_reduction <add>, %17, %cst_11 [0] : vector<1x1x128xf32> to vector<1x128xf32>
    %19 = vector.shape_cast %18 : vector<1x128xf32> to vector<1x1x128xf32>
    %cst_12 = arith.constant 1.000000e+00 : f32
    %20 = vector.broadcast %cst_12 : f32 to vector<1x1x128xf32>
    %21 = arith.divf %19, %20 : vector<1x1x128xf32>
    %22 = vector.broadcast %10 : vector<1x1x128xf32> to vector<1x32x128xf32>
    %23 = arith.subf %2, %22 : vector<1x32x128xf32>
    %cst_13 = arith.constant 9.99999974E-6 : f32
    %24 = vector.broadcast %cst_13 : f32 to vector<1x1x128xf32>
    %25 = arith.addf %21, %24 : vector<1x1x128xf32>
    %26 = math.rsqrt %25 : vector<1x1x128xf32>
    %27 = vector.broadcast %26 : vector<1x1x128xf32> to vector<1x32x128xf32>
    %28 = arith.mulf %23, %27 : vector<1x32x128xf32>
    %c0_14 = arith.constant 0 : index
    %c0_15 = arith.constant 0 : index
    %c0_16 = arith.constant 0 : index
    %29 = vector.load %arg5[%c0_14, %c0_15, %c0_16] : memref<1x1x128xf32, #tpu.memory_space<vmem>>, vector<1x1x128xf32>
    %30 = vector.broadcast %29 : vector<1x1x128xf32> to vector<1x32x128xf32>
    %31 = arith.mulf %28, %30 : vector<1x32x128xf32>
    %c0_17 = arith.constant 0 : index
    %c0_18 = arith.constant 0 : index
    %c0_19 = arith.constant 0 : index
    %32 = vector.load %arg6[%c0_17, %c0_18, %c0_19] : memref<1x1x128xf32, #tpu.memory_space<vmem>>, vector<1x1x128xf32>
    %33 = vector.broadcast %32 : vector<1x1x128xf32> to vector<1x32x128xf32>
    %34 = arith.addf %31, %33 : vector<1x32x128xf32>
    %35 = arith.truncf %34 : vector<1x32x128xf32> to vector<1x32x128xbf16>
    %c0_20 = arith.constant 0 : index
    %c0_21 = arith.constant 0 : index
    %c0_22 = arith.constant 0 : index
    %36 = vector.load %arg7[%c0_20, %c0_21, %c0_22] : memref<1x32x128xbf16, #tpu.memory_space<vmem>>, vector<1x32x128xbf16>
    tpu.vector_store %arg7[%c0_20, %c0_21, %c0_22], %35 {strides = array<i32>} : memref<1x32x128xbf16, #tpu.memory_space<vmem>>, vector<1x32x128xbf16>,
    return
  }
  func.func @transform_0(%arg0: i32, %arg1: i32, %arg2: i32) -> (i32, i32, i32) {
    %c0_i32 = arith.constant 0 : i32
    return %arg0, %arg1, %arg2 : i32, i32, i32
  }
  func.func @transform_1(%arg0: i32, %arg1: i32, %arg2: i32) -> (i32, i32, i32) {
    %c0_i32 = arith.constant 0 : i32
    %c0_i32_0 = arith.constant 0 : i32
    return %arg0, %arg2, %c0_i32 : i32, i32, i32
  }
  func.func @transform_2(%arg0: i32, %arg1: i32, %arg2: i32) -> (i32, i32, i32) {
    %c0_i32 = arith.constant 0 : i32
    %c0_i32_0 = arith.constant 0 : i32
    %c0_i32_1 = arith.constant 0 : i32
    %c0_i32_2 = arith.constant 0 : i32
    return %c0_i32, %c0_i32_0, %c0_i32_1 : i32, i32, i32
  }
  func.func @transform_3(%arg0: i32, %arg1: i32, %arg2: i32) -> (i32, i32, i32) {
    %c0_i32 = arith.constant 0 : i32
    %c0_i32_0 = arith.constant 0 : i32
    %c0_i32_1 = arith.constant 0 : i32
    %c0_i32_2 = arith.constant 0 : i32
    return %c0_i32, %c0_i32_0, %c0_i32_1 : i32, i32, i32
  }
  func.func @transform_4(%arg0: i32, %arg1: i32, %arg2: i32) -> (i32, i32, i32) {
    %c0_i32 = arith.constant 0 : i32
    %c0_i32_0 = arith.constant 0 : i32
    return %arg0, %arg1, %c0_i32 : i32, i32, i32
  }
}

module attributes {stable_mosaic.version = 11 : i64} {
  func.func @_conv_mm_kernel(%arg0: i32, %arg1: i32, %arg2: i32, %arg3: memref<1x16x512xbf16, #tpu.memory_space<vmem>>, %arg4: memref<1x512x128xbf16, #tpu.memory_space<vmem>>, %arg5: memref<1x1x128xf32, #tpu.memory_space<vmem>>, %arg6: memref<1x1x128xf32, #tpu.memory_space<vmem>>, %arg7: memref<1x16x128xbf16, #tpu.memory_space<vmem>>) attributes {dimension_semantics = [#tpu.dimension_semantics<parallel>, #tpu.dimension_semantics<parallel>, #tpu.dimension_semantics<arbitrary>], iteration_bounds = array<i64: 1, 1, 1>, scalar_prefetch = 0 : i64, scratch_operands = 0 : i64, tpu.core_type = #tpu.core_type<tc>, window_params = [{transform_indices = @transform_0, window_bounds = array<i64: 1, 16, 512>}, {transform_indices = @transform_1, window_bounds = array<i64: 1, 512, 128>}, {pipeline_mode = #tpu.pipeline_mode<synchronous>, transform_indices = @transform_2, window_bounds = array<i64: 1, 1, 128>}, {pipeline_mode = #tpu.pipeline_mode<synchronous>, transform_indices = @transform_3, window_bounds = array<i64: 1, 1, 128>}, {transform_indices = @transform_4, window_bounds = array<i64: 1, 16, 128>}]} {
    %c0 = arith.constant 0 : index
    %c0_0 = arith.constant 0 : index
    %c0_1 = arith.constant 0 : index
    %0 = vector.load %arg3[%c0, %c0_0, %c0_1] : memref<1x16x512xbf16, #tpu.memory_space<vmem>>, vector<1x16x512xbf16>
    %c0_2 = arith.constant 0 : index
    %c0_3 = arith.constant 0 : index
    %c0_4 = arith.constant 0 : index
    %1 = vector.load %arg4[%c0_2, %c0_3, %c0_4] : memref<1x512x128xbf16, #tpu.memory_space<vmem>>, vector<1x512x128xbf16>
    "tpu.trace_start"() <{level = 10 : i32, message = "pmk,pkn->pmn"}> : () -> ()
    %cst = arith.constant dense<0.000000e+00> : vector<1x16x128xf32>
    %2 = tpu.matmul %0, %1, %cst {dimension_numbers = #tpu.dot_dimension_numbers<[2], [1], [1], [2], [0, 0, 0, 1, 1, 2], [0], [0]>} : vector<1x16x512xbf16>, vector<1x512x128xbf16>, vector<1x16x128xf32> -> vector<1x16x128xf32>
    "tpu.trace_stop"() : () -> ()
    %3 = tpu.iota {dimensions = array<i32: 1>} : vector<1x16x128xi32>
    %c8_i32 = arith.constant 8 : i32
    %4 = vector.broadcast %c8_i32 : i32 to vector<1x16x128xi32>
    %5 = arith.cmpi slt, %3, %4 : vector<1x16x128xi32>
    %6 = arith.extui %5 : vector<1x16x128xi1> to vector<1x16x128xi32>
    %7 = arith.sitofp %6 : vector<1x16x128xi32> to vector<1x16x128xf32>
    %8 = arith.mulf %2, %7 : vector<1x16x128xf32>
    %cst_5 = arith.constant dense<0.000000e+00> : vector<1x128xf32>
    %9 = vector.multi_reduction <add>, %8, %cst_5 [1] : vector<1x16x128xf32> to vector<1x128xf32>
    %10 = vector.shape_cast %9 : vector<1x128xf32> to vector<1x1x128xf32>
    %cst_6 = arith.constant dense<0.000000e+00> : vector<1x128xf32>
    %11 = vector.multi_reduction <add>, %10, %cst_6 [0] : vector<1x1x128xf32> to vector<1x128xf32>
    %12 = vector.shape_cast %11 : vector<1x128xf32> to vector<1x1x128xf32>
    %cst_7 = arith.constant 8.000000e+00 : f32
    %13 = vector.broadcast %cst_7 : f32 to vector<1x1x128xf32>
    %14 = arith.divf %12, %13 : vector<1x1x128xf32>
    %15 = vector.broadcast %14 : vector<1x1x128xf32> to vector<1x16x128xf32>
    %16 = arith.subf %2, %15 : vector<1x16x128xf32>
    %17 = arith.mulf %16, %7 : vector<1x16x128xf32>
    %18 = arith.mulf %17, %17 : vector<1x16x128xf32>
    %cst_8 = arith.constant dense<0.000000e+00> : vector<1x128xf32>
    %19 = vector.multi_reduction <add>, %18, %cst_8 [1] : vector<1x16x128xf32> to vector<1x128xf32>
    %20 = vector.shape_cast %19 : vector<1x128xf32> to vector<1x1x128xf32>
    %cst_9 = arith.constant dense<0.000000e+00> : vector<1x128xf32>
    %21 = vector.multi_reduction <add>, %20, %cst_9 [0] : vector<1x1x128xf32> to vector<1x128xf32>
    %22 = vector.shape_cast %21 : vector<1x128xf32> to vector<1x1x128xf32>
    %cst_10 = arith.constant 8.000000e+00 : f32
    %23 = vector.broadcast %cst_10 : f32 to vector<1x1x128xf32>
    %24 = arith.divf %22, %23 : vector<1x1x128xf32>
    %25 = vector.broadcast %14 : vector<1x1x128xf32> to vector<1x16x128xf32>
    %26 = arith.subf %2, %25 : vector<1x16x128xf32>
    %cst_11 = arith.constant 9.99999974E-6 : f32
    %27 = vector.broadcast %cst_11 : f32 to vector<1x1x128xf32>
    %28 = arith.addf %24, %27 : vector<1x1x128xf32>
    %29 = math.rsqrt %28 : vector<1x1x128xf32>
    %30 = vector.broadcast %29 : vector<1x1x128xf32> to vector<1x16x128xf32>
    %31 = arith.mulf %26, %30 : vector<1x16x128xf32>
    %c0_12 = arith.constant 0 : index
    %c0_13 = arith.constant 0 : index
    %c0_14 = arith.constant 0 : index
    %32 = vector.load %arg5[%c0_12, %c0_13, %c0_14] : memref<1x1x128xf32, #tpu.memory_space<vmem>>, vector<1x1x128xf32>
    %33 = vector.broadcast %32 : vector<1x1x128xf32> to vector<1x16x128xf32>
    %34 = arith.mulf %31, %33 : vector<1x16x128xf32>
    %c0_15 = arith.constant 0 : index
    %c0_16 = arith.constant 0 : index
    %c0_17 = arith.constant 0 : index
    %35 = vector.load %arg6[%c0_15, %c0_16, %c0_17] : memref<1x1x128xf32, #tpu.memory_space<vmem>>, vector<1x1x128xf32>
    %36 = vector.broadcast %35 : vector<1x1x128xf32> to vector<1x16x128xf32>
    %37 = arith.addf %34, %36 : vector<1x16x128xf32>
    %38 = arith.truncf %37 : vector<1x16x128xf32> to vector<1x16x128xbf16>
    %c0_18 = arith.constant 0 : index
    %c0_19 = arith.constant 0 : index
    %c0_20 = arith.constant 0 : index
    %39 = vector.load %arg7[%c0_18, %c0_19, %c0_20] : memref<1x16x128xbf16, #tpu.memory_space<vmem>>, vector<1x16x128xbf16>
    tpu.vector_store %arg7[%c0_18, %c0_19, %c0_20], %38 {strides = array<i32>} : memref<1x16x128xbf16, #tpu.memory_space<vmem>>, vector<1x16x128xbf16>,
    return
  }
  func.func @transform_0(%arg0: i32, %arg1: i32, %arg2: i32) -> (i32, i32, i32) {
    %c0_i32 = arith.constant 0 : i32
    return %arg0, %arg1, %arg2 : i32, i32, i32
  }
  func.func @transform_1(%arg0: i32, %arg1: i32, %arg2: i32) -> (i32, i32, i32) {
    %c0_i32 = arith.constant 0 : i32
    %c0_i32_0 = arith.constant 0 : i32
    return %arg0, %arg2, %c0_i32 : i32, i32, i32
  }
  func.func @transform_2(%arg0: i32, %arg1: i32, %arg2: i32) -> (i32, i32, i32) {
    %c0_i32 = arith.constant 0 : i32
    %c0_i32_0 = arith.constant 0 : i32
    %c0_i32_1 = arith.constant 0 : i32
    %c0_i32_2 = arith.constant 0 : i32
    return %c0_i32, %c0_i32_0, %c0_i32_1 : i32, i32, i32
  }
  func.func @transform_3(%arg0: i32, %arg1: i32, %arg2: i32) -> (i32, i32, i32) {
    %c0_i32 = arith.constant 0 : i32
    %c0_i32_0 = arith.constant 0 : i32
    %c0_i32_1 = arith.constant 0 : i32
    %c0_i32_2 = arith.constant 0 : i32
    return %c0_i32, %c0_i32_0, %c0_i32_1 : i32, i32, i32
  }
  func.func @transform_4(%arg0: i32, %arg1: i32, %arg2: i32) -> (i32, i32, i32) {
    %c0_i32 = arith.constant 0 : i32
    %c0_i32_0 = arith.constant 0 : i32
    return %arg0, %arg1, %c0_i32 : i32, i32, i32
  }
}

module attributes {stable_mosaic.version = 11 : i64} {
  func.func @_conv_mm_kernel(%arg0: i32, %arg1: i32, %arg2: i32, %arg3: memref<1x16x1024xbf16, #tpu.memory_space<vmem>>, %arg4: memref<1x1024x128xbf16, #tpu.memory_space<vmem>>, %arg5: memref<1x16x128xbf16, #tpu.memory_space<vmem>>) attributes {dimension_semantics = [#tpu.dimension_semantics<parallel>, #tpu.dimension_semantics<parallel>, #tpu.dimension_semantics<arbitrary>], iteration_bounds = array<i64: 1, 1, 1>, scalar_prefetch = 0 : i64, scratch_operands = 0 : i64, tpu.core_type = #tpu.core_type<tc>, window_params = [{transform_indices = @transform_0, window_bounds = array<i64: 1, 16, 1024>}, {transform_indices = @transform_1, window_bounds = array<i64: 1, 1024, 128>}, {transform_indices = @transform_2, window_bounds = array<i64: 1, 16, 128>}]} {
    %c0 = arith.constant 0 : index
    %c0_0 = arith.constant 0 : index
    %c0_1 = arith.constant 0 : index
    %0 = vector.load %arg3[%c0, %c0_0, %c0_1] : memref<1x16x1024xbf16, #tpu.memory_space<vmem>>, vector<1x16x1024xbf16>
    %c0_2 = arith.constant 0 : index
    %c0_3 = arith.constant 0 : index
    %c0_4 = arith.constant 0 : index
    %1 = vector.load %arg4[%c0_2, %c0_3, %c0_4] : memref<1x1024x128xbf16, #tpu.memory_space<vmem>>, vector<1x1024x128xbf16>
    "tpu.trace_start"() <{level = 10 : i32, message = "pmk,pkn->pmn"}> : () -> ()
    %cst = arith.constant dense<0.000000e+00> : vector<1x16x128xf32>
    %2 = tpu.matmul %0, %1, %cst {dimension_numbers = #tpu.dot_dimension_numbers<[2], [1], [1], [2], [0, 0, 0, 1, 1, 2], [0], [0]>} : vector<1x16x1024xbf16>, vector<1x1024x128xbf16>, vector<1x16x128xf32> -> vector<1x16x128xf32>
    "tpu.trace_stop"() : () -> ()
    %3 = arith.truncf %2 : vector<1x16x128xf32> to vector<1x16x128xbf16>
    %c0_5 = arith.constant 0 : index
    %c0_6 = arith.constant 0 : index
    %c0_7 = arith.constant 0 : index
    %4 = vector.load %arg5[%c0_5, %c0_6, %c0_7] : memref<1x16x128xbf16, #tpu.memory_space<vmem>>, vector<1x16x128xbf16>
    tpu.vector_store %arg5[%c0_5, %c0_6, %c0_7], %3 {strides = array<i32>} : memref<1x16x128xbf16, #tpu.memory_space<vmem>>, vector<1x16x128xbf16>,
    return
  }
  func.func @transform_0(%arg0: i32, %arg1: i32, %arg2: i32) -> (i32, i32, i32) {
    %c0_i32 = arith.constant 0 : i32
    return %arg0, %arg1, %arg2 : i32, i32, i32
  }
  func.func @transform_1(%arg0: i32, %arg1: i32, %arg2: i32) -> (i32, i32, i32) {
    %c0_i32 = arith.constant 0 : i32
    %c0_i32_0 = arith.constant 0 : i32
    return %arg0, %arg2, %c0_i32 : i32, i32, i32
  }
  func.func @transform_2(%arg0: i32, %arg1: i32, %arg2: i32) -> (i32, i32, i32) {
    %c0_i32 = arith.constant 0 : i32
    %c0_i32_0 = arith.constant 0 : i32
    return %arg0, %arg1, %c0_i32 : i32, i32, i32
  }
}

module attributes {stable_mosaic.version = 11 : i64} {
  func.func @_conv_mm_kernel(%arg0: i32, %arg1: i32, %arg2: i32, %arg3: memref<4x16x256xbf16, #tpu.memory_space<vmem>>, %arg4: memref<4x256x128xbf16, #tpu.memory_space<vmem>>, %arg5: memref<1x1x128xf32, #tpu.memory_space<vmem>>, %arg6: memref<1x1x128xf32, #tpu.memory_space<vmem>>, %arg7: memref<4x16x128xbf16, #tpu.memory_space<vmem>>) attributes {dimension_semantics = [#tpu.dimension_semantics<parallel>, #tpu.dimension_semantics<parallel>, #tpu.dimension_semantics<arbitrary>], iteration_bounds = array<i64: 1, 1, 1>, scalar_prefetch = 0 : i64, scratch_operands = 0 : i64, tpu.core_type = #tpu.core_type<tc>, window_params = [{transform_indices = @transform_0, window_bounds = array<i64: 4, 16, 256>}, {transform_indices = @transform_1, window_bounds = array<i64: 4, 256, 128>}, {pipeline_mode = #tpu.pipeline_mode<synchronous>, transform_indices = @transform_2, window_bounds = array<i64: 1, 1, 128>}, {pipeline_mode = #tpu.pipeline_mode<synchronous>, transform_indices = @transform_3, window_bounds = array<i64: 1, 1, 128>}, {transform_indices = @transform_4, window_bounds = array<i64: 4, 16, 128>}]} {
    %c0 = arith.constant 0 : index
    %c0_0 = arith.constant 0 : index
    %c0_1 = arith.constant 0 : index
    %0 = vector.load %arg3[%c0, %c0_0, %c0_1] : memref<4x16x256xbf16, #tpu.memory_space<vmem>>, vector<4x16x256xbf16>
    %c0_2 = arith.constant 0 : index
    %c0_3 = arith.constant 0 : index
    %c0_4 = arith.constant 0 : index
    %1 = vector.load %arg4[%c0_2, %c0_3, %c0_4] : memref<4x256x128xbf16, #tpu.memory_space<vmem>>, vector<4x256x128xbf16>
    "tpu.trace_start"() <{level = 10 : i32, message = "pmk,pkn->pmn"}> : () -> ()
    %cst = arith.constant dense<0.000000e+00> : vector<4x16x128xf32>
    %2 = tpu.matmul %0, %1, %cst {dimension_numbers = #tpu.dot_dimension_numbers<[2], [1], [1], [2], [0, 0, 0, 1, 1, 2], [0], [0]>} : vector<4x16x256xbf16>, vector<4x256x128xbf16>, vector<4x16x128xf32> -> vector<4x16x128xf32>
    "tpu.trace_stop"() : () -> ()
    %3 = tpu.iota {dimensions = array<i32: 1>} : vector<4x16x128xi32>
    %c2_i32 = arith.constant 2 : i32
    %4 = vector.broadcast %c2_i32 : i32 to vector<4x16x128xi32>
    %5 = arith.cmpi slt, %3, %4 : vector<4x16x128xi32>
    %6 = arith.extui %5 : vector<4x16x128xi1> to vector<4x16x128xi32>
    %7 = arith.sitofp %6 : vector<4x16x128xi32> to vector<4x16x128xf32>
    %8 = arith.mulf %2, %7 : vector<4x16x128xf32>
    %cst_5 = arith.constant dense<0.000000e+00> : vector<4x128xf32>
    %9 = vector.multi_reduction <add>, %8, %cst_5 [1] : vector<4x16x128xf32> to vector<4x128xf32>
    %10 = vector.shape_cast %9 : vector<4x128xf32> to vector<4x1x128xf32>
    %cst_6 = arith.constant dense<0.000000e+00> : vector<1x128xf32>
    %11 = vector.multi_reduction <add>, %10, %cst_6 [0] : vector<4x1x128xf32> to vector<1x128xf32>
    %12 = vector.shape_cast %11 : vector<1x128xf32> to vector<1x1x128xf32>
    %cst_7 = arith.constant 8.000000e+00 : f32
    %13 = vector.broadcast %cst_7 : f32 to vector<1x1x128xf32>
    %14 = arith.divf %12, %13 : vector<1x1x128xf32>
    %15 = vector.broadcast %14 : vector<1x1x128xf32> to vector<4x16x128xf32>
    %16 = arith.subf %2, %15 : vector<4x16x128xf32>
    %17 = arith.mulf %16, %7 : vector<4x16x128xf32>
    %18 = arith.mulf %17, %17 : vector<4x16x128xf32>
    %cst_8 = arith.constant dense<0.000000e+00> : vector<4x128xf32>
    %19 = vector.multi_reduction <add>, %18, %cst_8 [1] : vector<4x16x128xf32> to vector<4x128xf32>
    %20 = vector.shape_cast %19 : vector<4x128xf32> to vector<4x1x128xf32>
    %cst_9 = arith.constant dense<0.000000e+00> : vector<1x128xf32>
    %21 = vector.multi_reduction <add>, %20, %cst_9 [0] : vector<4x1x128xf32> to vector<1x128xf32>
    %22 = vector.shape_cast %21 : vector<1x128xf32> to vector<1x1x128xf32>
    %cst_10 = arith.constant 8.000000e+00 : f32
    %23 = vector.broadcast %cst_10 : f32 to vector<1x1x128xf32>
    %24 = arith.divf %22, %23 : vector<1x1x128xf32>
    %25 = vector.broadcast %14 : vector<1x1x128xf32> to vector<4x16x128xf32>
    %26 = arith.subf %2, %25 : vector<4x16x128xf32>
    %cst_11 = arith.constant 9.99999974E-6 : f32
    %27 = vector.broadcast %cst_11 : f32 to vector<1x1x128xf32>
    %28 = arith.addf %24, %27 : vector<1x1x128xf32>
    %29 = math.rsqrt %28 : vector<1x1x128xf32>
    %30 = vector.broadcast %29 : vector<1x1x128xf32> to vector<4x16x128xf32>
    %31 = arith.mulf %26, %30 : vector<4x16x128xf32>
    %c0_12 = arith.constant 0 : index
    %c0_13 = arith.constant 0 : index
    %c0_14 = arith.constant 0 : index
    %32 = vector.load %arg5[%c0_12, %c0_13, %c0_14] : memref<1x1x128xf32, #tpu.memory_space<vmem>>, vector<1x1x128xf32>
    %33 = vector.broadcast %32 : vector<1x1x128xf32> to vector<4x16x128xf32>
    %34 = arith.mulf %31, %33 : vector<4x16x128xf32>
    %c0_15 = arith.constant 0 : index
    %c0_16 = arith.constant 0 : index
    %c0_17 = arith.constant 0 : index
    %35 = vector.load %arg6[%c0_15, %c0_16, %c0_17] : memref<1x1x128xf32, #tpu.memory_space<vmem>>, vector<1x1x128xf32>
    %36 = vector.broadcast %35 : vector<1x1x128xf32> to vector<4x16x128xf32>
    %37 = arith.addf %34, %36 : vector<4x16x128xf32>
    %38 = arith.truncf %37 : vector<4x16x128xf32> to vector<4x16x128xbf16>
    %c0_18 = arith.constant 0 : index
    %c0_19 = arith.constant 0 : index
    %c0_20 = arith.constant 0 : index
    %39 = vector.load %arg7[%c0_18, %c0_19, %c0_20] : memref<4x16x128xbf16, #tpu.memory_space<vmem>>, vector<4x16x128xbf16>
    tpu.vector_store %arg7[%c0_18, %c0_19, %c0_20], %38 {strides = array<i32>} : memref<4x16x128xbf16, #tpu.memory_space<vmem>>, vector<4x16x128xbf16>,
    return
  }
  func.func @transform_0(%arg0: i32, %arg1: i32, %arg2: i32) -> (i32, i32, i32) {
    %c0_i32 = arith.constant 0 : i32
    return %arg0, %arg1, %arg2 : i32, i32, i32
  }
  func.func @transform_1(%arg0: i32, %arg1: i32, %arg2: i32) -> (i32, i32, i32) {
    %c0_i32 = arith.constant 0 : i32
    %c0_i32_0 = arith.constant 0 : i32
    return %arg0, %arg2, %c0_i32 : i32, i32, i32
  }
  func.func @transform_2(%arg0: i32, %arg1: i32, %arg2: i32) -> (i32, i32, i32) {
    %c0_i32 = arith.constant 0 : i32
    %c0_i32_0 = arith.constant 0 : i32
    %c0_i32_1 = arith.constant 0 : i32
    %c0_i32_2 = arith.constant 0 : i32
    return %c0_i32, %c0_i32_0, %c0_i32_1 : i32, i32, i32
  }
  func.func @transform_3(%arg0: i32, %arg1: i32, %arg2: i32) -> (i32, i32, i32) {
    %c0_i32 = arith.constant 0 : i32
    %c0_i32_0 = arith.constant 0 : i32
    %c0_i32_1 = arith.constant 0 : i32
    %c0_i32_2 = arith.constant 0 : i32
    return %c0_i32, %c0_i32_0, %c0_i32_1 : i32, i32, i32
  }
  func.func @transform_4(%arg0: i32, %arg1: i32, %arg2: i32) -> (i32, i32, i32) {
    %c0_i32 = arith.constant 0 : i32
    %c0_i32_0 = arith.constant 0 : i32
    return %arg0, %arg1, %c0_i32 : i32, i32, i32
  }
}

module attributes {stable_mosaic.version = 11 : i64} {
  func.func @_conv_mm_kernel(%arg0: i32, %arg1: i32, %arg2: i32, %arg3: memref<4x16x512xbf16, #tpu.memory_space<vmem>>, %arg4: memref<4x512x128xbf16, #tpu.memory_space<vmem>>, %arg5: memref<1x1x128xf32, #tpu.memory_space<vmem>>, %arg6: memref<1x1x128xf32, #tpu.memory_space<vmem>>, %arg7: memref<4x16x128xbf16, #tpu.memory_space<vmem>>) attributes {dimension_semantics = [#tpu.dimension_semantics<parallel>, #tpu.dimension_semantics<parallel>, #tpu.dimension_semantics<arbitrary>], iteration_bounds = array<i64: 1, 1, 1>, scalar_prefetch = 0 : i64, scratch_operands = 0 : i64, tpu.core_type = #tpu.core_type<tc>, window_params = [{transform_indices = @transform_0, window_bounds = array<i64: 4, 16, 512>}, {transform_indices = @transform_1, window_bounds = array<i64: 4, 512, 128>}, {pipeline_mode = #tpu.pipeline_mode<synchronous>, transform_indices = @transform_2, window_bounds = array<i64: 1, 1, 128>}, {pipeline_mode = #tpu.pipeline_mode<synchronous>, transform_indices = @transform_3, window_bounds = array<i64: 1, 1, 128>}, {transform_indices = @transform_4, window_bounds = array<i64: 4, 16, 128>}]} {
    %c0 = arith.constant 0 : index
    %c0_0 = arith.constant 0 : index
    %c0_1 = arith.constant 0 : index
    %0 = vector.load %arg3[%c0, %c0_0, %c0_1] : memref<4x16x512xbf16, #tpu.memory_space<vmem>>, vector<4x16x512xbf16>
    %c0_2 = arith.constant 0 : index
    %c0_3 = arith.constant 0 : index
    %c0_4 = arith.constant 0 : index
    %1 = vector.load %arg4[%c0_2, %c0_3, %c0_4] : memref<4x512x128xbf16, #tpu.memory_space<vmem>>, vector<4x512x128xbf16>
    "tpu.trace_start"() <{level = 10 : i32, message = "pmk,pkn->pmn"}> : () -> ()
    %cst = arith.constant dense<0.000000e+00> : vector<4x16x128xf32>
    %2 = tpu.matmul %0, %1, %cst {dimension_numbers = #tpu.dot_dimension_numbers<[2], [1], [1], [2], [0, 0, 0, 1, 1, 2], [0], [0]>} : vector<4x16x512xbf16>, vector<4x512x128xbf16>, vector<4x16x128xf32> -> vector<4x16x128xf32>
    "tpu.trace_stop"() : () -> ()
    %3 = tpu.iota {dimensions = array<i32: 1>} : vector<4x16x128xi32>
    %c8_i32 = arith.constant 8 : i32
    %4 = vector.broadcast %c8_i32 : i32 to vector<4x16x128xi32>
    %5 = arith.cmpi slt, %3, %4 : vector<4x16x128xi32>
    %6 = arith.extui %5 : vector<4x16x128xi1> to vector<4x16x128xi32>
    %7 = arith.sitofp %6 : vector<4x16x128xi32> to vector<4x16x128xf32>
    %8 = arith.mulf %2, %7 : vector<4x16x128xf32>
    %cst_5 = arith.constant dense<0.000000e+00> : vector<4x128xf32>
    %9 = vector.multi_reduction <add>, %8, %cst_5 [1] : vector<4x16x128xf32> to vector<4x128xf32>
    %10 = vector.shape_cast %9 : vector<4x128xf32> to vector<4x1x128xf32>
    %cst_6 = arith.constant dense<0.000000e+00> : vector<1x128xf32>
    %11 = vector.multi_reduction <add>, %10, %cst_6 [0] : vector<4x1x128xf32> to vector<1x128xf32>
    %12 = vector.shape_cast %11 : vector<1x128xf32> to vector<1x1x128xf32>
    %cst_7 = arith.constant 3.200000e+01 : f32
    %13 = vector.broadcast %cst_7 : f32 to vector<1x1x128xf32>
    %14 = arith.divf %12, %13 : vector<1x1x128xf32>
    %15 = vector.broadcast %14 : vector<1x1x128xf32> to vector<4x16x128xf32>
    %16 = arith.subf %2, %15 : vector<4x16x128xf32>
    %17 = arith.mulf %16, %7 : vector<4x16x128xf32>
    %18 = arith.mulf %17, %17 : vector<4x16x128xf32>
    %cst_8 = arith.constant dense<0.000000e+00> : vector<4x128xf32>
    %19 = vector.multi_reduction <add>, %18, %cst_8 [1] : vector<4x16x128xf32> to vector<4x128xf32>
    %20 = vector.shape_cast %19 : vector<4x128xf32> to vector<4x1x128xf32>
    %cst_9 = arith.constant dense<0.000000e+00> : vector<1x128xf32>
    %21 = vector.multi_reduction <add>, %20, %cst_9 [0] : vector<4x1x128xf32> to vector<1x128xf32>
    %22 = vector.shape_cast %21 : vector<1x128xf32> to vector<1x1x128xf32>
    %cst_10 = arith.constant 3.200000e+01 : f32
    %23 = vector.broadcast %cst_10 : f32 to vector<1x1x128xf32>
    %24 = arith.divf %22, %23 : vector<1x1x128xf32>
    %25 = vector.broadcast %14 : vector<1x1x128xf32> to vector<4x16x128xf32>
    %26 = arith.subf %2, %25 : vector<4x16x128xf32>
    %cst_11 = arith.constant 9.99999974E-6 : f32
    %27 = vector.broadcast %cst_11 : f32 to vector<1x1x128xf32>
    %28 = arith.addf %24, %27 : vector<1x1x128xf32>
    %29 = math.rsqrt %28 : vector<1x1x128xf32>
    %30 = vector.broadcast %29 : vector<1x1x128xf32> to vector<4x16x128xf32>
    %31 = arith.mulf %26, %30 : vector<4x16x128xf32>
    %c0_12 = arith.constant 0 : index
    %c0_13 = arith.constant 0 : index
    %c0_14 = arith.constant 0 : index
    %32 = vector.load %arg5[%c0_12, %c0_13, %c0_14] : memref<1x1x128xf32, #tpu.memory_space<vmem>>, vector<1x1x128xf32>
    %33 = vector.broadcast %32 : vector<1x1x128xf32> to vector<4x16x128xf32>
    %34 = arith.mulf %31, %33 : vector<4x16x128xf32>
    %c0_15 = arith.constant 0 : index
    %c0_16 = arith.constant 0 : index
    %c0_17 = arith.constant 0 : index
    %35 = vector.load %arg6[%c0_15, %c0_16, %c0_17] : memref<1x1x128xf32, #tpu.memory_space<vmem>>, vector<1x1x128xf32>
    %36 = vector.broadcast %35 : vector<1x1x128xf32> to vector<4x16x128xf32>
    %37 = arith.addf %34, %36 : vector<4x16x128xf32>
    %38 = arith.truncf %37 : vector<4x16x128xf32> to vector<4x16x128xbf16>
    %c0_18 = arith.constant 0 : index
    %c0_19 = arith.constant 0 : index
    %c0_20 = arith.constant 0 : index
    %39 = vector.load %arg7[%c0_18, %c0_19, %c0_20] : memref<4x16x128xbf16, #tpu.memory_space<vmem>>, vector<4x16x128xbf16>
    tpu.vector_store %arg7[%c0_18, %c0_19, %c0_20], %38 {strides = array<i32>} : memref<4x16x128xbf16, #tpu.memory_space<vmem>>, vector<4x16x128xbf16>,
    return
  }
  func.func @transform_0(%arg0: i32, %arg1: i32, %arg2: i32) -> (i32, i32, i32) {
    %c0_i32 = arith.constant 0 : i32
    return %arg0, %arg1, %arg2 : i32, i32, i32
  }
  func.func @transform_1(%arg0: i32, %arg1: i32, %arg2: i32) -> (i32, i32, i32) {
    %c0_i32 = arith.constant 0 : i32
    %c0_i32_0 = arith.constant 0 : i32
    return %arg0, %arg2, %c0_i32 : i32, i32, i32
  }
  func.func @transform_2(%arg0: i32, %arg1: i32, %arg2: i32) -> (i32, i32, i32) {
    %c0_i32 = arith.constant 0 : i32
    %c0_i32_0 = arith.constant 0 : i32
    %c0_i32_1 = arith.constant 0 : i32
    %c0_i32_2 = arith.constant 0 : i32
    return %c0_i32, %c0_i32_0, %c0_i32_1 : i32, i32, i32
  }
  func.func @transform_3(%arg0: i32, %arg1: i32, %arg2: i32) -> (i32, i32, i32) {
    %c0_i32 = arith.constant 0 : i32
    %c0_i32_0 = arith.constant 0 : i32
    %c0_i32_1 = arith.constant 0 : i32
    %c0_i32_2 = arith.constant 0 : i32
    return %c0_i32, %c0_i32_0, %c0_i32_1 : i32, i32, i32
  }
  func.func @transform_4(%arg0: i32, %arg1: i32, %arg2: i32) -> (i32, i32, i32) {
    %c0_i32 = arith.constant 0 : i32
    %c0_i32_0 = arith.constant 0 : i32
    return %arg0, %arg1, %c0_i32 : i32, i32, i32
  }
}

module attributes {stable_mosaic.version = 11 : i64} {
  func.func @_conv_mm_kernel(%arg0: i32, %arg1: i32, %arg2: i32, %arg3: memref<4x32x256xbf16, #tpu.memory_space<vmem>>, %arg4: memref<4x256x128xbf16, #tpu.memory_space<vmem>>, %arg5: memref<1x1x128xf32, #tpu.memory_space<vmem>>, %arg6: memref<1x1x128xf32, #tpu.memory_space<vmem>>, %arg7: memref<4x32x128xbf16, #tpu.memory_space<vmem>>) attributes {dimension_semantics = [#tpu.dimension_semantics<parallel>, #tpu.dimension_semantics<parallel>, #tpu.dimension_semantics<arbitrary>], iteration_bounds = array<i64: 1, 1, 1>, scalar_prefetch = 0 : i64, scratch_operands = 0 : i64, tpu.core_type = #tpu.core_type<tc>, window_params = [{transform_indices = @transform_0, window_bounds = array<i64: 4, 32, 256>}, {transform_indices = @transform_1, window_bounds = array<i64: 4, 256, 128>}, {pipeline_mode = #tpu.pipeline_mode<synchronous>, transform_indices = @transform_2, window_bounds = array<i64: 1, 1, 128>}, {pipeline_mode = #tpu.pipeline_mode<synchronous>, transform_indices = @transform_3, window_bounds = array<i64: 1, 1, 128>}, {transform_indices = @transform_4, window_bounds = array<i64: 4, 32, 128>}]} {
    %c0 = arith.constant 0 : index
    %c0_0 = arith.constant 0 : index
    %c0_1 = arith.constant 0 : index
    %0 = vector.load %arg3[%c0, %c0_0, %c0_1] : memref<4x32x256xbf16, #tpu.memory_space<vmem>>, vector<4x32x256xbf16>
    %c0_2 = arith.constant 0 : index
    %c0_3 = arith.constant 0 : index
    %c0_4 = arith.constant 0 : index
    %1 = vector.load %arg4[%c0_2, %c0_3, %c0_4] : memref<4x256x128xbf16, #tpu.memory_space<vmem>>, vector<4x256x128xbf16>
    "tpu.trace_start"() <{level = 10 : i32, message = "pmk,pkn->pmn"}> : () -> ()
    %cst = arith.constant dense<0.000000e+00> : vector<4x32x128xf32>
    %2 = tpu.matmul %0, %1, %cst {dimension_numbers = #tpu.dot_dimension_numbers<[2], [1], [1], [2], [0, 0, 0, 1, 1, 2], [0], [0]>} : vector<4x32x256xbf16>, vector<4x256x128xbf16>, vector<4x32x128xf32> -> vector<4x32x128xf32>
    "tpu.trace_stop"() : () -> ()
    %cst_5 = arith.constant dense<0.000000e+00> : vector<4x128xf32>
    %3 = vector.multi_reduction <add>, %2, %cst_5 [1] : vector<4x32x128xf32> to vector<4x128xf32>
    %4 = vector.shape_cast %3 : vector<4x128xf32> to vector<4x1x128xf32>
    %cst_6 = arith.constant 3.200000e+01 : f32
    %5 = vector.broadcast %cst_6 : f32 to vector<4x1x128xf32>
    %6 = arith.divf %4, %5 : vector<4x1x128xf32>
    %cst_7 = arith.constant dense<0.000000e+00> : vector<1x128xf32>
    %7 = vector.multi_reduction <add>, %6, %cst_7 [0] : vector<4x1x128xf32> to vector<1x128xf32>
    %8 = vector.shape_cast %7 : vector<1x128xf32> to vector<1x1x128xf32>
    %cst_8 = arith.constant 4.000000e+00 : f32
    %9 = vector.broadcast %cst_8 : f32 to vector<1x1x128xf32>
    %10 = arith.divf %8, %9 : vector<1x1x128xf32>
    %11 = vector.broadcast %10 : vector<1x1x128xf32> to vector<4x32x128xf32>
    %12 = arith.subf %2, %11 : vector<4x32x128xf32>
    %13 = arith.mulf %12, %12 : vector<4x32x128xf32>
    %cst_9 = arith.constant dense<0.000000e+00> : vector<4x128xf32>
    %14 = vector.multi_reduction <add>, %13, %cst_9 [1] : vector<4x32x128xf32> to vector<4x128xf32>
    %15 = vector.shape_cast %14 : vector<4x128xf32> to vector<4x1x128xf32>
    %cst_10 = arith.constant 3.200000e+01 : f32
    %16 = vector.broadcast %cst_10 : f32 to vector<4x1x128xf32>
    %17 = arith.divf %15, %16 : vector<4x1x128xf32>
    %cst_11 = arith.constant dense<0.000000e+00> : vector<1x128xf32>
    %18 = vector.multi_reduction <add>, %17, %cst_11 [0] : vector<4x1x128xf32> to vector<1x128xf32>
    %19 = vector.shape_cast %18 : vector<1x128xf32> to vector<1x1x128xf32>
    %cst_12 = arith.constant 4.000000e+00 : f32
    %20 = vector.broadcast %cst_12 : f32 to vector<1x1x128xf32>
    %21 = arith.divf %19, %20 : vector<1x1x128xf32>
    %22 = vector.broadcast %10 : vector<1x1x128xf32> to vector<4x32x128xf32>
    %23 = arith.subf %2, %22 : vector<4x32x128xf32>
    %cst_13 = arith.constant 9.99999974E-6 : f32
    %24 = vector.broadcast %cst_13 : f32 to vector<1x1x128xf32>
    %25 = arith.addf %21, %24 : vector<1x1x128xf32>
    %26 = math.rsqrt %25 : vector<1x1x128xf32>
    %27 = vector.broadcast %26 : vector<1x1x128xf32> to vector<4x32x128xf32>
    %28 = arith.mulf %23, %27 : vector<4x32x128xf32>
    %c0_14 = arith.constant 0 : index
    %c0_15 = arith.constant 0 : index
    %c0_16 = arith.constant 0 : index
    %29 = vector.load %arg5[%c0_14, %c0_15, %c0_16] : memref<1x1x128xf32, #tpu.memory_space<vmem>>, vector<1x1x128xf32>
    %30 = vector.broadcast %29 : vector<1x1x128xf32> to vector<4x32x128xf32>
    %31 = arith.mulf %28, %30 : vector<4x32x128xf32>
    %c0_17 = arith.constant 0 : index
    %c0_18 = arith.constant 0 : index
    %c0_19 = arith.constant 0 : index
    %32 = vector.load %arg6[%c0_17, %c0_18, %c0_19] : memref<1x1x128xf32, #tpu.memory_space<vmem>>, vector<1x1x128xf32>
    %33 = vector.broadcast %32 : vector<1x1x128xf32> to vector<4x32x128xf32>
    %34 = arith.addf %31, %33 : vector<4x32x128xf32>
    %35 = arith.truncf %34 : vector<4x32x128xf32> to vector<4x32x128xbf16>
    %c0_20 = arith.constant 0 : index
    %c0_21 = arith.constant 0 : index
    %c0_22 = arith.constant 0 : index
    %36 = vector.load %arg7[%c0_20, %c0_21, %c0_22] : memref<4x32x128xbf16, #tpu.memory_space<vmem>>, vector<4x32x128xbf16>
    tpu.vector_store %arg7[%c0_20, %c0_21, %c0_22], %35 {strides = array<i32>} : memref<4x32x128xbf16, #tpu.memory_space<vmem>>, vector<4x32x128xbf16>,
    return
  }
  func.func @transform_0(%arg0: i32, %arg1: i32, %arg2: i32) -> (i32, i32, i32) {
    %c0_i32 = arith.constant 0 : i32
    return %arg0, %arg1, %arg2 : i32, i32, i32
  }
  func.func @transform_1(%arg0: i32, %arg1: i32, %arg2: i32) -> (i32, i32, i32) {
    %c0_i32 = arith.constant 0 : i32
    %c0_i32_0 = arith.constant 0 : i32
    return %arg0, %arg2, %c0_i32 : i32, i32, i32
  }
  func.func @transform_2(%arg0: i32, %arg1: i32, %arg2: i32) -> (i32, i32, i32) {
    %c0_i32 = arith.constant 0 : i32
    %c0_i32_0 = arith.constant 0 : i32
    %c0_i32_1 = arith.constant 0 : i32
    %c0_i32_2 = arith.constant 0 : i32
    return %c0_i32, %c0_i32_0, %c0_i32_1 : i32, i32, i32
  }
  func.func @transform_3(%arg0: i32, %arg1: i32, %arg2: i32) -> (i32, i32, i32) {
    %c0_i32 = arith.constant 0 : i32
    %c0_i32_0 = arith.constant 0 : i32
    %c0_i32_1 = arith.constant 0 : i32
    %c0_i32_2 = arith.constant 0 : i32
    return %c0_i32, %c0_i32_0, %c0_i32_1 : i32, i32, i32
  }
  func.func @transform_4(%arg0: i32, %arg1: i32, %arg2: i32) -> (i32, i32, i32) {
    %c0_i32 = arith.constant 0 : i32
    %c0_i32_0 = arith.constant 0 : i32
    return %arg0, %arg1, %c0_i32 : i32, i32, i32
  }
}

module attributes {stable_mosaic.version = 11 : i64} {
  func.func @_conv_mm_kernel(%arg0: i32, %arg1: i32, %arg2: i32, %arg3: memref<4x128x128xbf16, #tpu.memory_space<vmem>>, %arg4: memref<4x128x128xbf16, #tpu.memory_space<vmem>>, %arg5: memref<1x1x128xf32, #tpu.memory_space<vmem>>, %arg6: memref<1x1x128xf32, #tpu.memory_space<vmem>>, %arg7: memref<4x128x128xbf16, #tpu.memory_space<vmem>>) attributes {dimension_semantics = [#tpu.dimension_semantics<parallel>, #tpu.dimension_semantics<parallel>, #tpu.dimension_semantics<arbitrary>], iteration_bounds = array<i64: 1, 1, 1>, scalar_prefetch = 0 : i64, scratch_operands = 0 : i64, tpu.core_type = #tpu.core_type<tc>, window_params = [{transform_indices = @transform_0, window_bounds = array<i64: 4, 128, 128>}, {transform_indices = @transform_1, window_bounds = array<i64: 4, 128, 128>}, {pipeline_mode = #tpu.pipeline_mode<synchronous>, transform_indices = @transform_2, window_bounds = array<i64: 1, 1, 128>}, {pipeline_mode = #tpu.pipeline_mode<synchronous>, transform_indices = @transform_3, window_bounds = array<i64: 1, 1, 128>}, {transform_indices = @transform_4, window_bounds = array<i64: 4, 128, 128>}]} {
    %c0 = arith.constant 0 : index
    %c0_0 = arith.constant 0 : index
    %c0_1 = arith.constant 0 : index
    %0 = vector.load %arg3[%c0, %c0_0, %c0_1] : memref<4x128x128xbf16, #tpu.memory_space<vmem>>, vector<4x128x128xbf16>
    %c0_2 = arith.constant 0 : index
    %c0_3 = arith.constant 0 : index
    %c0_4 = arith.constant 0 : index
    %1 = vector.load %arg4[%c0_2, %c0_3, %c0_4] : memref<4x128x128xbf16, #tpu.memory_space<vmem>>, vector<4x128x128xbf16>
    "tpu.trace_start"() <{level = 10 : i32, message = "pmk,pkn->pmn"}> : () -> ()
    %cst = arith.constant dense<0.000000e+00> : vector<4x128x128xf32>
    %2 = tpu.matmul %0, %1, %cst {dimension_numbers = #tpu.dot_dimension_numbers<[2], [1], [1], [2], [0, 0, 0, 1, 1, 2], [0], [0]>} : vector<4x128x128xbf16>, vector<4x128x128xbf16>, vector<4x128x128xf32> -> vector<4x128x128xf32>
    "tpu.trace_stop"() : () -> ()
    %cst_5 = arith.constant dense<0.000000e+00> : vector<4x128xf32>
    %3 = vector.multi_reduction <add>, %2, %cst_5 [1] : vector<4x128x128xf32> to vector<4x128xf32>
    %4 = vector.shape_cast %3 : vector<4x128xf32> to vector<4x1x128xf32>
    %cst_6 = arith.constant 1.280000e+02 : f32
    %5 = vector.broadcast %cst_6 : f32 to vector<4x1x128xf32>
    %6 = arith.divf %4, %5 : vector<4x1x128xf32>
    %cst_7 = arith.constant dense<0.000000e+00> : vector<1x128xf32>
    %7 = vector.multi_reduction <add>, %6, %cst_7 [0] : vector<4x1x128xf32> to vector<1x128xf32>
    %8 = vector.shape_cast %7 : vector<1x128xf32> to vector<1x1x128xf32>
    %cst_8 = arith.constant 4.000000e+00 : f32
    %9 = vector.broadcast %cst_8 : f32 to vector<1x1x128xf32>
    %10 = arith.divf %8, %9 : vector<1x1x128xf32>
    %11 = vector.broadcast %10 : vector<1x1x128xf32> to vector<4x128x128xf32>
    %12 = arith.subf %2, %11 : vector<4x128x128xf32>
    %13 = arith.mulf %12, %12 : vector<4x128x128xf32>
    %cst_9 = arith.constant dense<0.000000e+00> : vector<4x128xf32>
    %14 = vector.multi_reduction <add>, %13, %cst_9 [1] : vector<4x128x128xf32> to vector<4x128xf32>
    %15 = vector.shape_cast %14 : vector<4x128xf32> to vector<4x1x128xf32>
    %cst_10 = arith.constant 1.280000e+02 : f32
    %16 = vector.broadcast %cst_10 : f32 to vector<4x1x128xf32>
    %17 = arith.divf %15, %16 : vector<4x1x128xf32>
    %cst_11 = arith.constant dense<0.000000e+00> : vector<1x128xf32>
    %18 = vector.multi_reduction <add>, %17, %cst_11 [0] : vector<4x1x128xf32> to vector<1x128xf32>
    %19 = vector.shape_cast %18 : vector<1x128xf32> to vector<1x1x128xf32>
    %cst_12 = arith.constant 4.000000e+00 : f32
    %20 = vector.broadcast %cst_12 : f32 to vector<1x1x128xf32>
    %21 = arith.divf %19, %20 : vector<1x1x128xf32>
    %22 = vector.broadcast %10 : vector<1x1x128xf32> to vector<4x128x128xf32>
    %23 = arith.subf %2, %22 : vector<4x128x128xf32>
    %cst_13 = arith.constant 9.99999974E-6 : f32
    %24 = vector.broadcast %cst_13 : f32 to vector<1x1x128xf32>
    %25 = arith.addf %21, %24 : vector<1x1x128xf32>
    %26 = math.rsqrt %25 : vector<1x1x128xf32>
    %27 = vector.broadcast %26 : vector<1x1x128xf32> to vector<4x128x128xf32>
    %28 = arith.mulf %23, %27 : vector<4x128x128xf32>
    %c0_14 = arith.constant 0 : index
    %c0_15 = arith.constant 0 : index
    %c0_16 = arith.constant 0 : index
    %29 = vector.load %arg5[%c0_14, %c0_15, %c0_16] : memref<1x1x128xf32, #tpu.memory_space<vmem>>, vector<1x1x128xf32>
    %30 = vector.broadcast %29 : vector<1x1x128xf32> to vector<4x128x128xf32>
    %31 = arith.mulf %28, %30 : vector<4x128x128xf32>
    %c0_17 = arith.constant 0 : index
    %c0_18 = arith.constant 0 : index
    %c0_19 = arith.constant 0 : index
    %32 = vector.load %arg6[%c0_17, %c0_18, %c0_19] : memref<1x1x128xf32, #tpu.memory_space<vmem>>, vector<1x1x128xf32>
    %33 = vector.broadcast %32 : vector<1x1x128xf32> to vector<4x128x128xf32>
    %34 = arith.addf %31, %33 : vector<4x128x128xf32>
    %35 = arith.truncf %34 : vector<4x128x128xf32> to vector<4x128x128xbf16>
    %c0_20 = arith.constant 0 : index
    %c0_21 = arith.constant 0 : index
    %c0_22 = arith.constant 0 : index
    %36 = vector.load %arg7[%c0_20, %c0_21, %c0_22] : memref<4x128x128xbf16, #tpu.memory_space<vmem>>, vector<4x128x128xbf16>
    tpu.vector_store %arg7[%c0_20, %c0_21, %c0_22], %35 {strides = array<i32>} : memref<4x128x128xbf16, #tpu.memory_space<vmem>>, vector<4x128x128xbf16>,
    return
  }
  func.func @transform_0(%arg0: i32, %arg1: i32, %arg2: i32) -> (i32, i32, i32) {
    %c0_i32 = arith.constant 0 : i32
    return %arg0, %arg1, %arg2 : i32, i32, i32
  }
  func.func @transform_1(%arg0: i32, %arg1: i32, %arg2: i32) -> (i32, i32, i32) {
    %c0_i32 = arith.constant 0 : i32
    %c0_i32_0 = arith.constant 0 : i32
    return %arg0, %arg2, %c0_i32 : i32, i32, i32
  }
  func.func @transform_2(%arg0: i32, %arg1: i32, %arg2: i32) -> (i32, i32, i32) {
    %c0_i32 = arith.constant 0 : i32
    %c0_i32_0 = arith.constant 0 : i32
    %c0_i32_1 = arith.constant 0 : i32
    %c0_i32_2 = arith.constant 0 : i32
    return %c0_i32, %c0_i32_0, %c0_i32_1 : i32, i32, i32
  }
  func.func @transform_3(%arg0: i32, %arg1: i32, %arg2: i32) -> (i32, i32, i32) {
    %c0_i32 = arith.constant 0 : i32
    %c0_i32_0 = arith.constant 0 : i32
    %c0_i32_1 = arith.constant 0 : i32
    %c0_i32_2 = arith.constant 0 : i32
    return %c0_i32, %c0_i32_0, %c0_i32_1 : i32, i32, i32
  }
  func.func @transform_4(%arg0: i32, %arg1: i32, %arg2: i32) -> (i32, i32, i32) {
    %c0_i32 = arith.constant 0 : i32
    %c0_i32_0 = arith.constant 0 : i32
    return %arg0, %arg1, %c0_i32 : i32, i32, i32
  }
}

module attributes {stable_mosaic.version = 11 : i64} {
  func.func @_conv_mm_kernel(%arg0: i32, %arg1: i32, %arg2: i32, %arg3: memref<1x512x64xbf16, #tpu.memory_space<vmem>>, %arg4: memref<1x64x128xbf16, #tpu.memory_space<vmem>>, %arg5: memref<1x1x128xf32, #tpu.memory_space<vmem>>, %arg6: memref<1x512x128xf32, #tpu.memory_space<vmem>>) attributes {dimension_semantics = [#tpu.dimension_semantics<parallel>, #tpu.dimension_semantics<parallel>, #tpu.dimension_semantics<arbitrary>], iteration_bounds = array<i64: 4, 1, 1>, scalar_prefetch = 0 : i64, scratch_operands = 0 : i64, tpu.core_type = #tpu.core_type<tc>, window_params = [{transform_indices = @transform_0, window_bounds = array<i64: 1, 512, 64>}, {transform_indices = @transform_1, window_bounds = array<i64: 1, 64, 128>}, {pipeline_mode = #tpu.pipeline_mode<synchronous>, transform_indices = @transform_2, window_bounds = array<i64: 1, 1, 128>}, {transform_indices = @transform_3, window_bounds = array<i64: 1, 512, 128>}]} {
    %c0 = arith.constant 0 : index
    %c0_0 = arith.constant 0 : index
    %c0_1 = arith.constant 0 : index
    %0 = vector.load %arg3[%c0, %c0_0, %c0_1] : memref<1x512x64xbf16, #tpu.memory_space<vmem>>, vector<1x512x64xbf16>
    %c0_2 = arith.constant 0 : index
    %c0_3 = arith.constant 0 : index
    %c0_4 = arith.constant 0 : index
    %1 = vector.load %arg4[%c0_2, %c0_3, %c0_4] : memref<1x64x128xbf16, #tpu.memory_space<vmem>>, vector<1x64x128xbf16>
    "tpu.trace_start"() <{level = 10 : i32, message = "pmk,pkn->pmn"}> : () -> ()
    %cst = arith.constant dense<0.000000e+00> : vector<1x512x128xf32>
    %2 = tpu.matmul %0, %1, %cst {dimension_numbers = #tpu.dot_dimension_numbers<[2], [1], [1], [2], [0, 0, 0, 1, 1, 2], [0], [0]>} : vector<1x512x64xbf16>, vector<1x64x128xbf16>, vector<1x512x128xf32> -> vector<1x512x128xf32>
    "tpu.trace_stop"() : () -> ()
    %c0_5 = arith.constant 0 : index
    %c0_6 = arith.constant 0 : index
    %c0_7 = arith.constant 0 : index
    %3 = vector.load %arg5[%c0_5, %c0_6, %c0_7] : memref<1x1x128xf32, #tpu.memory_space<vmem>>, vector<1x1x128xf32>
    %4 = vector.broadcast %3 : vector<1x1x128xf32> to vector<1x512x128xf32>
    %5 = arith.addf %2, %4 : vector<1x512x128xf32>
    %6 = math.tanh %5 : vector<1x512x128xf32>
    %c0_8 = arith.constant 0 : index
    %c0_9 = arith.constant 0 : index
    %c0_10 = arith.constant 0 : index
    %7 = vector.load %arg6[%c0_8, %c0_9, %c0_10] : memref<1x512x128xf32, #tpu.memory_space<vmem>>, vector<1x512x128xf32>
    tpu.vector_store %arg6[%c0_8, %c0_9, %c0_10], %6 {strides = array<i32>} : memref<1x512x128xf32, #tpu.memory_space<vmem>>, vector<1x512x128xf32>,
    return
  }
  func.func @transform_0(%arg0: i32, %arg1: i32, %arg2: i32) -> (i32, i32, i32) {
    %c0_i32 = arith.constant 0 : i32
    return %arg0, %arg1, %arg2 : i32, i32, i32
  }
  func.func @transform_1(%arg0: i32, %arg1: i32, %arg2: i32) -> (i32, i32, i32) {
    %c0_i32 = arith.constant 0 : i32
    %c0_i32_0 = arith.constant 0 : i32
    return %arg0, %arg2, %c0_i32 : i32, i32, i32
  }
  func.func @transform_2(%arg0: i32, %arg1: i32, %arg2: i32) -> (i32, i32, i32) {
    %c0_i32 = arith.constant 0 : i32
    %c0_i32_0 = arith.constant 0 : i32
    %c0_i32_1 = arith.constant 0 : i32
    %c0_i32_2 = arith.constant 0 : i32
    return %c0_i32, %c0_i32_0, %c0_i32_1 : i32, i32, i32
  }
  func.func @transform_3(%arg0: i32, %arg1: i32, %arg2: i32) -> (i32, i32, i32) {
    %c0_i32 = arith.constant 0 : i32
    %c0_i32_0 = arith.constant 0 : i32
    return %arg0, %arg1, %c0_i32 : i32, i32, i32
  }
}

</mosaic_0001>

<bundles_post_ra>
// kernel: _lambda_.10
= control target key start
LH: loop header
LB: loop body
LE: loop exit
PB: predicated region body
PF: predicated region fallthrough
CT: control target
= control target key end

     0   :  { %vm260_vm0 = vcmask 392192   ;;  %s1750_s1 = inlined_call_operand.vmem [shape: bf16[1,48,128], index: 1, kind: input, shape index: {}]   ;;  %s1751_s0 = inlined_call_operand.vmem [shape: bf16[1,512,48], index: 0, kind: input, shape index: {}]   ;;  %s1752_s2 = inlined_call_operand.vmem [shape: bf16[1,512,128], index: 2, kind: output, shape index: {}]  }
   0x1   :  { %v1467_v0 = vld [vmem:[%s1750_s1 + $0x10] sm:$0xff]   ;;  %v1468_v1 = vld [vmem:[%s1750_s1 + $0x8] sm:$0xff]   ;;  %v1469_v2 = vld [vmem:[%s1750_s1] sm:$0xff]  }
   0x2   :  { %1391 = vmatprep.subr.bf16.mxu0 %v1467_v0  ;;  %1461 = vmatprep.subr.bf16.mxu1 %v1467_v0  ;;  %v1470_v3 = vld [vmem:[%s1751_s0] sm:$0xff]   ;;  %v1472_v5 = vld [vmem:[%s1751_s0 + $0x8] sm:$0xff]   ;;  %v1474_v7 = vld [vmem:[%s1751_s0 + $0x10] sm:$0xff]  }
   0x3   :  { %1392 = vmatpush3.bf16.msra.mxu0 %v1467_v0  ;;  %1464 = vmatpush3.bf16.msra.mxu1 %v1467_v0  ;;  %v1471_v4 = vld [vmem:[%s1751_s0 + $0x80] sm:$0xff]   ;;  %v1473_v6 = vld [vmem:[%s1751_s0 + $0x88] sm:$0xff]   ;;  %v1475_v8 = vld [vmem:[%s1751_s0 + $0x90] sm:$0xff]  }
   0x4   :  { %1393 = vmatprep.subr.bf16.mxu0 %v1468_v1  ;;  %1462 = vmatprep.subr.bf16.mxu1 %v1468_v1  ;;  %v1476_v9 = vld [vmem:[%s1751_s0 + $0x18] sm:$0xff]   ;;  %v1478_v11 = vld [vmem:[%s1751_s0 + $0x20] sm:$0xff]   ;;  %v1480_v13 = vld [vmem:[%s1751_s0 + $0x28] sm:$0xff]  }
   0x5   :  { %1397 = vmatprep.mubr.msk.bf16.mxu0 %vm260_vm0, %v1470_v3  ;;  %1429 = vmatprep.mubr.msk.bf16.mxu1 %vm260_vm0, %v1471_v4  ;;  %v1477_v10 = vld [vmem:[%s1751_s0 + $0x98] sm:$0xff]   ;;  %v1479_v12 = vld [vmem:[%s1751_s0 + $0xa0] sm:$0xff]   ;;  %v1481_v14 = vld [vmem:[%s1751_s0 + $0xa8] sm:$0xff]  }
   0x6   :  { %v1482_v15 = vld [vmem:[%s1751_s0 + $0x30] sm:$0xff]   ;;  %v1484_v17 = vld [vmem:[%s1751_s0 + $0x38] sm:$0xff]   ;;  %v1486_v19 = vld [vmem:[%s1751_s0 + $0x40] sm:$0xff]  }
   0x7   :  { %1394 = vmatpush3.bf16.msra.mxu0 %v1468_v1  ;;  %1465 = vmatpush3.bf16.msra.mxu1 %v1468_v1  ;;  %v1483_v16 = vld [vmem:[%s1751_s0 + $0xb0] sm:$0xff]   ;;  %v1485_v18 = vld [vmem:[%s1751_s0 + $0xb8] sm:$0xff]   ;;  %v1487_v20 = vld [vmem:[%s1751_s0 + $0xc0] sm:$0xff]  }
   0x8   :  { %1395 = vmatprep.subr.bf16.mxu0 %v1469_v2  ;;  %1463 = vmatprep.subr.bf16.mxu1 %v1469_v2  ;;  %v1488_v21 = vld [vmem:[%s1751_s0 + $0x48] sm:$0xff]   ;;  %v1490_v23 = vld [vmem:[%s1751_s0 + $0x50] sm:$0xff]   ;;  %v1492_v25 = vld [vmem:[%s1751_s0 + $0x58] sm:$0xff]  }
   0x9   :  { %v1489_v22 = vld [vmem:[%s1751_s0 + $0xc8] sm:$0xff]   ;;  %v1491_v24 = vld [vmem:[%s1751_s0 + $0xd0] sm:$0xff]   ;;  %v1493_v26 = vld [vmem:[%s1751_s0 + $0xd8] sm:$0xff]  }
   0xa   :  { %v1494_v27 = vld [vmem:[%s1751_s0 + $0x60] sm:$0xff]   ;;  %v1496_v29 = vld [vmem:[%s1751_s0 + $0x68] sm:$0xff]   ;;  %v1498_v31 = vld [vmem:[%s1751_s0 + $0x70] sm:$0xff]  }
   0xb   :  { %1396 = vmatpush3.bf16.msra.mxu0 %v1469_v2  ;;  %1466 = vmatpush3.bf16.msra.mxu1 %v1469_v2  ;;  %v1495_v28 = vld [vmem:[%s1751_s0 + $0xe0] sm:$0xff]   ;;  %v1497_v30 = vld [vmem:[%s1751_s0 + $0xe8] sm:$0xff]   ;;  %v1499_v32 = vld [vmem:[%s1751_s0 + $0xf0] sm:$0xff]  }
   0xc   :  { %v1500_v33 = vld [vmem:[%s1751_s0 + $0x78] sm:$0xff]  }
   0xd   :  { %v1501_v34 = vld [vmem:[%s1751_s0 + $0xf8] sm:$0xff]  }
   0xe   :  { %1398 = vmatmul.mubr.msk.bf16.vlgmr.msra.gmra.mxu0 %vm260_vm0, %v1472_v5  ;;  %1430 = vmatmul.mubr.msk.bf16.vlgmr.msra.gmra.mxu1 %vm260_vm0, %v1473_v6 }
   0xf   :  { %1401 = vmatprep.mubr.msk.bf16.mxu0 %vm260_vm0, %v1474_v7  ;;  %1433 = vmatprep.mubr.msk.bf16.mxu1 %vm260_vm0, %v1475_v8 }
  0x16   :  { %1402 = vmatmul.mubr.msk.bf16.gmra.mxu0 %vm260_vm0, %v1476_v9  ;;  %1434 = vmatmul.mubr.msk.bf16.gmra.mxu1 %vm260_vm0, %v1477_v10 }
  0x17   :  { %1405 = vmatprep.mubr.msk.bf16.mxu0 %vm260_vm0, %v1478_v11  ;;  %1437 = vmatprep.mubr.msk.bf16.mxu1 %vm260_vm0, %v1479_v12 }
  0x1e   :  { %1406 = vmatmul.mubr.msk.bf16.gmra.mxu0 %vm260_vm0, %v1480_v13  ;;  %1438 = vmatmul.mubr.msk.bf16.gmra.mxu1 %vm260_vm0, %v1481_v14 }
  0x1f   :  { %1409 = vmatprep.mubr.msk.bf16.mxu0 %vm260_vm0, %v1482_v15  ;;  %1441 = vmatprep.mubr.msk.bf16.mxu1 %vm260_vm0, %v1483_v16 }
  0x26   :  { %1410 = vmatmul.mubr.msk.bf16.gmra.mxu0 %vm260_vm0, %v1484_v17  ;;  %1442 = vmatmul.mubr.msk.bf16.gmra.mxu1 %vm260_vm0, %v1485_v18 }
  0x27   :  { %1413 = vmatprep.mubr.msk.bf16.mxu0 %vm260_vm0, %v1486_v19  ;;  %1445 = vmatprep.mubr.msk.bf16.mxu1 %vm260_vm0, %v1487_v20 }
  0x2e   :  { %1414 = vmatmul.mubr.msk.bf16.gmra.mxu0 %vm260_vm0, %v1488_v21  ;;  %1446 = vmatmul.mubr.msk.bf16.gmra.mxu1 %vm260_vm0, %v1489_v22 }
  0x2f   :  { %1417 = vmatprep.mubr.msk.bf16.mxu0 %vm260_vm0, %v1490_v23  ;;  %1449 = vmatprep.mubr.msk.bf16.mxu1 %vm260_vm0, %v1491_v24 }
  0x36   :  { %1418 = vmatmul.mubr.msk.bf16.gmra.mxu0 %vm260_vm0, %v1492_v25  ;;  %1450 = vmatmul.mubr.msk.bf16.gmra.mxu1 %vm260_vm0, %v1493_v26 }
  0x37   :  { %1421 = vmatprep.mubr.msk.bf16.mxu0 %vm260_vm0, %v1494_v27  ;;  %1453 = vmatprep.mubr.msk.bf16.mxu1 %vm260_vm0, %v1495_v28 }
  0x3e   :  { %1422 = vmatmul.mubr.msk.bf16.gmra.mxu0 %vm260_vm0, %v1496_v29  ;;  %1454 = vmatmul.mubr.msk.bf16.gmra.mxu1 %vm260_vm0, %v1497_v30 }
  0x3f   :  { %1425 = vmatprep.mubr.msk.bf16.mxu0 %vm260_vm0, %v1498_v31  ;;  %1457 = vmatprep.mubr.msk.bf16.mxu1 %vm260_vm0, %v1499_v32 }
  0x46   :  { %1426 = vmatmul.mubr.msk.bf16.gmra.mxu0 %vm260_vm0, %v1500_v33  ;;  %1458 = vmatmul.mubr.msk.bf16.gmra.mxu1 %vm260_vm0, %v1501_v34 }
  0xce   :  { %v1399_v35 = vpop.f32.mrf.mxu0  ;;  %v1431_v36 = vpop.f32.mrf.mxu1 }
  0xd0   :  { %v391_v37 = vpop.f32.mrf.mxu0  ;;  %v519_v38 = vpop.f32.mrf.mxu1 }
  0xd2   :  { %v1400_v39 = vpop.f32.mrf.mxu0  ;;  %v1432_v40 = vpop.f32.mrf.mxu1 }
  0xd3   :  { %v1173_v41 = vpack.c.bf16 %v1400_v39, %v1399_v35  ;;  %v1253_v42 = vpack.c.bf16 %v1432_v40, %v1431_v36 }
  0xd4   :  { %v394_v43 = vpop.f32.mrf.mxu0  ;;  %v522_v44 = vpop.f32.mrf.mxu1 }
  0xd5   :  { %1325 = vst [vmem:[%s1752_s2 + $0x8] sm:$0xff] %v1173_v41   ;;  %1341 = vst [vmem:[%s1752_s2 + $0x88] sm:$0xff] %v1253_v42   ;;  %v1168_v45 = vpack.c.bf16 %v394_v43, %v391_v37  ;;  %v1248_v46 = vpack.c.bf16 %v522_v44, %v519_v38 }
  0xd6   :  { %v1403_v47 = vpop.f32.mrf.mxu0  ;;  %v1435_v48 = vpop.f32.mrf.mxu1 }
  0xd7   :  { %1169 = vst [vmem:[%s1752_s2] sm:$0xff] %v1168_v45   ;;  %1340 = vst [vmem:[%s1752_s2 + $0x80] sm:$0xff] %v1248_v46  }
  0xd8   :  { %v407_v49 = vpop.f32.mrf.mxu0  ;;  %v535_v50 = vpop.f32.mrf.mxu1 }
  0xda   :  { %v1404_v51 = vpop.f32.mrf.mxu0  ;;  %v1436_v52 = vpop.f32.mrf.mxu1 }
  0xdb   :  { %v1183_v53 = vpack.c.bf16 %v1404_v51, %v1403_v47  ;;  %v1263_v54 = vpack.c.bf16 %v1436_v52, %v1435_v48 }
  0xdc   :  { %v410_v55 = vpop.f32.mrf.mxu0  ;;  %v538_v56 = vpop.f32.mrf.mxu1 }
  0xdd   :  { %1327 = vst [vmem:[%s1752_s2 + $0x18] sm:$0xff] %v1183_v53   ;;  %1343 = vst [vmem:[%s1752_s2 + $0x98] sm:$0xff] %v1263_v54   ;;  %v1178_v57 = vpack.c.bf16 %v410_v55, %v407_v49  ;;  %v1258_v58 = vpack.c.bf16 %v538_v56, %v535_v50 }
  0xde   :  { %v1407_v59 = vpop.f32.mrf.mxu0  ;;  %v1439_v60 = vpop.f32.mrf.mxu1 }
  0xdf   :  { %1326 = vst [vmem:[%s1752_s2 + $0x10] sm:$0xff] %v1178_v57   ;;  %1342 = vst [vmem:[%s1752_s2 + $0x90] sm:$0xff] %v1258_v58  }
  0xe0   :  { %v423_v61 = vpop.f32.mrf.mxu0  ;;  %v551_v62 = vpop.f32.mrf.mxu1 }
  0xe2   :  { %v1408_v63 = vpop.f32.mrf.mxu0  ;;  %v1440_v0 = vpop.f32.mrf.mxu1 }
  0xe3   :  { %v1193_v1 = vpack.c.bf16 %v1408_v63, %v1407_v59  ;;  %v1273_v2 = vpack.c.bf16 %v1440_v0, %v1439_v60 }
  0xe4   :  { %v426_v3 = vpop.f32.mrf.mxu0  ;;  %v554_v4 = vpop.f32.mrf.mxu1 }
  0xe5   :  { %1329 = vst [vmem:[%s1752_s2 + $0x28] sm:$0xff] %v1193_v1   ;;  %1345 = vst [vmem:[%s1752_s2 + $0xa8] sm:$0xff] %v1273_v2   ;;  %v1188_v5 = vpack.c.bf16 %v426_v3, %v423_v61  ;;  %v1268_v6 = vpack.c.bf16 %v554_v4, %v551_v62 }
  0xe6   :  { %v1411_v7 = vpop.f32.mrf.mxu0  ;;  %v1443_v8 = vpop.f32.mrf.mxu1 }
  0xe7   :  { %1328 = vst [vmem:[%s1752_s2 + $0x20] sm:$0xff] %v1188_v5   ;;  %1344 = vst [vmem:[%s1752_s2 + $0xa0] sm:$0xff] %v1268_v6  }
  0xe8   :  { %v439_v9 = vpop.f32.mrf.mxu0  ;;  %v567_v10 = vpop.f32.mrf.mxu1 }
  0xea   :  { %v1412_v11 = vpop.f32.mrf.mxu0  ;;  %v1444_v12 = vpop.f32.mrf.mxu1 }
  0xeb   :  { %v1203_v13 = vpack.c.bf16 %v1412_v11, %v1411_v7  ;;  %v1283_v14 = vpack.c.bf16 %v1444_v12, %v1443_v8 }
  0xec   :  { %v442_v15 = vpop.f32.mrf.mxu0  ;;  %v570_v16 = vpop.f32.mrf.mxu1 }
  0xed   :  { %1331 = vst [vmem:[%s1752_s2 + $0x38] sm:$0xff] %v1203_v13   ;;  %1347 = vst [vmem:[%s1752_s2 + $0xb8] sm:$0xff] %v1283_v14   ;;  %v1198_v17 = vpack.c.bf16 %v442_v15, %v439_v9  ;;  %v1278_v18 = vpack.c.bf16 %v570_v16, %v567_v10 }
  0xee   :  { %v1415_v19 = vpop.f32.mrf.mxu0  ;;  %v1447_v20 = vpop.f32.mrf.mxu1 }
  0xef   :  { %1330 = vst [vmem:[%s1752_s2 + $0x30] sm:$0xff] %v1198_v17   ;;  %1346 = vst [vmem:[%s1752_s2 + $0xb0] sm:$0xff] %v1278_v18  }
  0xf0   :  { %v455_v21 = vpop.f32.mrf.mxu0  ;;  %v583_v22 = vpop.f32.mrf.mxu1 }
  0xf2   :  { %v1416_v23 = vpop.f32.mrf.mxu0  ;;  %v1448_v24 = vpop.f32.mrf.mxu1 }
  0xf3   :  { %v1213_v25 = vpack.c.bf16 %v1416_v23, %v1415_v19  ;;  %v1293_v26 = vpack.c.bf16 %v1448_v24, %v1447_v20 }
  0xf4   :  { %v458_v27 = vpop.f32.mrf.mxu0  ;;  %v586_v28 = vpop.f32.mrf.mxu1 }
  0xf5   :  { %1333 = vst [vmem:[%s1752_s2 + $0x48] sm:$0xff] %v1213_v25   ;;  %1349 = vst [vmem:[%s1752_s2 + $0xc8] sm:$0xff] %v1293_v26   ;;  %v1208_v29 = vpack.c.bf16 %v458_v27, %v455_v21  ;;  %v1288_v30 = vpack.c.bf16 %v586_v28, %v583_v22 }
  0xf6   :  { %v1419_v31 = vpop.f32.mrf.mxu0  ;;  %v1451_v32 = vpop.f32.mrf.mxu1 }
  0xf7   :  { %1332 = vst [vmem:[%s1752_s2 + $0x40] sm:$0xff] %v1208_v29   ;;  %1348 = vst [vmem:[%s1752_s2 + $0xc0] sm:$0xff] %v1288_v30  }
  0xf8   :  { %v471_v33 = vpop.f32.mrf.mxu0  ;;  %v599_v34 = vpop.f32.mrf.mxu1 }
  0xfa   :  { %v1420_v35 = vpop.f32.mrf.mxu0  ;;  %v1452_v36 = vpop.f32.mrf.mxu1 }
  0xfb   :  { %v1223_v37 = vpack.c.bf16 %v1420_v35, %v1419_v31  ;;  %v1303_v38 = vpack.c.bf16 %v1452_v36, %v1451_v32 }
  0xfc   :  { %v474_v39 = vpop.f32.mrf.mxu0  ;;  %v602_v40 = vpop.f32.mrf.mxu1 }
  0xfd   :  { %1335 = vst [vmem:[%s1752_s2 + $0x58] sm:$0xff] %v1223_v37   ;;  %1351 = vst [vmem:[%s1752_s2 + $0xd8] sm:$0xff] %v1303_v38   ;;  %v1218_v41 = vpack.c.bf16 %v474_v39, %v471_v33  ;;  %v1298_v42 = vpack.c.bf16 %v602_v40, %v599_v34 }
  0xfe   :  { %v1423_v43 = vpop.f32.mrf.mxu0  ;;  %v1455_v44 = vpop.f32.mrf.mxu1 }
  0xff   :  { %1334 = vst [vmem:[%s1752_s2 + $0x50] sm:$0xff] %v1218_v41   ;;  %1350 = vst [vmem:[%s1752_s2 + $0xd0] sm:$0xff] %v1298_v42  }
 0x100   :  { %v487_v45 = vpop.f32.mrf.mxu0  ;;  %v615_v46 = vpop.f32.mrf.mxu1 }
 0x102   :  { %v1424_v47 = vpop.f32.mrf.mxu0  ;;  %v1456_v48 = vpop.f32.mrf.mxu1 }
 0x103   :  { %v1233_v49 = vpack.c.bf16 %v1424_v47, %v1423_v43  ;;  %v1313_v50 = vpack.c.bf16 %v1456_v48, %v1455_v44 }
 0x104   :  { %v490_v51 = vpop.f32.mrf.mxu0  ;;  %v618_v52 = vpop.f32.mrf.mxu1 }
 0x105   :  { %1337 = vst [vmem:[%s1752_s2 + $0x68] sm:$0xff] %v1233_v49   ;;  %1353 = vst [vmem:[%s1752_s2 + $0xe8] sm:$0xff] %v1313_v50   ;;  %v1228_v53 = vpack.c.bf16 %v490_v51, %v487_v45  ;;  %v1308_v54 = vpack.c.bf16 %v618_v52, %v615_v46 }
 0x106   :  { %v1427_v55 = vpop.f32.mrf.mxu0  ;;  %v1459_v56 = vpop.f32.mrf.mxu1 }
 0x107   :  { %1336 = vst [vmem:[%s1752_s2 + $0x60] sm:$0xff] %v1228_v53   ;;  %1352 = vst [vmem:[%s1752_s2 + $0xe0] sm:$0xff] %v1308_v54  }
 0x108   :  { %v503_v57 = vpop.f32.mrf.mxu0  ;;  %v631_v58 = vpop.f32.mrf.mxu1 }
 0x10a   :  { %v1428_v59 = vpop.f32.mrf.mxu0  ;;  %v1460_v60 = vpop.f32.mrf.mxu1 }
 0x10b   :  { %v1243_v61 = vpack.c.bf16 %v1428_v59, %v1427_v55  ;;  %v1323_v62 = vpack.c.bf16 %v1460_v60, %v1459_v56 }
 0x10c   :  { %v506_v63 = vpop.f32.mrf.mxu0  ;;  %v634_v0 = vpop.f32.mrf.mxu1 }
 0x10d   :  { %1339 = vst [vmem:[%s1752_s2 + $0x78] sm:$0xff] %v1243_v61   ;;  %1355 = vst [vmem:[%s1752_s2 + $0xf8] sm:$0xff] %v1323_v62   ;;  %v1238_v1 = vpack.c.bf16 %v506_v63, %v503_v57  ;;  %v1318_v2 = vpack.c.bf16 %v634_v0, %v631_v58 }
 0x10f   :  { %1338 = vst [vmem:[%s1752_s2 + $0x70] sm:$0xff] %v1238_v1   ;;  %1354 = vst [vmem:[%s1752_s2 + $0xf0] sm:$0xff] %v1318_v2  }

// kernel: _lambda_.11
= control target key start
LH: loop header
LB: loop body
LE: loop exit
PB: predicated region body
PF: predicated region fallthrough
CT: control target
= control target key end

     0   :  { %s752_s1 = inlined_call_operand.vmem [shape: bf16[1,128,128], index: 1, kind: input, shape index: {}]   ;;  %s753_s0 = inlined_call_operand.vmem [shape: bf16[1,128,128], index: 0, kind: input, shape index: {}]   ;;  %s754_s2 = inlined_call_operand.vmem [shape: f32[1,1,128], index: 2, kind: input, shape index: {}]   ;;  %s755_s3 = inlined_call_operand.vmem [shape: f32[1,1,128], index: 3, kind: input, shape index: {}]   ;;  %s756_s4 = inlined_call_operand.vmem [shape: bf16[1,128,128], index: 4, kind: output, shape index: {}]  }
   0x1   :  { %v631_v0 = vld [vmem:[%s752_s1 + $0x38] sm:$0xff]   ;;  %v632_v1 = vld [vmem:[%s752_s1 + $0x30] sm:$0xff]   ;;  %v633_v2 = vld [vmem:[%s752_s1 + $0x28] sm:$0xff]  }
   0x2   :  { %583 = vmatprep.subr.bf16.mxu0 %v631_v0  ;;  %615 = vmatprep.subr.bf16.mxu1 %v631_v0  ;;  %v634_v3 = vld [vmem:[%s752_s1 + $0x20] sm:$0xff]   ;;  %v635_v5 = vld [vmem:[%s752_s1 + $0x18] sm:$0xff]   ;;  %v636_v7 = vld [vmem:[%s752_s1 + $0x10] sm:$0xff]  }
   0x3   :  { %584 = vmatpush3.bf16.msra.mxu0 %v631_v0  ;;  %623 = vmatpush3.bf16.msra.mxu1 %v631_v0  ;;  %v639_v4 = vld [vmem:[%s753_s0] sm:$0xff]   ;;  %v637_v8 = vld [vmem:[%s752_s1 + $0x8] sm:$0xff]   ;;  %v641_v12 = vld [vmem:[%s753_s0 + $0x10] sm:$0xff]  }
   0x4   :  { %585 = vmatprep.subr.bf16.mxu0 %v632_v1  ;;  %616 = vmatprep.subr.bf16.mxu1 %v632_v1  ;;  %v643_v6 = vld [vmem:[%s753_s0 + $0x20] sm:$0xff]   ;;  %v640_v10 = vld [vmem:[%s753_s0 + $0x8] sm:$0xff]   ;;  %v645_v13 = vld [vmem:[%s753_s0 + $0x30] sm:$0xff]  }
   0x5   :  { %599 = vmatprep.mubr.bf16.mxu0 %v639_v4  ;;  %607 = vmatprep.mubr.bf16.mxu1 %v643_v6  ;;  %v638_v9 = vld [vmem:[%s752_s1] sm:$0xff]   ;;  %v644_v11 = vld [vmem:[%s753_s0 + $0x28] sm:$0xff]   ;;  %v642_v14 = vld [vmem:[%s753_s0 + $0x18] sm:$0xff]  }
   0x6   :  { %v646_v15 = vld [vmem:[%s753_s0 + $0x38] sm:$0xff]  }
   0x7   :  { %586 = vmatpush3.bf16.msra.mxu0 %v632_v1  ;;  %624 = vmatpush3.bf16.msra.mxu1 %v632_v1 }
   0x8   :  { %587 = vmatprep.subr.bf16.mxu0 %v633_v2  ;;  %617 = vmatprep.subr.bf16.mxu1 %v633_v2 }
   0xb   :  { %588 = vmatpush3.bf16.msra.mxu0 %v633_v2  ;;  %625 = vmatpush3.bf16.msra.mxu1 %v633_v2 }
   0xc   :  { %589 = vmatprep.subr.bf16.mxu0 %v634_v3  ;;  %618 = vmatprep.subr.bf16.mxu1 %v634_v3 }
   0xf   :  { %590 = vmatpush3.bf16.msra.mxu0 %v634_v3  ;;  %626 = vmatpush3.bf16.msra.mxu1 %v634_v3 }
  0x10   :  { %591 = vmatprep.subr.bf16.mxu0 %v635_v5  ;;  %619 = vmatprep.subr.bf16.mxu1 %v635_v5 }
  0x13   :  { %592 = vmatpush3.bf16.msra.mxu0 %v635_v5  ;;  %627 = vmatpush3.bf16.msra.mxu1 %v635_v5 }
  0x14   :  { %593 = vmatprep.subr.bf16.mxu0 %v636_v7  ;;  %620 = vmatprep.subr.bf16.mxu1 %v636_v7 }
  0x17   :  { %594 = vmatpush3.bf16.msra.mxu0 %v636_v7  ;;  %628 = vmatpush3.bf16.msra.mxu1 %v636_v7 }
  0x18   :  { %595 = vmatprep.subr.bf16.mxu0 %v637_v8  ;;  %621 = vmatprep.subr.bf16.mxu1 %v637_v8 }
  0x1b   :  { %596 = vmatpush3.bf16.msra.mxu0 %v637_v8  ;;  %629 = vmatpush3.bf16.msra.mxu1 %v637_v8 }
  0x1c   :  { %597 = vmatprep.subr.bf16.mxu0 %v638_v9  ;;  %622 = vmatprep.subr.bf16.mxu1 %v638_v9 }
  0x1f   :  { %598 = vmatpush3.bf16.msra.mxu0 %v638_v9  ;;  %630 = vmatpush3.bf16.msra.mxu1 %v638_v9 }
  0x22   :  { %600 = vmatmul.mubr.bf16.vlgmr.msra.gmra.mxu0 %v640_v10  ;;  %608 = vmatmul.mubr.bf16.vlgmr.msra.gmra.mxu1 %v644_v11 }
  0x23   :  { %603 = vmatprep.mubr.bf16.mxu0 %v641_v12  ;;  %611 = vmatprep.mubr.bf16.mxu1 %v645_v13 }
  0x2a   :  { %604 = vmatmul.mubr.bf16.gmra.mxu0 %v642_v14  ;;  %612 = vmatmul.mubr.bf16.gmra.mxu1 %v646_v15 }
  0xe2   :  { %v601_v16 = vpop.f32.mrf.mxu0  ;;  %v609_v18 = vpop.f32.mrf.mxu1 }
  0xe4   :  { %v180_v17 = vpop.f32.mrf.mxu0  ;;  %v212_v21 = vpop.f32.mrf.mxu1 }
  0xe6   :  { %v602_v19 = vpop.f32.mrf.mxu0  ;;  %v610_v26 = vpop.f32.mrf.mxu1 }
  0xe8   :  { %v183_v20 = vpop.f32.mrf.mxu0  ;;  %v215_v31 = vpop.f32.mrf.mxu1 }
  0xe9   :  { %v243_v22 = vadd.f32 %v183_v20, %v180_v17 }
  0xea   :  { %v605_v23 = vpop.f32.mrf.mxu0  ;;  %v613_v34 = vpop.f32.mrf.mxu1 }
  0xeb   :  { %v244_v24 = vadd.f32 %v601_v16, %v243_v22 }
  0xec   :  { %v196_v25 = vpop.f32.mrf.mxu0  ;;  %v228_v37 = vpop.f32.mrf.mxu1 }
  0xed   :  { %v245_v27 = vadd.f32 %v602_v19, %v244_v24 }
  0xee   :  { %v606_v28 = vpop.f32.mrf.mxu0  ;;  %v614_v40 = vpop.f32.mrf.mxu1 }
  0xef   :  { %v246_v29 = vadd.f32 %v245_v27, %v196_v25 }
  0xf0   :  { %v199_v30 = vpop.f32.mrf.mxu0  ;;  %v231_v43 = vpop.f32.mrf.mxu1 }
  0xf1   :  { %v247_v32 = vadd.f32 %v246_v29, %v199_v30 }
  0xf3   :  { %v248_v33 = vadd.f32 %v605_v23, %v247_v32 }
  0xf5   :  { %v249_v35 = vadd.f32 %v606_v28, %v248_v33 }
  0xf7   :  { %v250_v36 = vadd.f32 %v249_v35, %v212_v21 }
  0xf9   :  { %v251_v38 = vadd.f32 %v250_v36, %v215_v31 }
  0xfb   :  { %v252_v39 = vadd.f32 %v609_v18, %v251_v38 }
  0xfd   :  { %v253_v41 = vadd.f32 %v610_v26, %v252_v39 }
  0xff   :  { %v254_v42 = vadd.f32 %v253_v41, %v228_v37 }
 0x101   :  { %v255_v44 = vadd.f32 %v254_v42, %v231_v43 }
 0x103   :  { %v256_v45 = vadd.f32 %v613_v34, %v255_v44 }
 0x105   :  { %v257_v46 = vadd.f32 %v614_v40, %v256_v45 }
 0x107   :  { %v258_v47 = vrot.slane %v257_v46, 4 }
 0x109   :  { %v259_v48 = vadd.f32 %v258_v47, %v257_v46 }
 0x10b   :  { %v260_v49 = vrot.slane %v259_v48, 2 }
 0x10d   :  { %v261_v50 = vadd.f32 %v260_v49, %v259_v48 }
 0x10f   :  { %v262_v51 = vrot.slane %v261_v50, 1 }
 0x111   :  { %v263_v52 = vadd.f32 %v262_v51, %v261_v50 }
 0x113   :  { %v265_v53 = vmul.f32 0.0078125, %v263_v52 }
 0x115   :  { %v267_v54 = vsub.f32 %v180_v17, %v265_v53  ;;  %v268_v55 = vsub.f32 %v183_v20, %v265_v53  ;;  %v269_v56 = vsub.f32 %v601_v16, %v265_v53  ;;  %v270_v59 = vsub.f32 %v602_v19, %v265_v53 }
 0x116   :  { %v271_v60 = vsub.f32 %v196_v25, %v265_v53  ;;  %v272_v63 = vsub.f32 %v199_v30, %v265_v53  ;;  %v273_v2 = vsub.f32 %v605_v23, %v265_v53  ;;  %v274_v5 = vsub.f32 %v606_v28, %v265_v53 }
 0x117   :  { %v283_v57 = vmul.f32 %v267_v54, %v267_v54  ;;  %v284_v58 = vmul.f32 %v268_v55, %v268_v55  ;;  %v285_v61 = vmul.f32 %v269_v56, %v269_v56  ;;  %v286_v0 = vmul.f32 %v270_v59, %v270_v59 }
 0x118   :  { %v287_v3 = vmul.f32 %v271_v60, %v271_v60  ;;  %v288_v6 = vmul.f32 %v272_v63, %v272_v63  ;;  %v275_v8 = vsub.f32 %v212_v21, %v265_v53  ;;  %v289_v9 = vmul.f32 %v273_v2, %v273_v2 }
 0x119   :  { %v299_v62 = vadd.f32 %v284_v58, %v283_v57  ;;  %v276_v11 = vsub.f32 %v215_v31, %v265_v53  ;;  %v290_v12 = vmul.f32 %v274_v5, %v274_v5  ;;  %v277_v14 = vsub.f32 %v609_v18, %v265_v53  ;;  %v486_v57 = vld [vmem:[%s754_s2] ss:$0 sm:$0xff] }
 0x11a   :  { %v291_v15 = vmul.f32 %v275_v8, %v275_v8  ;;  %v278_v17 = vsub.f32 %v610_v26, %v265_v53  ;;  %v279_v22 = vsub.f32 %v228_v37, %v265_v53  ;;  %v280_v25 = vsub.f32 %v231_v43, %v265_v53 }
 0x11b   :  { %v300_v1 = vadd.f32 %v299_v62, %v285_v61  ;;  %v292_v19 = vmul.f32 %v276_v11, %v276_v11  ;;  %v293_v24 = vmul.f32 %v277_v14, %v277_v14  ;;  %v281_v29 = vsub.f32 %v613_v34, %v265_v53 }
 0x11c   :  { %v294_v27 = vmul.f32 %v278_v17, %v278_v17  ;;  %v295_v30 = vmul.f32 %v279_v22, %v279_v22  ;;  %v282_v32 = vsub.f32 %v614_v40, %v265_v53  ;;  %v296_v33 = vmul.f32 %v280_v25, %v280_v25 }
 0x11d   :  { %v301_v4 = vadd.f32 %v300_v1, %v286_v0  ;;  %v297_v35 = vmul.f32 %v281_v29, %v281_v29 }
 0x11e   :  { %v298_v18 = vmul.f32 %v282_v32, %v282_v32 }
 0x11f   :  { %v302_v7 = vadd.f32 %v301_v4, %v287_v3 }
 0x121   :  { %v303_v10 = vadd.f32 %v302_v7, %v288_v6  ;;  %v487_v7 = vld [vmem:[%s755_s3] ss:$0 sm:$0xff] }
 0x123   :  { %v304_v13 = vadd.f32 %v303_v10, %v289_v9 }
 0x125   :  { %v305_v16 = vadd.f32 %v304_v13, %v290_v12 }
 0x127   :  { %v306_v20 = vadd.f32 %v305_v16, %v291_v15 }
 0x129   :  { %v307_v23 = vadd.f32 %v306_v20, %v292_v19 }
 0x12b   :  { %v308_v28 = vadd.f32 %v307_v23, %v293_v24 }
 0x12d   :  { %v309_v21 = vadd.f32 %v308_v28, %v294_v27 }
 0x12f   :  { %v310_v31 = vadd.f32 %v309_v21, %v295_v30 }
 0x131   :  { %v311_v36 = vadd.f32 %v310_v31, %v296_v33 }
 0x133   :  { %v312_v38 = vadd.f32 %v311_v36, %v297_v35 }
 0x135   :  { %v313_v39 = vadd.f32 %v312_v38, %v298_v18 }
 0x137   :  { %v314_v26 = vrot.slane %v313_v39, 4 }
 0x139   :  { %v315_v41 = vadd.f32 %v314_v26, %v313_v39 }
 0x13b   :  { %v316_v42 = vrot.slane %v315_v41, 2 }
 0x13d   :  { %v317_v37 = vadd.f32 %v316_v42, %v315_v41 }
 0x13f   :  { %v318_v44 = vrot.slane %v317_v37, 1 }
 0x141   :  { %v319_v45 = vadd.f32 %v318_v44, %v317_v37 }
 0x143   :  { %v320_v43 = vmul.f32 0.0078125, %v319_v45 }
 0x145   :  { %v322_v46 = vadd.f32 1e-05, %v320_v43 }
 0x147   :  { %647 = vrsqrt.f32 %v322_v46 }
 0x154   :  { %v648_v34 = vpop.eup %647 }
 0x155   :  { %v324_v47 = vmul.f32 %v648_v34, %v267_v54  ;;  %v325_v48 = vmul.f32 %v648_v34, %v268_v55  ;;  %v326_v40 = vmul.f32 %v648_v34, %v269_v56  ;;  %v327_v49 = vmul.f32 %v648_v34, %v270_v59 }
 0x156   :  { %v328_v50 = vmul.f32 %v648_v34, %v271_v60  ;;  %v329_v51 = vmul.f32 %v648_v34, %v272_v63  ;;  %v330_v52 = vmul.f32 %v648_v34, %v273_v2  ;;  %v331_v53 = vmul.f32 %v648_v34, %v274_v5 }
 0x157   :  { %v332_v58 = vmul.f32 %v648_v34, %v275_v8  ;;  %v333_v61 = vmul.f32 %v648_v34, %v276_v11  ;;  %v334_v62 = vmul.f32 %v648_v34, %v277_v14  ;;  %v335_v0 = vmul.f32 %v648_v34, %v278_v17 }
 0x158   :  { %v336_v1 = vmul.f32 %v648_v34, %v279_v22  ;;  %v337_v3 = vmul.f32 %v648_v34, %v280_v25  ;;  %v338_v4 = vmul.f32 %v648_v34, %v281_v29  ;;  %v339_v6 = vmul.f32 %v648_v34, %v282_v32 }
 0x159   :  { %v347_v54 = vmul.f32 %v486_v57, %v324_v47  ;;  %v348_v55 = vmul.f32 %v486_v57, %v325_v48  ;;  %v349_v56 = vmul.f32 %v486_v57, %v326_v40  ;;  %v350_v59 = vmul.f32 %v486_v57, %v327_v49 }
 0x15a   :  { %v351_v60 = vmul.f32 %v486_v57, %v328_v50  ;;  %v352_v63 = vmul.f32 %v486_v57, %v329_v51  ;;  %v353_v2 = vmul.f32 %v486_v57, %v330_v52  ;;  %v354_v5 = vmul.f32 %v486_v57, %v331_v53 }
 0x15b   :  { %v355_v8 = vmul.f32 %v486_v57, %v332_v58  ;;  %v356_v9 = vmul.f32 %v486_v57, %v333_v61  ;;  %v357_v10 = vmul.f32 %v486_v57, %v334_v62  ;;  %v358_v11 = vmul.f32 %v486_v57, %v335_v0 }
 0x15c   :  { %v359_v12 = vmul.f32 %v486_v57, %v336_v1  ;;  %v360_v13 = vmul.f32 %v486_v57, %v337_v3  ;;  %v361_v14 = vmul.f32 %v486_v57, %v338_v4  ;;  %v362_v15 = vmul.f32 %v486_v57, %v339_v6 }
 0x15d   :  { %v370_v16 = vadd.f32 %v487_v7, %v347_v54  ;;  %v371_v17 = vadd.f32 %v487_v7, %v348_v55  ;;  %v372_v19 = vadd.f32 %v487_v7, %v349_v56  ;;  %v373_v20 = vadd.f32 %v487_v7, %v350_v59 }
 0x15e   :  { %v374_v22 = vadd.f32 %v487_v7, %v351_v60  ;;  %v375_v24 = vadd.f32 %v487_v7, %v352_v63  ;;  %v376_v23 = vadd.f32 %v487_v7, %v353_v2  ;;  %v377_v25 = vadd.f32 %v487_v7, %v354_v5 }
 0x15f   :  { %v378_v27 = vadd.f32 %v487_v7, %v355_v8  ;;  %v379_v28 = vadd.f32 %v487_v7, %v356_v9  ;;  %v380_v29 = vadd.f32 %v487_v7, %v357_v10  ;;  %v381_v30 = vadd.f32 %v487_v7, %v358_v11 }
 0x160   :  { %v382_v21 = vadd.f32 %v487_v7, %v359_v12  ;;  %v383_v32 = vadd.f32 %v487_v7, %v360_v13  ;;  %v384_v33 = vadd.f32 %v487_v7, %v361_v14  ;;  %v385_v31 = vadd.f32 %v487_v7, %v362_v15 }
 0x161   :  { %v523_v35 = vpack.c.bf16 %v371_v17, %v370_v16  ;;  %v528_v36 = vpack.c.bf16 %v373_v20, %v372_v19  ;;  %v533_v18 = vpack.c.bf16 %v375_v24, %v374_v22  ;;  %v538_v38 = vpack.c.bf16 %v377_v25, %v376_v23 }
 0x162   :  { %v543_v39 = vpack.c.bf16 %v379_v28, %v378_v27  ;;  %v548_v26 = vpack.c.bf16 %v381_v30, %v380_v29  ;;  %v553_v41 = vpack.c.bf16 %v383_v32, %v382_v21  ;;  %v558_v42 = vpack.c.bf16 %v385_v31, %v384_v33 }
 0x163   :  { %524 = vst [vmem:[%s756_s4] sm:$0xff] %v523_v35   ;;  %560 = vst [vmem:[%s756_s4 + $0x8] sm:$0xff] %v528_v36  }
 0x164   :  { %561 = vst [vmem:[%s756_s4 + $0x10] sm:$0xff] %v533_v18   ;;  %562 = vst [vmem:[%s756_s4 + $0x18] sm:$0xff] %v538_v38  }
 0x165   :  { %563 = vst [vmem:[%s756_s4 + $0x20] sm:$0xff] %v543_v39   ;;  %564 = vst [vmem:[%s756_s4 + $0x28] sm:$0xff] %v548_v26  }
 0x166   :  { %565 = vst [vmem:[%s756_s4 + $0x30] sm:$0xff] %v553_v41   ;;  %566 = vst [vmem:[%s756_s4 + $0x38] sm:$0xff] %v558_v42  }

// kernel: _lambda_.12
= control target key start
LH: loop header
LB: loop body
LE: loop exit
PB: predicated region body
PF: predicated region fallthrough
CT: control target
= control target key end

     0   :  { %s508_s1 = inlined_call_operand.vmem [shape: bf16[1,256,128], index: 1, kind: input, shape index: {}]   ;;  %s509_s0 = inlined_call_operand.vmem [shape: bf16[1,32,256], index: 0, kind: input, shape index: {}]   ;;  %s510_s2 = inlined_call_operand.vmem [shape: f32[1,1,128], index: 2, kind: input, shape index: {}]   ;;  %s511_s3 = inlined_call_operand.vmem [shape: f32[1,1,128], index: 3, kind: input, shape index: {}]   ;;  %s512_s4 = inlined_call_operand.vmem [shape: bf16[1,32,128], index: 4, kind: output, shape index: {}]  }
   0x1   :  { %v387_v0 = vld [vmem:[%s508_s1 + $0x78] sm:$0xff]   ;;  %v389_v2 = vld [vmem:[%s508_s1 + $0x70] sm:$0xff]   ;;  %v391_v4 = vld [vmem:[%s508_s1 + $0x68] sm:$0xff]  }
   0x2   :  { %v388_v1 = vld [vmem:[%s508_s1 + $0x38] sm:$0xff]   ;;  %343 = vmatprep.subr.bf16.mxu0 %v387_v0  ;;  %371 = vmatprep.subr.bf16.mxu1 %v387_v0  ;;  %v390_v3 = vld [vmem:[%s508_s1 + $0x30] sm:$0xff]   ;;  %v392_v5 = vld [vmem:[%s508_s1 + $0x28] sm:$0xff]  }
   0x3   :  { %344 = vmatpush3.bf16.msra.mxu0 %v388_v1  ;;  %379 = vmatpush3.bf16.msra.mxu1 %v388_v1  ;;  %v393_v6 = vld [vmem:[%s508_s1 + $0x60] sm:$0xff]   ;;  %v395_v8 = vld [vmem:[%s508_s1 + $0x58] sm:$0xff]   ;;  %v397_v10 = vld [vmem:[%s508_s1 + $0x50] sm:$0xff]  }
   0x4   :  { %345 = vmatprep.subr.bf16.mxu0 %v389_v2  ;;  %372 = vmatprep.subr.bf16.mxu1 %v389_v2  ;;  %v394_v7 = vld [vmem:[%s508_s1 + $0x20] sm:$0xff]   ;;  %v396_v9 = vld [vmem:[%s508_s1 + $0x18] sm:$0xff]   ;;  %v398_v13 = vld [vmem:[%s508_s1 + $0x10] sm:$0xff]  }
   0x5   :  { %v405_v11 = vld [vmem:[%s509_s0 + $0x4] ss:$8 sps:$4 sm:$0xff]   ;;  %v408_v12 = vld [vmem:[%s509_s0 + $0x14] ss:$8 sps:$4 sm:$0xff]   ;;  %v403_v18 = vld [vmem:[%s509_s0] ss:$8 sps:$4 sm:$0xff]  }
   0x6   :  { %v399_v14 = vld [vmem:[%s508_s1 + $0x48] sm:$0xff]   ;;  %202 = vmatprep.mubr.bf16.mxu0 %v405_v11  ;;  %210 = vmatprep.mubr.bf16.mxu1 %v408_v12  ;;  %v401_v16 = vld [vmem:[%s508_s1 + $0x40] sm:$0xff]   ;;  %v406_v19 = vld [vmem:[%s509_s0 + $0x10] ss:$8 sps:$4 sm:$0xff]  }
   0x7   :  { %346 = vmatpush3.bf16.msra.mxu0 %v390_v3  ;;  %380 = vmatpush3.bf16.msra.mxu1 %v390_v3  ;;  %v400_v15 = vld [vmem:[%s508_s1 + $0x8] sm:$0xff]   ;;  %v402_v17 = vld [vmem:[%s508_s1] sm:$0xff]  }
   0x8   :  { %347 = vmatprep.subr.bf16.mxu0 %v391_v4  ;;  %373 = vmatprep.subr.bf16.mxu1 %v391_v4  ;;  %v322_v62 = vld [vmem:[%s510_s2] ss:$0 sm:$0xff] }
   0x9   :  { %v323_v3 = vld [vmem:[%s511_s3] ss:$0 sm:$0xff] }
   0xb   :  { %348 = vmatpush3.bf16.msra.mxu0 %v392_v5  ;;  %381 = vmatpush3.bf16.msra.mxu1 %v392_v5 }
   0xc   :  { %349 = vmatprep.subr.bf16.mxu0 %v393_v6  ;;  %374 = vmatprep.subr.bf16.mxu1 %v393_v6 }
   0xf   :  { %350 = vmatpush3.bf16.msra.mxu0 %v394_v7  ;;  %382 = vmatpush3.bf16.msra.mxu1 %v394_v7 }
  0x10   :  { %351 = vmatprep.subr.bf16.mxu0 %v395_v8  ;;  %375 = vmatprep.subr.bf16.mxu1 %v395_v8 }
  0x13   :  { %352 = vmatpush3.bf16.msra.mxu0 %v396_v9  ;;  %383 = vmatpush3.bf16.msra.mxu1 %v396_v9 }
  0x14   :  { %353 = vmatprep.subr.bf16.mxu0 %v397_v10  ;;  %376 = vmatprep.subr.bf16.mxu1 %v397_v10 }
  0x17   :  { %354 = vmatpush3.bf16.msra.mxu0 %v398_v13  ;;  %384 = vmatpush3.bf16.msra.mxu1 %v398_v13 }
  0x18   :  { %355 = vmatprep.subr.bf16.mxu0 %v399_v14  ;;  %377 = vmatprep.subr.bf16.mxu1 %v399_v14 }
  0x1b   :  { %356 = vmatpush3.bf16.msra.mxu0 %v400_v15  ;;  %385 = vmatpush3.bf16.msra.mxu1 %v400_v15 }
  0x1c   :  { %357 = vmatprep.subr.bf16.mxu0 %v401_v16  ;;  %378 = vmatprep.subr.bf16.mxu1 %v401_v16 }
  0x1f   :  { %358 = vmatpush3.bf16.msra.mxu0 %v402_v17  ;;  %386 = vmatpush3.bf16.msra.mxu1 %v402_v17 }
  0x22   :  { %203 = vmatmul.mubr.bf16.vlgmr.msra.gmra.mxu0 %v403_v18  ;;  %211 = vmatmul.mubr.bf16.vlgmr.msra.gmra.mxu1 %v406_v19 }
  0xe2   :  { %v359_v20 = vpop.f32.mrf.mxu0  ;;  %v365_v21 = vpop.f32.mrf.mxu1 }
  0xe4   :  { %v360_v22 = vpop.f32.mrf.mxu0  ;;  %v366_v23 = vpop.f32.mrf.mxu1 }
  0xe5   :  { %v361_v27 = vadd.f32 %v360_v22, %v359_v20  ;;  %v367_v30 = vadd.f32 %v366_v23, %v365_v21 }
  0xe6   :  { %v362_v24 = vpop.f32.mrf.mxu0  ;;  %v368_v25 = vpop.f32.mrf.mxu1 }
  0xe8   :  { %v363_v26 = vpop.f32.mrf.mxu0  ;;  %v369_v29 = vpop.f32.mrf.mxu1 }
  0xe9   :  { %v364_v28 = vadd.f32 %v363_v26, %v362_v24  ;;  %v370_v32 = vadd.f32 %v369_v29, %v368_v25 }
  0xeb   :  { %v219_v31 = vadd.f32 %v364_v28, %v361_v27 }
  0xed   :  { %v220_v33 = vadd.f32 %v367_v30, %v219_v31 }
  0xef   :  { %v221_v34 = vadd.f32 %v370_v32, %v220_v33 }
  0xf1   :  { %v222_v35 = vrot.slane %v221_v34, 4 }
  0xf3   :  { %v223_v36 = vadd.f32 %v222_v35, %v221_v34 }
  0xf5   :  { %v224_v37 = vrot.slane %v223_v36, 2 }
  0xf7   :  { %v225_v38 = vadd.f32 %v224_v37, %v223_v36 }
  0xf9   :  { %v226_v39 = vrot.slane %v225_v38, 1 }
  0xfb   :  { %v227_v40 = vadd.f32 %v226_v39, %v225_v38 }
  0xfd   :  { %v229_v41 = vmul.f32 0.03125, %v227_v40 }
  0xff   :  { %v231_v42 = vsub.f32 %v361_v27, %v229_v41  ;;  %v232_v43 = vsub.f32 %v364_v28, %v229_v41  ;;  %v233_v44 = vsub.f32 %v367_v30, %v229_v41  ;;  %v234_v45 = vsub.f32 %v370_v32, %v229_v41 }
 0x101   :  { %v235_v46 = vmul.f32 %v231_v42, %v231_v42  ;;  %v236_v47 = vmul.f32 %v232_v43, %v232_v43  ;;  %v237_v48 = vmul.f32 %v233_v44, %v233_v44  ;;  %v238_v50 = vmul.f32 %v234_v45, %v234_v45 }
 0x103   :  { %v239_v49 = vadd.f32 %v236_v47, %v235_v46 }
 0x105   :  { %v240_v51 = vadd.f32 %v239_v49, %v237_v48 }
 0x107   :  { %v241_v52 = vadd.f32 %v240_v51, %v238_v50 }
 0x109   :  { %v242_v53 = vrot.slane %v241_v52, 4 }
 0x10b   :  { %v243_v54 = vadd.f32 %v242_v53, %v241_v52 }
 0x10d   :  { %v244_v55 = vrot.slane %v243_v54, 2 }
 0x10f   :  { %v245_v56 = vadd.f32 %v244_v55, %v243_v54 }
 0x111   :  { %v246_v57 = vrot.slane %v245_v56, 1 }
 0x113   :  { %v247_v58 = vadd.f32 %v246_v57, %v245_v56 }
 0x115   :  { %v248_v59 = vmul.f32 0.03125, %v247_v58 }
 0x117   :  { %v250_v60 = vadd.f32 1e-05, %v248_v59 }
 0x119   :  { %409 = vrsqrt.f32 %v250_v60 }
 0x126   :  { %v410_v61 = vpop.eup %409 }
 0x127   :  { %v252_v63 = vmul.f32 %v410_v61, %v231_v42  ;;  %v253_v0 = vmul.f32 %v410_v61, %v232_v43  ;;  %v254_v1 = vmul.f32 %v410_v61, %v233_v44  ;;  %v255_v2 = vmul.f32 %v410_v61, %v234_v45 }
 0x129   :  { %v263_v4 = vmul.f32 %v322_v62, %v252_v63  ;;  %v264_v5 = vmul.f32 %v322_v62, %v253_v0  ;;  %v265_v6 = vmul.f32 %v322_v62, %v254_v1  ;;  %v266_v7 = vmul.f32 %v322_v62, %v255_v2 }
 0x12b   :  { %v274_v8 = vadd.f32 %v323_v3, %v263_v4  ;;  %v275_v9 = vadd.f32 %v323_v3, %v264_v5  ;;  %v276_v10 = vadd.f32 %v323_v3, %v265_v6  ;;  %v277_v11 = vadd.f32 %v323_v3, %v266_v7 }
 0x12d   :  { %v335_v12 = vpack.c.bf16 %v275_v9, %v274_v8  ;;  %v340_v13 = vpack.c.bf16 %v277_v11, %v276_v10 }
 0x12f   :  { %336 = vst [vmem:[%s512_s4] sm:$0xff] %v335_v12   ;;  %342 = vst [vmem:[%s512_s4 + $0x8] sm:$0xff] %v340_v13  }

// kernel: _lambda_.13
= control target key start
LH: loop header
LB: loop body
LE: loop exit
PB: predicated region body
PF: predicated region fallthrough
CT: control target
= control target key end

     0   :  { %s725_s1 = inlined_call_operand.vmem [shape: bf16[1,512,128], index: 1, kind: input, shape index: {}]   ;;  %s726_s0 = inlined_call_operand.vmem [shape: bf16[1,16,512], index: 0, kind: input, shape index: {}]   ;;  %s727_s2 = inlined_call_operand.vmem [shape: f32[1,1,128], index: 2, kind: input, shape index: {}]   ;;  %s728_s3 = inlined_call_operand.vmem [shape: f32[1,1,128], index: 3, kind: input, shape index: {}]   ;;  %s729_s4 = inlined_call_operand.vmem [shape: bf16[1,16,128], index: 4, kind: output, shape index: {}]  }
   0x1   :  { %v543_v0 = vld [vmem:[%s725_s1 + $0x78] sm:$0xff]   ;;  %v547_v4 = vld [vmem:[%s725_s1 + $0x70] sm:$0xff]   ;;  %v551_v8 = vld [vmem:[%s725_s1 + $0x68] sm:$0xff]  }
   0x2   :  { %v544_v1 = vld [vmem:[%s725_s1 + $0xf8] sm:$0xff]   ;;  %499 = vmatprep.subr.bf16.mxu0 %v543_v0  ;;  %v548_v5 = vld [vmem:[%s725_s1 + $0xf0] sm:$0xff]   ;;  %v552_v9 = vld [vmem:[%s725_s1 + $0xe8] sm:$0xff]  }
   0x3   :  { %v545_v2 = vld [vmem:[%s725_s1 + $0x38] sm:$0xff]   ;;  %521 = vmatprep.subr.bf16.mxu1 %v544_v1  ;;  %v549_v6 = vld [vmem:[%s725_s1 + $0x30] sm:$0xff]   ;;  %v553_v10 = vld [vmem:[%s725_s1 + $0x28] sm:$0xff]  }
   0x4   :  { %v546_v3 = vld [vmem:[%s725_s1 + $0xb8] sm:$0xff]   ;;  %500 = vmatpush3.bf16.msra.mxu0 %v545_v2  ;;  %v550_v7 = vld [vmem:[%s725_s1 + $0xb0] sm:$0xff]   ;;  %v554_v11 = vld [vmem:[%s725_s1 + $0xa8] sm:$0xff]  }
   0x5   :  { %522 = vmatpush3.bf16.msra.mxu1 %v546_v3  ;;  %501 = vmatprep.subr.bf16.mxu0 %v547_v4  ;;  %v555_v12 = vld [vmem:[%s725_s1 + $0x60] sm:$0xff]   ;;  %v559_v16 = vld [vmem:[%s725_s1 + $0x58] sm:$0xff]   ;;  %v563_v20 = vld [vmem:[%s725_s1 + $0x50] sm:$0xff]  }
   0x6   :  { %523 = vmatprep.subr.bf16.mxu1 %v548_v5  ;;  %v556_v13 = vld [vmem:[%s725_s1 + $0xe0] sm:$0xff]   ;;  %v560_v17 = vld [vmem:[%s725_s1 + $0xd8] sm:$0xff]   ;;  %v564_v21 = vld [vmem:[%s725_s1 + $0xd0] sm:$0xff]  }
   0x7   :  { %v557_v14 = vld [vmem:[%s725_s1 + $0x20] sm:$0xff]   ;;  %v561_v18 = vld [vmem:[%s725_s1 + $0x18] sm:$0xff]   ;;  %v565_v22 = vld [vmem:[%s725_s1 + $0x10] sm:$0xff]  }
   0x8   :  { %502 = vmatpush3.bf16.msra.mxu0 %v549_v6  ;;  %v558_v15 = vld [vmem:[%s725_s1 + $0xa0] sm:$0xff]   ;;  %v562_v19 = vld [vmem:[%s725_s1 + $0x98] sm:$0xff]   ;;  %v566_v23 = vld [vmem:[%s725_s1 + $0x90] sm:$0xff]  }
   0x9   :  { %524 = vmatpush3.bf16.msra.mxu1 %v550_v7  ;;  %503 = vmatprep.subr.bf16.mxu0 %v551_v8  ;;  %v567_v24 = vld [vmem:[%s725_s1 + $0x48] sm:$0xff]   ;;  %v571_v28 = vld [vmem:[%s725_s1 + $0x40] sm:$0xff]  }
   0xa   :  { %525 = vmatprep.subr.bf16.mxu1 %v552_v9  ;;  %v568_v25 = vld [vmem:[%s725_s1 + $0xc8] sm:$0xff]   ;;  %v572_v29 = vld [vmem:[%s725_s1 + $0xc0] sm:$0xff]  }
   0xb   :  { %v569_v26 = vld [vmem:[%s725_s1 + $0x8] sm:$0xff]   ;;  %v573_v30 = vld [vmem:[%s725_s1] sm:$0xff]  }
   0xc   :  { %504 = vmatpush3.bf16.msra.mxu0 %v553_v10  ;;  %v570_v27 = vld [vmem:[%s725_s1 + $0x88] sm:$0xff]   ;;  %v574_v31 = vld [vmem:[%s725_s1 + $0x80] sm:$0xff]  }
   0xd   :  { %526 = vmatpush3.bf16.msra.mxu1 %v554_v11  ;;  %505 = vmatprep.subr.bf16.mxu0 %v555_v12  ;;  %v575_v32 = vld [vmem:[%s726_s0] ss:$16 sps:$4 sm:$0xff]   ;;  %v577_v33 = vld [vmem:[%s726_s0 + $0x4] ss:$16 sps:$4 sm:$0xff]   ;;  %v578_v34 = vld [vmem:[%s726_s0 + $0x8] ss:$16 sps:$4 sm:$0xff]  }
   0xe   :  { %527 = vmatprep.subr.bf16.mxu1 %v556_v13  ;;  %v580_v35 = vld [vmem:[%s726_s0 + $0xc] ss:$16 sps:$4 sm:$0xff]   ;;  %330 = vmatprep.mubr.bf16.mxu0 %v577_v33  ;;  %v488_v10 = vld [vmem:[%s727_s2] ss:$0 sm:$0xff] }
   0xf   :  { %371 = vmatprep.mubr.bf16.mxu1 %v580_v35  ;;  %v489_v13 = vld [vmem:[%s728_s3] ss:$0 sm:$0xff] }
  0x10   :  { %506 = vmatpush3.bf16.msra.mxu0 %v557_v14 }
  0x11   :  { %528 = vmatpush3.bf16.msra.mxu1 %v558_v15  ;;  %507 = vmatprep.subr.bf16.mxu0 %v559_v16 }
  0x12   :  { %529 = vmatprep.subr.bf16.mxu1 %v560_v17 }
  0x14   :  { %508 = vmatpush3.bf16.msra.mxu0 %v561_v18 }
  0x15   :  { %530 = vmatpush3.bf16.msra.mxu1 %v562_v19  ;;  %509 = vmatprep.subr.bf16.mxu0 %v563_v20 }
  0x16   :  { %531 = vmatprep.subr.bf16.mxu1 %v564_v21 }
  0x18   :  { %510 = vmatpush3.bf16.msra.mxu0 %v565_v22 }
  0x19   :  { %532 = vmatpush3.bf16.msra.mxu1 %v566_v23  ;;  %511 = vmatprep.subr.bf16.mxu0 %v567_v24 }
  0x1a   :  { %533 = vmatprep.subr.bf16.mxu1 %v568_v25 }
  0x1c   :  { %512 = vmatpush3.bf16.msra.mxu0 %v569_v26 }
  0x1d   :  { %534 = vmatpush3.bf16.msra.mxu1 %v570_v27  ;;  %513 = vmatprep.subr.bf16.mxu0 %v571_v28 }
  0x1e   :  { %535 = vmatprep.subr.bf16.mxu1 %v572_v29 }
  0x20   :  { %514 = vmatpush3.bf16.msra.mxu0 %v573_v30 }
  0x21   :  { %536 = vmatpush3.bf16.msra.mxu1 %v574_v31 }
  0x23   :  { %331 = vmatmul.mubr.bf16.vlgmr.msra.gmra.mxu0 %v575_v32 }
  0x24   :  { %372 = vmatmul.mubr.bf16.vlgmr.msra.gmra.mxu1 %v578_v34 }
  0xe3   :  { %v515_v36 = vpop.f32.mrf.mxu0 }
  0xe4   :  { %v537_v37 = vpop.f32.mrf.mxu1 }
  0xe5   :  { %v516_v38 = vpop.f32.mrf.mxu0 }
  0xe6   :  { %v538_v39 = vpop.f32.mrf.mxu1  ;;  %v517_v45 = vadd.f32 %v516_v38, %v515_v36 }
  0xe7   :  { %v518_v40 = vpop.f32.mrf.mxu0  ;;  %v539_v46 = vadd.f32 %v538_v39, %v537_v37 }
  0xe8   :  { %v540_v41 = vpop.f32.mrf.mxu1 }
  0xe9   :  { %v519_v42 = vpop.f32.mrf.mxu0  ;;  %v374_v49 = vadd.f32 %v539_v46, %v517_v45 }
  0xea   :  { %v520_v43 = vadd.f32 %v519_v42, %v518_v40  ;;  %v541_v44 = vpop.f32.mrf.mxu1 }
  0xeb   :  { %v542_v47 = vadd.f32 %v541_v44, %v540_v41 }
  0xed   :  { %v377_v48 = vadd.f32 %v542_v47, %v520_v43 }
  0xef   :  { %v390_v50 = vmul.f32 0.0, %v377_v48 }
  0xf1   :  { %v391_v51 = vadd.f32 %v390_v50, %v374_v49 }
  0xf3   :  { %v392_v52 = vrot.slane %v391_v51, 4 }
  0xf5   :  { %v393_v53 = vadd.f32 %v392_v52, %v391_v51 }
  0xf7   :  { %v394_v54 = vrot.slane %v393_v53, 2 }
  0xf9   :  { %v395_v55 = vadd.f32 %v394_v54, %v393_v53 }
  0xfb   :  { %v396_v56 = vrot.slane %v395_v55, 1 }
  0xfd   :  { %v397_v57 = vadd.f32 %v396_v56, %v395_v55 }
  0xff   :  { %v400_v58 = vmul.f32 0.125, %v397_v57 }
 0x101   :  { %v401_v59 = vsub.f32 %v374_v49, %v400_v58  ;;  %v402_v60 = vsub.f32 %v377_v48, %v400_v58 }
 0x103   :  { %v404_v61 = vmul.f32 0.0, %v402_v60  ;;  %v405_v62 = vmul.f32 %v401_v59, %v401_v59 }
 0x105   :  { %v406_v63 = vmul.f32 %v404_v61, %v404_v61 }
 0x107   :  { %v407_v0 = vadd.f32 %v406_v63, %v405_v62 }
 0x109   :  { %v408_v1 = vrot.slane %v407_v0, 4 }
 0x10b   :  { %v409_v2 = vadd.f32 %v408_v1, %v407_v0 }
 0x10d   :  { %v410_v3 = vrot.slane %v409_v2, 2 }
 0x10f   :  { %v411_v4 = vadd.f32 %v410_v3, %v409_v2 }
 0x111   :  { %v412_v5 = vrot.slane %v411_v4, 1 }
 0x113   :  { %v413_v6 = vadd.f32 %v412_v5, %v411_v4 }
 0x115   :  { %v415_v7 = vmul.f32 0.125, %v413_v6 }
 0x117   :  { %v416_v8 = vadd.f32 1e-05, %v415_v7 }
 0x119   :  { %581 = vrsqrt.f32 %v416_v8 }
 0x126   :  { %v582_v9 = vpop.eup %581 }
 0x127   :  { %v418_v11 = vmul.f32 %v582_v9, %v401_v59  ;;  %v419_v12 = vmul.f32 %v582_v9, %v402_v60 }
 0x129   :  { %v427_v14 = vmul.f32 %v488_v10, %v418_v11  ;;  %v428_v15 = vmul.f32 %v488_v10, %v419_v12 }
 0x12b   :  { %v436_v16 = vadd.f32 %v489_v13, %v427_v14  ;;  %v437_v17 = vadd.f32 %v489_v13, %v428_v15 }
 0x12d   :  { %v497_v18 = vpack.c.bf16 %v437_v17, %v436_v16 }
 0x12f   :  { %498 = vst [vmem:[%s729_s4] sm:$0xff] %v497_v18  }

// kernel: _lambda_.14
= control target key start
LH: loop header
LB: loop body
LE: loop exit
PB: predicated region body
PF: predicated region fallthrough
CT: control target
= control target key end

     0   :  { %s1217_s1 = inlined_call_operand.vmem [shape: bf16[1,1024,128], index: 1, kind: input, shape index: {}]   ;;  %s1218_s0 = inlined_call_operand.vmem [shape: bf16[1,16,1024], index: 0, kind: input, shape index: {}]   ;;  %s1219_s2 = inlined_call_operand.vmem [shape: bf16[1,16,128], index: 2, kind: output, shape index: {}]  }
   0x1   :  { %v919_v0 = vld [vmem:[%s1217_s1 + $0x78] sm:$0xff]   ;;  %v923_v4 = vld [vmem:[%s1217_s1 + $0x70] sm:$0xff]   ;;  %v927_v8 = vld [vmem:[%s1217_s1 + $0x68] sm:$0xff]  }
   0x2   :  { %v920_v1 = vld [vmem:[%s1217_s1 + $0xf8] sm:$0xff]   ;;  %831 = vmatprep.subr.bf16.mxu0 %v919_v0  ;;  %v924_v5 = vld [vmem:[%s1217_s1 + $0xf0] sm:$0xff]   ;;  %v928_v9 = vld [vmem:[%s1217_s1 + $0xe8] sm:$0xff]  }
   0x3   :  { %v921_v2 = vld [vmem:[%s1217_s1 + $0x38] sm:$0xff]   ;;  %853 = vmatprep.subr.bf16.mxu1 %v920_v1  ;;  %v925_v6 = vld [vmem:[%s1217_s1 + $0x30] sm:$0xff]   ;;  %v929_v10 = vld [vmem:[%s1217_s1 + $0x28] sm:$0xff]  }
   0x4   :  { %v922_v3 = vld [vmem:[%s1217_s1 + $0xb8] sm:$0xff]   ;;  %832 = vmatpush3.bf16.msra.mxu0 %v921_v2  ;;  %v926_v7 = vld [vmem:[%s1217_s1 + $0xb0] sm:$0xff]   ;;  %v930_v11 = vld [vmem:[%s1217_s1 + $0xa8] sm:$0xff]  }
   0x5   :  { %854 = vmatpush3.bf16.msra.mxu1 %v922_v3  ;;  %833 = vmatprep.subr.bf16.mxu0 %v923_v4  ;;  %v931_v12 = vld [vmem:[%s1217_s1 + $0x60] sm:$0xff]   ;;  %v935_v16 = vld [vmem:[%s1217_s1 + $0x58] sm:$0xff]   ;;  %v939_v20 = vld [vmem:[%s1217_s1 + $0x50] sm:$0xff]  }
   0x6   :  { %855 = vmatprep.subr.bf16.mxu1 %v924_v5  ;;  %v932_v13 = vld [vmem:[%s1217_s1 + $0xe0] sm:$0xff]   ;;  %v936_v17 = vld [vmem:[%s1217_s1 + $0xd8] sm:$0xff]   ;;  %v940_v21 = vld [vmem:[%s1217_s1 + $0xd0] sm:$0xff]  }
   0x7   :  { %v933_v14 = vld [vmem:[%s1217_s1 + $0x20] sm:$0xff]   ;;  %v937_v18 = vld [vmem:[%s1217_s1 + $0x18] sm:$0xff]   ;;  %v941_v22 = vld [vmem:[%s1217_s1 + $0x10] sm:$0xff]  }
   0x8   :  { %834 = vmatpush3.bf16.msra.mxu0 %v925_v6  ;;  %v934_v15 = vld [vmem:[%s1217_s1 + $0xa0] sm:$0xff]   ;;  %v938_v19 = vld [vmem:[%s1217_s1 + $0x98] sm:$0xff]   ;;  %v942_v23 = vld [vmem:[%s1217_s1 + $0x90] sm:$0xff]  }
   0x9   :  { %856 = vmatpush3.bf16.msra.mxu1 %v926_v7  ;;  %835 = vmatprep.subr.bf16.mxu0 %v927_v8  ;;  %v943_v24 = vld [vmem:[%s1217_s1 + $0x48] sm:$0xff]   ;;  %v947_v28 = vld [vmem:[%s1217_s1 + $0x40] sm:$0xff]   ;;  %v951_v40 = vld [vmem:[%s1217_s1 + $0x178] sm:$0xff]  }
   0xa   :  { %857 = vmatprep.subr.bf16.mxu1 %v928_v9  ;;  %v944_v25 = vld [vmem:[%s1217_s1 + $0xc8] sm:$0xff]   ;;  %v948_v29 = vld [vmem:[%s1217_s1 + $0xc0] sm:$0xff]   ;;  %v952_v41 = vld [vmem:[%s1217_s1 + $0x1f8] sm:$0xff]  }
   0xb   :  { %v945_v26 = vld [vmem:[%s1217_s1 + $0x8] sm:$0xff]   ;;  %v949_v30 = vld [vmem:[%s1217_s1] sm:$0xff]   ;;  %v953_v42 = vld [vmem:[%s1217_s1 + $0x138] sm:$0xff]  }
   0xc   :  { %836 = vmatpush3.bf16.msra.mxu0 %v929_v10  ;;  %v946_v27 = vld [vmem:[%s1217_s1 + $0x88] sm:$0xff]   ;;  %v950_v31 = vld [vmem:[%s1217_s1 + $0x80] sm:$0xff]   ;;  %v954_v43 = vld [vmem:[%s1217_s1 + $0x1b8] sm:$0xff]  }
   0xd   :  { %858 = vmatpush3.bf16.msra.mxu1 %v930_v11  ;;  %837 = vmatprep.subr.bf16.mxu0 %v931_v12  ;;  %v12_v32 = vld [vmem:[%s1218_s0] sm:$0xff]  ;;  %v13_v34 = vld [vmem:[%s1218_s0 + $0x8] sm:$0xff]  ;;  %v955_v44 = vld [vmem:[%s1217_s1 + $0x170] sm:$0xff]  }
   0xe   :  { %859 = vmatprep.subr.bf16.mxu1 %v932_v13  ;;  %v16_v33 = vld [vmem:[%s1218_s0 + $0x20] sm:$0xff]  ;;  %v17_v37 = vld [vmem:[%s1218_s0 + $0x28] sm:$0xff]  ;;  %v956_v45 = vld [vmem:[%s1217_s1 + $0x1f0] sm:$0xff]  }
   0xf   :  { %v750_v35 = vcombine.low %v12_v32, %v16_v33  ;;  %v751_v36 = vcombine.high %v12_v32, %v16_v33  ;;  %v752_v38 = vcombine.low %v13_v34, %v17_v37  ;;  %v753_v39 = vcombine.high %v13_v34, %v17_v37  ;;  %v957_v46 = vld [vmem:[%s1217_s1 + $0x130] sm:$0xff]   ;;  %v959_v48 = vld [vmem:[%s1217_s1 + $0x168] sm:$0xff]   ;;  %v963_v52 = vld [vmem:[%s1217_s1 + $0x160] sm:$0xff]  }
  0x10   :  { %838 = vmatpush3.bf16.msra.mxu0 %v933_v14  ;;  %v958_v47 = vld [vmem:[%s1217_s1 + $0x1b0] sm:$0xff]   ;;  %v960_v49 = vld [vmem:[%s1217_s1 + $0x1e8] sm:$0xff]   ;;  %v964_v53 = vld [vmem:[%s1217_s1 + $0x1e0] sm:$0xff]  }
  0x11   :  { %860 = vmatpush3.bf16.msra.mxu1 %v934_v15  ;;  %839 = vmatprep.subr.bf16.mxu0 %v935_v16  ;;  %v961_v50 = vld [vmem:[%s1217_s1 + $0x128] sm:$0xff]   ;;  %v965_v54 = vld [vmem:[%s1217_s1 + $0x120] sm:$0xff]   ;;  %v967_v56 = vld [vmem:[%s1217_s1 + $0x158] sm:$0xff]  }
  0x12   :  { %861 = vmatprep.subr.bf16.mxu1 %v936_v17  ;;  %604 = vmatprep.mubr.bf16.mxu0 %v751_v36  ;;  %v962_v51 = vld [vmem:[%s1217_s1 + $0x1a8] sm:$0xff]   ;;  %v966_v55 = vld [vmem:[%s1217_s1 + $0x1a0] sm:$0xff]   ;;  %v968_v57 = vld [vmem:[%s1217_s1 + $0x1d8] sm:$0xff]  }
  0x13   :  { %645 = vmatprep.mubr.bf16.mxu1 %v753_v39  ;;  %v969_v58 = vld [vmem:[%s1217_s1 + $0x118] sm:$0xff]   ;;  %v971_v60 = vld [vmem:[%s1217_s1 + $0x150] sm:$0xff]   ;;  %v975_v0 = vld [vmem:[%s1217_s1 + $0x148] sm:$0xff]  }
  0x14   :  { %840 = vmatpush3.bf16.msra.mxu0 %v937_v18  ;;  %v970_v59 = vld [vmem:[%s1217_s1 + $0x198] sm:$0xff]   ;;  %v972_v61 = vld [vmem:[%s1217_s1 + $0x1d0] sm:$0xff]   ;;  %v976_v1 = vld [vmem:[%s1217_s1 + $0x1c8] sm:$0xff]  }
  0x15   :  { %862 = vmatpush3.bf16.msra.mxu1 %v938_v19  ;;  %841 = vmatprep.subr.bf16.mxu0 %v939_v20  ;;  %v973_v62 = vld [vmem:[%s1217_s1 + $0x110] sm:$0xff]   ;;  %v977_v2 = vld [vmem:[%s1217_s1 + $0x108] sm:$0xff]   ;;  %v979_v4 = vld [vmem:[%s1217_s1 + $0x140] sm:$0xff]  }
  0x16   :  { %863 = vmatprep.subr.bf16.mxu1 %v940_v21  ;;  %v974_v63 = vld [vmem:[%s1217_s1 + $0x190] sm:$0xff]   ;;  %v978_v3 = vld [vmem:[%s1217_s1 + $0x188] sm:$0xff]   ;;  %v980_v5 = vld [vmem:[%s1217_s1 + $0x1c0] sm:$0xff]  }
  0x17   :  { %v981_v6 = vld [vmem:[%s1217_s1 + $0x100] sm:$0xff]   ;;  %v14_v8 = vld [vmem:[%s1218_s0 + $0x10] sm:$0xff]  ;;  %v15_v12 = vld [vmem:[%s1218_s0 + $0x18] sm:$0xff] }
  0x18   :  { %842 = vmatpush3.bf16.msra.mxu0 %v941_v22  ;;  %v982_v7 = vld [vmem:[%s1217_s1 + $0x180] sm:$0xff]   ;;  %v18_v9 = vld [vmem:[%s1218_s0 + $0x30] sm:$0xff]  ;;  %v19_v13 = vld [vmem:[%s1218_s0 + $0x38] sm:$0xff] }
  0x19   :  { %864 = vmatpush3.bf16.msra.mxu1 %v942_v23  ;;  %843 = vmatprep.subr.bf16.mxu0 %v943_v24  ;;  %v754_v10 = vcombine.low %v14_v8, %v18_v9  ;;  %v755_v11 = vcombine.high %v14_v8, %v18_v9  ;;  %v756_v14 = vcombine.low %v15_v12, %v19_v13 }
  0x1a   :  { %865 = vmatprep.subr.bf16.mxu1 %v944_v25  ;;  %v757_v15 = vcombine.high %v15_v12, %v19_v13 }
  0x1c   :  { %844 = vmatpush3.bf16.msra.mxu0 %v945_v26 }
  0x1d   :  { %866 = vmatpush3.bf16.msra.mxu1 %v946_v27  ;;  %845 = vmatprep.subr.bf16.mxu0 %v947_v28 }
  0x1e   :  { %867 = vmatprep.subr.bf16.mxu1 %v948_v29 }
  0x20   :  { %846 = vmatpush3.bf16.msra.mxu0 %v949_v30 }
  0x21   :  { %868 = vmatpush3.bf16.msra.mxu1 %v950_v31  ;;  %875 = vmatprep.subr.bf16.mxu0 %v951_v40 }
  0x22   :  { %897 = vmatprep.subr.bf16.mxu1 %v952_v41 }
  0x23   :  { %605 = vmatmul.mubr.bf16.vlgmr.msra.gmra.mxu0 %v750_v35 }
  0x24   :  { %646 = vmatmul.mubr.bf16.vlgmr.msra.gmra.mxu1 %v752_v38  ;;  %876 = vmatpush3.bf16.msra.mxu0 %v953_v42 }
  0x25   :  { %898 = vmatpush3.bf16.msra.mxu1 %v954_v43  ;;  %877 = vmatprep.subr.bf16.mxu0 %v955_v44 }
  0x26   :  { %899 = vmatprep.subr.bf16.mxu1 %v956_v45  ;;  %686 = vmatprep.mubr.bf16.mxu0 %v755_v11 }
  0x27   :  { %727 = vmatprep.mubr.bf16.mxu1 %v757_v15 }
  0x28   :  { %878 = vmatpush3.bf16.msra.mxu0 %v957_v46 }
  0x29   :  { %900 = vmatpush3.bf16.msra.mxu1 %v958_v47  ;;  %879 = vmatprep.subr.bf16.mxu0 %v959_v48 }
  0x2a   :  { %901 = vmatprep.subr.bf16.mxu1 %v960_v49 }
  0x2c   :  { %880 = vmatpush3.bf16.msra.mxu0 %v961_v50 }
  0x2d   :  { %902 = vmatpush3.bf16.msra.mxu1 %v962_v51  ;;  %881 = vmatprep.subr.bf16.mxu0 %v963_v52 }
  0x2e   :  { %903 = vmatprep.subr.bf16.mxu1 %v964_v53 }
  0x30   :  { %882 = vmatpush3.bf16.msra.mxu0 %v965_v54 }
  0x31   :  { %904 = vmatpush3.bf16.msra.mxu1 %v966_v55  ;;  %883 = vmatprep.subr.bf16.mxu0 %v967_v56 }
  0x32   :  { %905 = vmatprep.subr.bf16.mxu1 %v968_v57 }
  0x34   :  { %884 = vmatpush3.bf16.msra.mxu0 %v969_v58 }
  0x35   :  { %906 = vmatpush3.bf16.msra.mxu1 %v970_v59  ;;  %885 = vmatprep.subr.bf16.mxu0 %v971_v60 }
  0x36   :  { %907 = vmatprep.subr.bf16.mxu1 %v972_v61 }
  0x38   :  { %886 = vmatpush3.bf16.msra.mxu0 %v973_v62 }
  0x39   :  { %908 = vmatpush3.bf16.msra.mxu1 %v974_v63  ;;  %887 = vmatprep.subr.bf16.mxu0 %v975_v0 }
  0x3a   :  { %909 = vmatprep.subr.bf16.mxu1 %v976_v1 }
  0x3c   :  { %888 = vmatpush3.bf16.msra.mxu0 %v977_v2 }
  0x3d   :  { %910 = vmatpush3.bf16.msra.mxu1 %v978_v3  ;;  %889 = vmatprep.subr.bf16.mxu0 %v979_v4 }
  0x3e   :  { %911 = vmatprep.subr.bf16.mxu1 %v980_v5 }
  0x40   :  { %890 = vmatpush3.bf16.msra.mxu0 %v981_v6 }
  0x41   :  { %912 = vmatpush3.bf16.msra.mxu1 %v982_v7 }
  0x43   :  { %687 = vmatmul.mubr.bf16.vlgmr.msra.gmra.mxu0 %v754_v10 }
  0x44   :  { %728 = vmatmul.mubr.bf16.vlgmr.msra.gmra.mxu1 %v756_v14 }
  0xe3   :  { %v847_v16 = vpop.f32.mrf.mxu0 }
  0xe4   :  { %v869_v17 = vpop.f32.mrf.mxu1 }
  0xe5   :  { %v848_v18 = vpop.f32.mrf.mxu0 }
  0xe6   :  { %v870_v19 = vpop.f32.mrf.mxu1  ;;  %v849_v25 = vadd.f32 %v848_v18, %v847_v16 }
  0xe7   :  { %v850_v20 = vpop.f32.mrf.mxu0  ;;  %v871_v26 = vadd.f32 %v870_v19, %v869_v17 }
  0xe8   :  { %v872_v21 = vpop.f32.mrf.mxu1 }
  0xe9   :  { %v851_v22 = vpop.f32.mrf.mxu0  ;;  %v648_v34 = vadd.f32 %v871_v26, %v849_v25 }
  0xea   :  { %v873_v23 = vpop.f32.mrf.mxu1  ;;  %v852_v29 = vadd.f32 %v851_v22, %v850_v20 }
  0xeb   :  { %v874_v30 = vadd.f32 %v873_v23, %v872_v21 }
  0xed   :  { %v651_v37 = vadd.f32 %v874_v30, %v852_v29 }
 0x103   :  { %v891_v24 = vpop.f32.mrf.mxu0 }
 0x104   :  { %v913_v27 = vpop.f32.mrf.mxu1 }
 0x105   :  { %v892_v28 = vpop.f32.mrf.mxu0 }
 0x106   :  { %v893_v31 = vadd.f32 %v892_v28, %v891_v24  ;;  %v914_v32 = vpop.f32.mrf.mxu1 }
 0x107   :  { %v894_v33 = vpop.f32.mrf.mxu0  ;;  %v915_v41 = vadd.f32 %v914_v32, %v913_v27 }
 0x108   :  { %v916_v35 = vpop.f32.mrf.mxu1  ;;  %v689_v38 = vadd.f32 %v893_v31, %v648_v34 }
 0x109   :  { %v895_v36 = vpop.f32.mrf.mxu0 }
 0x10a   :  { %v896_v39 = vadd.f32 %v895_v36, %v894_v33  ;;  %v917_v40 = vpop.f32.mrf.mxu1  ;;  %v730_v44 = vadd.f32 %v915_v41, %v689_v38 }
 0x10b   :  { %v918_v43 = vadd.f32 %v917_v40, %v916_v35 }
 0x10c   :  { %v692_v42 = vadd.f32 %v896_v39, %v651_v37 }
 0x10e   :  { %v733_v45 = vadd.f32 %v918_v43, %v692_v42 }
 0x110   :  { %v829_v46 = vpack.c.bf16 %v733_v45, %v730_v44 }
 0x112   :  { %830 = vst [vmem:[%s1219_s2] sm:$0xff] %v829_v46  }

// kernel: _lambda_.15
= control target key start
LH: loop header
LB: loop body
LE: loop exit
PB: predicated region body
PF: predicated region fallthrough
CT: control target
= control target key end

     0   :  { %s1483_s1 = inlined_call_operand.vmem [shape: bf16[4,256,128], index: 1, kind: input, shape index: {}]   ;;  %s1484_s0 = inlined_call_operand.vmem [shape: bf16[4,16,256], index: 0, kind: input, shape index: {}]   ;;  %s1485_s2 = inlined_call_operand.vmem [shape: f32[1,1,128], index: 2, kind: input, shape index: {}]   ;;  %s1486_s3 = inlined_call_operand.vmem [shape: f32[1,1,128], index: 3, kind: input, shape index: {}]   ;;  %s1487_s4 = inlined_call_operand.vmem [shape: bf16[4,16,128], index: 4, kind: output, shape index: {}]  }
   0x1   :  { %v1135_v0 = vld [vmem:[%s1483_s1 + $0x78] sm:$0xff]   ;;  %v1139_v4 = vld [vmem:[%s1483_s1 + $0x70] sm:$0xff]   ;;  %v1143_v8 = vld [vmem:[%s1483_s1 + $0x68] sm:$0xff]  }
   0x2   :  { %v1136_v1 = vld [vmem:[%s1483_s1 + $0xf8] sm:$0xff]   ;;  %1046 = vmatprep.subr.bf16.mxu0 %v1135_v0  ;;  %v1140_v5 = vld [vmem:[%s1483_s1 + $0xf0] sm:$0xff]   ;;  %v1144_v9 = vld [vmem:[%s1483_s1 + $0xe8] sm:$0xff]  }
   0x3   :  { %v1137_v2 = vld [vmem:[%s1483_s1 + $0x38] sm:$0xff]   ;;  %1068 = vmatprep.subr.bf16.mxu1 %v1136_v1  ;;  %v1141_v6 = vld [vmem:[%s1483_s1 + $0x30] sm:$0xff]   ;;  %v1145_v10 = vld [vmem:[%s1483_s1 + $0x28] sm:$0xff]  }
   0x4   :  { %v1138_v3 = vld [vmem:[%s1483_s1 + $0xb8] sm:$0xff]   ;;  %1047 = vmatpush3.bf16.msra.mxu0 %v1137_v2  ;;  %v1142_v7 = vld [vmem:[%s1483_s1 + $0xb0] sm:$0xff]   ;;  %v1146_v11 = vld [vmem:[%s1483_s1 + $0xa8] sm:$0xff]  }
   0x5   :  { %1069 = vmatpush3.bf16.msra.mxu1 %v1138_v3  ;;  %1048 = vmatprep.subr.bf16.mxu0 %v1139_v4  ;;  %v1147_v12 = vld [vmem:[%s1483_s1 + $0x60] sm:$0xff]   ;;  %v1151_v16 = vld [vmem:[%s1483_s1 + $0x58] sm:$0xff]   ;;  %v1155_v20 = vld [vmem:[%s1483_s1 + $0x50] sm:$0xff]  }
   0x6   :  { %1070 = vmatprep.subr.bf16.mxu1 %v1140_v5  ;;  %v1148_v13 = vld [vmem:[%s1483_s1 + $0xe0] sm:$0xff]   ;;  %v1152_v17 = vld [vmem:[%s1483_s1 + $0xd8] sm:$0xff]   ;;  %v1156_v21 = vld [vmem:[%s1483_s1 + $0xd0] sm:$0xff]  }
   0x7   :  { %v1149_v14 = vld [vmem:[%s1483_s1 + $0x20] sm:$0xff]   ;;  %v1153_v18 = vld [vmem:[%s1483_s1 + $0x18] sm:$0xff]   ;;  %v1157_v22 = vld [vmem:[%s1483_s1 + $0x10] sm:$0xff]  }
   0x8   :  { %1049 = vmatpush3.bf16.msra.mxu0 %v1141_v6  ;;  %v1150_v15 = vld [vmem:[%s1483_s1 + $0xa0] sm:$0xff]   ;;  %v1154_v19 = vld [vmem:[%s1483_s1 + $0x98] sm:$0xff]   ;;  %v1158_v23 = vld [vmem:[%s1483_s1 + $0x90] sm:$0xff]  }
   0x9   :  { %1071 = vmatpush3.bf16.msra.mxu1 %v1142_v7  ;;  %1050 = vmatprep.subr.bf16.mxu0 %v1143_v8  ;;  %v1159_v24 = vld [vmem:[%s1483_s1 + $0x48] sm:$0xff]   ;;  %v1163_v28 = vld [vmem:[%s1483_s1 + $0x40] sm:$0xff]   ;;  %v1170_v34 = vld [vmem:[%s1484_s0 + $0x10] ss:$8 sps:$4 sm:$0xff]  }
   0xa   :  { %1072 = vmatprep.subr.bf16.mxu1 %v1144_v9  ;;  %v1160_v25 = vld [vmem:[%s1483_s1 + $0xc8] sm:$0xff]   ;;  %v1164_v29 = vld [vmem:[%s1483_s1 + $0xc0] sm:$0xff]   ;;  %v1172_v35 = vld [vmem:[%s1484_s0 + $0x14] ss:$8 sps:$4 sm:$0xff]  }
   0xb   :  { %v1161_v26 = vld [vmem:[%s1483_s1 + $0x8] sm:$0xff]   ;;  %v1165_v30 = vld [vmem:[%s1483_s1] sm:$0xff]   ;;  %v1173_v36 = vld [vmem:[%s1483_s1 + $0x178] sm:$0xff]   ;;  %439 = vmatprep.mubr.bf16.mxu1 %v1172_v35 }
   0xc   :  { %1051 = vmatpush3.bf16.msra.mxu0 %v1145_v10  ;;  %v1162_v27 = vld [vmem:[%s1483_s1 + $0x88] sm:$0xff]   ;;  %v1166_v31 = vld [vmem:[%s1483_s1 + $0x80] sm:$0xff]   ;;  %v1174_v37 = vld [vmem:[%s1483_s1 + $0x1f8] sm:$0xff]  }
   0xd   :  { %1073 = vmatpush3.bf16.msra.mxu1 %v1146_v11  ;;  %1052 = vmatprep.subr.bf16.mxu0 %v1147_v12  ;;  %v1167_v32 = vld [vmem:[%s1484_s0] ss:$8 sps:$4 sm:$0xff]   ;;  %v1169_v33 = vld [vmem:[%s1484_s0 + $0x4] ss:$8 sps:$4 sm:$0xff]   ;;  %v1175_v38 = vld [vmem:[%s1483_s1 + $0x138] sm:$0xff]   ;;  %v742_v12 = vlaneseq }
   0xe   :  { %1074 = vmatprep.subr.bf16.mxu1 %v1148_v13  ;;  %292 = vmatprep.mubr.bf16.mxu0 %v1169_v33  ;;  %v1176_v39 = vld [vmem:[%s1483_s1 + $0x1b8] sm:$0xff]   ;;  %v1177_v40 = vld [vmem:[%s1483_s1 + $0x170] sm:$0xff]   ;;  %v1181_v44 = vld [vmem:[%s1483_s1 + $0x168] sm:$0xff]  }
   0xf   :  { %v1178_v41 = vld [vmem:[%s1483_s1 + $0x1f0] sm:$0xff]   ;;  %v1182_v45 = vld [vmem:[%s1483_s1 + $0x1e8] sm:$0xff]   ;;  %v1185_v48 = vld [vmem:[%s1483_s1 + $0x160] sm:$0xff]  }
  0x10   :  { %1053 = vmatpush3.bf16.msra.mxu0 %v1149_v14  ;;  %v1179_v42 = vld [vmem:[%s1483_s1 + $0x130] sm:$0xff]   ;;  %v1183_v46 = vld [vmem:[%s1483_s1 + $0x128] sm:$0xff]   ;;  %v1186_v49 = vld [vmem:[%s1483_s1 + $0x1e0] sm:$0xff]  }
  0x11   :  { %1075 = vmatpush3.bf16.msra.mxu1 %v1150_v15  ;;  %1054 = vmatprep.subr.bf16.mxu0 %v1151_v16  ;;  %v1180_v43 = vld [vmem:[%s1483_s1 + $0x1b0] sm:$0xff]   ;;  %v1184_v47 = vld [vmem:[%s1483_s1 + $0x1a8] sm:$0xff]   ;;  %v1187_v50 = vld [vmem:[%s1483_s1 + $0x120] sm:$0xff]   ;;  %v743_v15 = vshrl.u32 %v742_v12, 7 }
  0x12   :  { %1076 = vmatprep.subr.bf16.mxu1 %v1152_v17  ;;  %v1188_v51 = vld [vmem:[%s1483_s1 + $0x1a0] sm:$0xff]   ;;  %v1189_v52 = vld [vmem:[%s1483_s1 + $0x158] sm:$0xff]   ;;  %v1193_v56 = vld [vmem:[%s1483_s1 + $0x150] sm:$0xff]  }
  0x13   :  { %v1190_v53 = vld [vmem:[%s1483_s1 + $0x1d8] sm:$0xff]   ;;  %v1194_v57 = vld [vmem:[%s1483_s1 + $0x1d0] sm:$0xff]   ;;  %v1197_v60 = vld [vmem:[%s1483_s1 + $0x148] sm:$0xff]   ;;  %vm745_vm0 = vcmp.lt.s32.totalorder %v743_v15, 2 }
  0x14   :  { %1055 = vmatpush3.bf16.msra.mxu0 %v1153_v18  ;;  %v1191_v54 = vld [vmem:[%s1483_s1 + $0x118] sm:$0xff]   ;;  %v1195_v58 = vld [vmem:[%s1483_s1 + $0x110] sm:$0xff]   ;;  %v1198_v61 = vld [vmem:[%s1483_s1 + $0x1c8] sm:$0xff]  }
  0x15   :  { %1077 = vmatpush3.bf16.msra.mxu1 %v1154_v19  ;;  %1056 = vmatprep.subr.bf16.mxu0 %v1155_v20  ;;  %v1192_v55 = vld [vmem:[%s1483_s1 + $0x198] sm:$0xff]   ;;  %v1196_v59 = vld [vmem:[%s1483_s1 + $0x190] sm:$0xff]   ;;  %v1199_v62 = vld [vmem:[%s1483_s1 + $0x108] sm:$0xff]  }
  0x16   :  { %1078 = vmatprep.subr.bf16.mxu1 %v1156_v21  ;;  %v1200_v63 = vld [vmem:[%s1483_s1 + $0x188] sm:$0xff]   ;;  %v1201_v0 = vld [vmem:[%s1483_s1 + $0x140] sm:$0xff]   ;;  %v1208_v6 = vld [vmem:[%s1484_s0 + $0x30] ss:$8 sps:$4 sm:$0xff]   ;;  %v1213_v21 = vmov 0.0  }
  0x17   :  { %v1202_v1 = vld [vmem:[%s1483_s1 + $0x1c0] sm:$0xff]   ;;  %v1210_v7 = vld [vmem:[%s1484_s0 + $0x34] ss:$8 sps:$4 sm:$0xff]  }
  0x18   :  { %1057 = vmatpush3.bf16.msra.mxu0 %v1157_v22  ;;  %v1203_v2 = vld [vmem:[%s1483_s1 + $0x100] sm:$0xff]   ;;  %v1455_v22 = vsel %vm745_vm0, 1.0, %v1213_v21 }
  0x19   :  { %1079 = vmatpush3.bf16.msra.mxu1 %v1158_v23  ;;  %1058 = vmatprep.subr.bf16.mxu0 %v1159_v24  ;;  %v1204_v3 = vld [vmem:[%s1483_s1 + $0x180] sm:$0xff]  }
  0x1a   :  { %1080 = vmatprep.subr.bf16.mxu1 %v1160_v25  ;;  %v1205_v4 = vld [vmem:[%s1484_s0 + $0x20] ss:$8 sps:$4 sm:$0xff]   ;;  %v1207_v5 = vld [vmem:[%s1484_s0 + $0x24] ss:$8 sps:$4 sm:$0xff]  }
  0x1c   :  { %1059 = vmatpush3.bf16.msra.mxu0 %v1161_v26 }
  0x1d   :  { %1081 = vmatpush3.bf16.msra.mxu1 %v1162_v27  ;;  %1060 = vmatprep.subr.bf16.mxu0 %v1163_v28 }
  0x1e   :  { %1082 = vmatprep.subr.bf16.mxu1 %v1164_v29 }
  0x20   :  { %1061 = vmatpush3.bf16.msra.mxu0 %v1165_v30 }
  0x21   :  { %1083 = vmatpush3.bf16.msra.mxu1 %v1166_v31  ;;  %1090 = vmatprep.subr.bf16.mxu0 %v1173_v36 }
  0x22   :  { %1112 = vmatprep.subr.bf16.mxu1 %v1174_v37 }
  0x23   :  { %293 = vmatmul.mubr.bf16.vlgmr.msra.gmra.mxu0 %v1167_v32 }
  0x24   :  { %440 = vmatmul.mubr.bf16.vlgmr.msra.gmra.mxu1 %v1170_v34  ;;  %1091 = vmatpush3.bf16.msra.mxu0 %v1175_v38 }
  0x25   :  { %1113 = vmatpush3.bf16.msra.mxu1 %v1176_v39  ;;  %1092 = vmatprep.subr.bf16.mxu0 %v1177_v40 }
  0x26   :  { %1114 = vmatprep.subr.bf16.mxu1 %v1178_v41  ;;  %586 = vmatprep.mubr.bf16.mxu0 %v1207_v5 }
  0x27   :  { %733 = vmatprep.mubr.bf16.mxu1 %v1210_v7 }
  0x28   :  { %1093 = vmatpush3.bf16.msra.mxu0 %v1179_v42 }
  0x29   :  { %1115 = vmatpush3.bf16.msra.mxu1 %v1180_v43  ;;  %1094 = vmatprep.subr.bf16.mxu0 %v1181_v44 }
  0x2a   :  { %1116 = vmatprep.subr.bf16.mxu1 %v1182_v45 }
  0x2c   :  { %1095 = vmatpush3.bf16.msra.mxu0 %v1183_v46 }
  0x2d   :  { %1117 = vmatpush3.bf16.msra.mxu1 %v1184_v47  ;;  %1096 = vmatprep.subr.bf16.mxu0 %v1185_v48 }
  0x2e   :  { %1118 = vmatprep.subr.bf16.mxu1 %v1186_v49 }
  0x30   :  { %1097 = vmatpush3.bf16.msra.mxu0 %v1187_v50 }
  0x31   :  { %1119 = vmatpush3.bf16.msra.mxu1 %v1188_v51  ;;  %1098 = vmatprep.subr.bf16.mxu0 %v1189_v52 }
  0x32   :  { %1120 = vmatprep.subr.bf16.mxu1 %v1190_v53 }
  0x34   :  { %1099 = vmatpush3.bf16.msra.mxu0 %v1191_v54 }
  0x35   :  { %1121 = vmatpush3.bf16.msra.mxu1 %v1192_v55  ;;  %1100 = vmatprep.subr.bf16.mxu0 %v1193_v56 }
  0x36   :  { %1122 = vmatprep.subr.bf16.mxu1 %v1194_v57 }
  0x38   :  { %1101 = vmatpush3.bf16.msra.mxu0 %v1195_v58 }
  0x39   :  { %1123 = vmatpush3.bf16.msra.mxu1 %v1196_v59  ;;  %1102 = vmatprep.subr.bf16.mxu0 %v1197_v60 }
  0x3a   :  { %1124 = vmatprep.subr.bf16.mxu1 %v1198_v61 }
  0x3c   :  { %1103 = vmatpush3.bf16.msra.mxu0 %v1199_v62 }
  0x3d   :  { %1125 = vmatpush3.bf16.msra.mxu1 %v1200_v63  ;;  %1104 = vmatprep.subr.bf16.mxu0 %v1201_v0 }
  0x3e   :  { %1126 = vmatprep.subr.bf16.mxu1 %v1202_v1 }
  0x40   :  { %1105 = vmatpush3.bf16.msra.mxu0 %v1203_v2 }
  0x41   :  { %1127 = vmatpush3.bf16.msra.mxu1 %v1204_v3 }
  0x43   :  { %587 = vmatmul.mubr.bf16.vlgmr.msra.gmra.mxu0 %v1205_v4 }
  0x44   :  { %734 = vmatmul.mubr.bf16.vlgmr.msra.gmra.mxu1 %v1208_v6 }
  0xe3   :  { %v1062_v8 = vpop.f32.mrf.mxu0 }
  0xe4   :  { %v1084_v9 = vpop.f32.mrf.mxu1 }
  0xe5   :  { %v1063_v10 = vpop.f32.mrf.mxu0 }
  0xe6   :  { %v1085_v11 = vpop.f32.mrf.mxu1  ;;  %v1064_v20 = vadd.f32 %v1063_v10, %v1062_v8 }
  0xe7   :  { %v1065_v13 = vpop.f32.mrf.mxu0  ;;  %v1086_v23 = vadd.f32 %v1085_v11, %v1084_v9 }
  0xe8   :  { %v1087_v14 = vpop.f32.mrf.mxu1  ;;  %v751_v26 = vmul.f32 %v1064_v20, %v1455_v22 }
  0xe9   :  { %v1066_v16 = vpop.f32.mrf.mxu0  ;;  %v753_v27 = vmul.f32 %v1086_v23, %v1455_v22 }
  0xea   :  { %v1088_v17 = vpop.f32.mrf.mxu1  ;;  %v1067_v18 = vadd.f32 %v1066_v16, %v1065_v13 }
  0xeb   :  { %v1089_v19 = vadd.f32 %v1088_v17, %v1087_v14 }
  0xec   :  { %v752_v24 = vmul.f32 0.0, %v1067_v18 }
  0xed   :  { %v754_v25 = vmul.f32 0.0, %v1089_v19 }
  0xee   :  { %v759_v28 = vadd.f32 %v752_v24, %v751_v26 }
  0xef   :  { %v766_v29 = vadd.f32 %v754_v25, %v753_v27 }
  0xf0   :  { %v760_v30 = vrot.slane %v759_v28, 4 }
  0xf1   :  { %v767_v31 = vrot.slane %v766_v29, 4 }
  0xf2   :  { %v761_v33 = vadd.f32 %v760_v30, %v759_v28 }
  0xf3   :  { %v768_v36 = vadd.f32 %v767_v31, %v766_v29 }
  0xf4   :  { %v762_v40 = vrot.slane %v761_v33, 2 }
  0xf5   :  { %v769_v43 = vrot.slane %v768_v36, 2 }
  0xf6   :  { %v763_v50 = vadd.f32 %v762_v40, %v761_v33 }
  0xf7   :  { %v770_v51 = vadd.f32 %v769_v43, %v768_v36 }
  0xf8   :  { %v764_v57 = vrot.slane %v763_v50, 1 }
  0xf9   :  { %v771_v58 = vrot.slane %v770_v51, 1 }
  0xfa   :  { %v765_v63 = vadd.f32 %v764_v57, %v763_v50 }
  0xfb   :  { %v772_v0 = vadd.f32 %v771_v58, %v770_v51 }
  0xfd   :  { %v787_v5 = vadd.f32 %v772_v0, %v765_v63 }
 0x103   :  { %v1106_v32 = vpop.f32.mrf.mxu0 }
 0x104   :  { %v1128_v34 = vpop.f32.mrf.mxu1 }
 0x105   :  { %v1107_v35 = vpop.f32.mrf.mxu0 }
 0x106   :  { %v1129_v37 = vpop.f32.mrf.mxu1  ;;  %v1108_v39 = vadd.f32 %v1107_v35, %v1106_v32 }
 0x107   :  { %v1109_v38 = vpop.f32.mrf.mxu0  ;;  %v1130_v44 = vadd.f32 %v1129_v37, %v1128_v34 }
 0x108   :  { %v1131_v41 = vpop.f32.mrf.mxu1  ;;  %v755_v47 = vmul.f32 %v1108_v39, %v1455_v22 }
 0x109   :  { %v1110_v42 = vpop.f32.mrf.mxu0  ;;  %v757_v52 = vmul.f32 %v1130_v44, %v1455_v22 }
 0x10a   :  { %v1111_v45 = vadd.f32 %v1110_v42, %v1109_v38  ;;  %v1132_v46 = vpop.f32.mrf.mxu1 }
 0x10b   :  { %v1133_v49 = vadd.f32 %v1132_v46, %v1131_v41 }
 0x10c   :  { %v756_v48 = vmul.f32 0.0, %v1111_v45 }
 0x10d   :  { %v758_v54 = vmul.f32 0.0, %v1133_v49 }
 0x10e   :  { %v773_v53 = vadd.f32 %v756_v48, %v755_v47 }
 0x10f   :  { %v780_v56 = vadd.f32 %v758_v54, %v757_v52 }
 0x110   :  { %v774_v55 = vrot.slane %v773_v53, 4 }
 0x111   :  { %v781_v60 = vrot.slane %v780_v56, 4 }
 0x112   :  { %v775_v59 = vadd.f32 %v774_v55, %v773_v53 }
 0x113   :  { %v782_v62 = vadd.f32 %v781_v60, %v780_v56 }
 0x114   :  { %v776_v61 = vrot.slane %v775_v59, 2 }
 0x115   :  { %v783_v2 = vrot.slane %v782_v62, 2 }
 0x116   :  { %v777_v1 = vadd.f32 %v776_v61, %v775_v59 }
 0x117   :  { %v784_v4 = vadd.f32 %v783_v2, %v782_v62 }
 0x118   :  { %v778_v3 = vrot.slane %v777_v1, 1 }
 0x119   :  { %v785_v7 = vrot.slane %v784_v4, 1 }
 0x11a   :  { %v779_v6 = vadd.f32 %v778_v3, %v777_v1 }
 0x11b   :  { %v786_v9 = vadd.f32 %v785_v7, %v784_v4 }
 0x11c   :  { %v788_v8 = vadd.f32 %v787_v5, %v779_v6  ;;  %v1005_v6 = vld [vmem:[%s1485_s2] ss:$0 sm:$0xff] }
 0x11e   :  { %v789_v10 = vadd.f32 %v788_v8, %v786_v9 }
 0x120   :  { %v791_v11 = vmul.f32 0.125, %v789_v10 }
 0x122   :  { %v792_v12 = vsub.f32 %v1064_v20, %v791_v11  ;;  %v793_v13 = vsub.f32 %v1067_v18, %v791_v11  ;;  %v794_v14 = vsub.f32 %v1086_v23, %v791_v11  ;;  %v795_v15 = vsub.f32 %v1089_v19, %v791_v11 }
 0x123   :  { %v796_v16 = vsub.f32 %v1108_v39, %v791_v11  ;;  %v797_v17 = vsub.f32 %v1111_v45, %v791_v11  ;;  %v798_v21 = vsub.f32 %v1130_v44, %v791_v11  ;;  %v799_v24 = vsub.f32 %v1133_v49, %v791_v11 }
 0x124   :  { %v800_v25 = vmul.f32 %v1455_v22, %v792_v12  ;;  %v801_v26 = vmul.f32 0.0, %v793_v13  ;;  %v802_v27 = vmul.f32 %v1455_v22, %v794_v14  ;;  %v803_v28 = vmul.f32 0.0, %v795_v15 }
 0x125   :  { %v804_v29 = vmul.f32 %v1455_v22, %v796_v16  ;;  %v805_v30 = vmul.f32 0.0, %v797_v17  ;;  %v806_v31 = vmul.f32 %v1455_v22, %v798_v21  ;;  %v807_v32 = vmul.f32 0.0, %v799_v24 }
 0x126   :  { %v808_v20 = vmul.f32 %v800_v25, %v800_v25  ;;  %v809_v18 = vmul.f32 %v801_v26, %v801_v26  ;;  %v810_v23 = vmul.f32 %v802_v27, %v802_v27  ;;  %v811_v19 = vmul.f32 %v803_v28, %v803_v28  ;;  %v1006_v28 = vld [vmem:[%s1486_s3] ss:$0 sm:$0xff] }
 0x127   :  { %v812_v33 = vmul.f32 %v804_v29, %v804_v29  ;;  %v813_v34 = vmul.f32 %v805_v30, %v805_v30  ;;  %v814_v35 = vmul.f32 %v806_v31, %v806_v31  ;;  %v815_v36 = vmul.f32 %v807_v32, %v807_v32 }
 0x128   :  { %v816_v37 = vadd.f32 %v809_v18, %v808_v20  ;;  %v823_v38 = vadd.f32 %v811_v19, %v810_v23 }
 0x129   :  { %v830_v39 = vadd.f32 %v813_v34, %v812_v33  ;;  %v837_v40 = vadd.f32 %v815_v36, %v814_v35 }
 0x12a   :  { %v817_v41 = vrot.slane %v816_v37, 4  ;;  %v824_v42 = vrot.slane %v823_v38, 4 }
 0x12b   :  { %v831_v43 = vrot.slane %v830_v39, 4  ;;  %v838_v44 = vrot.slane %v837_v40, 4 }
 0x12c   :  { %v818_v45 = vadd.f32 %v817_v41, %v816_v37  ;;  %v825_v46 = vadd.f32 %v824_v42, %v823_v38 }
 0x12d   :  { %v832_v22 = vadd.f32 %v831_v43, %v830_v39  ;;  %v839_v47 = vadd.f32 %v838_v44, %v837_v40 }
 0x12e   :  { %v819_v48 = vrot.slane %v818_v45, 2  ;;  %v826_v49 = vrot.slane %v825_v46, 2 }
 0x12f   :  { %v833_v50 = vrot.slane %v832_v22, 2  ;;  %v840_v51 = vrot.slane %v839_v47, 2 }
 0x130   :  { %v820_v52 = vadd.f32 %v819_v48, %v818_v45  ;;  %v827_v53 = vadd.f32 %v826_v49, %v825_v46 }
 0x131   :  { %v834_v54 = vadd.f32 %v833_v50, %v832_v22  ;;  %v841_v55 = vadd.f32 %v840_v51, %v839_v47 }
 0x132   :  { %v821_v56 = vrot.slane %v820_v52, 1  ;;  %v828_v57 = vrot.slane %v827_v53, 1 }
 0x133   :  { %v835_v58 = vrot.slane %v834_v54, 1  ;;  %v842_v61 = vrot.slane %v841_v55, 1 }
 0x134   :  { %v822_v59 = vadd.f32 %v821_v56, %v820_v52  ;;  %v829_v60 = vadd.f32 %v828_v57, %v827_v53 }
 0x135   :  { %v836_v62 = vadd.f32 %v835_v58, %v834_v54  ;;  %v843_v0 = vadd.f32 %v842_v61, %v841_v55 }
 0x136   :  { %v844_v63 = vadd.f32 %v829_v60, %v822_v59 }
 0x138   :  { %v845_v1 = vadd.f32 %v844_v63, %v836_v62 }
 0x13a   :  { %v846_v2 = vadd.f32 %v845_v1, %v843_v0 }
 0x13c   :  { %v847_v3 = vmul.f32 0.125, %v846_v2 }
 0x13e   :  { %v848_v4 = vadd.f32 1e-05, %v847_v3 }
 0x140   :  { %1211 = vrsqrt.f32 %v848_v4 }
 0x14d   :  { %v1212_v5 = vpop.eup %1211 }
 0x14e   :  { %v850_v7 = vmul.f32 %v1212_v5, %v792_v12  ;;  %v851_v8 = vmul.f32 %v1212_v5, %v793_v13  ;;  %v852_v9 = vmul.f32 %v1212_v5, %v794_v14  ;;  %v853_v10 = vmul.f32 %v1212_v5, %v795_v15 }
 0x14f   :  { %v854_v11 = vmul.f32 %v1212_v5, %v796_v16  ;;  %v855_v25 = vmul.f32 %v1212_v5, %v797_v17  ;;  %v856_v26 = vmul.f32 %v1212_v5, %v798_v21  ;;  %v857_v27 = vmul.f32 %v1212_v5, %v799_v24 }
 0x150   :  { %v865_v29 = vmul.f32 %v1005_v6, %v850_v7  ;;  %v866_v30 = vmul.f32 %v1005_v6, %v851_v8  ;;  %v867_v31 = vmul.f32 %v1005_v6, %v852_v9  ;;  %v868_v32 = vmul.f32 %v1005_v6, %v853_v10 }
 0x151   :  { %v869_v20 = vmul.f32 %v1005_v6, %v854_v11  ;;  %v870_v18 = vmul.f32 %v1005_v6, %v855_v25  ;;  %v871_v23 = vmul.f32 %v1005_v6, %v856_v26  ;;  %v872_v19 = vmul.f32 %v1005_v6, %v857_v27 }
 0x152   :  { %v880_v12 = vadd.f32 %v1006_v28, %v865_v29  ;;  %v881_v13 = vadd.f32 %v1006_v28, %v866_v30  ;;  %v882_v14 = vadd.f32 %v1006_v28, %v867_v31  ;;  %v883_v15 = vadd.f32 %v1006_v28, %v868_v32 }
 0x153   :  { %v884_v16 = vadd.f32 %v1006_v28, %v869_v20  ;;  %v885_v17 = vadd.f32 %v1006_v28, %v870_v18  ;;  %v886_v21 = vadd.f32 %v1006_v28, %v871_v23  ;;  %v887_v24 = vadd.f32 %v1006_v28, %v872_v19 }
 0x154   :  { %v1026_v33 = vpack.c.bf16 %v881_v13, %v880_v12  ;;  %v1031_v34 = vpack.c.bf16 %v883_v15, %v882_v14 }
 0x155   :  { %v1036_v35 = vpack.c.bf16 %v885_v17, %v884_v16  ;;  %v1041_v36 = vpack.c.bf16 %v887_v24, %v886_v21 }
 0x156   :  { %1027 = vst [vmem:[%s1487_s4] sm:$0xff] %v1026_v33   ;;  %1043 = vst [vmem:[%s1487_s4 + $0x8] sm:$0xff] %v1031_v34  }
 0x157   :  { %1044 = vst [vmem:[%s1487_s4 + $0x10] sm:$0xff] %v1036_v35   ;;  %1045 = vst [vmem:[%s1487_s4 + $0x18] sm:$0xff] %v1041_v36  }

// kernel: _lambda_.16
= control target key start
LH: loop header
LB: loop body
LE: loop exit
PB: predicated region body
PF: predicated region fallthrough
CT: control target
= control target key end

     0   :  { %s2654_s1 = inlined_call_operand.vmem [shape: bf16[4,512,128], index: 1, kind: input, shape index: {}]   ;;  %s2655_s0 = inlined_call_operand.vmem [shape: bf16[4,16,512], index: 0, kind: input, shape index: {}]   ;;  %s2656_s2 = inlined_call_operand.vmem [shape: f32[1,1,128], index: 2, kind: input, shape index: {}]   ;;  %s2657_s3 = inlined_call_operand.vmem [shape: f32[1,1,128], index: 3, kind: input, shape index: {}]   ;;  %s2658_s4 = inlined_call_operand.vmem [shape: bf16[4,16,128], index: 4, kind: output, shape index: {}]  }
   0x1   :  { %v2017_v0 = vld [vmem:[%s2654_s1 + $0x78] sm:$0xff]   ;;  %v2021_v4 = vld [vmem:[%s2654_s1 + $0x70] sm:$0xff]   ;;  %v2025_v8 = vld [vmem:[%s2654_s1 + $0x68] sm:$0xff]  }
   0x2   :  { %v2018_v1 = vld [vmem:[%s2654_s1 + $0xf8] sm:$0xff]   ;;  %1841 = vmatprep.subr.bf16.mxu0 %v2017_v0  ;;  %v2022_v5 = vld [vmem:[%s2654_s1 + $0xf0] sm:$0xff]   ;;  %v2026_v9 = vld [vmem:[%s2654_s1 + $0xe8] sm:$0xff]  }
   0x3   :  { %v2019_v2 = vld [vmem:[%s2654_s1 + $0x38] sm:$0xff]   ;;  %1863 = vmatprep.subr.bf16.mxu1 %v2018_v1  ;;  %v2023_v6 = vld [vmem:[%s2654_s1 + $0x30] sm:$0xff]   ;;  %v2027_v10 = vld [vmem:[%s2654_s1 + $0x28] sm:$0xff]  }
   0x4   :  { %v2020_v3 = vld [vmem:[%s2654_s1 + $0xb8] sm:$0xff]   ;;  %1842 = vmatpush3.bf16.msra.mxu0 %v2019_v2  ;;  %v2024_v7 = vld [vmem:[%s2654_s1 + $0xb0] sm:$0xff]   ;;  %v2028_v11 = vld [vmem:[%s2654_s1 + $0xa8] sm:$0xff]  }
   0x5   :  { %1864 = vmatpush3.bf16.msra.mxu1 %v2020_v3  ;;  %1843 = vmatprep.subr.bf16.mxu0 %v2021_v4  ;;  %v2029_v12 = vld [vmem:[%s2654_s1 + $0x60] sm:$0xff]   ;;  %v2033_v16 = vld [vmem:[%s2654_s1 + $0x58] sm:$0xff]   ;;  %v2037_v20 = vld [vmem:[%s2654_s1 + $0x50] sm:$0xff]  }
   0x6   :  { %1865 = vmatprep.subr.bf16.mxu1 %v2022_v5  ;;  %v2030_v13 = vld [vmem:[%s2654_s1 + $0xe0] sm:$0xff]   ;;  %v2034_v17 = vld [vmem:[%s2654_s1 + $0xd8] sm:$0xff]   ;;  %v2038_v21 = vld [vmem:[%s2654_s1 + $0xd0] sm:$0xff]  }
   0x7   :  { %v2031_v14 = vld [vmem:[%s2654_s1 + $0x20] sm:$0xff]   ;;  %v2035_v18 = vld [vmem:[%s2654_s1 + $0x18] sm:$0xff]   ;;  %v2039_v22 = vld [vmem:[%s2654_s1 + $0x10] sm:$0xff]  }
   0x8   :  { %1844 = vmatpush3.bf16.msra.mxu0 %v2023_v6  ;;  %v2032_v15 = vld [vmem:[%s2654_s1 + $0xa0] sm:$0xff]   ;;  %v2036_v19 = vld [vmem:[%s2654_s1 + $0x98] sm:$0xff]   ;;  %v2040_v23 = vld [vmem:[%s2654_s1 + $0x90] sm:$0xff]  }
   0x9   :  { %1866 = vmatpush3.bf16.msra.mxu1 %v2024_v7  ;;  %1845 = vmatprep.subr.bf16.mxu0 %v2025_v8  ;;  %v2041_v24 = vld [vmem:[%s2654_s1 + $0x48] sm:$0xff]   ;;  %v2045_v28 = vld [vmem:[%s2654_s1 + $0x40] sm:$0xff]   ;;  %v2055_v36 = vld [vmem:[%s2654_s1 + $0x178] sm:$0xff]  }
   0xa   :  { %1867 = vmatprep.subr.bf16.mxu1 %v2026_v9  ;;  %v2042_v25 = vld [vmem:[%s2654_s1 + $0xc8] sm:$0xff]   ;;  %v2046_v29 = vld [vmem:[%s2654_s1 + $0xc0] sm:$0xff]   ;;  %v2056_v37 = vld [vmem:[%s2654_s1 + $0x1f8] sm:$0xff]  }
   0xb   :  { %v2043_v26 = vld [vmem:[%s2654_s1 + $0x8] sm:$0xff]   ;;  %v2047_v30 = vld [vmem:[%s2654_s1] sm:$0xff]   ;;  %v2057_v38 = vld [vmem:[%s2654_s1 + $0x138] sm:$0xff]  }
   0xc   :  { %1846 = vmatpush3.bf16.msra.mxu0 %v2027_v10  ;;  %v2044_v27 = vld [vmem:[%s2654_s1 + $0x88] sm:$0xff]   ;;  %v2048_v31 = vld [vmem:[%s2654_s1 + $0x80] sm:$0xff]   ;;  %v2058_v39 = vld [vmem:[%s2654_s1 + $0x1b8] sm:$0xff]  }
   0xd   :  { %1868 = vmatpush3.bf16.msra.mxu1 %v2028_v11  ;;  %1847 = vmatprep.subr.bf16.mxu0 %v2029_v12  ;;  %v2049_v32 = vld [vmem:[%s2655_s0] ss:$16 sps:$4 sm:$0xff]   ;;  %v2051_v33 = vld [vmem:[%s2655_s0 + $0x4] ss:$16 sps:$4 sm:$0xff]   ;;  %v2052_v34 = vld [vmem:[%s2655_s0 + $0x8] ss:$16 sps:$4 sm:$0xff]  }
   0xe   :  { %1869 = vmatprep.subr.bf16.mxu1 %v2030_v13  ;;  %v2054_v35 = vld [vmem:[%s2655_s0 + $0xc] ss:$16 sps:$4 sm:$0xff]   ;;  %534 = vmatprep.mubr.bf16.mxu0 %v2051_v33  ;;  %v2059_v40 = vld [vmem:[%s2654_s1 + $0x170] sm:$0xff]   ;;  %v2067_v48 = vld [vmem:[%s2654_s1 + $0x160] sm:$0xff]  }
   0xf   :  { %575 = vmatprep.mubr.bf16.mxu1 %v2054_v35  ;;  %v2060_v41 = vld [vmem:[%s2654_s1 + $0x1f0] sm:$0xff]   ;;  %v2063_v44 = vld [vmem:[%s2654_s1 + $0x168] sm:$0xff]   ;;  %v2068_v49 = vld [vmem:[%s2654_s1 + $0x1e0] sm:$0xff]  }
  0x10   :  { %1848 = vmatpush3.bf16.msra.mxu0 %v2031_v14  ;;  %v2061_v42 = vld [vmem:[%s2654_s1 + $0x130] sm:$0xff]   ;;  %v2064_v45 = vld [vmem:[%s2654_s1 + $0x1e8] sm:$0xff]   ;;  %v2069_v50 = vld [vmem:[%s2654_s1 + $0x120] sm:$0xff]  }
  0x11   :  { %1870 = vmatpush3.bf16.msra.mxu1 %v2032_v15  ;;  %1849 = vmatprep.subr.bf16.mxu0 %v2033_v16  ;;  %v2062_v43 = vld [vmem:[%s2654_s1 + $0x1b0] sm:$0xff]   ;;  %v2065_v46 = vld [vmem:[%s2654_s1 + $0x128] sm:$0xff]   ;;  %v2070_v51 = vld [vmem:[%s2654_s1 + $0x1a0] sm:$0xff]  }
  0x12   :  { %1871 = vmatprep.subr.bf16.mxu1 %v2034_v17  ;;  %v2066_v47 = vld [vmem:[%s2654_s1 + $0x1a8] sm:$0xff]   ;;  %v2071_v52 = vld [vmem:[%s2654_s1 + $0x158] sm:$0xff]   ;;  %v2075_v56 = vld [vmem:[%s2654_s1 + $0x150] sm:$0xff]  }
  0x13   :  { %v2072_v53 = vld [vmem:[%s2654_s1 + $0x1d8] sm:$0xff]   ;;  %v2076_v57 = vld [vmem:[%s2654_s1 + $0x1d0] sm:$0xff]   ;;  %v2079_v60 = vld [vmem:[%s2654_s1 + $0x148] sm:$0xff]  }
  0x14   :  { %1850 = vmatpush3.bf16.msra.mxu0 %v2035_v18  ;;  %v2073_v54 = vld [vmem:[%s2654_s1 + $0x118] sm:$0xff]   ;;  %v2077_v58 = vld [vmem:[%s2654_s1 + $0x110] sm:$0xff]   ;;  %v2080_v61 = vld [vmem:[%s2654_s1 + $0x1c8] sm:$0xff]  }
  0x15   :  { %1872 = vmatpush3.bf16.msra.mxu1 %v2036_v19  ;;  %1851 = vmatprep.subr.bf16.mxu0 %v2037_v20  ;;  %v2074_v55 = vld [vmem:[%s2654_s1 + $0x198] sm:$0xff]   ;;  %v2078_v59 = vld [vmem:[%s2654_s1 + $0x190] sm:$0xff]   ;;  %v2081_v62 = vld [vmem:[%s2654_s1 + $0x108] sm:$0xff]  }
  0x16   :  { %1873 = vmatprep.subr.bf16.mxu1 %v2038_v21  ;;  %v2082_v63 = vld [vmem:[%s2654_s1 + $0x188] sm:$0xff]   ;;  %v2083_v0 = vld [vmem:[%s2654_s1 + $0x140] sm:$0xff]   ;;  %v2093_v8 = vld [vmem:[%s2654_s1 + $0x278] sm:$0xff]  }
  0x17   :  { %v2084_v1 = vld [vmem:[%s2654_s1 + $0x1c0] sm:$0xff]   ;;  %v2090_v6 = vld [vmem:[%s2655_s0 + $0x28] ss:$16 sps:$4 sm:$0xff]   ;;  %v2092_v7 = vld [vmem:[%s2655_s0 + $0x2c] ss:$16 sps:$4 sm:$0xff]  }
  0x18   :  { %1852 = vmatpush3.bf16.msra.mxu0 %v2039_v22  ;;  %v2085_v2 = vld [vmem:[%s2654_s1 + $0x100] sm:$0xff]   ;;  %v2094_v9 = vld [vmem:[%s2654_s1 + $0x2f8] sm:$0xff]   ;;  %v2097_v12 = vld [vmem:[%s2654_s1 + $0x270] sm:$0xff]  }
  0x19   :  { %1874 = vmatpush3.bf16.msra.mxu1 %v2040_v23  ;;  %1853 = vmatprep.subr.bf16.mxu0 %v2041_v24  ;;  %v2086_v3 = vld [vmem:[%s2654_s1 + $0x180] sm:$0xff]   ;;  %v2095_v10 = vld [vmem:[%s2654_s1 + $0x238] sm:$0xff]   ;;  %v2098_v13 = vld [vmem:[%s2654_s1 + $0x2f0] sm:$0xff]  }
  0x1a   :  { %1875 = vmatprep.subr.bf16.mxu1 %v2042_v25  ;;  %v2087_v4 = vld [vmem:[%s2655_s0 + $0x20] ss:$16 sps:$4 sm:$0xff]   ;;  %v2089_v5 = vld [vmem:[%s2655_s0 + $0x24] ss:$16 sps:$4 sm:$0xff]   ;;  %v2096_v11 = vld [vmem:[%s2654_s1 + $0x2b8] sm:$0xff]  }
  0x1b   :  { %v2099_v14 = vld [vmem:[%s2654_s1 + $0x230] sm:$0xff]   ;;  %v2101_v16 = vld [vmem:[%s2654_s1 + $0x268] sm:$0xff]   ;;  %v2105_v20 = vld [vmem:[%s2654_s1 + $0x260] sm:$0xff]  }
  0x1c   :  { %1854 = vmatpush3.bf16.msra.mxu0 %v2043_v26  ;;  %v2100_v15 = vld [vmem:[%s2654_s1 + $0x2b0] sm:$0xff]   ;;  %v2102_v17 = vld [vmem:[%s2654_s1 + $0x2e8] sm:$0xff]   ;;  %v2106_v21 = vld [vmem:[%s2654_s1 + $0x2e0] sm:$0xff]  }
  0x1d   :  { %1876 = vmatpush3.bf16.msra.mxu1 %v2044_v27  ;;  %1855 = vmatprep.subr.bf16.mxu0 %v2045_v28  ;;  %v2103_v18 = vld [vmem:[%s2654_s1 + $0x228] sm:$0xff]   ;;  %v2107_v22 = vld [vmem:[%s2654_s1 + $0x220] sm:$0xff]   ;;  %v2109_v24 = vld [vmem:[%s2654_s1 + $0x258] sm:$0xff]  }
  0x1e   :  { %1877 = vmatprep.subr.bf16.mxu1 %v2046_v29  ;;  %v2104_v19 = vld [vmem:[%s2654_s1 + $0x2a8] sm:$0xff]   ;;  %v2108_v23 = vld [vmem:[%s2654_s1 + $0x2a0] sm:$0xff]   ;;  %v2110_v25 = vld [vmem:[%s2654_s1 + $0x2d8] sm:$0xff]  }
  0x1f   :  { %v2111_v26 = vld [vmem:[%s2654_s1 + $0x218] sm:$0xff]   ;;  %v2113_v28 = vld [vmem:[%s2654_s1 + $0x250] sm:$0xff]   ;;  %v2118_v33 = vld [vmem:[%s2654_s1 + $0x2c8] sm:$0xff]  }
  0x20   :  { %1856 = vmatpush3.bf16.msra.mxu0 %v2047_v30  ;;  %v2112_v27 = vld [vmem:[%s2654_s1 + $0x298] sm:$0xff]   ;;  %v2114_v29 = vld [vmem:[%s2654_s1 + $0x2d0] sm:$0xff]   ;;  %v2120_v35 = vld [vmem:[%s2654_s1 + $0x288] sm:$0xff]  }
  0x21   :  { %1878 = vmatpush3.bf16.msra.mxu1 %v2048_v31  ;;  %1885 = vmatprep.subr.bf16.mxu0 %v2055_v36  ;;  %v2115_v30 = vld [vmem:[%s2654_s1 + $0x210] sm:$0xff]   ;;  %v2121_v36 = vld [vmem:[%s2654_s1 + $0x240] sm:$0xff]  }
  0x22   :  { %1907 = vmatprep.subr.bf16.mxu1 %v2056_v37  ;;  %v2116_v31 = vld [vmem:[%s2654_s1 + $0x290] sm:$0xff]   ;;  %v2122_v37 = vld [vmem:[%s2654_s1 + $0x2c0] sm:$0xff]  }
  0x23   :  { %535 = vmatmul.mubr.bf16.vlgmr.msra.gmra.mxu0 %v2049_v32  ;;  %v2117_v32 = vld [vmem:[%s2654_s1 + $0x248] sm:$0xff]  }
  0x24   :  { %576 = vmatmul.mubr.bf16.vlgmr.msra.gmra.mxu1 %v2052_v34  ;;  %1886 = vmatpush3.bf16.msra.mxu0 %v2057_v38  ;;  %v2119_v34 = vld [vmem:[%s2654_s1 + $0x208] sm:$0xff]   ;;  %v2123_v38 = vld [vmem:[%s2654_s1 + $0x200] sm:$0xff]  }
  0x25   :  { %1908 = vmatpush3.bf16.msra.mxu1 %v2058_v39  ;;  %1887 = vmatprep.subr.bf16.mxu0 %v2059_v40  ;;  %v2124_v39 = vld [vmem:[%s2654_s1 + $0x280] sm:$0xff]  }
  0x26   :  { %1909 = vmatprep.subr.bf16.mxu1 %v2060_v41  ;;  %828 = vmatprep.mubr.bf16.mxu0 %v2089_v5  ;;  %v2125_v40 = vld [vmem:[%s2655_s0 + $0x40] ss:$16 sps:$4 sm:$0xff]   ;;  %v2127_v41 = vld [vmem:[%s2655_s0 + $0x44] ss:$16 sps:$4 sm:$0xff]   ;;  %v2156_v5 = vld [vmem:[%s2654_s1 + $0x3c8] sm:$0xff]  }
  0x27   :  { %869 = vmatprep.mubr.bf16.mxu1 %v2092_v7  ;;  %v2158_v7 = vld [vmem:[%s2654_s1 + $0x388] sm:$0xff]  }
  0x28   :  { %1888 = vmatpush3.bf16.msra.mxu0 %v2061_v42  ;;  %v2128_v42 = vld [vmem:[%s2655_s0 + $0x48] ss:$16 sps:$4 sm:$0xff]  }
  0x29   :  { %1910 = vmatpush3.bf16.msra.mxu1 %v2062_v43  ;;  %1889 = vmatprep.subr.bf16.mxu0 %v2063_v44  ;;  %v2130_v43 = vld [vmem:[%s2655_s0 + $0x4c] ss:$16 sps:$4 sm:$0xff]  }
  0x2a   :  { %1911 = vmatprep.subr.bf16.mxu1 %v2064_v45  ;;  %v2131_v44 = vld [vmem:[%s2654_s1 + $0x378] sm:$0xff]  }
  0x2b   :  { %v2132_v45 = vld [vmem:[%s2654_s1 + $0x3f8] sm:$0xff]  }
  0x2c   :  { %1890 = vmatpush3.bf16.msra.mxu0 %v2065_v46  ;;  %v2133_v46 = vld [vmem:[%s2654_s1 + $0x338] sm:$0xff]  }
  0x2d   :  { %1912 = vmatpush3.bf16.msra.mxu1 %v2066_v47  ;;  %1891 = vmatprep.subr.bf16.mxu0 %v2067_v48  ;;  %v2134_v47 = vld [vmem:[%s2654_s1 + $0x3b8] sm:$0xff]   ;;  %v2135_v48 = vld [vmem:[%s2654_s1 + $0x370] sm:$0xff]  }
  0x2e   :  { %1913 = vmatprep.subr.bf16.mxu1 %v2068_v49  ;;  %v2136_v49 = vld [vmem:[%s2654_s1 + $0x3f0] sm:$0xff]  }
  0x30   :  { %1892 = vmatpush3.bf16.msra.mxu0 %v2069_v50  ;;  %v2137_v50 = vld [vmem:[%s2654_s1 + $0x330] sm:$0xff]  }
  0x31   :  { %1914 = vmatpush3.bf16.msra.mxu1 %v2070_v51  ;;  %1893 = vmatprep.subr.bf16.mxu0 %v2071_v52  ;;  %v2138_v51 = vld [vmem:[%s2654_s1 + $0x3b0] sm:$0xff]   ;;  %v2139_v52 = vld [vmem:[%s2654_s1 + $0x368] sm:$0xff]  }
  0x32   :  { %1915 = vmatprep.subr.bf16.mxu1 %v2072_v53  ;;  %v2140_v53 = vld [vmem:[%s2654_s1 + $0x3e8] sm:$0xff]  }
  0x34   :  { %1894 = vmatpush3.bf16.msra.mxu0 %v2073_v54  ;;  %v2141_v54 = vld [vmem:[%s2654_s1 + $0x328] sm:$0xff]  }
  0x35   :  { %1916 = vmatpush3.bf16.msra.mxu1 %v2074_v55  ;;  %1895 = vmatprep.subr.bf16.mxu0 %v2075_v56  ;;  %v2142_v55 = vld [vmem:[%s2654_s1 + $0x3a8] sm:$0xff]   ;;  %v2143_v56 = vld [vmem:[%s2654_s1 + $0x360] sm:$0xff]  }
  0x36   :  { %1917 = vmatprep.subr.bf16.mxu1 %v2076_v57  ;;  %v2144_v57 = vld [vmem:[%s2654_s1 + $0x3e0] sm:$0xff]  }
  0x38   :  { %1896 = vmatpush3.bf16.msra.mxu0 %v2077_v58  ;;  %v2145_v58 = vld [vmem:[%s2654_s1 + $0x320] sm:$0xff]  }
  0x39   :  { %1918 = vmatpush3.bf16.msra.mxu1 %v2078_v59  ;;  %1897 = vmatprep.subr.bf16.mxu0 %v2079_v60  ;;  %v2146_v59 = vld [vmem:[%s2654_s1 + $0x3a0] sm:$0xff]   ;;  %v2147_v60 = vld [vmem:[%s2654_s1 + $0x358] sm:$0xff]  }
  0x3a   :  { %1919 = vmatprep.subr.bf16.mxu1 %v2080_v61  ;;  %v2148_v61 = vld [vmem:[%s2654_s1 + $0x3d8] sm:$0xff]  }
  0x3c   :  { %1898 = vmatpush3.bf16.msra.mxu0 %v2081_v62  ;;  %v2149_v62 = vld [vmem:[%s2654_s1 + $0x318] sm:$0xff]  }
  0x3d   :  { %1920 = vmatpush3.bf16.msra.mxu1 %v2082_v63  ;;  %1899 = vmatprep.subr.bf16.mxu0 %v2083_v0  ;;  %v2150_v63 = vld [vmem:[%s2654_s1 + $0x398] sm:$0xff]   ;;  %v2151_v0 = vld [vmem:[%s2654_s1 + $0x350] sm:$0xff]  }
  0x3e   :  { %1921 = vmatprep.subr.bf16.mxu1 %v2084_v1  ;;  %v2152_v1 = vld [vmem:[%s2654_s1 + $0x3d0] sm:$0xff]  }
  0x40   :  { %1900 = vmatpush3.bf16.msra.mxu0 %v2085_v2  ;;  %v2153_v2 = vld [vmem:[%s2654_s1 + $0x310] sm:$0xff]  }
  0x41   :  { %1922 = vmatpush3.bf16.msra.mxu1 %v2086_v3  ;;  %1929 = vmatprep.subr.bf16.mxu0 %v2093_v8  ;;  %v2154_v3 = vld [vmem:[%s2654_s1 + $0x390] sm:$0xff]   ;;  %v2159_v8 = vld [vmem:[%s2654_s1 + $0x340] sm:$0xff]  }
  0x42   :  { %1951 = vmatprep.subr.bf16.mxu1 %v2094_v9  ;;  %v2160_v9 = vld [vmem:[%s2654_s1 + $0x3c0] sm:$0xff]  }
  0x43   :  { %829 = vmatmul.mubr.bf16.vlgmr.msra.gmra.mxu0 %v2087_v4  ;;  %v2155_v4 = vld [vmem:[%s2654_s1 + $0x348] sm:$0xff]  }
  0x44   :  { %870 = vmatmul.mubr.bf16.vlgmr.msra.gmra.mxu1 %v2090_v6  ;;  %1930 = vmatpush3.bf16.msra.mxu0 %v2095_v10  ;;  %v2157_v6 = vld [vmem:[%s2654_s1 + $0x308] sm:$0xff]   ;;  %v2161_v10 = vld [vmem:[%s2654_s1 + $0x300] sm:$0xff]  }
  0x45   :  { %1952 = vmatpush3.bf16.msra.mxu1 %v2096_v11  ;;  %1931 = vmatprep.subr.bf16.mxu0 %v2097_v12  ;;  %v2162_v11 = vld [vmem:[%s2654_s1 + $0x380] sm:$0xff]  }
  0x46   :  { %1953 = vmatprep.subr.bf16.mxu1 %v2098_v13  ;;  %1122 = vmatprep.mubr.bf16.mxu0 %v2127_v41  ;;  %v2163_v12 = vld [vmem:[%s2655_s0 + $0x60] ss:$16 sps:$4 sm:$0xff]   ;;  %v2165_v13 = vld [vmem:[%s2655_s0 + $0x64] ss:$16 sps:$4 sm:$0xff]  }
  0x47   :  { %1163 = vmatprep.mubr.bf16.mxu1 %v2130_v43 }
  0x48   :  { %1932 = vmatpush3.bf16.msra.mxu0 %v2099_v14  ;;  %v2166_v14 = vld [vmem:[%s2655_s0 + $0x68] ss:$16 sps:$4 sm:$0xff]  }
  0x49   :  { %1954 = vmatpush3.bf16.msra.mxu1 %v2100_v15  ;;  %1933 = vmatprep.subr.bf16.mxu0 %v2101_v16  ;;  %v2168_v15 = vld [vmem:[%s2655_s0 + $0x6c] ss:$16 sps:$4 sm:$0xff]  }
  0x4a   :  { %1955 = vmatprep.subr.bf16.mxu1 %v2102_v17 }
  0x4c   :  { %1934 = vmatpush3.bf16.msra.mxu0 %v2103_v18 }
  0x4d   :  { %1956 = vmatpush3.bf16.msra.mxu1 %v2104_v19  ;;  %1935 = vmatprep.subr.bf16.mxu0 %v2105_v20 }
  0x4e   :  { %1957 = vmatprep.subr.bf16.mxu1 %v2106_v21 }
  0x50   :  { %1936 = vmatpush3.bf16.msra.mxu0 %v2107_v22 }
  0x51   :  { %1958 = vmatpush3.bf16.msra.mxu1 %v2108_v23  ;;  %1937 = vmatprep.subr.bf16.mxu0 %v2109_v24 }
  0x52   :  { %1959 = vmatprep.subr.bf16.mxu1 %v2110_v25 }
  0x54   :  { %1938 = vmatpush3.bf16.msra.mxu0 %v2111_v26 }
  0x55   :  { %1960 = vmatpush3.bf16.msra.mxu1 %v2112_v27  ;;  %1939 = vmatprep.subr.bf16.mxu0 %v2113_v28 }
  0x56   :  { %1961 = vmatprep.subr.bf16.mxu1 %v2114_v29 }
  0x58   :  { %1940 = vmatpush3.bf16.msra.mxu0 %v2115_v30 }
  0x59   :  { %1962 = vmatpush3.bf16.msra.mxu1 %v2116_v31  ;;  %1941 = vmatprep.subr.bf16.mxu0 %v2117_v32 }
  0x5a   :  { %1963 = vmatprep.subr.bf16.mxu1 %v2118_v33 }
  0x5c   :  { %1942 = vmatpush3.bf16.msra.mxu0 %v2119_v34 }
  0x5d   :  { %1964 = vmatpush3.bf16.msra.mxu1 %v2120_v35  ;;  %1943 = vmatprep.subr.bf16.mxu0 %v2121_v36 }
  0x5e   :  { %1965 = vmatprep.subr.bf16.mxu1 %v2122_v37 }
  0x60   :  { %1944 = vmatpush3.bf16.msra.mxu0 %v2123_v38 }
  0x61   :  { %1966 = vmatpush3.bf16.msra.mxu1 %v2124_v39  ;;  %1973 = vmatprep.subr.bf16.mxu0 %v2131_v44 }
  0x62   :  { %1995 = vmatprep.subr.bf16.mxu1 %v2132_v45 }
  0x63   :  { %1123 = vmatmul.mubr.bf16.vlgmr.msra.gmra.mxu0 %v2125_v40 }
  0x64   :  { %1164 = vmatmul.mubr.bf16.vlgmr.msra.gmra.mxu1 %v2128_v42  ;;  %1974 = vmatpush3.bf16.msra.mxu0 %v2133_v46 }
  0x65   :  { %1996 = vmatpush3.bf16.msra.mxu1 %v2134_v47  ;;  %1975 = vmatprep.subr.bf16.mxu0 %v2135_v48 }
  0x66   :  { %1997 = vmatprep.subr.bf16.mxu1 %v2136_v49  ;;  %1416 = vmatprep.mubr.bf16.mxu0 %v2165_v13 }
  0x67   :  { %1457 = vmatprep.mubr.bf16.mxu1 %v2168_v15 }
  0x68   :  { %1976 = vmatpush3.bf16.msra.mxu0 %v2137_v50 }
  0x69   :  { %1998 = vmatpush3.bf16.msra.mxu1 %v2138_v51  ;;  %1977 = vmatprep.subr.bf16.mxu0 %v2139_v52 }
  0x6a   :  { %1999 = vmatprep.subr.bf16.mxu1 %v2140_v53 }
  0x6c   :  { %1978 = vmatpush3.bf16.msra.mxu0 %v2141_v54 }
  0x6d   :  { %2000 = vmatpush3.bf16.msra.mxu1 %v2142_v55  ;;  %1979 = vmatprep.subr.bf16.mxu0 %v2143_v56 }
  0x6e   :  { %2001 = vmatprep.subr.bf16.mxu1 %v2144_v57 }
  0x70   :  { %1980 = vmatpush3.bf16.msra.mxu0 %v2145_v58 }
  0x71   :  { %2002 = vmatpush3.bf16.msra.mxu1 %v2146_v59  ;;  %1981 = vmatprep.subr.bf16.mxu0 %v2147_v60 }
  0x72   :  { %2003 = vmatprep.subr.bf16.mxu1 %v2148_v61 }
  0x74   :  { %1982 = vmatpush3.bf16.msra.mxu0 %v2149_v62 }
  0x75   :  { %2004 = vmatpush3.bf16.msra.mxu1 %v2150_v63  ;;  %1983 = vmatprep.subr.bf16.mxu0 %v2151_v0 }
  0x76   :  { %2005 = vmatprep.subr.bf16.mxu1 %v2152_v1 }
  0x78   :  { %1984 = vmatpush3.bf16.msra.mxu0 %v2153_v2 }
  0x79   :  { %2006 = vmatpush3.bf16.msra.mxu1 %v2154_v3  ;;  %1985 = vmatprep.subr.bf16.mxu0 %v2155_v4 }
  0x7a   :  { %2007 = vmatprep.subr.bf16.mxu1 %v2156_v5 }
  0x7c   :  { %1986 = vmatpush3.bf16.msra.mxu0 %v2157_v6 }
  0x7d   :  { %2008 = vmatpush3.bf16.msra.mxu1 %v2158_v7  ;;  %1987 = vmatprep.subr.bf16.mxu0 %v2159_v8 }
  0x7e   :  { %2009 = vmatprep.subr.bf16.mxu1 %v2160_v9 }
  0x80   :  { %1988 = vmatpush3.bf16.msra.mxu0 %v2161_v10 }
  0x81   :  { %2010 = vmatpush3.bf16.msra.mxu1 %v2162_v11 }
  0x83   :  { %1417 = vmatmul.mubr.bf16.vlgmr.msra.gmra.mxu0 %v2163_v12 }
  0x84   :  { %1458 = vmatmul.mubr.bf16.vlgmr.msra.gmra.mxu1 %v2166_v14 }
  0xe3   :  { %v1857_v16 = vpop.f32.mrf.mxu0 }
  0xe4   :  { %v1879_v17 = vpop.f32.mrf.mxu1 }
  0xe5   :  { %v1858_v18 = vpop.f32.mrf.mxu0 }
  0xe6   :  { %v1880_v19 = vpop.f32.mrf.mxu1  ;;  %v1859_v51 = vadd.f32 %v1858_v18, %v1857_v16 }
  0xe7   :  { %v1860_v20 = vpop.f32.mrf.mxu0  ;;  %v1881_v52 = vadd.f32 %v1880_v19, %v1879_v17 }
  0xe8   :  { %v1882_v21 = vpop.f32.mrf.mxu1 }
  0xe9   :  { %v1861_v22 = vpop.f32.mrf.mxu0  ;;  %v578_v59 = vadd.f32 %v1881_v52, %v1859_v51 }
  0xea   :  { %v1883_v23 = vpop.f32.mrf.mxu1  ;;  %v1862_v42 = vadd.f32 %v1861_v22, %v1860_v20 }
  0xeb   :  { %v1884_v43 = vadd.f32 %v1883_v23, %v1882_v21 }
  0xed   :  { %v581_v47 = vadd.f32 %v1884_v43, %v1862_v42 }
  0xef   :  { %v1476_v56 = vmul.f32 0.0, %v581_v47 }
  0xf1   :  { %v1483_v62 = vadd.f32 %v1476_v56, %v578_v59 }
  0xf3   :  { %v1484_v3 = vrot.slane %v1483_v62, 4 }
  0xf5   :  { %v1485_v10 = vadd.f32 %v1484_v3, %v1483_v62 }
  0xf7   :  { %v1486_v19 = vrot.slane %v1485_v10, 2 }
 0x103   :  { %v1901_v24 = vpop.f32.mrf.mxu0 }
 0x104   :  { %v1923_v25 = vpop.f32.mrf.mxu1 }
 0x105   :  { %v1902_v26 = vpop.f32.mrf.mxu0 }
 0x106   :  { %v1924_v27 = vpop.f32.mrf.mxu1  ;;  %v1903_v48 = vadd.f32 %v1902_v26, %v1901_v24 }
 0x107   :  { %v1904_v28 = vpop.f32.mrf.mxu0  ;;  %v1925_v49 = vadd.f32 %v1924_v27, %v1923_v25  ;;  %v1487_v25 = vadd.f32 %v1486_v19, %v1485_v10 }
 0x108   :  { %v1926_v29 = vpop.f32.mrf.mxu1 }
 0x109   :  { %v1905_v30 = vpop.f32.mrf.mxu0  ;;  %v872_v57 = vadd.f32 %v1925_v49, %v1903_v48 }
 0x10a   :  { %v1927_v31 = vpop.f32.mrf.mxu1  ;;  %v1906_v40 = vadd.f32 %v1905_v30, %v1904_v28  ;;  %v1488_v30 = vrot.slane %v1487_v25, 1 }
 0x10b   :  { %v1928_v41 = vadd.f32 %v1927_v31, %v1926_v29 }
 0x10d   :  { %v2628_v46 = vadd.f32 %v1928_v41, %v1906_v40 }
 0x10f   :  { %v1478_v53 = vmul.f32 0.0, %v2628_v46 }
 0x111   :  { %v1490_v60 = vadd.f32 %v1478_v53, %v872_v57 }
 0x113   :  { %v1491_v0 = vrot.slane %v1490_v60, 4 }
 0x115   :  { %v1492_v7 = vadd.f32 %v1491_v0, %v1490_v60 }
 0x117   :  { %v1493_v15 = vrot.slane %v1492_v7, 2 }
 0x119   :  { %v1494_v22 = vadd.f32 %v1493_v15, %v1492_v7 }
 0x11b   :  { %v1495_v28 = vrot.slane %v1494_v22, 1 }
 0x123   :  { %v1945_v32 = vpop.f32.mrf.mxu0 }
 0x124   :  { %v1967_v33 = vpop.f32.mrf.mxu1 }
 0x125   :  { %v1946_v34 = vpop.f32.mrf.mxu0 }
 0x126   :  { %v1968_v35 = vpop.f32.mrf.mxu1  ;;  %v1947_v54 = vadd.f32 %v1946_v34, %v1945_v32 }
 0x127   :  { %v1948_v36 = vpop.f32.mrf.mxu0  ;;  %v1969_v55 = vadd.f32 %v1968_v35, %v1967_v33  ;;  %v1496_v33 = vadd.f32 %v1495_v28, %v1494_v22  ;;  %v1489_v35 = vadd.f32 %v1488_v30, %v1487_v25 }
 0x128   :  { %v1970_v37 = vpop.f32.mrf.mxu1 }
 0x129   :  { %v1949_v38 = vpop.f32.mrf.mxu0  ;;  %v1166_v61 = vadd.f32 %v1969_v55, %v1947_v54 }
 0x12a   :  { %v1971_v39 = vpop.f32.mrf.mxu1  ;;  %v1950_v44 = vadd.f32 %v1949_v38, %v1948_v36  ;;  %v1511_v38 = vadd.f32 %v1496_v33, %v1489_v35 }
 0x12b   :  { %v1972_v45 = vadd.f32 %v1971_v39, %v1970_v37 }
 0x12d   :  { %v2630_v50 = vadd.f32 %v1972_v45, %v1950_v44 }
 0x12f   :  { %v1480_v58 = vmul.f32 0.0, %v2630_v50 }
 0x131   :  { %v1497_v63 = vadd.f32 %v1480_v58, %v1166_v61 }
 0x133   :  { %v1498_v4 = vrot.slane %v1497_v63, 4 }
 0x135   :  { %v1499_v11 = vadd.f32 %v1498_v4, %v1497_v63 }
 0x137   :  { %v1500_v20 = vrot.slane %v1499_v11, 2 }
 0x139   :  { %v1501_v26 = vadd.f32 %v1500_v20, %v1499_v11 }
 0x13b   :  { %v1502_v31 = vrot.slane %v1501_v26, 1 }
 0x13d   :  { %v1503_v36 = vadd.f32 %v1502_v31, %v1501_v26 }
 0x13f   :  { %v1512_v40 = vadd.f32 %v1511_v38, %v1503_v36 }
 0x143   :  { %v1989_v1 = vpop.f32.mrf.mxu0 }
 0x144   :  { %v2011_v2 = vpop.f32.mrf.mxu1 }
 0x145   :  { %v1990_v5 = vpop.f32.mrf.mxu0 }
 0x146   :  { %v2012_v6 = vpop.f32.mrf.mxu1  ;;  %v1991_v16 = vadd.f32 %v1990_v5, %v1989_v1 }
 0x147   :  { %v1992_v8 = vpop.f32.mrf.mxu0  ;;  %v2013_v17 = vadd.f32 %v2012_v6, %v2011_v2 }
 0x148   :  { %v2014_v9 = vpop.f32.mrf.mxu1 }
 0x149   :  { %v1993_v12 = vpop.f32.mrf.mxu0  ;;  %v1460_v23 = vadd.f32 %v2013_v17, %v1991_v16 }
 0x14a   :  { %v1994_v13 = vadd.f32 %v1993_v12, %v1992_v8  ;;  %v2015_v14 = vpop.f32.mrf.mxu1 }
 0x14b   :  { %v2016_v18 = vadd.f32 %v2015_v14, %v2014_v9 }
 0x14d   :  { %v1463_v21 = vadd.f32 %v2016_v18, %v1994_v13 }
 0x14f   :  { %v1482_v24 = vmul.f32 0.0, %v1463_v21 }
 0x151   :  { %v1504_v27 = vadd.f32 %v1482_v24, %v1460_v23 }
 0x153   :  { %v1505_v29 = vrot.slane %v1504_v27, 4 }
 0x155   :  { %v1506_v32 = vadd.f32 %v1505_v29, %v1504_v27 }
 0x157   :  { %v1507_v34 = vrot.slane %v1506_v32, 2 }
 0x159   :  { %v1508_v37 = vadd.f32 %v1507_v34, %v1506_v32  ;;  %v1800_v34 = vld [vmem:[%s2656_s2] ss:$0 sm:$0xff] }
 0x15b   :  { %v1509_v39 = vrot.slane %v1508_v37, 1 }
 0x15d   :  { %v1510_v41 = vadd.f32 %v1509_v39, %v1508_v37 }
 0x15f   :  { %v1513_v42 = vadd.f32 %v1512_v40, %v1510_v41 }
 0x161   :  { %v1515_v43 = vmul.f32 0.03125, %v1513_v42 }
 0x163   :  { %v1516_v44 = vsub.f32 %v578_v59, %v1515_v43  ;;  %v1517_v45 = vsub.f32 %v581_v47, %v1515_v43  ;;  %v1518_v48 = vsub.f32 %v872_v57, %v1515_v43  ;;  %v1519_v49 = vsub.f32 %v2628_v46, %v1515_v43 }
 0x164   :  { %v1520_v51 = vsub.f32 %v1166_v61, %v1515_v43  ;;  %v1521_v52 = vsub.f32 %v2630_v50, %v1515_v43  ;;  %v1522_v53 = vsub.f32 %v1460_v23, %v1515_v43  ;;  %v1523_v54 = vsub.f32 %v1463_v21, %v1515_v43  ;;  %v1801_v43 = vld [vmem:[%s2657_s3] ss:$0 sm:$0xff] }
 0x165   :  { %v1525_v55 = vmul.f32 0.0, %v1517_v45  ;;  %v1527_v56 = vmul.f32 0.0, %v1519_v49  ;;  %v1532_v62 = vmul.f32 %v1516_v44, %v1516_v44  ;;  %v1534_v0 = vmul.f32 %v1518_v48, %v1518_v48 }
 0x166   :  { %v1529_v58 = vmul.f32 0.0, %v1521_v52  ;;  %v1531_v60 = vmul.f32 0.0, %v1523_v54  ;;  %v1536_v2 = vmul.f32 %v1520_v51, %v1520_v51  ;;  %v1538_v59 = vmul.f32 %v1522_v53, %v1522_v53 }
 0x167   :  { %v1533_v63 = vmul.f32 %v1525_v55, %v1525_v55  ;;  %v1535_v1 = vmul.f32 %v1527_v56, %v1527_v56 }
 0x168   :  { %v1537_v3 = vmul.f32 %v1529_v58, %v1529_v58  ;;  %v1539_v47 = vmul.f32 %v1531_v60, %v1531_v60 }
 0x169   :  { %v1540_v57 = vadd.f32 %v1533_v63, %v1532_v62  ;;  %v1547_v4 = vadd.f32 %v1535_v1, %v1534_v0 }
 0x16a   :  { %v1554_v46 = vadd.f32 %v1537_v3, %v1536_v2  ;;  %v1561_v61 = vadd.f32 %v1539_v47, %v1538_v59 }
 0x16b   :  { %v1541_v5 = vrot.slane %v1540_v57, 4  ;;  %v1548_v50 = vrot.slane %v1547_v4, 4 }
 0x16c   :  { %v1555_v6 = vrot.slane %v1554_v46, 4  ;;  %v1562_v7 = vrot.slane %v1561_v61, 4 }
 0x16d   :  { %v1542_v8 = vadd.f32 %v1541_v5, %v1540_v57  ;;  %v1549_v9 = vadd.f32 %v1548_v50, %v1547_v4 }
 0x16e   :  { %v1556_v10 = vadd.f32 %v1555_v6, %v1554_v46  ;;  %v1563_v11 = vadd.f32 %v1562_v7, %v1561_v61 }
 0x16f   :  { %v1543_v12 = vrot.slane %v1542_v8, 2  ;;  %v1550_v13 = vrot.slane %v1549_v9, 2 }
 0x170   :  { %v1557_v14 = vrot.slane %v1556_v10, 2  ;;  %v1564_v15 = vrot.slane %v1563_v11, 2 }
 0x171   :  { %v1544_v16 = vadd.f32 %v1543_v12, %v1542_v8  ;;  %v1551_v17 = vadd.f32 %v1550_v13, %v1549_v9 }
 0x172   :  { %v1558_v18 = vadd.f32 %v1557_v14, %v1556_v10  ;;  %v1565_v19 = vadd.f32 %v1564_v15, %v1563_v11 }
 0x173   :  { %v1545_v20 = vrot.slane %v1544_v16, 1  ;;  %v1552_v21 = vrot.slane %v1551_v17, 1 }
 0x174   :  { %v1559_v22 = vrot.slane %v1558_v18, 1  ;;  %v1566_v25 = vrot.slane %v1565_v19, 1 }
 0x175   :  { %v1546_v23 = vadd.f32 %v1545_v20, %v1544_v16  ;;  %v1553_v24 = vadd.f32 %v1552_v21, %v1551_v17 }
 0x176   :  { %v1560_v26 = vadd.f32 %v1559_v22, %v1558_v18  ;;  %v1567_v28 = vadd.f32 %v1566_v25, %v1565_v19 }
 0x177   :  { %v1568_v27 = vadd.f32 %v1553_v24, %v1546_v23 }
 0x179   :  { %v1569_v29 = vadd.f32 %v1568_v27, %v1560_v26 }
 0x17b   :  { %v1570_v30 = vadd.f32 %v1569_v29, %v1567_v28 }
 0x17d   :  { %v1571_v31 = vmul.f32 0.03125, %v1570_v30 }
 0x17f   :  { %v1572_v32 = vadd.f32 1e-05, %v1571_v31 }
 0x181   :  { %2169 = vrsqrt.f32 %v1572_v32 }
 0x18e   :  { %v2170_v33 = vpop.eup %2169 }
 0x18f   :  { %v1574_v35 = vmul.f32 %v2170_v33, %v1516_v44  ;;  %v1575_v36 = vmul.f32 %v2170_v33, %v1517_v45  ;;  %v1576_v37 = vmul.f32 %v2170_v33, %v1518_v48  ;;  %v1577_v38 = vmul.f32 %v2170_v33, %v1519_v49 }
 0x190   :  { %v1578_v39 = vmul.f32 %v2170_v33, %v1520_v51  ;;  %v1579_v40 = vmul.f32 %v2170_v33, %v1521_v52  ;;  %v1580_v41 = vmul.f32 %v2170_v33, %v1522_v53  ;;  %v1581_v42 = vmul.f32 %v2170_v33, %v1523_v54 }
 0x191   :  { %v1589_v55 = vmul.f32 %v1800_v34, %v1574_v35  ;;  %v1590_v56 = vmul.f32 %v1800_v34, %v1575_v36  ;;  %v1591_v58 = vmul.f32 %v1800_v34, %v1576_v37  ;;  %v1592_v60 = vmul.f32 %v1800_v34, %v1577_v38 }
 0x192   :  { %v1593_v62 = vmul.f32 %v1800_v34, %v1578_v39  ;;  %v1594_v63 = vmul.f32 %v1800_v34, %v1579_v40  ;;  %v1595_v0 = vmul.f32 %v1800_v34, %v1580_v41  ;;  %v1596_v1 = vmul.f32 %v1800_v34, %v1581_v42 }
 0x193   :  { %v1604_v44 = vadd.f32 %v1801_v43, %v1589_v55  ;;  %v1605_v45 = vadd.f32 %v1801_v43, %v1590_v56  ;;  %v1606_v48 = vadd.f32 %v1801_v43, %v1591_v58  ;;  %v1607_v49 = vadd.f32 %v1801_v43, %v1592_v60 }
 0x194   :  { %v1608_v51 = vadd.f32 %v1801_v43, %v1593_v62  ;;  %v1609_v52 = vadd.f32 %v1801_v43, %v1594_v63  ;;  %v1610_v53 = vadd.f32 %v1801_v43, %v1595_v0  ;;  %v1611_v54 = vadd.f32 %v1801_v43, %v1596_v1 }
 0x195   :  { %v1821_v2 = vpack.c.bf16 %v1605_v45, %v1604_v44  ;;  %v1826_v3 = vpack.c.bf16 %v1607_v49, %v1606_v48 }
 0x196   :  { %v1831_v59 = vpack.c.bf16 %v1609_v52, %v1608_v51  ;;  %v1836_v47 = vpack.c.bf16 %v1611_v54, %v1610_v53 }
 0x197   :  { %1822 = vst [vmem:[%s2658_s4] sm:$0xff] %v1821_v2   ;;  %1838 = vst [vmem:[%s2658_s4 + $0x8] sm:$0xff] %v1826_v3  }
 0x198   :  { %1839 = vst [vmem:[%s2658_s4 + $0x10] sm:$0xff] %v1831_v59   ;;  %1840 = vst [vmem:[%s2658_s4 + $0x18] sm:$0xff] %v1836_v47  }

// kernel: _lambda_.17
= control target key start
LH: loop header
LB: loop body
LE: loop exit
PB: predicated region body
PF: predicated region fallthrough
CT: control target
= control target key end

     0   :  { %s1862_s1 = inlined_call_operand.vmem [shape: bf16[4,256,128], index: 1, kind: input, shape index: {}]   ;;  %s1863_s0 = inlined_call_operand.vmem [shape: bf16[4,32,256], index: 0, kind: input, shape index: {}]   ;;  %s1864_s2 = inlined_call_operand.vmem [shape: f32[1,1,128], index: 2, kind: input, shape index: {}]   ;;  %s1865_s3 = inlined_call_operand.vmem [shape: f32[1,1,128], index: 3, kind: input, shape index: {}]   ;;  %s1866_s4 = inlined_call_operand.vmem [shape: bf16[4,32,128], index: 4, kind: output, shape index: {}]  }
   0x1   :  { %v1365_v0 = vld [vmem:[%s1862_s1 + $0x78] sm:$0xff]   ;;  %v1369_v4 = vld [vmem:[%s1862_s1 + $0x70] sm:$0xff]   ;;  %v1373_v8 = vld [vmem:[%s1862_s1 + $0x68] sm:$0xff]  }
   0x2   :  { %v1366_v1 = vld [vmem:[%s1862_s1 + $0xf8] sm:$0xff]   ;;  %1253 = vmatprep.subr.bf16.mxu0 %v1365_v0  ;;  %v1370_v5 = vld [vmem:[%s1862_s1 + $0xf0] sm:$0xff]   ;;  %v1374_v9 = vld [vmem:[%s1862_s1 + $0xe8] sm:$0xff]  }
   0x3   :  { %v1367_v2 = vld [vmem:[%s1862_s1 + $0x38] sm:$0xff]   ;;  %1281 = vmatprep.subr.bf16.mxu1 %v1366_v1  ;;  %v1371_v6 = vld [vmem:[%s1862_s1 + $0x30] sm:$0xff]   ;;  %v1375_v10 = vld [vmem:[%s1862_s1 + $0x28] sm:$0xff]  }
   0x4   :  { %v1368_v3 = vld [vmem:[%s1862_s1 + $0xb8] sm:$0xff]   ;;  %1254 = vmatpush3.bf16.msra.mxu0 %v1367_v2  ;;  %v1372_v7 = vld [vmem:[%s1862_s1 + $0xb0] sm:$0xff]   ;;  %v1376_v11 = vld [vmem:[%s1862_s1 + $0xa8] sm:$0xff]  }
   0x5   :  { %1282 = vmatpush3.bf16.msra.mxu1 %v1368_v3  ;;  %1255 = vmatprep.subr.bf16.mxu0 %v1369_v4  ;;  %v1377_v12 = vld [vmem:[%s1862_s1 + $0x60] sm:$0xff]   ;;  %v1381_v16 = vld [vmem:[%s1862_s1 + $0x58] sm:$0xff]   ;;  %v1385_v20 = vld [vmem:[%s1862_s1 + $0x50] sm:$0xff]  }
   0x6   :  { %1283 = vmatprep.subr.bf16.mxu1 %v1370_v5  ;;  %v1378_v13 = vld [vmem:[%s1862_s1 + $0xe0] sm:$0xff]   ;;  %v1382_v17 = vld [vmem:[%s1862_s1 + $0xd8] sm:$0xff]   ;;  %v1386_v21 = vld [vmem:[%s1862_s1 + $0xd0] sm:$0xff]  }
   0x7   :  { %v1379_v14 = vld [vmem:[%s1862_s1 + $0x20] sm:$0xff]   ;;  %v1383_v18 = vld [vmem:[%s1862_s1 + $0x18] sm:$0xff]   ;;  %v1387_v22 = vld [vmem:[%s1862_s1 + $0x10] sm:$0xff]  }
   0x8   :  { %1256 = vmatpush3.bf16.msra.mxu0 %v1371_v6  ;;  %v1380_v15 = vld [vmem:[%s1862_s1 + $0xa0] sm:$0xff]   ;;  %v1384_v19 = vld [vmem:[%s1862_s1 + $0x98] sm:$0xff]   ;;  %v1388_v23 = vld [vmem:[%s1862_s1 + $0x90] sm:$0xff]  }
   0x9   :  { %1284 = vmatpush3.bf16.msra.mxu1 %v1372_v7  ;;  %1257 = vmatprep.subr.bf16.mxu0 %v1373_v8  ;;  %v1389_v24 = vld [vmem:[%s1862_s1 + $0x48] sm:$0xff]   ;;  %v1393_v28 = vld [vmem:[%s1862_s1 + $0x40] sm:$0xff]   ;;  %v1403_v36 = vld [vmem:[%s1862_s1 + $0x178] sm:$0xff]  }
   0xa   :  { %1285 = vmatprep.subr.bf16.mxu1 %v1374_v9  ;;  %v1390_v25 = vld [vmem:[%s1862_s1 + $0xc8] sm:$0xff]   ;;  %v1394_v29 = vld [vmem:[%s1862_s1 + $0xc0] sm:$0xff]   ;;  %v1404_v37 = vld [vmem:[%s1862_s1 + $0x1f8] sm:$0xff]  }
   0xb   :  { %v1391_v26 = vld [vmem:[%s1862_s1 + $0x8] sm:$0xff]   ;;  %v1395_v30 = vld [vmem:[%s1862_s1] sm:$0xff]   ;;  %v1405_v38 = vld [vmem:[%s1862_s1 + $0x138] sm:$0xff]  }
   0xc   :  { %1258 = vmatpush3.bf16.msra.mxu0 %v1375_v10  ;;  %v1392_v27 = vld [vmem:[%s1862_s1 + $0x88] sm:$0xff]   ;;  %v1396_v31 = vld [vmem:[%s1862_s1 + $0x80] sm:$0xff]   ;;  %v1406_v39 = vld [vmem:[%s1862_s1 + $0x1b8] sm:$0xff]  }
   0xd   :  { %1286 = vmatpush3.bf16.msra.mxu1 %v1376_v11  ;;  %1259 = vmatprep.subr.bf16.mxu0 %v1377_v12  ;;  %v1397_v32 = vld [vmem:[%s1863_s0] ss:$8 sps:$4 sm:$0xff]   ;;  %v1399_v33 = vld [vmem:[%s1863_s0 + $0x4] ss:$8 sps:$4 sm:$0xff]   ;;  %v1407_v40 = vld [vmem:[%s1862_s1 + $0x170] sm:$0xff]  }
   0xe   :  { %1287 = vmatprep.subr.bf16.mxu1 %v1378_v13  ;;  %v1400_v34 = vld [vmem:[%s1863_s0 + $0x20] ss:$8 sps:$4 sm:$0xff]   ;;  %v1402_v35 = vld [vmem:[%s1863_s0 + $0x24] ss:$8 sps:$4 sm:$0xff]   ;;  %310 = vmatprep.mubr.bf16.mxu0 %v1399_v33  ;;  %v1408_v41 = vld [vmem:[%s1862_s1 + $0x1f0] sm:$0xff]  }
   0xf   :  { %475 = vmatprep.mubr.bf16.mxu1 %v1402_v35  ;;  %v1409_v42 = vld [vmem:[%s1862_s1 + $0x130] sm:$0xff]   ;;  %v1417_v48 = vld [vmem:[%s1862_s1 + $0x168] sm:$0xff]   ;;  %v1421_v52 = vld [vmem:[%s1862_s1 + $0x160] sm:$0xff]  }
  0x10   :  { %1260 = vmatpush3.bf16.msra.mxu0 %v1379_v14  ;;  %v1410_v43 = vld [vmem:[%s1862_s1 + $0x1b0] sm:$0xff]   ;;  %v1418_v49 = vld [vmem:[%s1862_s1 + $0x1e8] sm:$0xff]   ;;  %v1422_v53 = vld [vmem:[%s1862_s1 + $0x1e0] sm:$0xff]  }
  0x11   :  { %1288 = vmatpush3.bf16.msra.mxu1 %v1380_v15  ;;  %1261 = vmatprep.subr.bf16.mxu0 %v1381_v16  ;;  %v1411_v44 = vld [vmem:[%s1863_s0 + $0x14] ss:$8 sps:$4 sm:$0xff]   ;;  %v1415_v46 = vld [vmem:[%s1863_s0 + $0x10] ss:$8 sps:$4 sm:$0xff]   ;;  %v1419_v50 = vld [vmem:[%s1862_s1 + $0x128] sm:$0xff]  }
  0x12   :  { %1289 = vmatprep.subr.bf16.mxu1 %v1382_v17  ;;  %v1413_v45 = vld [vmem:[%s1863_s0 + $0x34] ss:$8 sps:$4 sm:$0xff]   ;;  %v1416_v47 = vld [vmem:[%s1863_s0 + $0x30] ss:$8 sps:$4 sm:$0xff]   ;;  %v1420_v51 = vld [vmem:[%s1862_s1 + $0x1a8] sm:$0xff]  }
  0x13   :  { %v1423_v54 = vld [vmem:[%s1862_s1 + $0x120] sm:$0xff]   ;;  %v1425_v56 = vld [vmem:[%s1862_s1 + $0x158] sm:$0xff]   ;;  %v1429_v60 = vld [vmem:[%s1862_s1 + $0x150] sm:$0xff]  }
  0x14   :  { %1262 = vmatpush3.bf16.msra.mxu0 %v1383_v18  ;;  %v1424_v55 = vld [vmem:[%s1862_s1 + $0x1a0] sm:$0xff]   ;;  %v1426_v57 = vld [vmem:[%s1862_s1 + $0x1d8] sm:$0xff]   ;;  %v1430_v61 = vld [vmem:[%s1862_s1 + $0x1d0] sm:$0xff]  }
  0x15   :  { %1290 = vmatpush3.bf16.msra.mxu1 %v1384_v19  ;;  %1263 = vmatprep.subr.bf16.mxu0 %v1385_v20  ;;  %v1427_v58 = vld [vmem:[%s1862_s1 + $0x118] sm:$0xff]   ;;  %v1431_v62 = vld [vmem:[%s1862_s1 + $0x110] sm:$0xff]   ;;  %v1433_v0 = vld [vmem:[%s1862_s1 + $0x148] sm:$0xff]  }
  0x16   :  { %1291 = vmatprep.subr.bf16.mxu1 %v1386_v21  ;;  %v1428_v59 = vld [vmem:[%s1862_s1 + $0x198] sm:$0xff]   ;;  %v1432_v63 = vld [vmem:[%s1862_s1 + $0x190] sm:$0xff]   ;;  %v1434_v1 = vld [vmem:[%s1862_s1 + $0x1c8] sm:$0xff]  }
  0x17   :  { %v1435_v2 = vld [vmem:[%s1862_s1 + $0x108] sm:$0xff]   ;;  %v1437_v4 = vld [vmem:[%s1862_s1 + $0x140] sm:$0xff]   ;;  %v1447_v12 = vld [vmem:[%s1863_s0 + $0x54] ss:$8 sps:$4 sm:$0xff]  }
  0x18   :  { %1264 = vmatpush3.bf16.msra.mxu0 %v1387_v22  ;;  %v1436_v3 = vld [vmem:[%s1862_s1 + $0x188] sm:$0xff]   ;;  %v1438_v5 = vld [vmem:[%s1862_s1 + $0x1c0] sm:$0xff]   ;;  %v1449_v13 = vld [vmem:[%s1863_s0 + $0x74] ss:$8 sps:$4 sm:$0xff]  }
  0x19   :  { %1292 = vmatpush3.bf16.msra.mxu1 %v1388_v23  ;;  %1265 = vmatprep.subr.bf16.mxu0 %v1389_v24  ;;  %v1439_v6 = vld [vmem:[%s1862_s1 + $0x100] sm:$0xff]   ;;  %v1451_v14 = vld [vmem:[%s1863_s0 + $0x50] ss:$8 sps:$4 sm:$0xff]  }
  0x1a   :  { %1293 = vmatprep.subr.bf16.mxu1 %v1390_v25  ;;  %v1440_v7 = vld [vmem:[%s1862_s1 + $0x180] sm:$0xff]   ;;  %v1452_v15 = vld [vmem:[%s1863_s0 + $0x70] ss:$8 sps:$4 sm:$0xff]  }
  0x1b   :  { %v1441_v8 = vld [vmem:[%s1863_s0 + $0x40] ss:$8 sps:$4 sm:$0xff]   ;;  %v1443_v9 = vld [vmem:[%s1863_s0 + $0x44] ss:$8 sps:$4 sm:$0xff]  }
  0x1c   :  { %1266 = vmatpush3.bf16.msra.mxu0 %v1391_v26  ;;  %v1444_v10 = vld [vmem:[%s1863_s0 + $0x60] ss:$8 sps:$4 sm:$0xff]   ;;  %v1446_v11 = vld [vmem:[%s1863_s0 + $0x64] ss:$8 sps:$4 sm:$0xff]  }
  0x1d   :  { %1294 = vmatpush3.bf16.msra.mxu1 %v1392_v27  ;;  %1267 = vmatprep.subr.bf16.mxu0 %v1393_v28 }
  0x1e   :  { %1295 = vmatprep.subr.bf16.mxu1 %v1394_v29 }
  0x20   :  { %1268 = vmatpush3.bf16.msra.mxu0 %v1395_v30 }
  0x21   :  { %1296 = vmatpush3.bf16.msra.mxu1 %v1396_v31  ;;  %1309 = vmatprep.subr.bf16.mxu0 %v1403_v36 }
  0x22   :  { %1337 = vmatprep.subr.bf16.mxu1 %v1404_v37 }
  0x23   :  { %311 = vmatmul.mubr.bf16.vlgmr.msra.gmra.mxu0 %v1397_v32 }
  0x24   :  { %476 = vmatmul.mubr.bf16.vlgmr.msra.gmra.mxu1 %v1400_v34  ;;  %1310 = vmatpush3.bf16.msra.mxu0 %v1405_v38 }
  0x25   :  { %1338 = vmatpush3.bf16.msra.mxu1 %v1406_v39  ;;  %1311 = vmatprep.subr.bf16.mxu0 %v1407_v40 }
  0x26   :  { %1339 = vmatprep.subr.bf16.mxu1 %v1408_v41  ;;  %318 = vmatprep.mubr.bf16.mxu0 %v1411_v44 }
  0x27   :  { %483 = vmatprep.mubr.bf16.mxu1 %v1413_v45 }
  0x28   :  { %1312 = vmatpush3.bf16.msra.mxu0 %v1409_v42 }
  0x29   :  { %1340 = vmatpush3.bf16.msra.mxu1 %v1410_v43  ;;  %1313 = vmatprep.subr.bf16.mxu0 %v1417_v48 }
  0x2a   :  { %1341 = vmatprep.subr.bf16.mxu1 %v1418_v49 }
  0x2b   :  { %319 = vmatmul.mubr.bf16.gmra.mxu0 %v1415_v46 }
  0x2c   :  { %484 = vmatmul.mubr.bf16.gmra.mxu1 %v1416_v47  ;;  %1314 = vmatpush3.bf16.msra.mxu0 %v1419_v50 }
  0x2d   :  { %1342 = vmatpush3.bf16.msra.mxu1 %v1420_v51  ;;  %1315 = vmatprep.subr.bf16.mxu0 %v1421_v52 }
  0x2e   :  { %1343 = vmatprep.subr.bf16.mxu1 %v1422_v53  ;;  %640 = vmatprep.mubr.bf16.mxu0 %v1443_v9 }
  0x2f   :  { %805 = vmatprep.mubr.bf16.mxu1 %v1446_v11 }
  0x30   :  { %1316 = vmatpush3.bf16.msra.mxu0 %v1423_v54 }
  0x31   :  { %1344 = vmatpush3.bf16.msra.mxu1 %v1424_v55  ;;  %1317 = vmatprep.subr.bf16.mxu0 %v1425_v56 }
  0x32   :  { %1345 = vmatprep.subr.bf16.mxu1 %v1426_v57 }
  0x34   :  { %1318 = vmatpush3.bf16.msra.mxu0 %v1427_v58 }
  0x35   :  { %1346 = vmatpush3.bf16.msra.mxu1 %v1428_v59  ;;  %1319 = vmatprep.subr.bf16.mxu0 %v1429_v60 }
  0x36   :  { %1347 = vmatprep.subr.bf16.mxu1 %v1430_v61 }
  0x38   :  { %1320 = vmatpush3.bf16.msra.mxu0 %v1431_v62 }
  0x39   :  { %1348 = vmatpush3.bf16.msra.mxu1 %v1432_v63  ;;  %1321 = vmatprep.subr.bf16.mxu0 %v1433_v0 }
  0x3a   :  { %1349 = vmatprep.subr.bf16.mxu1 %v1434_v1 }
  0x3c   :  { %1322 = vmatpush3.bf16.msra.mxu0 %v1435_v2 }
  0x3d   :  { %1350 = vmatpush3.bf16.msra.mxu1 %v1436_v3  ;;  %1323 = vmatprep.subr.bf16.mxu0 %v1437_v4 }
  0x3e   :  { %1351 = vmatprep.subr.bf16.mxu1 %v1438_v5 }
  0x40   :  { %1324 = vmatpush3.bf16.msra.mxu0 %v1439_v6 }
  0x41   :  { %1352 = vmatpush3.bf16.msra.mxu1 %v1440_v7 }
  0x43   :  { %641 = vmatmul.mubr.bf16.vlgmr.msra.gmra.mxu0 %v1441_v8 }
  0x44   :  { %806 = vmatmul.mubr.bf16.vlgmr.msra.gmra.mxu1 %v1444_v10  ;;  %648 = vmatprep.mubr.bf16.mxu0 %v1447_v12 }
  0x45   :  { %813 = vmatprep.mubr.bf16.mxu1 %v1449_v13 }
  0x4b   :  { %649 = vmatmul.mubr.bf16.gmra.mxu0 %v1451_v14 }
  0x4c   :  { %814 = vmatmul.mubr.bf16.gmra.mxu1 %v1452_v15 }
  0xe3   :  { %v1269_v16 = vpop.f32.mrf.mxu0 }
  0xe4   :  { %v1297_v17 = vpop.f32.mrf.mxu1 }
  0xe5   :  { %v1270_v18 = vpop.f32.mrf.mxu0 }
  0xe6   :  { %v1298_v19 = vpop.f32.mrf.mxu1  ;;  %v1724_v34 = vadd.f32 %v1270_v18, %v1269_v16 }
  0xe7   :  { %v1272_v20 = vpop.f32.mrf.mxu0  ;;  %v1726_v35 = vadd.f32 %v1298_v19, %v1297_v17 }
  0xe8   :  { %v1300_v21 = vpop.f32.mrf.mxu1 }
  0xe9   :  { %v1273_v22 = vpop.f32.mrf.mxu0 }
  0xea   :  { %v1301_v23 = vpop.f32.mrf.mxu1  ;;  %v1720_v30 = vadd.f32 %v1273_v22, %v1272_v20 }
  0xeb   :  { %v1275_v24 = vpop.f32.mrf.mxu0  ;;  %v1722_v31 = vadd.f32 %v1301_v23, %v1300_v21 }
  0xec   :  { %v1303_v25 = vpop.f32.mrf.mxu1  ;;  %v822_v38 = vadd.f32 %v1720_v30, %v1724_v34 }
  0xed   :  { %v1276_v26 = vpop.f32.mrf.mxu0  ;;  %v831_v39 = vadd.f32 %v1722_v31, %v1726_v35 }
  0xee   :  { %v1304_v27 = vpop.f32.mrf.mxu1  ;;  %v1728_v36 = vadd.f32 %v1276_v26, %v1275_v24 }
  0xef   :  { %v1278_v28 = vpop.f32.mrf.mxu0  ;;  %v1730_v37 = vadd.f32 %v1304_v27, %v1303_v25 }
  0xf0   :  { %v1306_v29 = vpop.f32.mrf.mxu1  ;;  %v823_v42 = vadd.f32 %v1728_v36, %v822_v38 }
  0xf1   :  { %v1279_v32 = vpop.f32.mrf.mxu0  ;;  %v832_v43 = vadd.f32 %v1730_v37, %v831_v39 }
  0xf2   :  { %v1307_v33 = vpop.f32.mrf.mxu1  ;;  %v1736_v40 = vadd.f32 %v1279_v32, %v1278_v28 }
  0xf3   :  { %v1738_v41 = vadd.f32 %v1307_v33, %v1306_v29 }
  0xf4   :  { %v824_v44 = vadd.f32 %v1736_v40, %v823_v42 }
  0xf5   :  { %v833_v45 = vadd.f32 %v1738_v41, %v832_v43 }
  0xf6   :  { %v825_v49 = vrot.slane %v824_v44, 4 }
  0xf7   :  { %v834_v50 = vrot.slane %v833_v45, 4 }
  0xf8   :  { %v826_v55 = vadd.f32 %v825_v49, %v824_v44 }
  0xf9   :  { %v835_v56 = vadd.f32 %v834_v50, %v833_v45 }
  0xfa   :  { %v827_v63 = vrot.slane %v826_v55, 2 }
  0xfb   :  { %v836_v0 = vrot.slane %v835_v56, 2 }
  0xfc   :  { %v828_v11 = vadd.f32 %v827_v63, %v826_v55 }
  0xfd   :  { %v837_v12 = vadd.f32 %v836_v0, %v835_v56 }
  0xfe   :  { %v829_v20 = vrot.slane %v828_v11, 1 }
  0xff   :  { %v838_v21 = vrot.slane %v837_v12, 1 }
 0x100   :  { %v830_v26 = vadd.f32 %v829_v20, %v828_v11 }
 0x101   :  { %v839_v27 = vadd.f32 %v838_v21, %v837_v12 }
 0x102   :  { %v859_v38 = vmul.f32 0.03125, %v830_v26 }
 0x103   :  { %v1325_v46 = vpop.f32.mrf.mxu0  ;;  %v860_v39 = vmul.f32 0.03125, %v839_v27 }
 0x104   :  { %v1353_v47 = vpop.f32.mrf.mxu1 }
 0x105   :  { %v1326_v48 = vpop.f32.mrf.mxu0 }
 0x106   :  { %v1354_v51 = vpop.f32.mrf.mxu1  ;;  %v1327_v1 = vadd.f32 %v1326_v48, %v1325_v46  ;;  %v863_v46 = vadd.f32 %v860_v39, %v859_v38 }
 0x107   :  { %v1328_v52 = vpop.f32.mrf.mxu0  ;;  %v1355_v4 = vadd.f32 %v1354_v51, %v1353_v47 }
 0x108   :  { %v1356_v53 = vpop.f32.mrf.mxu1 }
 0x109   :  { %v1329_v54 = vpop.f32.mrf.mxu0 }
 0x10a   :  { %v1357_v57 = vpop.f32.mrf.mxu1  ;;  %v1330_v59 = vadd.f32 %v1329_v54, %v1328_v52 }
 0x10b   :  { %v1331_v58 = vpop.f32.mrf.mxu0  ;;  %v1358_v61 = vadd.f32 %v1357_v57, %v1356_v53 }
 0x10c   :  { %v1359_v60 = vpop.f32.mrf.mxu1  ;;  %v840_v7 = vadd.f32 %v1330_v59, %v1327_v1 }
 0x10d   :  { %v1332_v62 = vpop.f32.mrf.mxu0  ;;  %v849_v9 = vadd.f32 %v1358_v61, %v1355_v4 }
 0x10e   :  { %v1333_v2 = vadd.f32 %v1332_v62, %v1331_v58  ;;  %v1360_v3 = vpop.f32.mrf.mxu1 }
 0x10f   :  { %v1361_v5 = vadd.f32 %v1360_v3, %v1359_v60  ;;  %v1334_v6 = vpop.f32.mrf.mxu0 }
 0x110   :  { %v1362_v8 = vpop.f32.mrf.mxu1  ;;  %v841_v13 = vadd.f32 %v1333_v2, %v840_v7 }
 0x111   :  { %v1335_v10 = vpop.f32.mrf.mxu0  ;;  %v850_v16 = vadd.f32 %v1361_v5, %v849_v9 }
 0x112   :  { %v1336_v14 = vadd.f32 %v1335_v10, %v1334_v6  ;;  %v1363_v15 = vpop.f32.mrf.mxu1 }
 0x113   :  { %v1364_v17 = vadd.f32 %v1363_v15, %v1362_v8 }
 0x114   :  { %v842_v18 = vadd.f32 %v1336_v14, %v841_v13 }
 0x115   :  { %v851_v19 = vadd.f32 %v1364_v17, %v850_v16 }
 0x116   :  { %v843_v22 = vrot.slane %v842_v18, 4 }
 0x117   :  { %v852_v23 = vrot.slane %v851_v19, 4 }
 0x118   :  { %v844_v24 = vadd.f32 %v843_v22, %v842_v18 }
 0x119   :  { %v853_v25 = vadd.f32 %v852_v23, %v851_v19 }
 0x11a   :  { %v845_v28 = vrot.slane %v844_v24, 2 }
 0x11b   :  { %v854_v29 = vrot.slane %v853_v25, 2 }
 0x11c   :  { %v846_v32 = vadd.f32 %v845_v28, %v844_v24 }
 0x11d   :  { %v855_v33 = vadd.f32 %v854_v29, %v853_v25 }
 0x11e   :  { %v847_v42 = vrot.slane %v846_v32, 1 }
 0x11f   :  { %v856_v43 = vrot.slane %v855_v33, 1 }
 0x120   :  { %v848_v44 = vadd.f32 %v847_v42, %v846_v32 }
 0x121   :  { %v857_v45 = vadd.f32 %v856_v43, %v855_v33 }
 0x122   :  { %v861_v47 = vmul.f32 0.03125, %v848_v44 }
 0x123   :  { %v862_v49 = vmul.f32 0.03125, %v857_v45 }
 0x124   :  { %v864_v48 = vadd.f32 %v863_v46, %v861_v47 }
 0x126   :  { %v865_v50 = vadd.f32 %v864_v48, %v862_v49 }
 0x128   :  { %v867_v51 = vmul.f32 0.25, %v865_v50 }
 0x12a   :  { %v1745_v52 = vsub.f32 %v1724_v34, %v867_v51  ;;  %v1748_v53 = vsub.f32 %v1720_v30, %v867_v51  ;;  %v1751_v54 = vsub.f32 %v1726_v35, %v867_v51  ;;  %v1754_v55 = vsub.f32 %v1722_v31, %v867_v51 }
 0x12b   :  { %v1756_v56 = vsub.f32 %v1327_v1, %v867_v51  ;;  %v1758_v57 = vsub.f32 %v1330_v59, %v867_v51  ;;  %v1761_v58 = vsub.f32 %v1728_v36, %v867_v51  ;;  %v1764_v60 = vsub.f32 %v1730_v37, %v867_v51 }
 0x12c   :  { %v1766_v34 = vsub.f32 %v1355_v4, %v867_v51  ;;  %v1768_v30 = vsub.f32 %v1358_v61, %v867_v51  ;;  %v1771_v35 = vsub.f32 %v1736_v40, %v867_v51  ;;  %v1773_v62 = vsub.f32 %v1333_v2, %v867_v51 }
 0x12d   :  { %v884_v31 = vmul.f32 %v1745_v52, %v1745_v52  ;;  %v885_v59 = vmul.f32 %v1748_v53, %v1748_v53  ;;  %v1780_v36 = vsub.f32 %v1738_v41, %v867_v51  ;;  %v1782_v37 = vsub.f32 %v1361_v5, %v867_v51 }
 0x12e   :  { %v888_v61 = vmul.f32 %v1751_v54, %v1751_v54  ;;  %v889_v40 = vmul.f32 %v1754_v55, %v1754_v55  ;;  %v1788_v63 = vsub.f32 %v1336_v14, %v867_v51  ;;  %v1790_v0 = vsub.f32 %v1364_v17, %v867_v51 }
 0x12f   :  { %v892_v1 = vmul.f32 %v1756_v56, %v1756_v56  ;;  %v893_v2 = vmul.f32 %v1758_v57, %v1758_v57  ;;  %v886_v41 = vmul.f32 %v1761_v58, %v1761_v58  ;;  %v890_v3 = vmul.f32 %v1764_v60, %v1764_v60 }
 0x130   :  { %v896_v4 = vmul.f32 %v1766_v34, %v1766_v34  ;;  %v897_v5 = vmul.f32 %v1768_v30, %v1768_v30  ;;  %v894_v6 = vmul.f32 %v1773_v62, %v1773_v62  ;;  %v900_v7 = vadd.f32 %v885_v59, %v884_v31 }
 0x131   :  { %v909_v8 = vadd.f32 %v889_v40, %v888_v61  ;;  %v918_v9 = vadd.f32 %v893_v2, %v892_v1  ;;  %v887_v10 = vmul.f32 %v1771_v35, %v1771_v35  ;;  %v891_v11 = vmul.f32 %v1780_v36, %v1780_v36 }
 0x132   :  { %v898_v12 = vmul.f32 %v1782_v37, %v1782_v37  ;;  %v927_v13 = vadd.f32 %v897_v5, %v896_v4  ;;  %v895_v14 = vmul.f32 %v1788_v63, %v1788_v63  ;;  %v901_v15 = vadd.f32 %v900_v7, %v886_v41 }
 0x133   :  { %v910_v16 = vadd.f32 %v909_v8, %v890_v3  ;;  %v919_v17 = vadd.f32 %v918_v9, %v894_v6  ;;  %v899_v18 = vmul.f32 %v1790_v0, %v1790_v0 }
 0x134   :  { %v928_v19 = vadd.f32 %v927_v13, %v898_v12  ;;  %v902_v20 = vadd.f32 %v901_v15, %v887_v10 }
 0x135   :  { %v911_v21 = vadd.f32 %v910_v16, %v891_v11  ;;  %v920_v22 = vadd.f32 %v919_v17, %v895_v14 }
 0x136   :  { %v929_v23 = vadd.f32 %v928_v19, %v899_v18  ;;  %v903_v24 = vrot.slane %v902_v20, 4  ;;  %v1172_v18 = vld [vmem:[%s1864_s2] ss:$0 sm:$0xff] }
 0x137   :  { %v912_v25 = vrot.slane %v911_v21, 4  ;;  %v921_v26 = vrot.slane %v920_v22, 4 }
 0x138   :  { %v930_v27 = vrot.slane %v929_v23, 4  ;;  %v904_v28 = vadd.f32 %v903_v24, %v902_v20 }
 0x139   :  { %v913_v29 = vadd.f32 %v912_v25, %v911_v21  ;;  %v922_v32 = vadd.f32 %v921_v26, %v920_v22 }
 0x13a   :  { %v931_v33 = vadd.f32 %v930_v27, %v929_v23  ;;  %v905_v38 = vrot.slane %v904_v28, 2 }
 0x13b   :  { %v914_v39 = vrot.slane %v913_v29, 2  ;;  %v923_v42 = vrot.slane %v922_v32, 2 }
 0x13c   :  { %v932_v43 = vrot.slane %v931_v33, 2  ;;  %v906_v44 = vadd.f32 %v905_v38, %v904_v28 }
 0x13d   :  { %v915_v45 = vadd.f32 %v914_v39, %v913_v29  ;;  %v924_v46 = vadd.f32 %v923_v42, %v922_v32 }
 0x13e   :  { %v933_v47 = vadd.f32 %v932_v43, %v931_v33  ;;  %v907_v48 = vrot.slane %v906_v44, 1 }
 0x13f   :  { %v916_v49 = vrot.slane %v915_v45, 1  ;;  %v925_v50 = vrot.slane %v924_v46, 1 }
 0x140   :  { %v934_v51 = vrot.slane %v933_v47, 1  ;;  %v908_v31 = vadd.f32 %v907_v48, %v906_v44 }
 0x141   :  { %v917_v59 = vadd.f32 %v916_v49, %v915_v45  ;;  %v926_v61 = vadd.f32 %v925_v50, %v924_v46 }
 0x142   :  { %v935_v40 = vadd.f32 %v934_v51, %v933_v47  ;;  %v936_v1 = vmul.f32 0.03125, %v908_v31 }
 0x143   :  { %v937_v2 = vmul.f32 0.03125, %v917_v59  ;;  %v938_v41 = vmul.f32 0.03125, %v926_v61 }
 0x144   :  { %v939_v4 = vmul.f32 0.03125, %v935_v40 }
 0x145   :  { %v940_v3 = vadd.f32 %v937_v2, %v936_v1 }
 0x147   :  { %v941_v5 = vadd.f32 %v940_v3, %v938_v41 }
 0x149   :  { %v942_v6 = vadd.f32 %v941_v5, %v939_v4 }
 0x14b   :  { %v943_v7 = vmul.f32 0.25, %v942_v6 }
 0x14d   :  { %v944_v8 = vadd.f32 1e-05, %v943_v7 }
 0x14f   :  { %1453 = vrsqrt.f32 %v944_v8 }
 0x15c   :  { %v1454_v9 = vpop.eup %1453 }
 0x15d   :  { %v946_v10 = vmul.f32 %v1454_v9, %v1745_v52  ;;  %v947_v11 = vmul.f32 %v1454_v9, %v1748_v53  ;;  %v948_v12 = vmul.f32 %v1454_v9, %v1761_v58  ;;  %v949_v13 = vmul.f32 %v1454_v9, %v1771_v35 }
 0x15e   :  { %v950_v14 = vmul.f32 %v1454_v9, %v1751_v54  ;;  %v951_v15 = vmul.f32 %v1454_v9, %v1754_v55  ;;  %v952_v16 = vmul.f32 %v1454_v9, %v1764_v60  ;;  %v953_v17 = vmul.f32 %v1454_v9, %v1780_v36 }
 0x15f   :  { %v954_v52 = vmul.f32 %v1454_v9, %v1756_v56  ;;  %v955_v53 = vmul.f32 %v1454_v9, %v1758_v57  ;;  %v956_v58 = vmul.f32 %v1454_v9, %v1773_v62  ;;  %v957_v35 = vmul.f32 %v1454_v9, %v1788_v63  ;;  %v1173_v62 = vld [vmem:[%s1865_s3] ss:$0 sm:$0xff] }
 0x160   :  { %v958_v54 = vmul.f32 %v1454_v9, %v1766_v34  ;;  %v959_v55 = vmul.f32 %v1454_v9, %v1768_v30  ;;  %v960_v60 = vmul.f32 %v1454_v9, %v1782_v37  ;;  %v961_v36 = vmul.f32 %v1454_v9, %v1790_v0 }
 0x161   :  { %v969_v19 = vmul.f32 %v1172_v18, %v946_v10  ;;  %v970_v20 = vmul.f32 %v1172_v18, %v947_v11  ;;  %v971_v21 = vmul.f32 %v1172_v18, %v948_v12  ;;  %v972_v22 = vmul.f32 %v1172_v18, %v949_v13 }
 0x162   :  { %v973_v23 = vmul.f32 %v1172_v18, %v950_v14  ;;  %v974_v56 = vmul.f32 %v1172_v18, %v951_v15  ;;  %v975_v24 = vmul.f32 %v1172_v18, %v952_v16  ;;  %v976_v57 = vmul.f32 %v1172_v18, %v953_v17 }
 0x163   :  { %v977_v63 = vmul.f32 %v1172_v18, %v954_v52  ;;  %v978_v34 = vmul.f32 %v1172_v18, %v955_v53  ;;  %v979_v25 = vmul.f32 %v1172_v18, %v956_v58  ;;  %v980_v30 = vmul.f32 %v1172_v18, %v957_v35 }
 0x164   :  { %v981_v26 = vmul.f32 %v1172_v18, %v958_v54  ;;  %v982_v37 = vmul.f32 %v1172_v18, %v959_v55  ;;  %v983_v27 = vmul.f32 %v1172_v18, %v960_v60  ;;  %v984_v0 = vmul.f32 %v1172_v18, %v961_v36 }
 0x165   :  { %v992_v28 = vadd.f32 %v1173_v62, %v969_v19  ;;  %v993_v29 = vadd.f32 %v1173_v62, %v970_v20  ;;  %v994_v32 = vadd.f32 %v1173_v62, %v971_v21  ;;  %v995_v33 = vadd.f32 %v1173_v62, %v972_v22 }
 0x166   :  { %v996_v38 = vadd.f32 %v1173_v62, %v973_v23  ;;  %v997_v39 = vadd.f32 %v1173_v62, %v974_v56  ;;  %v998_v42 = vadd.f32 %v1173_v62, %v975_v24  ;;  %v999_v43 = vadd.f32 %v1173_v62, %v976_v57 }
 0x167   :  { %v1000_v44 = vadd.f32 %v1173_v62, %v977_v63  ;;  %v1001_v45 = vadd.f32 %v1173_v62, %v978_v34  ;;  %v1002_v46 = vadd.f32 %v1173_v62, %v979_v25  ;;  %v1003_v47 = vadd.f32 %v1173_v62, %v980_v30 }
 0x168   :  { %v1004_v48 = vadd.f32 %v1173_v62, %v981_v26  ;;  %v1005_v49 = vadd.f32 %v1173_v62, %v982_v37  ;;  %v1006_v50 = vadd.f32 %v1173_v62, %v983_v27  ;;  %v1007_v51 = vadd.f32 %v1173_v62, %v984_v0 }
 0x169   :  { %v1209_v31 = vpack.c.bf16 %v993_v29, %v992_v28  ;;  %v1214_v59 = vpack.c.bf16 %v995_v33, %v994_v32  ;;  %v1219_v61 = vpack.c.bf16 %v997_v39, %v996_v38  ;;  %v1224_v40 = vpack.c.bf16 %v999_v43, %v998_v42 }
 0x16a   :  { %v1229_v1 = vpack.c.bf16 %v1001_v45, %v1000_v44  ;;  %v1234_v2 = vpack.c.bf16 %v1003_v47, %v1002_v46  ;;  %v1239_v41 = vpack.c.bf16 %v1005_v49, %v1004_v48  ;;  %v1244_v3 = vpack.c.bf16 %v1007_v51, %v1006_v50 }
 0x16b   :  { %1210 = vst [vmem:[%s1866_s4] sm:$0xff] %v1209_v31   ;;  %1246 = vst [vmem:[%s1866_s4 + $0x8] sm:$0xff] %v1214_v59  }
 0x16c   :  { %1247 = vst [vmem:[%s1866_s4 + $0x10] sm:$0xff] %v1219_v61   ;;  %1248 = vst [vmem:[%s1866_s4 + $0x18] sm:$0xff] %v1224_v40  }
 0x16d   :  { %1249 = vst [vmem:[%s1866_s4 + $0x20] sm:$0xff] %v1229_v1   ;;  %1250 = vst [vmem:[%s1866_s4 + $0x28] sm:$0xff] %v1234_v2  }
 0x16e   :  { %1251 = vst [vmem:[%s1866_s4 + $0x30] sm:$0xff] %v1239_v41   ;;  %1252 = vst [vmem:[%s1866_s4 + $0x38] sm:$0xff] %v1244_v3  }

// kernel: _lambda_.18
= control target key start
LH: loop header
LB: loop body
LE: loop exit
PB: predicated region body
PF: predicated region fallthrough
CT: control target
= control target key end

     0   :  { %s4142_s1 = inlined_call_operand.vmem [shape: bf16[4,128,128], index: 1, kind: input, shape index: {}]   ;;  %s4143_s0 = inlined_call_operand.vmem [shape: bf16[4,128,128], index: 0, kind: input, shape index: {}]   ;;  %s4144_s2 = inlined_call_operand.vmem [shape: f32[1,1,128], index: 2, kind: input, shape index: {}]   ;;  %s4145_s3 = inlined_call_operand.vmem [shape: f32[1,1,128], index: 3, kind: input, shape index: {}]   ;;  %s4146_s4 = inlined_call_operand.vmem [shape: bf16[4,128,128], index: 4, kind: output, shape index: {}]  }
   0x1   :  { %v2341_v0 = vld [vmem:[%s4142_s1 + $0x38] sm:$0xff]   ;;  %v2343_v2 = vld [vmem:[%s4142_s1 + $0x30] sm:$0xff]   ;;  %v2345_v4 = vld [vmem:[%s4142_s1 + $0x28] sm:$0xff]  }
   0x2   :  { %v2342_v1 = vld [vmem:[%s4142_s1 + $0x78] sm:$0xff]   ;;  %2213 = vmatprep.subr.bf16.mxu0 %v2341_v0  ;;  %v2344_v3 = vld [vmem:[%s4142_s1 + $0x70] sm:$0xff]   ;;  %v2346_v5 = vld [vmem:[%s4142_s1 + $0x68] sm:$0xff]  }
   0x3   :  { %2245 = vmatprep.subr.bf16.mxu1 %v2342_v1  ;;  %2214 = vmatpush3.bf16.msra.mxu0 %v2341_v0  ;;  %v2347_v6 = vld [vmem:[%s4142_s1 + $0x20] sm:$0xff]   ;;  %v2349_v8 = vld [vmem:[%s4142_s1 + $0x18] sm:$0xff]   ;;  %v2351_v10 = vld [vmem:[%s4142_s1 + $0x10] sm:$0xff]  }
   0x4   :  { %2246 = vmatpush3.bf16.msra.mxu1 %v2342_v1  ;;  %2215 = vmatprep.subr.bf16.mxu0 %v2343_v2  ;;  %v2348_v7 = vld [vmem:[%s4142_s1 + $0x60] sm:$0xff]   ;;  %v2350_v9 = vld [vmem:[%s4142_s1 + $0x58] sm:$0xff]   ;;  %v2352_v11 = vld [vmem:[%s4142_s1 + $0x50] sm:$0xff]  }
   0x5   :  { %2247 = vmatprep.subr.bf16.mxu1 %v2344_v3  ;;  %v2357_v12 = vld [vmem:[%s4143_s0] sm:$0xff]   ;;  %v2353_v14 = vld [vmem:[%s4142_s1 + $0x8] sm:$0xff]   ;;  %v2361_v19 = vld [vmem:[%s4142_s1 + $0xb8] sm:$0xff]  }
   0x6   :  { %v2358_v13 = vld [vmem:[%s4143_s0 + $0x40] sm:$0xff]   ;;  %2229 = vmatprep.mubr.bf16.mxu0 %v2357_v12  ;;  %v2354_v15 = vld [vmem:[%s4142_s1 + $0x48] sm:$0xff]   ;;  %v2362_v20 = vld [vmem:[%s4142_s1 + $0xf8] sm:$0xff]  }
   0x7   :  { %2216 = vmatpush3.bf16.msra.mxu0 %v2343_v2  ;;  %2261 = vmatprep.mubr.bf16.mxu1 %v2358_v13  ;;  %v2355_v16 = vld [vmem:[%s4142_s1] sm:$0xff]   ;;  %v2359_v18 = vld [vmem:[%s4143_s0 + $0x8] sm:$0xff]   ;;  %v2363_v22 = vld [vmem:[%s4142_s1 + $0xb0] sm:$0xff]  }
   0x8   :  { %2248 = vmatpush3.bf16.msra.mxu1 %v2344_v3  ;;  %2217 = vmatprep.subr.bf16.mxu0 %v2345_v4  ;;  %v2356_v17 = vld [vmem:[%s4142_s1 + $0x40] sm:$0xff]   ;;  %v2360_v21 = vld [vmem:[%s4143_s0 + $0x48] sm:$0xff]   ;;  %v2364_v23 = vld [vmem:[%s4142_s1 + $0xf0] sm:$0xff]  }
   0x9   :  { %2249 = vmatprep.subr.bf16.mxu1 %v2346_v5  ;;  %v2365_v24 = vld [vmem:[%s4143_s0 + $0x10] sm:$0xff]   ;;  %v2367_v26 = vld [vmem:[%s4143_s0 + $0x18] sm:$0xff]   ;;  %v2369_v27 = vld [vmem:[%s4142_s1 + $0xa8] sm:$0xff]  }
   0xa   :  { %v2366_v25 = vld [vmem:[%s4143_s0 + $0x50] sm:$0xff]   ;;  %v2370_v28 = vld [vmem:[%s4142_s1 + $0xe8] sm:$0xff]   ;;  %v2368_v29 = vld [vmem:[%s4143_s0 + $0x58] sm:$0xff]  }
   0xb   :  { %2218 = vmatpush3.bf16.msra.mxu0 %v2345_v4  ;;  %v2371_v30 = vld [vmem:[%s4142_s1 + $0xa0] sm:$0xff]   ;;  %v2375_v34 = vld [vmem:[%s4143_s0 + $0x28] sm:$0xff]   ;;  %v2377_v35 = vld [vmem:[%s4142_s1 + $0x98] sm:$0xff]  }
   0xc   :  { %2250 = vmatpush3.bf16.msra.mxu1 %v2346_v5  ;;  %2219 = vmatprep.subr.bf16.mxu0 %v2347_v6  ;;  %v2372_v31 = vld [vmem:[%s4142_s1 + $0xe0] sm:$0xff]   ;;  %v2378_v36 = vld [vmem:[%s4142_s1 + $0xd8] sm:$0xff]   ;;  %v2376_v37 = vld [vmem:[%s4143_s0 + $0x68] sm:$0xff]  }
   0xd   :  { %2251 = vmatprep.subr.bf16.mxu1 %v2348_v7  ;;  %v2373_v32 = vld [vmem:[%s4143_s0 + $0x20] sm:$0xff]   ;;  %v2379_v38 = vld [vmem:[%s4142_s1 + $0x90] sm:$0xff]   ;;  %v2383_v42 = vld [vmem:[%s4143_s0 + $0x38] sm:$0xff]  }
   0xe   :  { %v2374_v33 = vld [vmem:[%s4143_s0 + $0x60] sm:$0xff]   ;;  %v2380_v39 = vld [vmem:[%s4142_s1 + $0xd0] sm:$0xff]   ;;  %v2385_v43 = vld [vmem:[%s4142_s1 + $0x88] sm:$0xff]  }
   0xf   :  { %2220 = vmatpush3.bf16.msra.mxu0 %v2347_v6  ;;  %v2381_v40 = vld [vmem:[%s4143_s0 + $0x30] sm:$0xff]   ;;  %v2386_v44 = vld [vmem:[%s4142_s1 + $0xc8] sm:$0xff]   ;;  %v2384_v45 = vld [vmem:[%s4143_s0 + $0x78] sm:$0xff]  }
  0x10   :  { %2252 = vmatpush3.bf16.msra.mxu1 %v2348_v7  ;;  %2221 = vmatprep.subr.bf16.mxu0 %v2349_v8  ;;  %v2382_v41 = vld [vmem:[%s4143_s0 + $0x70] sm:$0xff]   ;;  %v2387_v46 = vld [vmem:[%s4142_s1 + $0x80] sm:$0xff]   ;;  %v2391_v50 = vld [vmem:[%s4143_s0 + $0x88] sm:$0xff]  }
  0x11   :  { %2253 = vmatprep.subr.bf16.mxu1 %v2350_v9  ;;  %v2388_v47 = vld [vmem:[%s4142_s1 + $0xc0] sm:$0xff]   ;;  %v2392_v51 = vld [vmem:[%s4143_s0 + $0xc8] sm:$0xff]   ;;  %v2393_v52 = vld [vmem:[%s4143_s0 + $0x90] sm:$0xff]  }
  0x12   :  { %v2389_v48 = vld [vmem:[%s4143_s0 + $0x80] sm:$0xff]   ;;  %v2394_v53 = vld [vmem:[%s4143_s0 + $0xd0] sm:$0xff]   ;;  %v2395_v54 = vld [vmem:[%s4143_s0 + $0x98] sm:$0xff]  }
  0x13   :  { %2222 = vmatpush3.bf16.msra.mxu0 %v2349_v8  ;;  %v2390_v49 = vld [vmem:[%s4143_s0 + $0xc0] sm:$0xff]   ;;  %v2396_v55 = vld [vmem:[%s4143_s0 + $0xd8] sm:$0xff]   ;;  %v2399_v58 = vld [vmem:[%s4143_s0 + $0xa8] sm:$0xff]  }
  0x14   :  { %2254 = vmatpush3.bf16.msra.mxu1 %v2350_v9  ;;  %2223 = vmatprep.subr.bf16.mxu0 %v2351_v10  ;;  %v2397_v56 = vld [vmem:[%s4143_s0 + $0xa0] sm:$0xff]   ;;  %v2400_v59 = vld [vmem:[%s4143_s0 + $0xe8] sm:$0xff]   ;;  %v2401_v60 = vld [vmem:[%s4143_s0 + $0xb0] sm:$0xff]  }
  0x15   :  { %2255 = vmatprep.subr.bf16.mxu1 %v2352_v11  ;;  %v2398_v57 = vld [vmem:[%s4143_s0 + $0xe0] sm:$0xff]   ;;  %v2402_v61 = vld [vmem:[%s4143_s0 + $0xf0] sm:$0xff]   ;;  %v2403_v62 = vld [vmem:[%s4143_s0 + $0xb8] sm:$0xff]  }
  0x16   :  { %v2404_v63 = vld [vmem:[%s4143_s0 + $0xf8] sm:$0xff]  }
  0x17   :  { %2224 = vmatpush3.bf16.msra.mxu0 %v2351_v10 }
  0x18   :  { %2256 = vmatpush3.bf16.msra.mxu1 %v2352_v11  ;;  %2225 = vmatprep.subr.bf16.mxu0 %v2353_v14 }
  0x19   :  { %2257 = vmatprep.subr.bf16.mxu1 %v2354_v15 }
  0x1b   :  { %2226 = vmatpush3.bf16.msra.mxu0 %v2353_v14 }
  0x1c   :  { %2258 = vmatpush3.bf16.msra.mxu1 %v2354_v15  ;;  %2227 = vmatprep.subr.bf16.mxu0 %v2355_v16 }
  0x1d   :  { %2259 = vmatprep.subr.bf16.mxu1 %v2356_v17 }
  0x1f   :  { %2228 = vmatpush3.bf16.msra.mxu0 %v2355_v16 }
  0x20   :  { %2260 = vmatpush3.bf16.msra.mxu1 %v2356_v17  ;;  %2277 = vmatprep.subr.bf16.mxu0 %v2361_v19 }
  0x21   :  { %2309 = vmatprep.subr.bf16.mxu1 %v2362_v20 }
  0x22   :  { %2230 = vmatmul.mubr.bf16.vlgmr.msra.gmra.mxu0 %v2359_v18 }
  0x23   :  { %2262 = vmatmul.mubr.bf16.vlgmr.msra.gmra.mxu1 %v2360_v21  ;;  %2278 = vmatpush3.bf16.msra.mxu0 %v2361_v19 }
  0x24   :  { %2310 = vmatpush3.bf16.msra.mxu1 %v2362_v20  ;;  %2279 = vmatprep.subr.bf16.mxu0 %v2363_v22 }
  0x25   :  { %2311 = vmatprep.subr.bf16.mxu1 %v2364_v23  ;;  %2233 = vmatprep.mubr.bf16.mxu0 %v2365_v24 }
  0x26   :  { %2265 = vmatprep.mubr.bf16.mxu1 %v2366_v25 }
  0x27   :  { %2280 = vmatpush3.bf16.msra.mxu0 %v2363_v22 }
  0x28   :  { %2312 = vmatpush3.bf16.msra.mxu1 %v2364_v23  ;;  %2281 = vmatprep.subr.bf16.mxu0 %v2369_v27 }
  0x29   :  { %2313 = vmatprep.subr.bf16.mxu1 %v2370_v28 }
  0x2a   :  { %2234 = vmatmul.mubr.bf16.gmra.mxu0 %v2367_v26 }
  0x2b   :  { %2266 = vmatmul.mubr.bf16.gmra.mxu1 %v2368_v29  ;;  %2282 = vmatpush3.bf16.msra.mxu0 %v2369_v27 }
  0x2c   :  { %2314 = vmatpush3.bf16.msra.mxu1 %v2370_v28  ;;  %2283 = vmatprep.subr.bf16.mxu0 %v2371_v30 }
  0x2d   :  { %2315 = vmatprep.subr.bf16.mxu1 %v2372_v31  ;;  %2237 = vmatprep.mubr.bf16.mxu0 %v2373_v32 }
  0x2e   :  { %2269 = vmatprep.mubr.bf16.mxu1 %v2374_v33 }
  0x2f   :  { %2284 = vmatpush3.bf16.msra.mxu0 %v2371_v30 }
  0x30   :  { %2316 = vmatpush3.bf16.msra.mxu1 %v2372_v31  ;;  %2285 = vmatprep.subr.bf16.mxu0 %v2377_v35 }
  0x31   :  { %2317 = vmatprep.subr.bf16.mxu1 %v2378_v36 }
  0x32   :  { %2238 = vmatmul.mubr.bf16.gmra.mxu0 %v2375_v34 }
  0x33   :  { %2270 = vmatmul.mubr.bf16.gmra.mxu1 %v2376_v37  ;;  %2286 = vmatpush3.bf16.msra.mxu0 %v2377_v35 }
  0x34   :  { %2318 = vmatpush3.bf16.msra.mxu1 %v2378_v36  ;;  %2287 = vmatprep.subr.bf16.mxu0 %v2379_v38 }
  0x35   :  { %2319 = vmatprep.subr.bf16.mxu1 %v2380_v39  ;;  %2241 = vmatprep.mubr.bf16.mxu0 %v2381_v40 }
  0x36   :  { %2273 = vmatprep.mubr.bf16.mxu1 %v2382_v41 }
  0x37   :  { %2288 = vmatpush3.bf16.msra.mxu0 %v2379_v38 }
  0x38   :  { %2320 = vmatpush3.bf16.msra.mxu1 %v2380_v39  ;;  %2289 = vmatprep.subr.bf16.mxu0 %v2385_v43 }
  0x39   :  { %2321 = vmatprep.subr.bf16.mxu1 %v2386_v44 }
  0x3a   :  { %2242 = vmatmul.mubr.bf16.gmra.mxu0 %v2383_v42 }
  0x3b   :  { %2274 = vmatmul.mubr.bf16.gmra.mxu1 %v2384_v45  ;;  %2290 = vmatpush3.bf16.msra.mxu0 %v2385_v43 }
  0x3c   :  { %2322 = vmatpush3.bf16.msra.mxu1 %v2386_v44  ;;  %2291 = vmatprep.subr.bf16.mxu0 %v2387_v46 }
  0x3d   :  { %2323 = vmatprep.subr.bf16.mxu1 %v2388_v47  ;;  %2293 = vmatprep.mubr.bf16.mxu0 %v2389_v48 }
  0x3e   :  { %2325 = vmatprep.mubr.bf16.mxu1 %v2390_v49 }
  0x3f   :  { %2292 = vmatpush3.bf16.msra.mxu0 %v2387_v46 }
  0x40   :  { %2324 = vmatpush3.bf16.msra.mxu1 %v2388_v47 }
  0x42   :  { %2294 = vmatmul.mubr.bf16.vlgmr.msra.gmra.mxu0 %v2391_v50 }
  0x43   :  { %2326 = vmatmul.mubr.bf16.vlgmr.msra.gmra.mxu1 %v2392_v51  ;;  %2297 = vmatprep.mubr.bf16.mxu0 %v2393_v52 }
  0x44   :  { %2329 = vmatprep.mubr.bf16.mxu1 %v2394_v53 }
  0x4a   :  { %2298 = vmatmul.mubr.bf16.gmra.mxu0 %v2395_v54 }
  0x4b   :  { %2330 = vmatmul.mubr.bf16.gmra.mxu1 %v2396_v55  ;;  %2301 = vmatprep.mubr.bf16.mxu0 %v2397_v56 }
  0x4c   :  { %2333 = vmatprep.mubr.bf16.mxu1 %v2398_v57 }
  0x52   :  { %2302 = vmatmul.mubr.bf16.gmra.mxu0 %v2399_v58 }
  0x53   :  { %2334 = vmatmul.mubr.bf16.gmra.mxu1 %v2400_v59  ;;  %2305 = vmatprep.mubr.bf16.mxu0 %v2401_v60 }
  0x54   :  { %2337 = vmatprep.mubr.bf16.mxu1 %v2402_v61 }
  0x5a   :  { %2306 = vmatmul.mubr.bf16.gmra.mxu0 %v2403_v62 }
  0x5b   :  { %2338 = vmatmul.mubr.bf16.gmra.mxu1 %v2404_v63 }
  0xe2   :  { %v2624_v0 = vpop.f32.mrf.mxu0 }
  0xe3   :  { %v2626_v1 = vpop.f32.mrf.mxu1 }
  0xe4   :  { %v2628_v2 = vpop.f32.mrf.mxu0 }
  0xe5   :  { %v2630_v3 = vpop.f32.mrf.mxu1 }
  0xe6   :  { %v2632_v4 = vpop.f32.mrf.mxu0 }
  0xe7   :  { %v2634_v5 = vpop.f32.mrf.mxu1 }
  0xe8   :  { %v2636_v6 = vpop.f32.mrf.mxu0 }
  0xe9   :  { %v918_v7 = vadd.f32 %v2636_v6, %v2628_v2  ;;  %v2640_v8 = vpop.f32.mrf.mxu1 }
  0xea   :  { %v939_v9 = vadd.f32 %v2640_v8, %v2630_v3  ;;  %v2644_v10 = vpop.f32.mrf.mxu0 }
  0xeb   :  { %v919_v11 = vadd.f32 %v2624_v0, %v918_v7  ;;  %v2647_v12 = vpop.f32.mrf.mxu1 }
  0xec   :  { %v940_v13 = vadd.f32 %v2626_v1, %v939_v9  ;;  %v2650_v14 = vpop.f32.mrf.mxu0 }
  0xed   :  { %v920_v15 = vadd.f32 %v2632_v4, %v919_v11  ;;  %v2653_v16 = vpop.f32.mrf.mxu1 }
  0xee   :  { %v941_v17 = vadd.f32 %v2634_v5, %v940_v13  ;;  %v2656_v18 = vpop.f32.mrf.mxu0 }
  0xef   :  { %v921_v19 = vadd.f32 %v920_v15, %v2650_v14  ;;  %v2659_v20 = vpop.f32.mrf.mxu1 }
  0xf0   :  { %v942_v21 = vadd.f32 %v941_v17, %v2653_v16  ;;  %v2662_v22 = vpop.f32.mrf.mxu0 }
  0xf1   :  { %v2664_v23 = vpop.f32.mrf.mxu1  ;;  %v922_v24 = vadd.f32 %v921_v19, %v2662_v22 }
  0xf2   :  { %v943_v25 = vadd.f32 %v942_v21, %v2664_v23  ;;  %v2668_v26 = vpop.f32.mrf.mxu0 }
  0xf3   :  { %v2670_v27 = vpop.f32.mrf.mxu1  ;;  %v923_v30 = vadd.f32 %v2644_v10, %v922_v24 }
  0xf4   :  { %v2672_v28 = vpop.f32.mrf.mxu0  ;;  %v944_v31 = vadd.f32 %v2647_v12, %v943_v25 }
  0xf5   :  { %v2674_v29 = vpop.f32.mrf.mxu1  ;;  %v924_v36 = vadd.f32 %v2656_v18, %v923_v30 }
  0xf6   :  { %v2678_v32 = vpop.f32.mrf.mxu0  ;;  %v945_v37 = vadd.f32 %v2659_v20, %v944_v31 }
  0xf7   :  { %v2680_v33 = vpop.f32.mrf.mxu1  ;;  %v925_v42 = vadd.f32 %v924_v36, %v2672_v28 }
  0xf8   :  { %v2682_v34 = vpop.f32.mrf.mxu0  ;;  %v946_v43 = vadd.f32 %v945_v37, %v2674_v29 }
  0xf9   :  { %v2684_v35 = vpop.f32.mrf.mxu1  ;;  %v926_v48 = vadd.f32 %v925_v42, %v2682_v34 }
  0xfa   :  { %v2688_v38 = vpop.f32.mrf.mxu0  ;;  %v947_v49 = vadd.f32 %v946_v43, %v2684_v35 }
  0xfb   :  { %v2690_v39 = vpop.f32.mrf.mxu1  ;;  %v927_v54 = vadd.f32 %v2668_v26, %v926_v48 }
  0xfc   :  { %v2692_v40 = vpop.f32.mrf.mxu0  ;;  %v948_v55 = vadd.f32 %v2670_v27, %v947_v49 }
  0xfd   :  { %v2694_v41 = vpop.f32.mrf.mxu1  ;;  %v928_v61 = vadd.f32 %v2678_v32, %v927_v54 }
  0xfe   :  { %v2698_v44 = vpop.f32.mrf.mxu0  ;;  %v949_v62 = vadd.f32 %v2680_v33, %v948_v55 }
  0xff   :  { %v2700_v45 = vpop.f32.mrf.mxu1  ;;  %v929_v21 = vadd.f32 %v928_v61, %v2692_v40 }
 0x100   :  { %v2702_v46 = vpop.f32.mrf.mxu0  ;;  %v950_v24 = vadd.f32 %v949_v62, %v2694_v41 }
 0x101   :  { %v2704_v47 = vpop.f32.mrf.mxu1  ;;  %v930_v49 = vadd.f32 %v929_v21, %v2702_v46 }
 0x102   :  { %v2708_v50 = vpop.f32.mrf.mxu0  ;;  %v951_v54 = vadd.f32 %v950_v24, %v2704_v47 }
 0x103   :  { %v2710_v51 = vpop.f32.mrf.mxu1  ;;  %v931_v21 = vadd.f32 %v2688_v38, %v930_v49 }
 0x104   :  { %4213 = vst [vmem:[#allocation2_spill] sm:$0xff] %v2710_v51  ;;  %v2712_v52 = vpop.f32.mrf.mxu0  ;;  %v952_v24 = vadd.f32 %v2690_v39, %v951_v54 }
 0x105   :  { %v2714_v53 = vpop.f32.mrf.mxu1  ;;  %v932_v49 = vadd.f32 %v2698_v44, %v931_v21 }
 0x106   :  { %4214 = vst [vmem:[#allocation3_spill] sm:$0xff] %v2714_v53  ;;  %v2718_v56 = vpop.f32.mrf.mxu0  ;;  %v953_v54 = vadd.f32 %v2700_v45, %v952_v24 }
 0x107   :  { %v2720_v57 = vpop.f32.mrf.mxu1 }
 0x108   :  { %4215 = vst [vmem:[#allocation4_spill] sm:$0xff] %v2720_v57  ;;  %v2722_v58 = vpop.f32.mrf.mxu0  ;;  %v954_v21 = vrot.slane %v953_v54, 4 }
 0x109   :  { %v960_v59 = vadd.f32 %v2722_v58, %v2712_v52  ;;  %v2726_v60 = vpop.f32.mrf.mxu1 }
 0x10a   :  { %4216 = vst [vmem:[#allocation5_spill] sm:$0xff] %v2726_v60  ;;  %v981_v63 = vadd.f32 %v2726_v60, %v2714_v53  ;;  %v2732_v7 = vpop.f32.mrf.mxu0 }
 0x10b   :  { %4217 = vst [vmem:[#allocation6_spill] sm:$0xff] %v2732_v7  ;;  %v961_v9 = vadd.f32 %v2708_v50, %v960_v59  ;;  %v2735_v11 = vpop.f32.mrf.mxu1 }
 0x10c   :  { %4218 = vst [vmem:[#allocation7_spill] sm:$0xff] %v2735_v11  ;;  %v982_v13 = vadd.f32 %v2710_v51, %v981_v63  ;;  %v2738_v15 = vpop.f32.mrf.mxu0  ;;  %v933_v51 = vrot.slane %v932_v49, 4 }
 0x10d   :  { %4219 = vst [vmem:[#allocation8_spill] sm:$0xff] %v2738_v15  ;;  %v962_v17 = vadd.f32 %v2718_v56, %v961_v9  ;;  %v2741_v19 = vpop.f32.mrf.mxu1 }
 0x10e   :  { %4220 = vst [vmem:[#allocation9_spill] sm:$0xff] %v2741_v19  ;;  %v983_v25 = vadd.f32 %v2720_v57, %v982_v13  ;;  %v2746_v30 = vpop.f32.mrf.mxu0 }
 0x10f   :  { %4221 = vst [vmem:[#allocation10_spill] sm:$0xff] %v2746_v30  ;;  %v963_v31 = vadd.f32 %v962_v17, %v2738_v15  ;;  %v2749_v36 = vpop.f32.mrf.mxu1 }
 0x110   :  { %4222 = vst [vmem:[#allocation11_spill] sm:$0xff] %v2749_v36  ;;  %v984_v37 = vadd.f32 %v983_v25, %v2741_v19  ;;  %v2752_v42 = vpop.f32.mrf.mxu0 }
 0x111   :  { %4223 = vst [vmem:[#allocation12_spill] sm:$0xff] %v2752_v42  ;;  %v964_v43 = vadd.f32 %v963_v31, %v2752_v42  ;;  %v2755_v48 = vpop.f32.mrf.mxu1 }
 0x112   :  { %4224 = vst [vmem:[#allocation13_spill] sm:$0xff] %v2755_v48  ;;  %v985_v55 = vadd.f32 %v984_v37, %v2755_v48  ;;  %v2760_v59 = vpop.f32.mrf.mxu0 }
 0x113   :  { %4225 = vst [vmem:[#allocation14_spill] sm:$0xff] %v2760_v59  ;;  %v965_v61 = vadd.f32 %v2732_v7, %v964_v43  ;;  %v2763_v62 = vpop.f32.mrf.mxu1 }
 0x114   :  { %4226 = vst [vmem:[#allocation15_spill] sm:$0xff] %v2763_v62  ;;  %v986_v63 = vadd.f32 %v2735_v11, %v985_v55  ;;  %v2766_v9 = vpop.f32.mrf.mxu0 }
 0x115   :  { %4227 = vst [vmem:[#allocation16_spill] sm:$0xff] %v2766_v9  ;;  %v966_v13 = vadd.f32 %v2746_v30, %v965_v61  ;;  %v2769_v17 = vpop.f32.mrf.mxu1 }
 0x116   :  { %4228 = vst [vmem:[#allocation17_spill] sm:$0xff] %v2769_v17  ;;  %v987_v25 = vadd.f32 %v2749_v36, %v986_v63  ;;  %v2774_v31 = vpop.f32.mrf.mxu0 }
 0x117   :  { %4229 = vst [vmem:[#allocation18_spill] sm:$0xff] %v2774_v31  ;;  %v967_v37 = vadd.f32 %v966_v13, %v2766_v9  ;;  %v2777_v43 = vpop.f32.mrf.mxu1 }
 0x118   :  { %4230 = vst [vmem:[#allocation19_spill] sm:$0xff] %v2777_v43  ;;  %v988_v55 = vadd.f32 %v987_v25, %v2769_v17  ;;  %v2780_v11 = vpop.f32.mrf.mxu0 }
 0x119   :  { %4231 = vst [vmem:[#allocation20_spill] sm:$0xff] %v2780_v11  ;;  %v968_v61 = vadd.f32 %v967_v37, %v2780_v11  ;;  %v2783_v48 = vpop.f32.mrf.mxu1 }
 0x11a   :  { %4232 = vst [vmem:[#allocation21_spill] sm:$0xff] %v2783_v48  ;;  %v989_v63 = vadd.f32 %v988_v55, %v2783_v48  ;;  %v2788_v36 = vpop.f32.mrf.mxu0 }
 0x11b   :  { %4233 = vst [vmem:[#allocation22_spill] sm:$0xff] %v2788_v36  ;;  %v969_v13 = vadd.f32 %v2760_v59, %v968_v61  ;;  %v2791_v19 = vpop.f32.mrf.mxu1 }
 0x11c   :  { %4234 = vst [vmem:[#allocation23_spill] sm:$0xff] %v2791_v19  ;;  %v990_v25 = vadd.f32 %v2763_v62, %v989_v63  ;;  %v2794_v17 = vpop.f32.mrf.mxu0 }
 0x11d   :  { %4235 = vst [vmem:[#allocation24_spill] sm:$0xff] %v2794_v17  ;;  %v970_v37 = vadd.f32 %v2774_v31, %v969_v13  ;;  %v2797_v57 = vpop.f32.mrf.mxu1  ;;  %v934_v13 = vadd.f32 %v933_v51, %v932_v49  ;;  %v955_v31 = vadd.f32 %v954_v21, %v953_v54 }
 0x11e   :  { %4236 = vst [vmem:[#allocation25_spill] sm:$0xff] %v2797_v57  ;;  %v991_v24 = vadd.f32 %v2777_v43, %v990_v25  ;;  %v2800_v60 = vpop.f32.mrf.mxu0 }
 0x11f   :  { %4237 = vst [vmem:[#allocation26_spill] sm:$0xff] %v2800_v60  ;;  %v971_v55 = vadd.f32 %v970_v37, %v2794_v17  ;;  %v2803_v48 = vpop.f32.mrf.mxu1  ;;  %v935_v17 = vrot.slane %v934_v13, 2  ;;  %v956_v11 = vrot.slane %v955_v31, 2 }
 0x120   :  { %4238 = vst [vmem:[#allocation27_spill] sm:$0xff] %v2803_v48  ;;  %v992_v61 = vadd.f32 %v991_v24, %v2797_v57  ;;  %v2806_v53 = vpop.f32.mrf.mxu0 }
 0x121   :  { %4239 = vst [vmem:[#allocation28_spill] sm:$0xff] %v2806_v53  ;;  %v972_v63 = vadd.f32 %v971_v55, %v2806_v53  ;;  %v2809_v62 = vpop.f32.mrf.mxu1  ;;  %v936_v55 = vadd.f32 %v935_v17, %v934_v13  ;;  %v957_v53 = vadd.f32 %v956_v11, %v955_v31  ;;  %v4261_v31 = vld [vmem:[#allocation20_spill] sm:$0xff] }
 0x122   :  { %4240 = vst [vmem:[#allocation29_spill] sm:$0xff] %v2809_v62  ;;  %v993_v59 = vadd.f32 %v992_v61, %v2809_v62 }
 0x123   :  { %v973_v25 = vadd.f32 %v2788_v36, %v972_v63  ;;  %v937_v54 = vrot.slane %v936_v55, 1  ;;  %v958_v21 = vrot.slane %v957_v53, 1 }
 0x124   :  { %v994_v43 = vadd.f32 %v2791_v19, %v993_v59 }
 0x125   :  { %v974_v37 = vadd.f32 %v2800_v60, %v973_v25  ;;  %v938_v62 = vadd.f32 %v937_v54, %v936_v55  ;;  %v959_v59 = vadd.f32 %v958_v21, %v957_v53  ;;  %v4265_v55 = vld [vmem:[#allocation18_spill] sm:$0xff] }
 0x126   :  { %v995_v24 = vadd.f32 %v2803_v48, %v994_v43 }
 0x127   :  { %v975_v57 = vrot.slane %v974_v37, 4  ;;  %v1003_v60 = vmul.f32 0.0078125, %v938_v62  ;;  %v1004_v36 = vmul.f32 0.0078125, %v959_v59  ;;  %v4260_v62 = vld [vmem:[#allocation16_spill] sm:$0xff] }
 0x128   :  { %v996_v9 = vrot.slane %v995_v24, 4  ;;  %v4269_v21 = vld [vmem:[#allocation28_spill] sm:$0xff] }
 0x129   :  { %v976_v30 = vadd.f32 %v975_v57, %v974_v37  ;;  %v1007_v48 = vadd.f32 %v1004_v36, %v1003_v60  ;;  %v4257_v36 = vld [vmem:[#allocation12_spill] sm:$0xff]  ;;  %v4263_v37 = vld [vmem:[#allocation14_spill] sm:$0xff] }
 0x12a   :  { %v997_v7 = vadd.f32 %v996_v9, %v995_v24 }
 0x12b   :  { %v977_v51 = vrot.slane %v976_v30, 2 }
 0x12c   :  { %v998_v61 = vrot.slane %v997_v7, 2 }
 0x12d   :  { %v978_v49 = vadd.f32 %v977_v51, %v976_v30 }
 0x12e   :  { %v999_v19 = vadd.f32 %v998_v61, %v997_v7 }
 0x12f   :  { %v979_v63 = vrot.slane %v978_v49, 1 }
 0x130   :  { %v1000_v42 = vrot.slane %v999_v19, 1 }
 0x131   :  { %v980_v25 = vadd.f32 %v979_v63, %v978_v49  ;;  %v4267_v49 = vld [vmem:[#allocation24_spill] sm:$0xff]  ;;  %v4271_v63 = vld [vmem:[#allocation3_spill] sm:$0xff] }
 0x132   :  { %v1001_v15 = vadd.f32 %v1000_v42, %v999_v19  ;;  %v4256_v19 = vld [vmem:[#allocation8_spill] sm:$0xff]  ;;  %v4258_v42 = vld [vmem:[#allocation6_spill] sm:$0xff] }
 0x133   :  { %v1005_v43 = vmul.f32 0.0078125, %v980_v25  ;;  %v4273_v25 = vld [vmem:[#allocation5_spill] sm:$0xff] }
 0x134   :  { %v1006_v17 = vmul.f32 0.0078125, %v1001_v15 }
 0x135   :  { %v1008_v57 = vadd.f32 %v1007_v48, %v1005_v43  ;;  %v4259_v48 = vld [vmem:[#allocation10_spill] sm:$0xff] }
 0x137   :  { %v1009_v11 = vadd.f32 %v1008_v57, %v1006_v17  ;;  %v4275_v57 = vld [vmem:[#allocation22_spill] sm:$0xff] }
 0x139   :  { %v2816_v9 = vmul.f32 0.25, %v1009_v11  ;;  %v4277_v11 = vld [vmem:[#allocation26_spill] sm:$0xff] }
 0x13b   :  { %v2820_v30 = vsub.f32 %v2628_v2, %v2816_v9  ;;  %v2824_v53 = vsub.f32 %v2636_v6, %v2816_v9  ;;  %v2828_v7 = vsub.f32 %v2624_v0, %v2816_v9  ;;  %v2832_v60 = vsub.f32 %v2632_v4, %v2816_v9 }
 0x13c   :  { %v2836_v15 = vsub.f32 %v2650_v14, %v2816_v9  ;;  %v2840_v2 = vsub.f32 %v2662_v22, %v2816_v9  ;;  %v2844_v6 = vsub.f32 %v2644_v10, %v2816_v9  ;;  %v2848_v0 = vsub.f32 %v2656_v18, %v2816_v9 }
 0x13d   :  { %4241 = vst [vmem:[#allocation30_spill] sm:$0xff] %v2820_v30  ;;  %4242 = vst [vmem:[#allocation31_spill] sm:$0xff] %v2824_v53  ;;  %v2852_v4 = vsub.f32 %v2672_v28, %v2816_v9  ;;  %v2856_v14 = vsub.f32 %v2682_v34, %v2816_v9  ;;  %v2860_v22 = vsub.f32 %v2668_v26, %v2816_v9 }
 0x13e   :  { %4243 = vst [vmem:[#allocation32_spill] sm:$0xff] %v2828_v7  ;;  %v2864_v10 = vsub.f32 %v2678_v32, %v2816_v9  ;;  %v2868_v18 = vsub.f32 %v2692_v40, %v2816_v9  ;;  %v2872_v28 = vsub.f32 %v2702_v46, %v2816_v9  ;;  %v2876_v34 = vsub.f32 %v2688_v38, %v2816_v9 }
 0x13f   :  { %v2880_v26 = vsub.f32 %v2698_v44, %v2816_v9  ;;  %v2884_v32 = vsub.f32 %v2630_v3, %v2816_v9  ;;  %v2888_v40 = vsub.f32 %v2640_v8, %v2816_v9  ;;  %v2892_v46 = vsub.f32 %v2626_v1, %v2816_v9 }
 0x140   :  { %4244 = vst [vmem:[#allocation33_spill] sm:$0xff] %v2872_v28  ;;  %4245 = vst [vmem:[#allocation34_spill] sm:$0xff] %v2876_v34  ;;  %v2896_v38 = vsub.f32 %v2634_v5, %v2816_v9  ;;  %v2900_v44 = vsub.f32 %v2653_v16, %v2816_v9  ;;  %v2904_v3 = vsub.f32 %v2664_v23, %v2816_v9  ;;  %v4305_v34 = vld [vmem:[#allocation27_spill] sm:$0xff] }
 0x141   :  { %4246 = vst [vmem:[#allocation35_spill] sm:$0xff] %v2880_v26  ;;  %4247 = vst [vmem:[#allocation36_spill] sm:$0xff] %v2884_v32  ;;  %v2908_v8 = vsub.f32 %v2647_v12, %v2816_v9  ;;  %v2912_v1 = vsub.f32 %v2659_v20, %v2816_v9  ;;  %v2916_v5 = vsub.f32 %v2674_v29, %v2816_v9 }
 0x142   :  { %4248 = vst [vmem:[#allocation37_spill] sm:$0xff] %v2888_v40  ;;  %4249 = vst [vmem:[#allocation38_spill] sm:$0xff] %v2892_v46  ;;  %v2920_v16 = vsub.f32 %v2684_v35, %v2816_v9  ;;  %v2924_v23 = vsub.f32 %v2670_v27, %v2816_v9  ;;  %v2928_v12 = vsub.f32 %v2680_v33, %v2816_v9 }
 0x143   :  { %v2932_v20 = vsub.f32 %v2694_v41, %v2816_v9  ;;  %v2936_v29 = vsub.f32 %v2704_v47, %v2816_v9  ;;  %v2940_v35 = vsub.f32 %v2690_v39, %v2816_v9  ;;  %v2944_v27 = vsub.f32 %v2700_v45, %v2816_v9 }
 0x144   :  { %v2948_v33 = vsub.f32 %v2712_v52, %v2816_v9  ;;  %v2952_v41 = vsub.f32 %v2722_v58, %v2816_v9  ;;  %v2956_v47 = vsub.f32 %v2708_v50, %v2816_v9  ;;  %v2960_v39 = vsub.f32 %v2718_v56, %v2816_v9 }
 0x145   :  { %4250 = vst [vmem:[#allocation39_spill] sm:$0xff] %v2936_v29  ;;  %4251 = vst [vmem:[#allocation40_spill] sm:$0xff] %v2940_v35  ;;  %v2964_v45 = vsub.f32 %v4256_v19, %v2816_v9  ;;  %v2968_v52 = vsub.f32 %v4257_v36, %v2816_v9  ;;  %v2972_v58 = vsub.f32 %v4258_v42, %v2816_v9  ;;  %v4279_v36 = vld [vmem:[#allocation2_spill] sm:$0xff]  ;;  %v4303_v35 = vld [vmem:[#allocation23_spill] sm:$0xff] }
 0x146   :  { %4252 = vst [vmem:[#allocation41_spill] sm:$0xff] %v2944_v27  ;;  %4253 = vst [vmem:[#allocation42_spill] sm:$0xff] %v2948_v33  ;;  %v2976_v50 = vsub.f32 %v4259_v48, %v2816_v9  ;;  %v2980_v56 = vsub.f32 %v4260_v62, %v2816_v9  ;;  %v2984_v13 = vsub.f32 %v4261_v31, %v2816_v9  ;;  %v4281_v48 = vld [vmem:[#allocation4_spill] sm:$0xff]  ;;  %v4283_v31 = vld [vmem:[#allocation9_spill] sm:$0xff] }
 0x147   :  { %4254 = vst [vmem:[#allocation43_spill] sm:$0xff] %v2952_v41  ;;  %4255 = vst [vmem:[#allocation44_spill] sm:$0xff] %v2956_v47  ;;  %v2988_v24 = vsub.f32 %v4263_v37, %v2816_v9  ;;  %v2992_v51 = vsub.f32 %v4265_v55, %v2816_v9  ;;  %v2996_v54 = vsub.f32 %v4267_v49, %v2816_v9  ;;  %v4285_v55 = vld [vmem:[#allocation13_spill] sm:$0xff] }
 0x148   :  { %4262 = vst [vmem:[#allocation8_spill] sm:$0xff] %v2984_v13  ;;  %v3000_v61 = vsub.f32 %v4269_v21, %v2816_v9  ;;  %v3004_v59 = vsub.f32 %v4271_v63, %v2816_v9  ;;  %v3008_v43 = vsub.f32 %v4273_v25, %v2816_v9  ;;  %v3012_v17 = vsub.f32 %v4275_v57, %v2816_v9  ;;  %v4287_v21 = vld [vmem:[#allocation7_spill] sm:$0xff] }
 0x149   :  { %4264 = vst [vmem:[#allocation12_spill] sm:$0xff] %v2988_v24  ;;  %4266 = vst [vmem:[#allocation6_spill] sm:$0xff] %v2992_v51  ;;  %v3016_v19 = vsub.f32 %v4277_v11, %v2816_v9  ;;  %v3020_v42 = vsub.f32 %v4279_v36, %v2816_v9  ;;  %v3024_v62 = vsub.f32 %v4281_v48, %v2816_v9  ;;  %v4289_v25 = vld [vmem:[#allocation11_spill] sm:$0xff] }
 0x14a   :  { %4268 = vst [vmem:[#allocation10_spill] sm:$0xff] %v2996_v54  ;;  %4270 = vst [vmem:[#allocation16_spill] sm:$0xff] %v3000_v61  ;;  %v3028_v37 = vsub.f32 %v4283_v31, %v2816_v9  ;;  %v3032_v49 = vsub.f32 %v4285_v55, %v2816_v9  ;;  %v3036_v63 = vsub.f32 %v4287_v21, %v2816_v9 }
 0x14b   :  { %4272 = vst [vmem:[#allocation20_spill] sm:$0xff] %v3004_v59  ;;  %4274 = vst [vmem:[#allocation14_spill] sm:$0xff] %v3008_v43  ;;  %v3040_v57 = vsub.f32 %v4289_v25, %v2816_v9  ;;  %v1076_v11 = vmul.f32 %v2820_v30, %v2820_v30  ;;  %v1077_v36 = vmul.f32 %v2824_v53, %v2824_v53  ;;  %v4291_v53 = vld [vmem:[#allocation17_spill] sm:$0xff] }
 0x14c   :  { %4276 = vst [vmem:[#allocation18_spill] sm:$0xff] %v3012_v17  ;;  %4278 = vst [vmem:[#allocation24_spill] sm:$0xff] %v3016_v19  ;;  %v1092_v48 = vmul.f32 %v2884_v32, %v2884_v32  ;;  %v1093_v31 = vmul.f32 %v2888_v40, %v2888_v40  ;;  %v1108_v55 = vmul.f32 %v2948_v33, %v2948_v33  ;;  %v4293_v32 = vld [vmem:[#allocation21_spill] sm:$0xff]  ;;  %v4295_v40 = vld [vmem:[#allocation15_spill] sm:$0xff] }
 0x14d   :  { %4280 = vst [vmem:[#allocation28_spill] sm:$0xff] %v3020_v42  ;;  %4282 = vst [vmem:[#allocation3_spill] sm:$0xff] %v3024_v62  ;;  %v1109_v21 = vmul.f32 %v2952_v41, %v2952_v41  ;;  %v1124_v25 = vmul.f32 %v3004_v59, %v3004_v59  ;;  %v1125_v30 = vmul.f32 %v3008_v43, %v3008_v43  ;;  %v4297_v41 = vld [vmem:[#allocation19_spill] sm:$0xff]  ;;  %v4299_v59 = vld [vmem:[#allocation25_spill] sm:$0xff] }
 0x14e   :  { %4284 = vst [vmem:[#allocation5_spill] sm:$0xff] %v3028_v37  ;;  %4286 = vst [vmem:[#allocation22_spill] sm:$0xff] %v3032_v49  ;;  %v3060_v19 = vsub.f32 %v4291_v53, %v2816_v9  ;;  %v3064_v27 = vsub.f32 %v4293_v32, %v2816_v9  ;;  %v3068_v33 = vsub.f32 %v4295_v40, %v2816_v9  ;;  %v4301_v43 = vld [vmem:[#allocation29_spill] sm:$0xff] }
 0x14f   :  { %4288 = vst [vmem:[#allocation26_spill] sm:$0xff] %v3036_v63  ;;  %4290 = vst [vmem:[#allocation2_spill] sm:$0xff] %v3040_v57  ;;  %v3072_v26 = vsub.f32 %v4297_v41, %v2816_v9  ;;  %v3076_v17 = vsub.f32 %v4299_v59, %v2816_v9  ;;  %v3080_v53 = vsub.f32 %v4301_v43, %v2816_v9 }
 0x150   :  { %4292 = vst [vmem:[#allocation4_spill] sm:$0xff] %v3060_v19  ;;  %4294 = vst [vmem:[#allocation9_spill] sm:$0xff] %v3064_v27  ;;  %v3084_v32 = vsub.f32 %v4303_v35, %v2816_v9  ;;  %v3088_v40 = vsub.f32 %v4305_v34, %v2816_v9  ;;  %v1078_v41 = vmul.f32 %v2828_v7, %v2828_v7 }
 0x151   :  { %4296 = vst [vmem:[#allocation13_spill] sm:$0xff] %v3068_v33  ;;  %4298 = vst [vmem:[#allocation7_spill] sm:$0xff] %v3072_v26  ;;  %v1094_v61 = vmul.f32 %v2892_v46, %v2892_v46  ;;  %v1110_v59 = vmul.f32 %v2956_v47, %v2956_v47  ;;  %v1126_v43 = vmul.f32 %v3020_v42, %v3020_v42 }
 0x152   :  { %4300 = vst [vmem:[#allocation11_spill] sm:$0xff] %v3076_v17  ;;  %4302 = vst [vmem:[#allocation17_spill] sm:$0xff] %v3080_v53  ;;  %v1140_v53 = vadd.f32 %v1077_v36, %v1076_v11  ;;  %v1161_v29 = vadd.f32 %v1093_v31, %v1092_v48  ;;  %v1182_v35 = vadd.f32 %v1109_v21, %v1108_v55 }
 0x153   :  { %4304 = vst [vmem:[#allocation21_spill] sm:$0xff] %v3084_v32  ;;  %4306 = vst [vmem:[#allocation15_spill] sm:$0xff] %v3088_v40  ;;  %v1203_v32 = vadd.f32 %v1125_v30, %v1124_v25  ;;  %v1079_v9 = vmul.f32 %v2832_v60, %v2832_v60  ;;  %v1095_v34 = vmul.f32 %v2896_v38, %v2896_v38 }
 0x154   :  { %v1111_v7 = vmul.f32 %v2960_v39, %v2960_v39  ;;  %v1127_v46 = vmul.f32 %v3024_v62, %v3024_v62  ;;  %v1141_v47 = vadd.f32 %v1140_v53, %v1078_v41  ;;  %v1162_v40 = vadd.f32 %v1161_v29, %v1094_v61 }
 0x155   :  { %v1183_v28 = vadd.f32 %v1182_v35, %v1110_v59  ;;  %v1204_v42 = vadd.f32 %v1203_v32, %v1126_v43  ;;  %v1080_v11 = vmul.f32 %v2836_v15, %v2836_v15  ;;  %v1096_v30 = vmul.f32 %v2900_v44, %v2900_v44 }
 0x156   :  { %v1112_v36 = vmul.f32 %v2964_v45, %v2964_v45  ;;  %v1128_v48 = vmul.f32 %v3028_v37, %v3028_v37  ;;  %v1142_v31 = vadd.f32 %v1141_v47, %v1079_v9  ;;  %v1163_v55 = vadd.f32 %v1162_v40, %v1095_v34 }
 0x157   :  { %v1184_v21 = vadd.f32 %v1183_v28, %v1111_v7  ;;  %v1205_v25 = vadd.f32 %v1204_v42, %v1127_v46  ;;  %v1081_v29 = vmul.f32 %v2840_v2, %v2840_v2  ;;  %v1097_v61 = vmul.f32 %v2904_v3, %v2904_v3 }
 0x158   :  { %v1113_v53 = vmul.f32 %v2968_v52, %v2968_v52  ;;  %v1129_v32 = vmul.f32 %v3032_v49, %v3032_v49  ;;  %v1143_v41 = vadd.f32 %v1142_v31, %v1080_v11  ;;  %v1164_v59 = vadd.f32 %v1163_v55, %v1096_v30 }
 0x159   :  { %v1185_v43 = vadd.f32 %v1184_v21, %v1112_v36  ;;  %v1206_v35 = vadd.f32 %v1205_v25, %v1128_v48  ;;  %v1082_v7 = vmul.f32 %v2844_v6, %v2844_v6  ;;  %v1098_v28 = vmul.f32 %v2908_v8, %v2908_v8 }
 0x15a   :  { %v1114_v46 = vmul.f32 %v2972_v58, %v2972_v58  ;;  %v1130_v47 = vmul.f32 %v3036_v63, %v3036_v63  ;;  %v1144_v42 = vadd.f32 %v1143_v41, %v1081_v29  ;;  %v1165_v40 = vadd.f32 %v1164_v59, %v1097_v61 }
 0x15b   :  { %v1186_v9 = vadd.f32 %v1185_v43, %v1113_v53  ;;  %v1207_v34 = vadd.f32 %v1206_v35, %v1129_v32  ;;  %v1083_v11 = vmul.f32 %v2848_v0, %v2848_v0  ;;  %v1099_v30 = vmul.f32 %v2912_v1, %v2912_v1 }
 0x15c   :  { %v1115_v36 = vmul.f32 %v2976_v50, %v2976_v50  ;;  %v1131_v48 = vmul.f32 %v3040_v57, %v3040_v57  ;;  %v1145_v31 = vadd.f32 %v1144_v42, %v1082_v7  ;;  %v1166_v55 = vadd.f32 %v1165_v40, %v1098_v28 }
 0x15d   :  { %v1187_v21 = vadd.f32 %v1186_v9, %v1114_v46  ;;  %v1208_v25 = vadd.f32 %v1207_v34, %v1130_v47  ;;  %v1084_v29 = vmul.f32 %v2852_v4, %v2852_v4  ;;  %v1100_v61 = vmul.f32 %v2916_v5, %v2916_v5 }
 0x15e   :  { %v1116_v53 = vmul.f32 %v2980_v56, %v2980_v56  ;;  %v1132_v32 = vmul.f32 %v3060_v19, %v3060_v19  ;;  %v1146_v41 = vadd.f32 %v1145_v31, %v1083_v11  ;;  %v1167_v59 = vadd.f32 %v1166_v55, %v1099_v30 }
 0x15f   :  { %v1188_v43 = vadd.f32 %v1187_v21, %v1115_v36  ;;  %v1209_v35 = vadd.f32 %v1208_v25, %v1131_v48  ;;  %v1085_v7 = vmul.f32 %v2856_v14, %v2856_v14  ;;  %v1101_v28 = vmul.f32 %v2920_v16, %v2920_v16 }
 0x160   :  { %v1117_v46 = vmul.f32 %v2984_v13, %v2984_v13  ;;  %v1133_v47 = vmul.f32 %v3064_v27, %v3064_v27  ;;  %v1147_v42 = vadd.f32 %v1146_v41, %v1084_v29  ;;  %v1168_v40 = vadd.f32 %v1167_v59, %v1100_v61 }
 0x161   :  { %v1189_v9 = vadd.f32 %v1188_v43, %v1116_v53  ;;  %v1210_v34 = vadd.f32 %v1209_v35, %v1132_v32  ;;  %v1086_v11 = vmul.f32 %v2860_v22, %v2860_v22  ;;  %v1102_v30 = vmul.f32 %v2924_v23, %v2924_v23 }
 0x162   :  { %v1118_v36 = vmul.f32 %v2988_v24, %v2988_v24  ;;  %v1134_v48 = vmul.f32 %v3068_v33, %v3068_v33  ;;  %v1148_v31 = vadd.f32 %v1147_v42, %v1085_v7  ;;  %v1169_v55 = vadd.f32 %v1168_v40, %v1101_v28 }
 0x163   :  { %v1190_v21 = vadd.f32 %v1189_v9, %v1117_v46  ;;  %v1211_v25 = vadd.f32 %v1210_v34, %v1133_v47  ;;  %v1087_v29 = vmul.f32 %v2864_v10, %v2864_v10  ;;  %v1103_v61 = vmul.f32 %v2928_v12, %v2928_v12 }
 0x164   :  { %v1119_v53 = vmul.f32 %v2992_v51, %v2992_v51  ;;  %v1135_v32 = vmul.f32 %v3072_v26, %v3072_v26  ;;  %v1149_v41 = vadd.f32 %v1148_v31, %v1086_v11  ;;  %v1170_v59 = vadd.f32 %v1169_v55, %v1102_v30  ;;  %v4307_v11 = vld [vmem:[#allocation33_spill] sm:$0xff]  ;;  %v4309_v31 = vld [vmem:[#allocation16_spill] sm:$0xff] }
 0x165   :  { %v1191_v43 = vadd.f32 %v1190_v21, %v1118_v36  ;;  %v1212_v35 = vadd.f32 %v1211_v25, %v1134_v48  ;;  %v1088_v7 = vmul.f32 %v2868_v18, %v2868_v18  ;;  %v1104_v28 = vmul.f32 %v2932_v20, %v2932_v20  ;;  %v4308_v36 = vld [vmem:[#allocation39_spill] sm:$0xff]  ;;  %v4310_v21 = vld [vmem:[#allocation17_spill] sm:$0xff] }
 0x166   :  { %v1120_v46 = vmul.f32 %v2996_v54, %v2996_v54  ;;  %v1136_v47 = vmul.f32 %v3076_v17, %v3076_v17  ;;  %v1150_v42 = vadd.f32 %v1149_v41, %v1087_v29  ;;  %v1171_v40 = vadd.f32 %v1170_v59, %v1103_v61  ;;  %v4311_v29 = vld [vmem:[#allocation34_spill] sm:$0xff] }
 0x167   :  { %v1192_v9 = vadd.f32 %v1191_v43, %v1119_v53  ;;  %v1213_v34 = vadd.f32 %v1212_v35, %v1135_v32  ;;  %v1089_v30 = vmul.f32 %v4307_v11, %v4307_v11  ;;  %v1105_v48 = vmul.f32 %v4308_v36, %v4308_v36  ;;  %v4312_v53 = vld [vmem:[#allocation40_spill] sm:$0xff]  ;;  %v4313_v41 = vld [vmem:[#allocation18_spill] sm:$0xff]  ;;  %v4314_v43 = vld [vmem:[#allocation21_spill] sm:$0xff] }
 0x168   :  { %v1121_v55 = vmul.f32 %v4309_v31, %v4309_v31  ;;  %v1137_v25 = vmul.f32 %v4310_v21, %v4310_v21  ;;  %v1151_v26 = vadd.f32 %v1150_v42, %v1088_v7  ;;  %v1172_v33 = vadd.f32 %v1171_v40, %v1104_v28  ;;  %v4315_v7 = vld [vmem:[#allocation35_spill] sm:$0xff]  ;;  %v4317_v42 = vld [vmem:[#allocation24_spill] sm:$0xff] }
 0x169   :  { %v1193_v27 = vadd.f32 %v1192_v9, %v1120_v46  ;;  %v1214_v17 = vadd.f32 %v1213_v34, %v1136_v47  ;;  %v1090_v61 = vmul.f32 %v4311_v29, %v4311_v29  ;;  %v1106_v32 = vmul.f32 %v4312_v53, %v4312_v53  ;;  %v4316_v46 = vld [vmem:[#allocation41_spill] sm:$0xff]  ;;  %v4318_v9 = vld [vmem:[#allocation15_spill] sm:$0xff] }
 0x16a   :  { %v1122_v59 = vmul.f32 %v4313_v41, %v4313_v41  ;;  %v1138_v35 = vmul.f32 %v4314_v43, %v4314_v43  ;;  %v1152_v19 = vadd.f32 %v1151_v26, %v1089_v30  ;;  %v1173_v57 = vadd.f32 %v1172_v33, %v1105_v48 }
 0x16b   :  { %v1194_v63 = vadd.f32 %v1193_v27, %v1121_v55  ;;  %v1215_v21 = vadd.f32 %v1214_v17, %v1137_v25  ;;  %v1091_v28 = vmul.f32 %v4315_v7, %v4315_v7  ;;  %v1107_v47 = vmul.f32 %v4316_v46, %v4316_v46 }
 0x16c   :  { %v1123_v40 = vmul.f32 %v4317_v42, %v4317_v42  ;;  %v1139_v34 = vmul.f32 %v4318_v9, %v4318_v9  ;;  %v1153_v49 = vadd.f32 %v1152_v19, %v1090_v61  ;;  %v1174_v37 = vadd.f32 %v1173_v57, %v1106_v32 }
 0x16d   :  { %v1195_v62 = vadd.f32 %v1194_v63, %v1122_v59  ;;  %v1216_v43 = vadd.f32 %v1215_v21, %v1138_v35 }
 0x16e   :  { %v1154_v26 = vadd.f32 %v1153_v49, %v1091_v28  ;;  %v1175_v33 = vadd.f32 %v1174_v37, %v1107_v47 }
 0x16f   :  { %v1196_v27 = vadd.f32 %v1195_v62, %v1123_v40  ;;  %v1217_v17 = vadd.f32 %v1216_v43, %v1139_v34 }
 0x170   :  { %v1155_v30 = vrot.slane %v1154_v26, 4  ;;  %v1176_v48 = vrot.slane %v1175_v33, 4 }
 0x171   :  { %v1197_v55 = vrot.slane %v1196_v27, 4  ;;  %v1218_v25 = vrot.slane %v1217_v17, 4 }
 0x172   :  { %v1156_v41 = vadd.f32 %v1155_v30, %v1154_v26  ;;  %v1177_v31 = vadd.f32 %v1176_v48, %v1175_v33 }
 0x173   :  { %v1198_v54 = vadd.f32 %v1197_v55, %v1196_v27  ;;  %v1219_v51 = vadd.f32 %v1218_v25, %v1217_v17 }
 0x174   :  { %v1157_v42 = vrot.slane %v1156_v41, 2  ;;  %v1178_v24 = vrot.slane %v1177_v31, 2 }
 0x175   :  { %v1199_v13 = vrot.slane %v1198_v54, 2  ;;  %v1220_v9 = vrot.slane %v1219_v51, 2 }
 0x176   :  { %v1158_v19 = vadd.f32 %v1157_v42, %v1156_v41  ;;  %v1179_v57 = vadd.f32 %v1178_v24, %v1177_v31  ;;  %v4319_v24 = vld [vmem:[#allocation30_spill] sm:$0xff]  ;;  %v4321_v42 = vld [vmem:[#allocation32_spill] sm:$0xff] }
 0x177   :  { %v1200_v63 = vadd.f32 %v1199_v13, %v1198_v54  ;;  %v1221_v21 = vadd.f32 %v1220_v9, %v1219_v51  ;;  %v4320_v54 = vld [vmem:[#allocation31_spill] sm:$0xff] }
 0x178   :  { %v1159_v49 = vrot.slane %v1158_v19, 1  ;;  %v1180_v37 = vrot.slane %v1179_v57, 1 }
 0x179   :  { %v1201_v62 = vrot.slane %v1200_v63, 1  ;;  %v1222_v61 = vrot.slane %v1221_v21, 1 }
 0x17a   :  { %v1160_v32 = vadd.f32 %v1159_v49, %v1158_v19  ;;  %v1181_v59 = vadd.f32 %v1180_v37, %v1179_v57  ;;  %v4322_v57 = vld [vmem:[#allocation36_spill] sm:$0xff] }
 0x17b   :  { %v1202_v43 = vadd.f32 %v1201_v62, %v1200_v63  ;;  %v1223_v35 = vadd.f32 %v1222_v61, %v1221_v21  ;;  %v4323_v63 = vld [vmem:[#allocation37_spill] sm:$0xff]  ;;  %v4324_v21 = vld [vmem:[#allocation38_spill] sm:$0xff] }
 0x17c   :  { %v1224_v28 = vmul.f32 0.0078125, %v1160_v32  ;;  %v1225_v47 = vmul.f32 0.0078125, %v1181_v59  ;;  %v4325_v61 = vld [vmem:[#allocation42_spill] sm:$0xff]  ;;  %v4326_v32 = vld [vmem:[#allocation43_spill] sm:$0xff]  ;;  %v4327_v59 = vld [vmem:[#allocation44_spill] sm:$0xff] }
 0x17d   :  { %v1226_v40 = vmul.f32 0.0078125, %v1202_v43  ;;  %v1227_v26 = vmul.f32 0.0078125, %v1223_v35 }
 0x17e   :  { %v1228_v34 = vadd.f32 %v1225_v47, %v1224_v28  ;;  %v4328_v47 = vld [vmem:[#allocation8_spill] sm:$0xff] }
 0x180   :  { %v1229_v33 = vadd.f32 %v1228_v34, %v1226_v40  ;;  %v4329_v40 = vld [vmem:[#allocation12_spill] sm:$0xff]  ;;  %v4330_v34 = vld [vmem:[#allocation6_spill] sm:$0xff] }
 0x182   :  { %v1230_v27 = vadd.f32 %v1229_v33, %v1227_v26  ;;  %v4331_v26 = vld [vmem:[#allocation10_spill] sm:$0xff]  ;;  %v4332_v33 = vld [vmem:[#allocation16_spill] sm:$0xff] }
 0x184   :  { %v1231_v17 = vmul.f32 0.25, %v1230_v27  ;;  %v4333_v27 = vld [vmem:[#allocation18_spill] sm:$0xff] }
 0x186   :  { %v1232_v41 = vadd.f32 1e-05, %v1231_v17 }
 0x188   :  { %2405 = vrsqrt.f32 %v1232_v41  ;;  %v4334_v41 = vld [vmem:[#allocation24_spill] sm:$0xff] }
 0x195   :  { %v3202_v13 = vpop.eup %2405 }
 0x196   :  { %v3206_v51 = vmul.f32 %v3202_v13, %v4319_v24  ;;  %v3210_v31 = vmul.f32 %v3202_v13, %v4320_v54  ;;  %v3214_v9 = vmul.f32 %v3202_v13, %v4321_v42  ;;  %v3218_v30 = vmul.f32 %v3202_v13, %v2832_v60  ;;  %v4335_v54 = vld [vmem:[#allocation20_spill] sm:$0xff] }
 0x197   :  { %v3222_v48 = vmul.f32 %v3202_v13, %v2836_v15  ;;  %v3226_v55 = vmul.f32 %v3202_v13, %v2840_v2  ;;  %v3230_v25 = vmul.f32 %v3202_v13, %v2844_v6  ;;  %v3234_v19 = vmul.f32 %v3202_v13, %v2848_v0 }
 0x198   :  { %v3238_v60 = vmul.f32 %v3202_v13, %v2852_v4  ;;  %v3242_v15 = vmul.f32 %v3202_v13, %v2856_v14  ;;  %v3246_v2 = vmul.f32 %v3202_v13, %v2860_v22  ;;  %v3250_v6 = vmul.f32 %v3202_v13, %v2864_v10 }
 0x199   :  { %v3254_v0 = vmul.f32 %v3202_v13, %v2868_v18  ;;  %v3258_v4 = vmul.f32 %v3202_v13, %v4307_v11  ;;  %v3262_v14 = vmul.f32 %v3202_v13, %v4311_v29  ;;  %v3266_v22 = vmul.f32 %v3202_v13, %v4315_v7 }
 0x19a   :  { %v3270_v10 = vmul.f32 %v3202_v13, %v4322_v57  ;;  %v3274_v18 = vmul.f32 %v3202_v13, %v4323_v63  ;;  %v3278_v11 = vmul.f32 %v3202_v13, %v4324_v21  ;;  %v3282_v29 = vmul.f32 %v3202_v13, %v2896_v38  ;;  %v4336_v57 = vld [vmem:[#allocation14_spill] sm:$0xff]  ;;  %v4337_v21 = vld [vmem:[#allocation28_spill] sm:$0xff] }
 0x19b   :  { %v3286_v7 = vmul.f32 %v3202_v13, %v2900_v44  ;;  %v3290_v49 = vmul.f32 %v3202_v13, %v2904_v3  ;;  %v3294_v37 = vmul.f32 %v3202_v13, %v2908_v8  ;;  %v3298_v62 = vmul.f32 %v3202_v13, %v2912_v1 }
 0x19c   :  { %v3302_v38 = vmul.f32 %v3202_v13, %v2916_v5  ;;  %v3306_v44 = vmul.f32 %v3202_v13, %v2920_v16  ;;  %v3310_v3 = vmul.f32 %v3202_v13, %v2924_v23  ;;  %v3314_v8 = vmul.f32 %v3202_v13, %v2928_v12 }
 0x19d   :  { %v3318_v1 = vmul.f32 %v3202_v13, %v2932_v20  ;;  %v3322_v5 = vmul.f32 %v3202_v13, %v4308_v36  ;;  %v3326_v16 = vmul.f32 %v3202_v13, %v4312_v53  ;;  %v3330_v23 = vmul.f32 %v3202_v13, %v4316_v46 }
 0x19e   :  { %v3334_v12 = vmul.f32 %v3202_v13, %v4325_v61  ;;  %v3338_v20 = vmul.f32 %v3202_v13, %v4326_v32  ;;  %v3342_v36 = vmul.f32 %v3202_v13, %v4327_v59  ;;  %v3346_v53 = vmul.f32 %v3202_v13, %v2960_v39  ;;  %v4338_v32 = vld [vmem:[#allocation3_spill] sm:$0xff] }
 0x19f   :  { %v3350_v46 = vmul.f32 %v3202_v13, %v2964_v45  ;;  %v3354_v43 = vmul.f32 %v3202_v13, %v2968_v52  ;;  %v3358_v35 = vmul.f32 %v3202_v13, %v2972_v58  ;;  %v3362_v28 = vmul.f32 %v3202_v13, %v2976_v50 }
 0x1a0   :  { %v3366_v39 = vmul.f32 %v3202_v13, %v2980_v56  ;;  %v3370_v45 = vmul.f32 %v3202_v13, %v4328_v47  ;;  %v3374_v52 = vmul.f32 %v3202_v13, %v4329_v40  ;;  %v3378_v58 = vmul.f32 %v3202_v13, %v4330_v34  ;;  %v4340_v47 = vld [vmem:[#allocation5_spill] sm:$0xff]  ;;  %v4342_v34 = vld [vmem:[#allocation22_spill] sm:$0xff] }
 0x1a1   :  { %v3382_v50 = vmul.f32 %v3202_v13, %v4331_v26  ;;  %v3386_v56 = vmul.f32 %v3202_v13, %v4332_v33  ;;  %v3390_v17 = vmul.f32 %v3202_v13, %v4333_v27  ;;  %v3394_v24 = vmul.f32 %v3202_v13, %v4334_v41  ;;  %v4344_v33 = vld [vmem:[#allocation26_spill] sm:$0xff] }
 0x1a2   :  { %v3398_v42 = vmul.f32 %v3202_v13, %v4335_v54  ;;  %v3402_v63 = vmul.f32 %v3202_v13, %v4336_v57  ;;  %v3406_v61 = vmul.f32 %v3202_v13, %v4337_v21  ;;  %v3410_v59 = vmul.f32 %v3202_v13, %v4338_v32  ;;  %v4346_v41 = vld [vmem:[#allocation2_spill] sm:$0xff]  ;;  %v4348_v21 = vld [vmem:[#allocation4_spill] sm:$0xff] }
 0x1a3   :  { %v3414_v40 = vmul.f32 %v3202_v13, %v4340_v47  ;;  %v3418_v26 = vmul.f32 %v3202_v13, %v4342_v34  ;;  %v3422_v27 = vmul.f32 %v3202_v13, %v4344_v33  ;;  %v3426_v54 = vmul.f32 %v3202_v13, %v4346_v41  ;;  %v3431_v57 = vld [vmem:[%s4144_s2] ss:$0 sm:$0xff]  ;;  %v4350_v47 = vld [vmem:[#allocation9_spill] sm:$0xff] }
 0x1a4   :  { %4339 = vst [vmem:[#allocation19_spill] sm:$0xff] %v3410_v59  ;;  %v3435_v32 = vmul.f32 %v3202_v13, %v4348_v21  ;;  %v3439_v34 = vmul.f32 %v3202_v13, %v4350_v47  ;;  %v4355_v59 = vld [vmem:[#allocation17_spill] sm:$0xff] }
 0x1a5   :  { %4341 = vst [vmem:[#allocation25_spill] sm:$0xff] %v3414_v40  ;;  %4343 = vst [vmem:[#allocation29_spill] sm:$0xff] %v3418_v26  ;;  %v4352_v26 = vld [vmem:[#allocation13_spill] sm:$0xff]  ;;  %v3455_v21 = vmul.f32 %v3202_v13, %v4355_v59  ;;  %v3475_v59 = vmul.f32 %v3431_v57, %v3214_v9  ;;  %v3495_v9 = vmul.f32 %v3431_v57, %v3234_v19 }
 0x1a6   :  { %4345 = vst [vmem:[#allocation23_spill] sm:$0xff] %v3422_v27  ;;  %4347 = vst [vmem:[#allocation27_spill] sm:$0xff] %v3426_v54  ;;  %v3443_v33 = vmul.f32 %v3202_v13, %v4352_v26  ;;  %v4353_v27 = vld [vmem:[#allocation7_spill] sm:$0xff]  ;;  %v3515_v19 = vmul.f32 %v3431_v57, %v3254_v0  ;;  %v3535_v0 = vmul.f32 %v3431_v57, %v3274_v18 }
 0x1a7   :  { %4349 = vst [vmem:[#allocation33_spill] sm:$0xff] %v3435_v32  ;;  %4351 = vst [vmem:[#allocation39_spill] sm:$0xff] %v3439_v34  ;;  %v3447_v41 = vmul.f32 %v3202_v13, %v4353_v27  ;;  %v4354_v54 = vld [vmem:[#allocation11_spill] sm:$0xff]  ;;  %v4356_v32 = vld [vmem:[#allocation21_spill] sm:$0xff]  ;;  %v3467_v27 = vmul.f32 %v3431_v57, %v3206_v51  ;;  %v3487_v51 = vmul.f32 %v3431_v57, %v3226_v55 }
 0x1a8   :  { %v3451_v40 = vmul.f32 %v3202_v13, %v4354_v54  ;;  %v3459_v47 = vmul.f32 %v3202_v13, %v4356_v32  ;;  %v4357_v34 = vld [vmem:[#allocation15_spill] sm:$0xff]  ;;  %v3471_v54 = vmul.f32 %v3431_v57, %v3210_v31  ;;  %v3479_v32 = vmul.f32 %v3431_v57, %v3218_v30 }
 0x1a9   :  { %v3463_v26 = vmul.f32 %v3202_v13, %v4357_v34  ;;  %v3483_v13 = vmul.f32 %v3431_v57, %v3222_v48  ;;  %v3491_v31 = vmul.f32 %v3431_v57, %v3230_v25  ;;  %v3499_v30 = vmul.f32 %v3431_v57, %v3238_v60 }
 0x1aa   :  { %v3503_v48 = vmul.f32 %v3431_v57, %v3242_v15  ;;  %v3507_v55 = vmul.f32 %v3431_v57, %v3246_v2  ;;  %v3511_v25 = vmul.f32 %v3431_v57, %v3250_v6  ;;  %v3519_v60 = vmul.f32 %v3431_v57, %v3258_v4 }
 0x1ab   :  { %v3523_v15 = vmul.f32 %v3431_v57, %v3262_v14  ;;  %v3527_v2 = vmul.f32 %v3431_v57, %v3266_v22  ;;  %v3531_v6 = vmul.f32 %v3431_v57, %v3270_v10  ;;  %v3539_v4 = vmul.f32 %v3431_v57, %v3278_v11  ;;  %v4362_v34 = vld [vmem:[#allocation19_spill] sm:$0xff] }
 0x1ac   :  { %v3543_v14 = vmul.f32 %v3431_v57, %v3282_v29  ;;  %v3547_v22 = vmul.f32 %v3431_v57, %v3286_v7  ;;  %v3551_v10 = vmul.f32 %v3431_v57, %v3290_v49  ;;  %v3555_v18 = vmul.f32 %v3431_v57, %v3294_v37 }
 0x1ad   :  { %v3559_v11 = vmul.f32 %v3431_v57, %v3298_v62  ;;  %v3563_v29 = vmul.f32 %v3431_v57, %v3302_v38  ;;  %v3567_v7 = vmul.f32 %v3431_v57, %v3306_v44  ;;  %v3571_v49 = vmul.f32 %v3431_v57, %v3310_v3 }
 0x1ae   :  { %v3575_v37 = vmul.f32 %v3431_v57, %v3314_v8  ;;  %v3579_v62 = vmul.f32 %v3431_v57, %v3318_v1  ;;  %v3583_v38 = vmul.f32 %v3431_v57, %v3322_v5  ;;  %v3587_v44 = vmul.f32 %v3431_v57, %v3326_v16 }
 0x1af   :  { %v3591_v3 = vmul.f32 %v3431_v57, %v3330_v23  ;;  %v3595_v8 = vmul.f32 %v3431_v57, %v3334_v12  ;;  %v3599_v1 = vmul.f32 %v3431_v57, %v3338_v20  ;;  %v3603_v5 = vmul.f32 %v3431_v57, %v3342_v36 }
 0x1b0   :  { %v3607_v16 = vmul.f32 %v3431_v57, %v3346_v53  ;;  %v3611_v23 = vmul.f32 %v3431_v57, %v3350_v46  ;;  %v3615_v12 = vmul.f32 %v3431_v57, %v3354_v43  ;;  %v3619_v20 = vmul.f32 %v3431_v57, %v3358_v35 }
 0x1b1   :  { %v3623_v36 = vmul.f32 %v3431_v57, %v3362_v28  ;;  %v3627_v53 = vmul.f32 %v3431_v57, %v3366_v39  ;;  %v3631_v46 = vmul.f32 %v3431_v57, %v3370_v45  ;;  %v3635_v43 = vmul.f32 %v3431_v57, %v3374_v52 }
 0x1b2   :  { %v3639_v35 = vmul.f32 %v3431_v57, %v3378_v58  ;;  %v3643_v28 = vmul.f32 %v3431_v57, %v3382_v50  ;;  %v3647_v39 = vmul.f32 %v3431_v57, %v3386_v56  ;;  %v3651_v45 = vmul.f32 %v3431_v57, %v3390_v17 }
 0x1b3   :  { %v3655_v52 = vmul.f32 %v3431_v57, %v3394_v24  ;;  %v3659_v58 = vmul.f32 %v3431_v57, %v3398_v42  ;;  %v3663_v50 = vmul.f32 %v3431_v57, %v3402_v63  ;;  %v3667_v56 = vmul.f32 %v3431_v57, %v3406_v61 }
 0x1b4   :  { %4358 = vst [vmem:[#allocation34_spill] sm:$0xff] %v3651_v45  ;;  %v3671_v17 = vmul.f32 %v3431_v57, %v4362_v34  ;;  %v4364_v45 = vld [vmem:[#allocation25_spill] sm:$0xff]  ;;  %v3692_v34 = vld [vmem:[%s4145_s3] ss:$0 sm:$0xff] }
 0x1b5   :  { %4359 = vst [vmem:[#allocation40_spill] sm:$0xff] %v3655_v52  ;;  %4360 = vst [vmem:[#allocation35_spill] sm:$0xff] %v3659_v58  ;;  %v3675_v24 = vmul.f32 %v3431_v57, %v4364_v45  ;;  %v4366_v52 = vld [vmem:[#allocation29_spill] sm:$0xff]  ;;  %v4367_v58 = vld [vmem:[#allocation23_spill] sm:$0xff] }
 0x1b6   :  { %4361 = vst [vmem:[#allocation41_spill] sm:$0xff] %v3663_v50  ;;  %4363 = vst [vmem:[#allocation30_spill] sm:$0xff] %v3671_v17  ;;  %v3679_v42 = vmul.f32 %v3431_v57, %v4366_v52  ;;  %v3683_v63 = vmul.f32 %v3431_v57, %v4367_v58  ;;  %v4368_v50 = vld [vmem:[#allocation27_spill] sm:$0xff]  ;;  %v4370_v17 = vld [vmem:[#allocation33_spill] sm:$0xff]  ;;  %v3704_v58 = vmul.f32 %v3431_v57, %v3443_v33 }
 0x1b7   :  { %4365 = vst [vmem:[#allocation31_spill] sm:$0xff] %v3675_v24  ;;  %v3687_v61 = vmul.f32 %v3431_v57, %v4368_v50  ;;  %v3696_v45 = vmul.f32 %v3431_v57, %v4370_v17  ;;  %v4371_v24 = vld [vmem:[#allocation39_spill] sm:$0xff]  ;;  %v3708_v50 = vmul.f32 %v3431_v57, %v3447_v41  ;;  %v3716_v17 = vmul.f32 %v3431_v57, %v3455_v21 }
 0x1b8   :  { %v3700_v52 = vmul.f32 %v3431_v57, %v4371_v24  ;;  %v3720_v24 = vmul.f32 %v3431_v57, %v3459_v47  ;;  %v3724_v33 = vmul.f32 %v3431_v57, %v3463_v26  ;;  %v3728_v41 = vadd.f32 %v3692_v34, %v3467_v27 }
 0x1b9   :  { %4369 = vst [vmem:[#allocation32_spill] sm:$0xff] %v3687_v61  ;;  %v3712_v61 = vmul.f32 %v3431_v57, %v3451_v40  ;;  %v3732_v40 = vadd.f32 %v3692_v34, %v3471_v54  ;;  %v3736_v21 = vadd.f32 %v3692_v34, %v3475_v59  ;;  %v3740_v47 = vadd.f32 %v3692_v34, %v3479_v32 }
 0x1ba   :  { %v3744_v57 = vadd.f32 %v3692_v34, %v3483_v13  ;;  %v3748_v26 = vadd.f32 %v3692_v34, %v3487_v51  ;;  %v3752_v27 = vadd.f32 %v3692_v34, %v3491_v31  ;;  %v3756_v54 = vadd.f32 %v3692_v34, %v3495_v9 }
 0x1bb   :  { %v3760_v59 = vadd.f32 %v3692_v34, %v3499_v30  ;;  %v3764_v32 = vadd.f32 %v3692_v34, %v3503_v48  ;;  %v3768_v13 = vadd.f32 %v3692_v34, %v3507_v55  ;;  %v3772_v51 = vadd.f32 %v3692_v34, %v3511_v25 }
 0x1bc   :  { %v3776_v31 = vadd.f32 %v3692_v34, %v3515_v19  ;;  %v3780_v9 = vadd.f32 %v3692_v34, %v3519_v60  ;;  %v3784_v30 = vadd.f32 %v3692_v34, %v3523_v15  ;;  %v3788_v48 = vadd.f32 %v3692_v34, %v3527_v2 }
 0x1bd   :  { %v3792_v55 = vadd.f32 %v3692_v34, %v3531_v6  ;;  %v3796_v25 = vadd.f32 %v3692_v34, %v3535_v0  ;;  %v3800_v19 = vadd.f32 %v3692_v34, %v3539_v4  ;;  %v3804_v60 = vadd.f32 %v3692_v34, %v3543_v14 }
 0x1be   :  { %v3808_v15 = vadd.f32 %v3692_v34, %v3547_v22  ;;  %v3812_v2 = vadd.f32 %v3692_v34, %v3551_v10  ;;  %v3816_v6 = vadd.f32 %v3692_v34, %v3555_v18  ;;  %v3820_v0 = vadd.f32 %v3692_v34, %v3559_v11 }
 0x1bf   :  { %v3824_v4 = vadd.f32 %v3692_v34, %v3563_v29  ;;  %v3828_v14 = vadd.f32 %v3692_v34, %v3567_v7  ;;  %v3832_v22 = vadd.f32 %v3692_v34, %v3571_v49  ;;  %v3836_v10 = vadd.f32 %v3692_v34, %v3575_v37 }
 0x1c0   :  { %v3840_v18 = vadd.f32 %v3692_v34, %v3579_v62  ;;  %v3844_v11 = vadd.f32 %v3692_v34, %v3583_v38  ;;  %v3848_v29 = vadd.f32 %v3692_v34, %v3587_v44  ;;  %v3852_v7 = vadd.f32 %v3692_v34, %v3591_v3 }
 0x1c1   :  { %v3856_v49 = vadd.f32 %v3692_v34, %v3595_v8  ;;  %v3860_v37 = vadd.f32 %v3692_v34, %v3599_v1  ;;  %v3864_v62 = vadd.f32 %v3692_v34, %v3603_v5  ;;  %v3868_v38 = vadd.f32 %v3692_v34, %v3607_v16 }
 0x1c2   :  { %v3872_v44 = vadd.f32 %v3692_v34, %v3611_v23  ;;  %v3876_v3 = vadd.f32 %v3692_v34, %v3615_v12  ;;  %v3880_v8 = vadd.f32 %v3692_v34, %v3619_v20  ;;  %v3884_v1 = vadd.f32 %v3692_v34, %v3623_v36 }
 0x1c3   :  { %v3888_v5 = vadd.f32 %v3692_v34, %v3627_v53  ;;  %v3892_v16 = vadd.f32 %v3692_v34, %v3631_v46  ;;  %v3896_v23 = vadd.f32 %v3692_v34, %v3635_v43  ;;  %v3900_v12 = vadd.f32 %v3692_v34, %v3639_v35  ;;  %v4376_v53 = vld [vmem:[#allocation34_spill] sm:$0xff] }
 0x1c4   :  { %v3904_v20 = vadd.f32 %v3692_v34, %v3643_v28  ;;  %v3908_v36 = vadd.f32 %v3692_v34, %v3647_v39  ;;  %v3912_v46 = vadd.f32 %v3692_v34, %v4376_v53  ;;  %v3928_v39 = vadd.f32 %v3692_v34, %v3667_v56 }
 0x1c5   :  { %4372 = vst [vmem:[#allocation36_spill] sm:$0xff] %v3892_v16  ;;  %4373 = vst [vmem:[#allocation37_spill] sm:$0xff] %v3896_v23  ;;  %v4378_v16 = vld [vmem:[#allocation40_spill] sm:$0xff]  ;;  %v4379_v23 = vld [vmem:[#allocation35_spill] sm:$0xff] }
 0x1c6   :  { %4374 = vst [vmem:[#allocation38_spill] sm:$0xff] %v3900_v12  ;;  %4375 = vst [vmem:[#allocation42_spill] sm:$0xff] %v3908_v36  ;;  %v3916_v43 = vadd.f32 %v3692_v34, %v4378_v16  ;;  %v3920_v35 = vadd.f32 %v3692_v34, %v4379_v23  ;;  %v4380_v12 = vld [vmem:[#allocation41_spill] sm:$0xff]  ;;  %v4382_v36 = vld [vmem:[#allocation30_spill] sm:$0xff]  ;;  %v3940_v23 = vadd.f32 %v3692_v34, %v3679_v42 }
 0x1c7   :  { %4377 = vst [vmem:[#allocation43_spill] sm:$0xff] %v3912_v46  ;;  %v3924_v28 = vadd.f32 %v3692_v34, %v4380_v12  ;;  %v3932_v53 = vadd.f32 %v3692_v34, %v4382_v36  ;;  %v4383_v46 = vld [vmem:[#allocation31_spill] sm:$0xff]  ;;  %v3944_v12 = vadd.f32 %v3692_v34, %v3683_v63  ;;  %v3952_v36 = vadd.f32 %v3692_v34, %v3696_v45 }
 0x1c8   :  { %v3936_v16 = vadd.f32 %v3692_v34, %v4383_v46  ;;  %v3956_v46 = vadd.f32 %v3692_v34, %v3700_v52  ;;  %v3960_v42 = vadd.f32 %v3692_v34, %v3704_v58  ;;  %v3964_v63 = vadd.f32 %v3692_v34, %v3708_v50 }
 0x1c9   :  { %4381 = vst [vmem:[#allocation44_spill] sm:$0xff] %v3924_v28  ;;  %v4384_v28 = vld [vmem:[#allocation32_spill] sm:$0xff]  ;;  %v3972_v45 = vadd.f32 %v3692_v34, %v3716_v17  ;;  %v3976_v52 = vadd.f32 %v3692_v34, %v3720_v24  ;;  %v3980_v58 = vadd.f32 %v3692_v34, %v3724_v33  ;;  %v1961_v50 = vpack.c.bf16 %v3732_v40, %v3728_v41 }
 0x1ca   :  { %v3948_v56 = vadd.f32 %v3692_v34, %v4384_v28  ;;  %4385 = vst [vmem:[#allocation8_spill] sm:$0xff] %v3964_v63  ;;  %v3968_v28 = vadd.f32 %v3692_v34, %v3712_v61  ;;  %v1966_v63 = vpack.c.bf16 %v3740_v47, %v3736_v21  ;;  %v1971_v61 = vpack.c.bf16 %v3748_v26, %v3744_v57 }
 0x1cb   :  { %4386 = vst [vmem:[#allocation12_spill] sm:$0xff] %v3976_v52  ;;  %v1976_v17 = vpack.c.bf16 %v3756_v54, %v3752_v27  ;;  %v1981_v24 = vpack.c.bf16 %v3764_v32, %v3760_v59  ;;  %v1986_v52 = vpack.c.bf16 %v3772_v51, %v3768_v13  ;;  %v1991_v34 = vpack.c.bf16 %v3780_v9, %v3776_v31 }
 0x1cc   :  { %v1996_v33 = vpack.c.bf16 %v3788_v48, %v3784_v30  ;;  %1962 = vst [vmem:[%s4146_s4] sm:$0xff] %v1961_v50   ;;  %2118 = vst [vmem:[%s4146_s4 + $0x8] sm:$0xff] %v1966_v63   ;;  %v2001_v41 = vpack.c.bf16 %v3796_v25, %v3792_v55  ;;  %v2006_v40 = vpack.c.bf16 %v3804_v60, %v3800_v19  ;;  %v4387_v31 = vld [vmem:[#allocation36_spill] sm:$0xff]  ;;  %v4388_v30 = vld [vmem:[#allocation37_spill] sm:$0xff] }
 0x1cd   :  { %2119 = vst [vmem:[%s4146_s4 + $0x10] sm:$0xff] %v1971_v61   ;;  %2120 = vst [vmem:[%s4146_s4 + $0x18] sm:$0xff] %v1976_v17   ;;  %v2011_v21 = vpack.c.bf16 %v3812_v2, %v3808_v15  ;;  %v2016_v47 = vpack.c.bf16 %v3820_v0, %v3816_v6  ;;  %v2021_v57 = vpack.c.bf16 %v3828_v14, %v3824_v4  ;;  %v4389_v48 = vld [vmem:[#allocation38_spill] sm:$0xff] }
 0x1ce   :  { %2121 = vst [vmem:[%s4146_s4 + $0x20] sm:$0xff] %v1981_v24   ;;  %2122 = vst [vmem:[%s4146_s4 + $0x28] sm:$0xff] %v1986_v52   ;;  %v2026_v26 = vpack.c.bf16 %v3836_v10, %v3832_v22  ;;  %v2031_v27 = vpack.c.bf16 %v3844_v11, %v3840_v18  ;;  %v2036_v54 = vpack.c.bf16 %v3852_v7, %v3848_v29  ;;  %v4390_v25 = vld [vmem:[#allocation42_spill] sm:$0xff]  ;;  %v4391_v60 = vld [vmem:[#allocation43_spill] sm:$0xff] }
 0x1cf   :  { %2123 = vst [vmem:[%s4146_s4 + $0x30] sm:$0xff] %v1991_v34   ;;  %2124 = vst [vmem:[%s4146_s4 + $0x38] sm:$0xff] %v1996_v33   ;;  %v2041_v59 = vpack.c.bf16 %v3860_v37, %v3856_v49  ;;  %v2046_v32 = vpack.c.bf16 %v3868_v38, %v3864_v62  ;;  %v2051_v13 = vpack.c.bf16 %v3876_v3, %v3872_v44 }
 0x1d0   :  { %2125 = vst [vmem:[%s4146_s4 + $0x40] sm:$0xff] %v2001_v41   ;;  %2126 = vst [vmem:[%s4146_s4 + $0x48] sm:$0xff] %v2006_v40   ;;  %v2056_v51 = vpack.c.bf16 %v3884_v1, %v3880_v8  ;;  %v2061_v9 = vpack.c.bf16 %v4387_v31, %v3888_v5  ;;  %v2066_v55 = vpack.c.bf16 %v4389_v48, %v4388_v30  ;;  %v4392_v2 = vld [vmem:[#allocation44_spill] sm:$0xff] }
 0x1d1   :  { %2127 = vst [vmem:[%s4146_s4 + $0x50] sm:$0xff] %v2011_v21   ;;  %2128 = vst [vmem:[%s4146_s4 + $0x58] sm:$0xff] %v2016_v47   ;;  %v2071_v19 = vpack.c.bf16 %v4390_v25, %v3904_v20  ;;  %v2076_v15 = vpack.c.bf16 %v3916_v43, %v4391_v60  ;;  %v2081_v6 = vpack.c.bf16 %v4392_v2, %v3920_v35  ;;  %v4393_v10 = vld [vmem:[#allocation8_spill] sm:$0xff] }
 0x1d2   :  { %2129 = vst [vmem:[%s4146_s4 + $0x60] sm:$0xff] %v2021_v57   ;;  %2130 = vst [vmem:[%s4146_s4 + $0x68] sm:$0xff] %v2026_v26   ;;  %v2086_v0 = vpack.c.bf16 %v3932_v53, %v3928_v39  ;;  %v2091_v4 = vpack.c.bf16 %v3940_v23, %v3936_v16  ;;  %v2096_v14 = vpack.c.bf16 %v3948_v56, %v3944_v12  ;;  %v4394_v29 = vld [vmem:[#allocation12_spill] sm:$0xff] }
 0x1d3   :  { %2131 = vst [vmem:[%s4146_s4 + $0x70] sm:$0xff] %v2031_v27   ;;  %2132 = vst [vmem:[%s4146_s4 + $0x78] sm:$0xff] %v2036_v54   ;;  %v2101_v22 = vpack.c.bf16 %v3956_v46, %v3952_v36  ;;  %v2106_v18 = vpack.c.bf16 %v4393_v10, %v3960_v42  ;;  %v2111_v11 = vpack.c.bf16 %v3972_v45, %v3968_v28 }
 0x1d4   :  { %2133 = vst [vmem:[%s4146_s4 + $0x80] sm:$0xff] %v2041_v59   ;;  %2134 = vst [vmem:[%s4146_s4 + $0x88] sm:$0xff] %v2046_v32   ;;  %v2116_v7 = vpack.c.bf16 %v3980_v58, %v4394_v29 }
 0x1d5   :  { %2135 = vst [vmem:[%s4146_s4 + $0x90] sm:$0xff] %v2051_v13   ;;  %2136 = vst [vmem:[%s4146_s4 + $0x98] sm:$0xff] %v2056_v51  }
 0x1d6   :  { %2137 = vst [vmem:[%s4146_s4 + $0xa0] sm:$0xff] %v2061_v9   ;;  %2138 = vst [vmem:[%s4146_s4 + $0xa8] sm:$0xff] %v2066_v55  }
 0x1d7   :  { %2139 = vst [vmem:[%s4146_s4 + $0xb0] sm:$0xff] %v2071_v19   ;;  %2140 = vst [vmem:[%s4146_s4 + $0xb8] sm:$0xff] %v2076_v15  }
 0x1d8   :  { %2141 = vst [vmem:[%s4146_s4 + $0xc0] sm:$0xff] %v2081_v6   ;;  %2142 = vst [vmem:[%s4146_s4 + $0xc8] sm:$0xff] %v2086_v0  }
 0x1d9   :  { %2143 = vst [vmem:[%s4146_s4 + $0xd0] sm:$0xff] %v2091_v4   ;;  %2144 = vst [vmem:[%s4146_s4 + $0xd8] sm:$0xff] %v2096_v14  }
 0x1da   :  { %2145 = vst [vmem:[%s4146_s4 + $0xe0] sm:$0xff] %v2101_v22   ;;  %2146 = vst [vmem:[%s4146_s4 + $0xe8] sm:$0xff] %v2106_v18  }
 0x1db   :  { %2147 = vst [vmem:[%s4146_s4 + $0xf0] sm:$0xff] %v2111_v11   ;;  %2148 = vst [vmem:[%s4146_s4 + $0xf8] sm:$0xff] %v2116_v7  }

// kernel: _lambda_.19
= control target key start
LH: loop header
LB: loop body
LE: loop exit
PB: predicated region body
PF: predicated region fallthrough
CT: control target
= control target key end

     0   :  { %s1586_s12 = smov 0   ;;  %s1588_s13 = smov 0   ;;  %s1828_s0 = inlined_call_operand.vmem [shape: bf16[4,512,64], index: 0, kind: input, shape index: {}]   ;;  %s1829_s1 = inlined_call_operand.vmem [shape: bf16[4,64,128], index: 1, kind: input, shape index: {}]   ;;  %s1830_s2 = inlined_call_operand.vmem [shape: f32[1,1,128], index: 2, kind: input, shape index: {}]   ;;  %s1831_s3 = inlined_call_operand.vmem [shape: f32[4,512,128], index: 3, kind: output, shape index: {}]  }
   0x1   :  { %s1590_s14 = smov 0  }
   0x2 LB: > { %s32_s15 = sadd.s32 1, %s1560_s13  ;;  %p1157_p0 = scmp.ge.s32.totalorder %s1564_s14, 1  ;;  %s1564_s14 = sphi %s1590_s14, %s13_s14   ;;  %s1560_s13 = sphi %s1588_s13, %s1833_s13   ;;  %s1556_s12 = sphi %s1586_s12, %s1832_s12  }
   0x3   : > { %p34_p1 = scmp.ge.s32.totalorder %s32_s15, 4  ;;  %p187_p2 = scmp.lt.s32.totalorder %s1564_s14, 5 }
   0x5   : > { %s1835_s15 = smov (%p34_p1, %s32_s15), 0  ;;  %p188_p3 = pnand %p1157_p0, %p187_p2 }
   0x6   : > { %p232_p4 = scmp.lt.s32.totalorder (!%p188_p3), %s1556_s12, 3 }
   0x7   : > { %191 = sbr.rel (%p188_p3) target bundleno = 305 (0x131), region = 32 }
   0xc   : > { %s1837_s12 = smov (!%p232_p4, %s1556_s12), 3  ;;  %vm528_vm0 = vcmask 523264   ;;  %v1683_v36 = vld [vmem:[%s1830_s2] ss:$0 sm:$0xff] }
   0xd   : > { %s1235_s16 = sshll.u32 %s1837_s12, 8  ;;  %s1236_s17 = sshll.u32 %s1837_s12, 5 }
   0xe   : > { %s252_s20 = scalar_lea.vmem %s1829_s1, %s1236_s17  ;;  %s1614_s23 = scalar_lea.vmem %s1828_s0, %s1235_s16 }
   0xf   : > { %v1378_v0 = vld [vmem:[%s252_s20 + $0x18] sm:$0xff]   ;;  %v1379_v1 = vld [vmem:[%s252_s20 + $0x10] sm:$0xff]   ;;  %v1380_v2 = vld [vmem:[%s252_s20 + $0x8] sm:$0xff]   ;;  %s1237_s26 = sshll.u32 %s1837_s12, 9 }
  0x10   : > { %1274 = vmatprep.subr.bf16.mxu0 %v1378_v0  ;;  %1346 = vmatprep.subr.bf16.mxu1 %v1378_v0  ;;  %v1382_v3 = vld [vmem:[%s1614_s23] sm:$0xff]   ;;  %v1384_v6 = vld [vmem:[%s1614_s23 + $0x8] sm:$0xff]   ;;  %v1386_v8 = vld [vmem:[%s1614_s23 + $0x10] sm:$0xff]   ;;  %s1703_s29 = scalar_lea.vmem %s1831_s3, %s1237_s26 }
  0x11   : > { %1275 = vmatpush3.bf16.msra.mxu0 %v1378_v0  ;;  %1350 = vmatpush3.bf16.msra.mxu1 %v1378_v0  ;;  %v1383_v4 = vld [vmem:[%s1614_s23 + $0x80] sm:$0xff]   ;;  %v1385_v7 = vld [vmem:[%s1614_s23 + $0x88] sm:$0xff]   ;;  %v1387_v9 = vld [vmem:[%s1614_s23 + $0x90] sm:$0xff]  }
  0x12   : > { %1276 = vmatprep.subr.bf16.mxu0 %v1379_v1  ;;  %1347 = vmatprep.subr.bf16.mxu1 %v1379_v1  ;;  %v1381_v5 = vld [vmem:[%s252_s20] sm:$0xff]   ;;  %v1388_v10 = vld [vmem:[%s1614_s23 + $0x18] sm:$0xff]   ;;  %v1392_v14 = vld [vmem:[%s1614_s23 + $0x28] sm:$0xff]  }
  0x13   : > { %1282 = vmatprep.mubr.msk.bf16.mxu0 %vm528_vm0, %v1382_v3  ;;  %1314 = vmatprep.mubr.msk.bf16.mxu1 %vm528_vm0, %v1383_v4  ;;  %v1389_v11 = vld [vmem:[%s1614_s23 + $0x98] sm:$0xff]   ;;  %v1390_v12 = vld [vmem:[%s1614_s23 + $0x20] sm:$0xff]   ;;  %v1393_v15 = vld [vmem:[%s1614_s23 + $0xa8] sm:$0xff]  }
  0x14   : > { %v1391_v13 = vld [vmem:[%s1614_s23 + $0xa0] sm:$0xff]   ;;  %v1394_v16 = vld [vmem:[%s1614_s23 + $0x30] sm:$0xff]   ;;  %v1396_v18 = vld [vmem:[%s1614_s23 + $0x38] sm:$0xff]  }
  0x15   : > { %1277 = vmatpush3.bf16.msra.mxu0 %v1379_v1  ;;  %1351 = vmatpush3.bf16.msra.mxu1 %v1379_v1  ;;  %v1395_v17 = vld [vmem:[%s1614_s23 + $0xb0] sm:$0xff]   ;;  %v1397_v19 = vld [vmem:[%s1614_s23 + $0xb8] sm:$0xff]   ;;  %v1398_v20 = vld [vmem:[%s1614_s23 + $0x40] sm:$0xff]  }
  0x16   : > { %1278 = vmatprep.subr.bf16.mxu0 %v1380_v2  ;;  %1348 = vmatprep.subr.bf16.mxu1 %v1380_v2  ;;  %v1399_v21 = vld [vmem:[%s1614_s23 + $0xc0] sm:$0xff]   ;;  %v1400_v22 = vld [vmem:[%s1614_s23 + $0x48] sm:$0xff]   ;;  %v1402_v24 = vld [vmem:[%s1614_s23 + $0x50] sm:$0xff]  }
  0x17   : > { %v1401_v23 = vld [vmem:[%s1614_s23 + $0xc8] sm:$0xff]   ;;  %v1403_v25 = vld [vmem:[%s1614_s23 + $0xd0] sm:$0xff]   ;;  %v1404_v26 = vld [vmem:[%s1614_s23 + $0x58] sm:$0xff]  }
  0x18   : > { %v1405_v27 = vld [vmem:[%s1614_s23 + $0xd8] sm:$0xff]   ;;  %v1406_v28 = vld [vmem:[%s1614_s23 + $0x60] sm:$0xff]   ;;  %v1408_v30 = vld [vmem:[%s1614_s23 + $0x68] sm:$0xff]  }
  0x19   : > { %1279 = vmatpush3.bf16.msra.mxu0 %v1380_v2  ;;  %1352 = vmatpush3.bf16.msra.mxu1 %v1380_v2  ;;  %v1407_v29 = vld [vmem:[%s1614_s23 + $0xe0] sm:$0xff]   ;;  %v1409_v31 = vld [vmem:[%s1614_s23 + $0xe8] sm:$0xff]   ;;  %v1410_v32 = vld [vmem:[%s1614_s23 + $0x70] sm:$0xff]  }
  0x1a   : > { %1280 = vmatprep.subr.bf16.mxu0 %v1381_v5  ;;  %1349 = vmatprep.subr.bf16.mxu1 %v1381_v5  ;;  %v1411_v33 = vld [vmem:[%s1614_s23 + $0xf0] sm:$0xff]   ;;  %v1412_v34 = vld [vmem:[%s1614_s23 + $0x78] sm:$0xff]  }
  0x1b   : > { %v1413_v35 = vld [vmem:[%s1614_s23 + $0xf8] sm:$0xff]  }
  0x1d   : > { %1281 = vmatpush3.bf16.msra.mxu0 %v1381_v5  ;;  %1353 = vmatpush3.bf16.msra.mxu1 %v1381_v5 }
  0x20   : > { %1283 = vmatmul.mubr.msk.bf16.vlgmr.msra.gmra.mxu0 %vm528_vm0, %v1384_v6  ;;  %1315 = vmatmul.mubr.msk.bf16.vlgmr.msra.gmra.mxu1 %vm528_vm0, %v1385_v7 }
  0x21   : > { %1286 = vmatprep.mubr.msk.bf16.mxu0 %vm528_vm0, %v1386_v8  ;;  %1318 = vmatprep.mubr.msk.bf16.mxu1 %vm528_vm0, %v1387_v9 }
  0x28   : > { %1287 = vmatmul.mubr.msk.bf16.gmra.mxu0 %vm528_vm0, %v1388_v10  ;;  %1319 = vmatmul.mubr.msk.bf16.gmra.mxu1 %vm528_vm0, %v1389_v11 }
  0x29   : > { %1290 = vmatprep.mubr.msk.bf16.mxu0 %vm528_vm0, %v1390_v12  ;;  %1322 = vmatprep.mubr.msk.bf16.mxu1 %vm528_vm0, %v1391_v13 }
  0x30   : > { %1291 = vmatmul.mubr.msk.bf16.gmra.mxu0 %vm528_vm0, %v1392_v14  ;;  %1323 = vmatmul.mubr.msk.bf16.gmra.mxu1 %vm528_vm0, %v1393_v15 }
  0x31   : > { %1294 = vmatprep.mubr.msk.bf16.mxu0 %vm528_vm0, %v1394_v16  ;;  %1326 = vmatprep.mubr.msk.bf16.mxu1 %vm528_vm0, %v1395_v17 }
  0x38   : > { %1295 = vmatmul.mubr.msk.bf16.gmra.mxu0 %vm528_vm0, %v1396_v18  ;;  %1327 = vmatmul.mubr.msk.bf16.gmra.mxu1 %vm528_vm0, %v1397_v19 }
  0x39   : > { %1298 = vmatprep.mubr.msk.bf16.mxu0 %vm528_vm0, %v1398_v20  ;;  %1330 = vmatprep.mubr.msk.bf16.mxu1 %vm528_vm0, %v1399_v21 }
  0x40   : > { %1299 = vmatmul.mubr.msk.bf16.gmra.mxu0 %vm528_vm0, %v1400_v22  ;;  %1331 = vmatmul.mubr.msk.bf16.gmra.mxu1 %vm528_vm0, %v1401_v23 }
  0x41   : > { %1302 = vmatprep.mubr.msk.bf16.mxu0 %vm528_vm0, %v1402_v24  ;;  %1334 = vmatprep.mubr.msk.bf16.mxu1 %vm528_vm0, %v1403_v25 }
  0x48   : > { %1303 = vmatmul.mubr.msk.bf16.gmra.mxu0 %vm528_vm0, %v1404_v26  ;;  %1335 = vmatmul.mubr.msk.bf16.gmra.mxu1 %vm528_vm0, %v1405_v27 }
  0x49   : > { %1306 = vmatprep.mubr.msk.bf16.mxu0 %vm528_vm0, %v1406_v28  ;;  %1338 = vmatprep.mubr.msk.bf16.mxu1 %vm528_vm0, %v1407_v29 }
  0x50   : > { %1307 = vmatmul.mubr.msk.bf16.gmra.mxu0 %vm528_vm0, %v1408_v30  ;;  %1339 = vmatmul.mubr.msk.bf16.gmra.mxu1 %vm528_vm0, %v1409_v31 }
  0x51   : > { %1310 = vmatprep.mubr.msk.bf16.mxu0 %vm528_vm0, %v1410_v32  ;;  %1342 = vmatprep.mubr.msk.bf16.mxu1 %vm528_vm0, %v1411_v33 }
  0x58   : > { %1311 = vmatmul.mubr.msk.bf16.gmra.mxu0 %vm528_vm0, %v1412_v34  ;;  %1343 = vmatmul.mubr.msk.bf16.gmra.mxu1 %vm528_vm0, %v1413_v35 }
  0xe0   : > { %v1284_v37 = vpop.f32.mrf.mxu0  ;;  %v1316_v38 = vpop.f32.mrf.mxu1 }
  0xe1   : > { %v668_v39 = vadd.f32 %v1284_v37, %v1683_v36  ;;  %v796_v40 = vadd.f32 %v1316_v38, %v1683_v36 }
  0xe2   : > { %v659_v41 = vpop.f32.mrf.mxu0  ;;  %v787_v42 = vpop.f32.mrf.mxu1 }
  0xe3   : > { %1414 = vtanh.f32 %v668_v39  ;;  %v660_v43 = vadd.f32 %v1683_v36, %v659_v41  ;;  %v788_v44 = vadd.f32 %v1683_v36, %v787_v42 }
  0xe4   : > { %1416 = vtanh.f32 %v796_v40  ;;  %v1285_v45 = vpop.f32.mrf.mxu0  ;;  %v1317_v46 = vpop.f32.mrf.mxu1 }
  0xe5   : > { %1418 = vtanh.f32 %v660_v43  ;;  %v671_v47 = vadd.f32 %v1285_v45, %v1683_v36  ;;  %v799_v48 = vadd.f32 %v1317_v46, %v1683_v36 }
  0xe6   : > { %1420 = vtanh.f32 %v788_v44  ;;  %v662_v49 = vpop.f32.mrf.mxu0  ;;  %v790_v50 = vpop.f32.mrf.mxu1 }
  0xe7   : > { %1422 = vtanh.f32 %v671_v47  ;;  %v663_v51 = vadd.f32 %v1683_v36, %v662_v49  ;;  %v791_v52 = vadd.f32 %v1683_v36, %v790_v50 }
  0xe8   : > { %1424 = vtanh.f32 %v799_v48  ;;  %v1288_v53 = vpop.f32.mrf.mxu0  ;;  %v1320_v54 = vpop.f32.mrf.mxu1 }
  0xe9   : > { %1426 = vtanh.f32 %v663_v51  ;;  %v684_v55 = vadd.f32 %v1288_v53, %v1683_v36  ;;  %v812_v56 = vadd.f32 %v1320_v54, %v1683_v36 }
  0xea   : > { %1428 = vtanh.f32 %v791_v52  ;;  %v675_v57 = vpop.f32.mrf.mxu0  ;;  %v803_v58 = vpop.f32.mrf.mxu1 }
  0xeb   : > { %1430 = vtanh.f32 %v684_v55  ;;  %v676_v59 = vadd.f32 %v1683_v36, %v675_v57  ;;  %v804_v60 = vadd.f32 %v1683_v36, %v803_v58 }
  0xec   : > { %1432 = vtanh.f32 %v812_v56  ;;  %v1289_v61 = vpop.f32.mrf.mxu0  ;;  %v1321_v62 = vpop.f32.mrf.mxu1 }
  0xed   : > { %1434 = vtanh.f32 %v676_v59  ;;  %v687_v63 = vadd.f32 %v1289_v61, %v1683_v36  ;;  %v815_v0 = vadd.f32 %v1321_v62, %v1683_v36 }
  0xee   : > { %1436 = vtanh.f32 %v804_v60  ;;  %v678_v1 = vpop.f32.mrf.mxu0  ;;  %v806_v2 = vpop.f32.mrf.mxu1 }
  0xef   : > { %1438 = vtanh.f32 %v687_v63  ;;  %v679_v3 = vadd.f32 %v1683_v36, %v678_v1  ;;  %v807_v4 = vadd.f32 %v1683_v36, %v806_v2 }
  0xf0   : > { %v1415_v5 = vpop.eup %1414  ;;  %1440 = vtanh.f32 %v815_v0  ;;  %v1292_v6 = vpop.f32.mrf.mxu0 }
  0xf1   : > { %v1324_v7 = vpop.f32.mrf.mxu1  ;;  %v1417_v8 = vpop.eup %1416  ;;  %980 = vst [vmem:[%s1703_s29 + $0x10] sm:$0xff] %v1415_v5  ;;  %1442 = vtanh.f32 %v679_v3  ;;  %v700_v9 = vadd.f32 %v1292_v6, %v1683_v36 }
  0xf2   : > { %v828_v10 = vadd.f32 %v1324_v7, %v1683_v36  ;;  %v1419_v11 = vpop.eup %1418  ;;  %1012 = vst [vmem:[%s1703_s29 + $0x110] sm:$0xff] %v1417_v8  ;;  %1444 = vtanh.f32 %v807_v4  ;;  %v691_v12 = vpop.f32.mrf.mxu0 }
  0xf3   : > { %v819_v13 = vpop.f32.mrf.mxu1  ;;  %v1421_v14 = vpop.eup %1420  ;;  %978 = vst [vmem:[%s1703_s29] sm:$0xff] %v1419_v11  ;;  %1446 = vtanh.f32 %v700_v9  ;;  %v692_v15 = vadd.f32 %v1683_v36, %v691_v12 }
  0xf4   : > { %v820_v16 = vadd.f32 %v1683_v36, %v819_v13  ;;  %v1423_v17 = vpop.eup %1422  ;;  %1010 = vst [vmem:[%s1703_s29 + $0x100] sm:$0xff] %v1421_v14  ;;  %1448 = vtanh.f32 %v828_v10  ;;  %v1293_v18 = vpop.f32.mrf.mxu0 }
  0xf5   : > { %v1325_v19 = vpop.f32.mrf.mxu1  ;;  %v1425_v20 = vpop.eup %1424  ;;  %981 = vst [vmem:[%s1703_s29 + $0x18] sm:$0xff] %v1423_v17  ;;  %1450 = vtanh.f32 %v692_v15  ;;  %v703_v21 = vadd.f32 %v1293_v18, %v1683_v36 }
  0xf6   : > { %v831_v22 = vadd.f32 %v1325_v19, %v1683_v36  ;;  %v1427_v23 = vpop.eup %1426  ;;  %1013 = vst [vmem:[%s1703_s29 + $0x118] sm:$0xff] %v1425_v20  ;;  %1452 = vtanh.f32 %v820_v16  ;;  %v694_v24 = vpop.f32.mrf.mxu0 }
  0xf7   : > { %v822_v25 = vpop.f32.mrf.mxu1  ;;  %v1429_v26 = vpop.eup %1428  ;;  %979 = vst [vmem:[%s1703_s29 + $0x8] sm:$0xff] %v1427_v23  ;;  %1454 = vtanh.f32 %v703_v21  ;;  %v695_v27 = vadd.f32 %v1683_v36, %v694_v24 }
  0xf8   : > { %v823_v28 = vadd.f32 %v1683_v36, %v822_v25  ;;  %v1431_v29 = vpop.eup %1430  ;;  %1011 = vst [vmem:[%s1703_s29 + $0x108] sm:$0xff] %v1429_v26  ;;  %1456 = vtanh.f32 %v831_v22  ;;  %v1296_v30 = vpop.f32.mrf.mxu0 }
  0xf9   : > { %v1328_v31 = vpop.f32.mrf.mxu1  ;;  %v1433_v32 = vpop.eup %1432  ;;  %984 = vst [vmem:[%s1703_s29 + $0x30] sm:$0xff] %v1431_v29  ;;  %1458 = vtanh.f32 %v695_v27  ;;  %v716_v33 = vadd.f32 %v1296_v30, %v1683_v36 }
  0xfa   : > { %v844_v34 = vadd.f32 %v1328_v31, %v1683_v36  ;;  %v1435_v35 = vpop.eup %1434  ;;  %1016 = vst [vmem:[%s1703_s29 + $0x130] sm:$0xff] %v1433_v32  ;;  %1460 = vtanh.f32 %v823_v28  ;;  %v707_v37 = vpop.f32.mrf.mxu0 }
  0xfb   : > { %v835_v38 = vpop.f32.mrf.mxu1  ;;  %v1437_v39 = vpop.eup %1436  ;;  %982 = vst [vmem:[%s1703_s29 + $0x20] sm:$0xff] %v1435_v35  ;;  %1462 = vtanh.f32 %v716_v33  ;;  %v708_v40 = vadd.f32 %v1683_v36, %v707_v37 }
  0xfc   : > { %v836_v41 = vadd.f32 %v1683_v36, %v835_v38  ;;  %v1439_v42 = vpop.eup %1438  ;;  %1014 = vst [vmem:[%s1703_s29 + $0x120] sm:$0xff] %v1437_v39  ;;  %1464 = vtanh.f32 %v844_v34  ;;  %v1297_v43 = vpop.f32.mrf.mxu0 }
  0xfd   : > { %v1329_v44 = vpop.f32.mrf.mxu1  ;;  %v1441_v45 = vpop.eup %1440  ;;  %985 = vst [vmem:[%s1703_s29 + $0x38] sm:$0xff] %v1439_v42  ;;  %1466 = vtanh.f32 %v708_v40  ;;  %v719_v46 = vadd.f32 %v1297_v43, %v1683_v36 }
  0xfe   : > { %v847_v47 = vadd.f32 %v1329_v44, %v1683_v36  ;;  %v1443_v48 = vpop.eup %1442  ;;  %1017 = vst [vmem:[%s1703_s29 + $0x138] sm:$0xff] %v1441_v45  ;;  %1468 = vtanh.f32 %v836_v41  ;;  %v710_v49 = vpop.f32.mrf.mxu0 }
  0xff   : > { %v838_v50 = vpop.f32.mrf.mxu1  ;;  %v1445_v51 = vpop.eup %1444  ;;  %983 = vst [vmem:[%s1703_s29 + $0x28] sm:$0xff] %v1443_v48  ;;  %1470 = vtanh.f32 %v719_v46  ;;  %v711_v52 = vadd.f32 %v1683_v36, %v710_v49 }
 0x100   : > { %v839_v53 = vadd.f32 %v1683_v36, %v838_v50  ;;  %v1447_v54 = vpop.eup %1446  ;;  %1015 = vst [vmem:[%s1703_s29 + $0x128] sm:$0xff] %v1445_v51  ;;  %1472 = vtanh.f32 %v847_v47  ;;  %v1300_v55 = vpop.f32.mrf.mxu0 }
 0x101   : > { %v1332_v56 = vpop.f32.mrf.mxu1  ;;  %v1449_v57 = vpop.eup %1448  ;;  %988 = vst [vmem:[%s1703_s29 + $0x50] sm:$0xff] %v1447_v54  ;;  %1474 = vtanh.f32 %v711_v52  ;;  %v732_v58 = vadd.f32 %v1300_v55, %v1683_v36 }
 0x102   : > { %v860_v59 = vadd.f32 %v1332_v56, %v1683_v36  ;;  %v1451_v60 = vpop.eup %1450  ;;  %1020 = vst [vmem:[%s1703_s29 + $0x150] sm:$0xff] %v1449_v57  ;;  %1476 = vtanh.f32 %v839_v53  ;;  %v723_v61 = vpop.f32.mrf.mxu0 }
 0x103   : > { %v851_v62 = vpop.f32.mrf.mxu1  ;;  %v1453_v63 = vpop.eup %1452  ;;  %986 = vst [vmem:[%s1703_s29 + $0x40] sm:$0xff] %v1451_v60  ;;  %1478 = vtanh.f32 %v732_v58  ;;  %v724_v0 = vadd.f32 %v1683_v36, %v723_v61 }
 0x104   : > { %v852_v1 = vadd.f32 %v1683_v36, %v851_v62  ;;  %v1455_v2 = vpop.eup %1454  ;;  %1018 = vst [vmem:[%s1703_s29 + $0x140] sm:$0xff] %v1453_v63  ;;  %1480 = vtanh.f32 %v860_v59  ;;  %v1301_v3 = vpop.f32.mrf.mxu0 }
 0x105   : > { %v1333_v4 = vpop.f32.mrf.mxu1  ;;  %v1457_v5 = vpop.eup %1456  ;;  %989 = vst [vmem:[%s1703_s29 + $0x58] sm:$0xff] %v1455_v2  ;;  %1482 = vtanh.f32 %v724_v0  ;;  %v735_v6 = vadd.f32 %v1301_v3, %v1683_v36 }
 0x106   : > { %v863_v7 = vadd.f32 %v1333_v4, %v1683_v36  ;;  %v1459_v8 = vpop.eup %1458  ;;  %1021 = vst [vmem:[%s1703_s29 + $0x158] sm:$0xff] %v1457_v5  ;;  %1484 = vtanh.f32 %v852_v1  ;;  %v726_v9 = vpop.f32.mrf.mxu0 }
 0x107   : > { %v854_v10 = vpop.f32.mrf.mxu1  ;;  %v1461_v11 = vpop.eup %1460  ;;  %987 = vst [vmem:[%s1703_s29 + $0x48] sm:$0xff] %v1459_v8  ;;  %1486 = vtanh.f32 %v735_v6  ;;  %v727_v12 = vadd.f32 %v1683_v36, %v726_v9 }
 0x108   : > { %v855_v13 = vadd.f32 %v1683_v36, %v854_v10  ;;  %v1463_v14 = vpop.eup %1462  ;;  %1019 = vst [vmem:[%s1703_s29 + $0x148] sm:$0xff] %v1461_v11  ;;  %1488 = vtanh.f32 %v863_v7  ;;  %v1304_v15 = vpop.f32.mrf.mxu0 }
 0x109   : > { %v1336_v16 = vpop.f32.mrf.mxu1  ;;  %v1465_v17 = vpop.eup %1464  ;;  %992 = vst [vmem:[%s1703_s29 + $0x70] sm:$0xff] %v1463_v14  ;;  %1490 = vtanh.f32 %v727_v12  ;;  %v748_v18 = vadd.f32 %v1304_v15, %v1683_v36 }
 0x10a   : > { %v876_v19 = vadd.f32 %v1336_v16, %v1683_v36  ;;  %v1467_v20 = vpop.eup %1466  ;;  %1024 = vst [vmem:[%s1703_s29 + $0x170] sm:$0xff] %v1465_v17  ;;  %1492 = vtanh.f32 %v855_v13  ;;  %v739_v21 = vpop.f32.mrf.mxu0 }
 0x10b   : > { %v867_v22 = vpop.f32.mrf.mxu1  ;;  %v1469_v23 = vpop.eup %1468  ;;  %990 = vst [vmem:[%s1703_s29 + $0x60] sm:$0xff] %v1467_v20  ;;  %1494 = vtanh.f32 %v748_v18  ;;  %v740_v24 = vadd.f32 %v1683_v36, %v739_v21 }
 0x10c   : > { %v868_v25 = vadd.f32 %v1683_v36, %v867_v22  ;;  %v1471_v26 = vpop.eup %1470  ;;  %1022 = vst [vmem:[%s1703_s29 + $0x160] sm:$0xff] %v1469_v23  ;;  %1496 = vtanh.f32 %v876_v19  ;;  %v1305_v27 = vpop.f32.mrf.mxu0 }
 0x10d   : > { %v1337_v28 = vpop.f32.mrf.mxu1  ;;  %v1473_v29 = vpop.eup %1472  ;;  %993 = vst [vmem:[%s1703_s29 + $0x78] sm:$0xff] %v1471_v26  ;;  %1498 = vtanh.f32 %v740_v24  ;;  %v751_v30 = vadd.f32 %v1305_v27, %v1683_v36 }
 0x10e   : > { %v879_v31 = vadd.f32 %v1337_v28, %v1683_v36  ;;  %v1475_v32 = vpop.eup %1474  ;;  %1025 = vst [vmem:[%s1703_s29 + $0x178] sm:$0xff] %v1473_v29  ;;  %1500 = vtanh.f32 %v868_v25  ;;  %v742_v33 = vpop.f32.mrf.mxu0 }
 0x10f   : > { %v870_v34 = vpop.f32.mrf.mxu1  ;;  %v1477_v35 = vpop.eup %1476  ;;  %991 = vst [vmem:[%s1703_s29 + $0x68] sm:$0xff] %v1475_v32  ;;  %1502 = vtanh.f32 %v751_v30  ;;  %v743_v37 = vadd.f32 %v1683_v36, %v742_v33 }
 0x110   : > { %v871_v38 = vadd.f32 %v1683_v36, %v870_v34  ;;  %v1479_v39 = vpop.eup %1478  ;;  %1023 = vst [vmem:[%s1703_s29 + $0x168] sm:$0xff] %v1477_v35  ;;  %1504 = vtanh.f32 %v879_v31  ;;  %v1308_v40 = vpop.f32.mrf.mxu0 }
 0x111   : > { %v1340_v41 = vpop.f32.mrf.mxu1  ;;  %v1481_v42 = vpop.eup %1480  ;;  %996 = vst [vmem:[%s1703_s29 + $0x90] sm:$0xff] %v1479_v39  ;;  %1506 = vtanh.f32 %v743_v37  ;;  %v764_v43 = vadd.f32 %v1308_v40, %v1683_v36 }
 0x112   : > { %v892_v44 = vadd.f32 %v1340_v41, %v1683_v36  ;;  %v1483_v45 = vpop.eup %1482  ;;  %1028 = vst [vmem:[%s1703_s29 + $0x190] sm:$0xff] %v1481_v42  ;;  %1508 = vtanh.f32 %v871_v38  ;;  %v755_v46 = vpop.f32.mrf.mxu0 }
 0x113   : > { %v883_v47 = vpop.f32.mrf.mxu1  ;;  %v1485_v48 = vpop.eup %1484  ;;  %994 = vst [vmem:[%s1703_s29 + $0x80] sm:$0xff] %v1483_v45  ;;  %1510 = vtanh.f32 %v764_v43  ;;  %v756_v49 = vadd.f32 %v1683_v36, %v755_v46 }
 0x114   : > { %v884_v50 = vadd.f32 %v1683_v36, %v883_v47  ;;  %v1487_v51 = vpop.eup %1486  ;;  %1026 = vst [vmem:[%s1703_s29 + $0x180] sm:$0xff] %v1485_v48  ;;  %1512 = vtanh.f32 %v892_v44  ;;  %v1309_v52 = vpop.f32.mrf.mxu0 }
 0x115   : > { %v1341_v53 = vpop.f32.mrf.mxu1  ;;  %v1489_v54 = vpop.eup %1488  ;;  %997 = vst [vmem:[%s1703_s29 + $0x98] sm:$0xff] %v1487_v51  ;;  %1514 = vtanh.f32 %v756_v49  ;;  %v767_v55 = vadd.f32 %v1309_v52, %v1683_v36 }
 0x116   : > { %v895_v56 = vadd.f32 %v1341_v53, %v1683_v36  ;;  %v1491_v57 = vpop.eup %1490  ;;  %1029 = vst [vmem:[%s1703_s29 + $0x198] sm:$0xff] %v1489_v54  ;;  %1516 = vtanh.f32 %v884_v50  ;;  %v758_v58 = vpop.f32.mrf.mxu0 }
 0x117   : > { %v886_v59 = vpop.f32.mrf.mxu1  ;;  %v1493_v60 = vpop.eup %1492  ;;  %995 = vst [vmem:[%s1703_s29 + $0x88] sm:$0xff] %v1491_v57  ;;  %1518 = vtanh.f32 %v767_v55  ;;  %v759_v61 = vadd.f32 %v1683_v36, %v758_v58 }
 0x118   : > { %v887_v62 = vadd.f32 %v1683_v36, %v886_v59  ;;  %v1495_v63 = vpop.eup %1494  ;;  %1027 = vst [vmem:[%s1703_s29 + $0x188] sm:$0xff] %v1493_v60  ;;  %1520 = vtanh.f32 %v895_v56  ;;  %v1312_v0 = vpop.f32.mrf.mxu0 }
 0x119   : > { %v1344_v1 = vpop.f32.mrf.mxu1  ;;  %v1497_v2 = vpop.eup %1496  ;;  %1000 = vst [vmem:[%s1703_s29 + $0xb0] sm:$0xff] %v1495_v63  ;;  %1522 = vtanh.f32 %v759_v61  ;;  %v780_v3 = vadd.f32 %v1312_v0, %v1683_v36 }
 0x11a   : > { %v908_v4 = vadd.f32 %v1344_v1, %v1683_v36  ;;  %v1499_v5 = vpop.eup %1498  ;;  %1032 = vst [vmem:[%s1703_s29 + $0x1b0] sm:$0xff] %v1497_v2  ;;  %1524 = vtanh.f32 %v887_v62  ;;  %v771_v6 = vpop.f32.mrf.mxu0 }
 0x11b   : > { %v899_v7 = vpop.f32.mrf.mxu1  ;;  %v1501_v8 = vpop.eup %1500  ;;  %998 = vst [vmem:[%s1703_s29 + $0xa0] sm:$0xff] %v1499_v5  ;;  %1526 = vtanh.f32 %v780_v3  ;;  %v772_v9 = vadd.f32 %v1683_v36, %v771_v6 }
 0x11c   : > { %v900_v10 = vadd.f32 %v1683_v36, %v899_v7  ;;  %v1503_v11 = vpop.eup %1502  ;;  %1030 = vst [vmem:[%s1703_s29 + $0x1a0] sm:$0xff] %v1501_v8  ;;  %1528 = vtanh.f32 %v908_v4  ;;  %v1313_v12 = vpop.f32.mrf.mxu0 }
 0x11d   : > { %v1345_v13 = vpop.f32.mrf.mxu1  ;;  %v1505_v14 = vpop.eup %1504  ;;  %1001 = vst [vmem:[%s1703_s29 + $0xb8] sm:$0xff] %v1503_v11  ;;  %1530 = vtanh.f32 %v772_v9  ;;  %v783_v15 = vadd.f32 %v1313_v12, %v1683_v36 }
 0x11e   : > { %v911_v16 = vadd.f32 %v1345_v13, %v1683_v36  ;;  %v1507_v17 = vpop.eup %1506  ;;  %1033 = vst [vmem:[%s1703_s29 + $0x1b8] sm:$0xff] %v1505_v14  ;;  %1532 = vtanh.f32 %v900_v10  ;;  %v774_v18 = vpop.f32.mrf.mxu0 }
 0x11f   : > { %v902_v19 = vpop.f32.mrf.mxu1  ;;  %v1509_v20 = vpop.eup %1508  ;;  %999 = vst [vmem:[%s1703_s29 + $0xa8] sm:$0xff] %v1507_v17  ;;  %1534 = vtanh.f32 %v783_v15  ;;  %v775_v21 = vadd.f32 %v1683_v36, %v774_v18 }
 0x120   : > { %v903_v22 = vadd.f32 %v1683_v36, %v902_v19  ;;  %v1511_v23 = vpop.eup %1510  ;;  %1031 = vst [vmem:[%s1703_s29 + $0x1a8] sm:$0xff] %v1509_v20  ;;  %1536 = vtanh.f32 %v911_v16 }
 0x121   : > { %v1513_v24 = vpop.eup %1512  ;;  %1004 = vst [vmem:[%s1703_s29 + $0xd0] sm:$0xff] %v1511_v23  ;;  %1538 = vtanh.f32 %v775_v21 }
 0x122   : > { %v1515_v25 = vpop.eup %1514  ;;  %1036 = vst [vmem:[%s1703_s29 + $0x1d0] sm:$0xff] %v1513_v24  ;;  %1540 = vtanh.f32 %v903_v22 }
 0x123   : > { %v1517_v26 = vpop.eup %1516  ;;  %1002 = vst [vmem:[%s1703_s29 + $0xc0] sm:$0xff] %v1515_v25 }
 0x124   : > { %v1519_v27 = vpop.eup %1518  ;;  %1034 = vst [vmem:[%s1703_s29 + $0x1c0] sm:$0xff] %v1517_v26 }
 0x125   : > { %v1521_v36 = vpop.eup %1520  ;;  %1005 = vst [vmem:[%s1703_s29 + $0xd8] sm:$0xff] %v1519_v27 }
 0x126   : > { %v1523_v28 = vpop.eup %1522  ;;  %1037 = vst [vmem:[%s1703_s29 + $0x1d8] sm:$0xff] %v1521_v36 }
 0x127   : > { %v1525_v29 = vpop.eup %1524  ;;  %1003 = vst [vmem:[%s1703_s29 + $0xc8] sm:$0xff] %v1523_v28 }
 0x128   : > { %v1527_v30 = vpop.eup %1526  ;;  %1035 = vst [vmem:[%s1703_s29 + $0x1c8] sm:$0xff] %v1525_v29 }
 0x129   : > { %v1529_v31 = vpop.eup %1528  ;;  %1008 = vst [vmem:[%s1703_s29 + $0xf0] sm:$0xff] %v1527_v30 }
 0x12a   : > { %v1531_v32 = vpop.eup %1530  ;;  %1040 = vst [vmem:[%s1703_s29 + $0x1f0] sm:$0xff] %v1529_v31 }
 0x12b   : > { %v1533_v33 = vpop.eup %1532  ;;  %1006 = vst [vmem:[%s1703_s29 + $0xe0] sm:$0xff] %v1531_v32 }
 0x12c   : > { %v1535_v34 = vpop.eup %1534  ;;  %1038 = vst [vmem:[%s1703_s29 + $0x1e0] sm:$0xff] %v1533_v33 }
 0x12d   : > { %v1537_v35 = vpop.eup %1536  ;;  %1009 = vst [vmem:[%s1703_s29 + $0xf8] sm:$0xff] %v1535_v34 }
 0x12e   : > { %v1539_v37 = vpop.eup %1538  ;;  %1041 = vst [vmem:[%s1703_s29 + $0x1f8] sm:$0xff] %v1537_v35 }
 0x12f   : > { %v1541_v38 = vpop.eup %1540  ;;  %1007 = vst [vmem:[%s1703_s29 + $0xe8] sm:$0xff] %v1539_v37 }
 0x130   : > { %1039 = vst [vmem:[%s1703_s29 + $0x1e8] sm:$0xff] %v1541_v38 }
 0x131 PF: > { %s13_s14 = sadd.s32 1, %s1564_s14   ;;  %s1832_s12 = smov %s1560_s13 }
 0x132   : > { %p10_p5 = scmp.ge.s32.totalorder %s13_s14, 6   ;;  %s1833_s13 = smov %s1835_s15 }
 0x134   :  { %12 = sbr.rel (!%p10_p5) target bundleno = 2 (0x2), region = 65 }

</bundles_post_ra>
